<compile_context>
chip_gen: v7x
topology: tpu7x:2x2x1
jax: 0.10.0
libtpu: 0.0.40
codegen_flags: <defaults>
</compile_context>

<pallas_src>
import jax
import jax.numpy as jnp
from jax.experimental import pallas as pl
from jax.experimental.pallas import tpu as pltpu

EPS = 1e-5


def _round_up(a, b):
    return (a + b - 1) // b * b


def _fold_bn(w, b, gamma, beta, mean, var):
    """Fold inference-mode BatchNorm into a (C_out, C_in) weight + bias."""
    s = gamma / jnp.sqrt(var + EPS)                        # (C_out,)
    return w * s[:, None], b * s + (beta - mean * s)


def _const_spec(shape):
    """BlockSpec for a grid-invariant operand; single-buffered if supported."""
    index_map = lambda b, k: (0,) * len(shape)
    try:
        return pl.BlockSpec(shape, index_map, pipeline_mode=pl.Buffered(1))
    except TypeError:  # older BlockSpec without pipeline_mode kwarg
        return pl.BlockSpec(shape, index_map)


# ----------------------------------------------------------------------------
# Kernel 1: per-point MLP + running max-pool over point tiles.
# ----------------------------------------------------------------------------
def _make_point_kernel(n_tile, valid_n, padded):
    n_groups = n_tile // 128

    def kernel(x_ref, w1_ref, b1_ref, w2_ref, b2_ref, w3_ref, b3_ref,
               feat_ref, acc_ref):
        nt = pl.program_id(1)

        @pl.when(nt == 0)
        def _init():
            acc_ref[...] = jnp.full(acc_ref.shape, -jnp.inf, acc_ref.dtype)

        x = x_ref[0]                                       # (3, NT) f32
        w1 = w1_ref[...]                                   # (64, 3)
        # conv1 (3 -> 64): K=3 done as VPU broadcast FMAs (keeps the MXU free).
        h = (w1[:, 0:1] * x[0:1, :]
             + w1[:, 1:2] * x[1:2, :]
             + w1[:, 2:3] * x[2:3, :])
        h = jnp.maximum(h + b1_ref[...], 0.0)              # (64, NT)

        # conv2 (64 -> 128), conv3 (128 -> 1024): bf16 MXU, f32 accumulate.
        h = jnp.dot(w2_ref[...], h.astype(jnp.bfloat16),
                    preferred_element_type=jnp.float32)
        h = jnp.maximum(h + b2_ref[...], 0.0)              # (128, NT)
        h = jnp.dot(w3_ref[...], h.astype(jnp.bfloat16),
                    preferred_element_type=jnp.float32)
        h = jnp.maximum(h + b3_ref[...], 0.0)              # (1024, NT)

        if padded:
            # Mask padded point lanes *before* pooling: relu(bias) on the
            # zero-padded columns can otherwise exceed the true per-channel max.
            col = nt * n_tile + jax.lax.broadcasted_iota(
                jnp.int32, (1, n_tile), 1)
            h = jnp.where(col < valid_n, h, -jnp.inf)

        # Lane-dense running max: pure VPU maxes over 128-lane groups
        # (128-aligned lane slices are just vreg selections). The single
        # cross-lane (XLU) reduce is deferred to the finalize step.
        m = h[:, 0:128]
        for g in range(1, n_groups):
            m = jnp.maximum(m, h[:, g * 128:(g + 1) * 128])
        acc_ref[...] = jnp.maximum(acc_ref[...], m)

        @pl.when(nt == pl.num_programs(1) - 1)
        def _finalize():
            feat_ref[0] = jnp.max(acc_ref[...], axis=1, keepdims=True)

    return kernel


# ----------------------------------------------------------------------------
# Kernel 2: FC head 1024 -> 512 -> 256 -> 9, batched over all B pooled features.
# ----------------------------------------------------------------------------
def _head_kernel(f_ref, w4_ref, b4_ref, w5_ref, b5_ref, w6_ref, b6_ref, o_ref):
    g = jnp.dot(f_ref[...], w4_ref[...], preferred_element_type=jnp.float32)
    g = jnp.maximum(g + b4_ref[...], 0.0)                  # (B, 512)
    g = jnp.dot(g, w5_ref[...], preferred_element_type=jnp.float32)
    g = jnp.maximum(g + b5_ref[...], 0.0)                  # (B, 256)
    o_ref[...] = (jnp.dot(g, w6_ref[...], preferred_element_type=jnp.float32)
                  + b6_ref[...])                           # (B, 9), identity folded in


def stn3d_forward(x, params, *, n_tile=None):
    """x: (B, 3, N) float32 (PyTorch Conv1d layout). Returns (B, 3, 3)."""
    B, C_in, N = x.shape
    assert C_in == 3

    p = params
    w1, b1 = _fold_bn(p["w1"], p["b1"], *p["bn1"])
    w2, b2 = _fold_bn(p["w2"], p["b2"], *p["bn2"])
    w3, b3 = _fold_bn(p["w3"], p["b3"], *p["bn3"])
    w4, b4 = _fold_bn(p["w4"], p["b4"], *p["bn4"])
    w5, b5 = _fold_bn(p["w5"], p["b5"], *p["bn5"])
    w6, b6 = p["w6"], p["b6"]

    # bf16 weights for the two big per-point matmuls (bf16-native MXU path).
    w2 = w2.astype(jnp.bfloat16)
    w3 = w3.astype(jnp.bfloat16)

    # Point-axis tiling: 128-aligned tile, N padded up to a tile multiple.
    if n_tile is None:
        n128 = _round_up(N, 128)
        n_tile = next(t for t in (2048, 1024, 512, 256, 128) if n128 % t == 0)
    assert n_tile % 128 == 0 and n_tile >= 128
    n_pad = _round_up(N, n_tile)
    num_nt = n_pad // n_tile
    if n_pad != N:
        x = jnp.pad(x, ((0, 0), (0, 0), (0, n_pad - N)))

    col = lambda v: v.reshape(-1, 1)
    row = lambda v: v.reshape(1, -1)

    kernel = _make_point_kernel(n_tile, N, n_pad != N)

    flops = 2 * B * n_pad * (3 * 64 + 64 * 128 + 128 * 1024)
    bytes_accessed = (B * 3 * n_pad * 4 + B * 1024 * 4
                      + w1.size * 4 + w2.size * 2 + w3.size * 2
                      + (b1.size + b2.size + b3.size) * 4)

    feat = pl.pallas_call(
        kernel,
        out_shape=jax.ShapeDtypeStruct((B, 1024, 1), jnp.float32),
        grid_spec=pltpu.PrefetchScalarGridSpec(
            num_scalar_prefetch=0,
            grid=(B, num_nt),
            in_specs=[
                pl.BlockSpec((1, 3, n_tile), lambda b, k: (b, 0, k)),
                _const_spec((64, 3)), _const_spec((64, 1)),
                _const_spec((128, 64)), _const_spec((128, 1)),
                _const_spec((1024, 128)), _const_spec((1024, 1)),
            ],
            out_specs=pl.BlockSpec((1, 1024, 1), lambda b, k: (b, 0, 0)),
            scratch_shapes=[pltpu.VMEM((1024, 128), jnp.float32)],
        ),
        compiler_params=pltpu.CompilerParams(
            dimension_semantics=("parallel", "arbitrary"),
            vmem_limit_bytes=40 * 1024 * 1024),
        cost_estimate=pl.CostEstimate(
            flops=flops, transcendentals=0, bytes_accessed=bytes_accessed),
    )(x, w1, col(b1), w2, col(b2), w3, col(b3))

    feat = feat.reshape(B, 1024)

    # FC head, batched over B in a single tiny pallas_call (full lane
    # utilization); the 3x3 identity is folded into the fc3 bias.
    b6_eye = b6 + jnp.eye(3, dtype=jnp.float32).reshape(9)
    out9 = pl.pallas_call(
        _head_kernel,
        out_shape=jax.ShapeDtypeStruct((B, 9), jnp.float32),
    )(feat, w4.T, row(b4), w5.T, row(b5), w6.T, row(b6_eye))

    return out9.reshape(B, 3, 3)


def init_params(key):
    ks = jax.random.split(key, 17)
    n = lambda k, shape, s=0.05: s * jax.random.normal(k, shape, jnp.float32)

    def bn_stats(k, c):
        k1, k2, k3, k4 = jax.random.split(k, 4)
        gamma = 1.0 + 0.1 * jax.random.normal(k1, (c,), jnp.float32)
        beta = 0.05 * jax.random.normal(k2, (c,), jnp.float32)
        mean = 0.05 * jax.random.normal(k3, (c,), jnp.float32)
        var = 0.9 + 0.2 * jax.random.uniform(k4, (c,), jnp.float32)
        return gamma, beta, mean, var

    return {
        # PyTorch-style (C_out, C_in) weights (Conv1d k=1 / Linear).
        "w1": n(ks[0], (64, 3)),     "b1": n(ks[1], (64,)),
        "w2": n(ks[2], (128, 64)),   "b2": n(ks[3], (128,)),
        "w3": n(ks[4], (1024, 128)), "b3": n(ks[5], (1024,)),
        "w4": n(ks[6], (512, 1024)), "b4": n(ks[7], (512,)),
        "w5": n(ks[8], (256, 512)),  "b5": n(ks[9], (256,)),
        "w6": n(ks[10], (9, 256)),   "b6": n(ks[11], (9,)),
        "bn1": bn_stats(ks[12], 64),
        "bn2": bn_stats(ks[13], 128),
        "bn3": bn_stats(ks[14], 1024),
        "bn4": bn_stats(ks[15], 512),
        "bn5": bn_stats(ks[16], 256),
    }


def _reference_forward(x, params):
    """Pure-JAX f32 reference of the same (eval-mode BN) forward."""
    p = params
    w1, b1 = _fold_bn(p["w1"], p["b1"], *p["bn1"])
    w2, b2 = _fold_bn(p["w2"], p["b2"], *p["bn2"])
    w3, b3 = _fold_bn(p["w3"], p["b3"], *p["bn3"])
    w4, b4 = _fold_bn(p["w4"], p["b4"], *p["bn4"])
    w5, b5 = _fold_bn(p["w5"], p["b5"], *p["bn5"])
    h = jnp.transpose(x, (0, 2, 1))                        # (B, N, 3)
    h = jax.nn.relu(h @ w1.T + b1)
    h = jax.nn.relu(h @ w2.T + b2)
    h = jax.nn.relu(h @ w3.T + b3)
    h = jnp.max(h, axis=1)                                 # (B, 1024)
    h = jax.nn.relu(h @ w4.T + b4)
    h = jax.nn.relu(h @ w5.T + b5)
    h = h @ p["w6"].T + p["b6"]
    return (h + jnp.eye(3, dtype=jnp.float32).reshape(1, 9)).reshape(-1, 3, 3)


if __name__ == "__main__":
    key = jax.random.PRNGKey(0)
    kx, kp = jax.random.split(key)

    # B=4 exercises the parallel batch axis (>=2 steps for v7x megacore).
    # N=1000 with an explicit 256-point tile exercises both the multi-tile
    # running-max path and the padded-lane masking (1000 -> 1024 padded).
    B, N = 4, 1000
    x = jax.random.normal(kx, (B, 3, N), jnp.float32)      # PyTorch (B, C, N)
    params = init_params(kp)

    fwd = jax.jit(lambda x_, p_: stn3d_forward(x_, p_, n_tile=256))
    out = jax.block_until_ready(fwd(x, params))            # (B, 3, 3)

    ref = _reference_forward(x, params)
    assert out.shape == (B, 3, 3)
    # Tolerance relaxed vs the pure-f32 reference because conv2/conv3 run in
    # bf16 on the MXU before the max-pool (observed error ~1e-3; near-tie
    # points can in principle flip the argmax).
    err = float(jnp.max(jnp.abs(out - ref)))
    assert jnp.allclose(out, ref, atol=1e-2, rtol=1e-2), (
        f"mismatch vs reference, max abs err {err}")

    print("KERNEL_OK")
</pallas_src>

<mosaic_0001>
module attributes {stable_mosaic.version = 11 : i64} {
  func.func @kernel(%arg0: i32, %arg1: i32, %arg2: memref<1x3x256xf32, #tpu.memory_space<vmem>>, %arg3: memref<64x3xf32, #tpu.memory_space<vmem>>, %arg4: memref<64x1xf32, #tpu.memory_space<vmem>>, %arg5: memref<128x64xbf16, #tpu.memory_space<vmem>>, %arg6: memref<128x1xf32, #tpu.memory_space<vmem>>, %arg7: memref<1024x128xbf16, #tpu.memory_space<vmem>>, %arg8: memref<1024x1xf32, #tpu.memory_space<vmem>>, %arg9: memref<1x1024x1xf32, #tpu.memory_space<vmem>>, %arg10: memref<1024x128xf32, #tpu.memory_space<vmem>>) attributes {dimension_semantics = [#tpu.dimension_semantics<parallel>, #tpu.dimension_semantics<arbitrary>], iteration_bounds = array<i64: 4, 4>, scalar_prefetch = 0 : i64, scratch_operands = 1 : i64, tpu.core_type = #tpu.core_type<tc>, window_params = [{transform_indices = @transform_0, window_bounds = array<i64: 1, 3, 256>}, {pipeline_mode = #tpu.pipeline_mode<synchronous>, transform_indices = @transform_1, window_bounds = array<i64: 64, 3>}, {pipeline_mode = #tpu.pipeline_mode<synchronous>, transform_indices = @transform_2, window_bounds = array<i64: 64, 1>}, {pipeline_mode = #tpu.pipeline_mode<synchronous>, transform_indices = @transform_3, window_bounds = array<i64: 128, 64>}, {pipeline_mode = #tpu.pipeline_mode<synchronous>, transform_indices = @transform_4, window_bounds = array<i64: 128, 1>}, {pipeline_mode = #tpu.pipeline_mode<synchronous>, transform_indices = @transform_5, window_bounds = array<i64: 1024, 128>}, {pipeline_mode = #tpu.pipeline_mode<synchronous>, transform_indices = @transform_6, window_bounds = array<i64: 1024, 1>}, {transform_indices = @transform_7, window_bounds = array<i64: 1, 1024, 1>}]} {
    %c0_i32 = arith.constant 0 : i32
    %0 = arith.cmpi eq, %arg1, %c0_i32 : i32
    %1 = arith.extui %0 : i1 to i32
    %c0_i32_0 = arith.constant 0 : i32
    %2 = arith.cmpi ne, %1, %c0_i32_0 : i32
    scf.if %2 {
      %cst_25 = arith.constant 0xFF800000 : f32
      %63 = vector.broadcast %cst_25 : f32 to vector<1024x128xf32>
      %c0_26 = arith.constant 0 : index
      %c0_27 = arith.constant 0 : index
      %64 = vector.load %arg10[%c0_26, %c0_27] : memref<1024x128xf32, #tpu.memory_space<vmem>>, vector<1024x128xf32>
      tpu.vector_store %arg10[%c0_26, %c0_27], %63 {strides = array<i32>} : memref<1024x128xf32, #tpu.memory_space<vmem>>, vector<1024x128xf32>,
    } else {
    }
    %c0 = arith.constant 0 : index
    %c0_1 = arith.constant 0 : index
    %c0_2 = arith.constant 0 : index
    %3 = vector.load %arg2[%c0, %c0_1, %c0_2] : memref<1x3x256xf32, #tpu.memory_space<vmem>>, vector<1x3x256xf32>
    %4 = vector.shape_cast %3 : vector<1x3x256xf32> to vector<3x256xf32>
    %c0_3 = arith.constant 0 : index
    %c0_4 = arith.constant 0 : index
    %5 = vector.load %arg3[%c0_3, %c0_4] : memref<64x3xf32, #tpu.memory_space<vmem>>, vector<64x3xf32>
    %6 = vector.extract_strided_slice %5 {offsets = [0, 0], sizes = [64, 1], strides = [1, 1]} : vector<64x3xf32> to vector<64x1xf32>
    %7 = vector.extract_strided_slice %4 {offsets = [0, 0], sizes = [1, 256], strides = [1, 1]} : vector<3x256xf32> to vector<1x256xf32>
    %8 = vector.broadcast %6 : vector<64x1xf32> to vector<64x256xf32>
    %9 = vector.broadcast %7 : vector<1x256xf32> to vector<64x256xf32>
    %10 = arith.mulf %8, %9 : vector<64x256xf32>
    %11 = vector.extract_strided_slice %5 {offsets = [0, 1], sizes = [64, 1], strides = [1, 1]} : vector<64x3xf32> to vector<64x1xf32>
    %12 = vector.extract_strided_slice %4 {offsets = [1, 0], sizes = [1, 256], strides = [1, 1]} : vector<3x256xf32> to vector<1x256xf32>
    %13 = vector.broadcast %11 : vector<64x1xf32> to vector<64x256xf32>
    %14 = vector.broadcast %12 : vector<1x256xf32> to vector<64x256xf32>
    %15 = arith.mulf %13, %14 : vector<64x256xf32>
    %16 = arith.addf %10, %15 : vector<64x256xf32>
    %17 = vector.extract_strided_slice %5 {offsets = [0, 2], sizes = [64, 1], strides = [1, 1]} : vector<64x3xf32> to vector<64x1xf32>
    %18 = vector.extract_strided_slice %4 {offsets = [2, 0], sizes = [1, 256], strides = [1, 1]} : vector<3x256xf32> to vector<1x256xf32>
    %19 = vector.broadcast %17 : vector<64x1xf32> to vector<64x256xf32>
    %20 = vector.broadcast %18 : vector<1x256xf32> to vector<64x256xf32>
    %21 = arith.mulf %19, %20 : vector<64x256xf32>
    %22 = arith.addf %16, %21 : vector<64x256xf32>
    %c0_5 = arith.constant 0 : index
    %c0_6 = arith.constant 0 : index
    %23 = vector.load %arg4[%c0_5, %c0_6] : memref<64x1xf32, #tpu.memory_space<vmem>>, vector<64x1xf32>
    %24 = vector.broadcast %23 : vector<64x1xf32> to vector<64x256xf32>
    %25 = arith.addf %22, %24 : vector<64x256xf32>
    %cst = arith.constant 0.000000e+00 : f32
    %26 = vector.broadcast %cst : f32 to vector<64x256xf32>
    %27 = arith.maximumf %25, %26 : vector<64x256xf32>
    %c0_7 = arith.constant 0 : index
    %c0_8 = arith.constant 0 : index
    %28 = vector.load %arg5[%c0_7, %c0_8] : memref<128x64xbf16, #tpu.memory_space<vmem>>, vector<128x64xbf16>
    %29 = arith.truncf %27 : vector<64x256xf32> to vector<64x256xbf16>
    %cst_9 = arith.constant dense<0.000000e+00> : vector<128x256xf32>
    %30 = tpu.matmul %28, %29, %cst_9 {dimension_numbers = #tpu.dot_dimension_numbers<[1], [0], [0], [1], [0, 0, 1, 1], [], []>} : vector<128x64xbf16>, vector<64x256xbf16>, vector<128x256xf32> -> vector<128x256xf32>
    %c0_10 = arith.constant 0 : index
    %c0_11 = arith.constant 0 : index
    %31 = vector.load %arg6[%c0_10, %c0_11] : memref<128x1xf32, #tpu.memory_space<vmem>>, vector<128x1xf32>
    %32 = vector.broadcast %31 : vector<128x1xf32> to vector<128x256xf32>
    %33 = arith.addf %30, %32 : vector<128x256xf32>
    %cst_12 = arith.constant 0.000000e+00 : f32
    %34 = vector.broadcast %cst_12 : f32 to vector<128x256xf32>
    %35 = arith.maximumf %33, %34 : vector<128x256xf32>
    %c0_13 = arith.constant 0 : index
    %c0_14 = arith.constant 0 : index
    %36 = vector.load %arg7[%c0_13, %c0_14] : memref<1024x128xbf16, #tpu.memory_space<vmem>>, vector<1024x128xbf16>
    %37 = arith.truncf %35 : vector<128x256xf32> to vector<128x256xbf16>
    %cst_15 = arith.constant dense<0.000000e+00> : vector<1024x256xf32>
    %38 = tpu.matmul %36, %37, %cst_15 {dimension_numbers = #tpu.dot_dimension_numbers<[1], [0], [0], [1], [0, 0, 1, 1], [], []>} : vector<1024x128xbf16>, vector<128x256xbf16>, vector<1024x256xf32> -> vector<1024x256xf32>
    %c0_16 = arith.constant 0 : index
    %c0_17 = arith.constant 0 : index
    %39 = vector.load %arg8[%c0_16, %c0_17] : memref<1024x1xf32, #tpu.memory_space<vmem>>, vector<1024x1xf32>
    %40 = vector.broadcast %39 : vector<1024x1xf32> to vector<1024x256xf32>
    %41 = arith.addf %38, %40 : vector<1024x256xf32>
    %cst_18 = arith.constant 0.000000e+00 : f32
    %42 = vector.broadcast %cst_18 : f32 to vector<1024x256xf32>
    %43 = arith.maximumf %41, %42 : vector<1024x256xf32>
    %c256_i32 = arith.constant 256 : i32
    %44 = arith.muli %arg1, %c256_i32 : i32
    %45 = tpu.iota {dimensions = array<i32: 1>} : vector<1x256xi32>
    %46 = vector.broadcast %44 : i32 to vector<1x256xi32>
    %47 = arith.addi %46, %45 : vector<1x256xi32>
    %c1000_i32 = arith.constant 1000 : i32
    %48 = vector.broadcast %c1000_i32 : i32 to vector<1x256xi32>
    %49 = arith.cmpi slt, %47, %48 : vector<1x256xi32>
    %cst_19 = arith.constant 0xFF800000 : f32
    %50 = vector.shape_cast %49 : vector<1x256xi1> to vector<1x256xi1>
    %51 = vector.broadcast %50 : vector<1x256xi1> to vector<1024x256xi1>
    %52 = vector.broadcast %cst_19 : f32 to vector<1024x256xf32>
    %53 = arith.select %51, %43, %52 : vector<1024x256xi1>, vector<1024x256xf32>
    %54 = vector.extract_strided_slice %53 {offsets = [0, 0], sizes = [1024, 128], strides = [1, 1]} : vector<1024x256xf32> to vector<1024x128xf32>
    %55 = vector.extract_strided_slice %53 {offsets = [0, 128], sizes = [1024, 128], strides = [1, 1]} : vector<1024x256xf32> to vector<1024x128xf32>
    %56 = arith.maximumf %54, %55 : vector<1024x128xf32>
    %c0_20 = arith.constant 0 : index
    %c0_21 = arith.constant 0 : index
    %57 = vector.load %arg10[%c0_20, %c0_21] : memref<1024x128xf32, #tpu.memory_space<vmem>>, vector<1024x128xf32>
    %58 = arith.maximumf %57, %56 : vector<1024x128xf32>
    %c0_22 = arith.constant 0 : index
    %c0_23 = arith.constant 0 : index
    %59 = vector.load %arg10[%c0_22, %c0_23] : memref<1024x128xf32, #tpu.memory_space<vmem>>, vector<1024x128xf32>
    tpu.vector_store %arg10[%c0_22, %c0_23], %58 {strides = array<i32>} : memref<1024x128xf32, #tpu.memory_space<vmem>>, vector<1024x128xf32>,
    %c3_i32 = arith.constant 3 : i32
    %60 = arith.cmpi eq, %arg1, %c3_i32 : i32
    %61 = arith.extui %60 : i1 to i32
    %c0_i32_24 = arith.constant 0 : i32
    %62 = arith.cmpi ne, %61, %c0_i32_24 : i32
    scf.if %62 {
      %c0_25 = arith.constant 0 : index
      %c0_26 = arith.constant 0 : index
      %63 = vector.load %arg10[%c0_25, %c0_26] : memref<1024x128xf32, #tpu.memory_space<vmem>>, vector<1024x128xf32>
      %cst_27 = arith.constant dense<0xFF800000> : vector<1024xf32>
      %64 = vector.multi_reduction <maximumf>, %63, %cst_27 [1] : vector<1024x128xf32> to vector<1024xf32>
      %65 = vector.shape_cast %64 : vector<1024xf32> to vector<1024x1xf32>
      %c0_28 = arith.constant 0 : index
      %c0_29 = arith.constant 0 : index
      %c0_30 = arith.constant 0 : index
      %66 = vector.load %arg9[%c0_28, %c0_29, %c0_30] : memref<1x1024x1xf32, #tpu.memory_space<vmem>>, vector<1x1024x1xf32>
      %67 = vector.shape_cast %66 : vector<1x1024x1xf32> to vector<1024x1xf32>
      %68 = vector.shape_cast %65 : vector<1024x1xf32> to vector<1x1024x1xf32>
      tpu.vector_store %arg9[%c0_28, %c0_29, %c0_30], %68 {strides = array<i32>} : memref<1x1024x1xf32, #tpu.memory_space<vmem>>, vector<1x1024x1xf32>,
    } else {
    }
    return
  }
  func.func @transform_0(%arg0: i32, %arg1: i32) -> (i32, i32, i32) {
    %c0_i32 = arith.constant 0 : i32
    %c0_i32_0 = arith.constant 0 : i32
    return %arg0, %c0_i32, %arg1 : i32, i32, i32
  }
  func.func @transform_1(%arg0: i32, %arg1: i32) -> (i32, i32) {
    %c0_i32 = arith.constant 0 : i32
    %c0_i32_0 = arith.constant 0 : i32
    %c0_i32_1 = arith.constant 0 : i32
    return %c0_i32, %c0_i32_0 : i32, i32
  }
  func.func @transform_2(%arg0: i32, %arg1: i32) -> (i32, i32) {
    %c0_i32 = arith.constant 0 : i32
    %c0_i32_0 = arith.constant 0 : i32
    %c0_i32_1 = arith.constant 0 : i32
    return %c0_i32, %c0_i32_0 : i32, i32
  }
  func.func @transform_3(%arg0: i32, %arg1: i32) -> (i32, i32) {
    %c0_i32 = arith.constant 0 : i32
    %c0_i32_0 = arith.constant 0 : i32
    %c0_i32_1 = arith.constant 0 : i32
    return %c0_i32, %c0_i32_0 : i32, i32
  }
  func.func @transform_4(%arg0: i32, %arg1: i32) -> (i32, i32) {
    %c0_i32 = arith.constant 0 : i32
    %c0_i32_0 = arith.constant 0 : i32
    %c0_i32_1 = arith.constant 0 : i32
    return %c0_i32, %c0_i32_0 : i32, i32
  }
  func.func @transform_5(%arg0: i32, %arg1: i32) -> (i32, i32) {
    %c0_i32 = arith.constant 0 : i32
    %c0_i32_0 = arith.constant 0 : i32
    %c0_i32_1 = arith.constant 0 : i32
    return %c0_i32, %c0_i32_0 : i32, i32
  }
  func.func @transform_6(%arg0: i32, %arg1: i32) -> (i32, i32) {
    %c0_i32 = arith.constant 0 : i32
    %c0_i32_0 = arith.constant 0 : i32
    %c0_i32_1 = arith.constant 0 : i32
    return %c0_i32, %c0_i32_0 : i32, i32
  }
  func.func @transform_7(%arg0: i32, %arg1: i32) -> (i32, i32, i32) {
    %c0_i32 = arith.constant 0 : i32
    %c0_i32_0 = arith.constant 0 : i32
    %c0_i32_1 = arith.constant 0 : i32
    return %arg0, %c0_i32, %c0_i32_0 : i32, i32, i32
  }
}

module attributes {stable_mosaic.version = 11 : i64} {
  func.func @_head_kernel(%arg0: memref<4x1024xf32, #tpu.memory_space<vmem>>, %arg1: memref<1024x512xf32, #tpu.memory_space<vmem>>, %arg2: memref<1x512xf32, #tpu.memory_space<vmem>>, %arg3: memref<512x256xf32, #tpu.memory_space<vmem>>, %arg4: memref<1x256xf32, #tpu.memory_space<vmem>>, %arg5: memref<256x9xf32, #tpu.memory_space<vmem>>, %arg6: memref<1x9xf32, #tpu.memory_space<vmem>>, %arg7: memref<4x9xf32, #tpu.memory_space<vmem>>) attributes {dimension_semantics = [], scalar_prefetch = 0 : i64, scratch_operands = 0 : i64, tpu.core_type = #tpu.core_type<tc>} {
    %c0 = arith.constant 0 : index
    %c0_0 = arith.constant 0 : index
    %0 = vector.load %arg0[%c0, %c0_0] : memref<4x1024xf32, #tpu.memory_space<vmem>>, vector<4x1024xf32>
    %c0_1 = arith.constant 0 : index
    %c0_2 = arith.constant 0 : index
    %1 = vector.load %arg1[%c0_1, %c0_2] : memref<1024x512xf32, #tpu.memory_space<vmem>>, vector<1024x512xf32>
    %cst = arith.constant dense<0.000000e+00> : vector<4x512xf32>
    %2 = tpu.matmul %0, %1, %cst {dimension_numbers = #tpu.dot_dimension_numbers<[1], [0], [0], [1], [0, 0, 1, 1], [], []>} : vector<4x1024xf32>, vector<1024x512xf32>, vector<4x512xf32> -> vector<4x512xf32>
    %c0_3 = arith.constant 0 : index
    %c0_4 = arith.constant 0 : index
    %3 = vector.load %arg2[%c0_3, %c0_4] : memref<1x512xf32, #tpu.memory_space<vmem>>, vector<1x512xf32>
    %4 = vector.broadcast %3 : vector<1x512xf32> to vector<4x512xf32>
    %5 = arith.addf %2, %4 : vector<4x512xf32>
    %cst_5 = arith.constant 0.000000e+00 : f32
    %6 = vector.broadcast %cst_5 : f32 to vector<4x512xf32>
    %7 = arith.maximumf %5, %6 : vector<4x512xf32>
    %c0_6 = arith.constant 0 : index
    %c0_7 = arith.constant 0 : index
    %8 = vector.load %arg3[%c0_6, %c0_7] : memref<512x256xf32, #tpu.memory_space<vmem>>, vector<512x256xf32>
    %cst_8 = arith.constant dense<0.000000e+00> : vector<4x256xf32>
    %9 = tpu.matmul %7, %8, %cst_8 {dimension_numbers = #tpu.dot_dimension_numbers<[1], [0], [0], [1], [0, 0, 1, 1], [], []>} : vector<4x512xf32>, vector<512x256xf32>, vector<4x256xf32> -> vector<4x256xf32>
    %c0_9 = arith.constant 0 : index
    %c0_10 = arith.constant 0 : index
    %10 = vector.load %arg4[%c0_9, %c0_10] : memref<1x256xf32, #tpu.memory_space<vmem>>, vector<1x256xf32>
    %11 = vector.broadcast %10 : vector<1x256xf32> to vector<4x256xf32>
    %12 = arith.addf %9, %11 : vector<4x256xf32>
    %cst_11 = arith.constant 0.000000e+00 : f32
    %13 = vector.broadcast %cst_11 : f32 to vector<4x256xf32>
    %14 = arith.maximumf %12, %13 : vector<4x256xf32>
    %c0_12 = arith.constant 0 : index
    %c0_13 = arith.constant 0 : index
    %15 = vector.load %arg5[%c0_12, %c0_13] : memref<256x9xf32, #tpu.memory_space<vmem>>, vector<256x9xf32>
    %cst_14 = arith.constant dense<0.000000e+00> : vector<4x9xf32>
    %16 = tpu.matmul %14, %15, %cst_14 {dimension_numbers = #tpu.dot_dimension_numbers<[1], [0], [0], [1], [0, 0, 1, 1], [], []>} : vector<4x256xf32>, vector<256x9xf32>, vector<4x9xf32> -> vector<4x9xf32>
    %c0_15 = arith.constant 0 : index
    %c0_16 = arith.constant 0 : index
    %17 = vector.load %arg6[%c0_15, %c0_16] : memref<1x9xf32, #tpu.memory_space<vmem>>, vector<1x9xf32>
    %18 = vector.broadcast %17 : vector<1x9xf32> to vector<4x9xf32>
    %19 = arith.addf %16, %18 : vector<4x9xf32>
    %c0_17 = arith.constant 0 : index
    %c0_18 = arith.constant 0 : index
    %20 = vector.load %arg7[%c0_17, %c0_18] : memref<4x9xf32, #tpu.memory_space<vmem>>, vector<4x9xf32>
    tpu.vector_store %arg7[%c0_17, %c0_18], %19 {strides = array<i32>} : memref<4x9xf32, #tpu.memory_space<vmem>>, vector<4x9xf32>,
    return
  }
}

</mosaic_0001>

<bundles_post_ra>
// kernel: _lambda_.2
= control target key start
LH: loop header
LB: loop body
LE: loop exit
PB: predicated region body
PF: predicated region fallthrough
CT: control target
= control target key end

     0   :  { %s5020_s24 = smov 0   ;;  %s5022_s25 = smov 0   ;;  %s7245_s0 = inlined_call_operand.vmem [shape: f32[4,3,1024], index: 0, kind: input, shape index: {}]   ;;  %s7246_s1 = inlined_call_operand.vmem [shape: f32[64,3], index: 1, kind: input, shape index: {}]   ;;  %s7247_s2 = inlined_call_operand.vmem [shape: f32[64,1], index: 2, kind: input, shape index: {}]   ;;  %s7248_s3 = inlined_call_operand.vmem [shape: bf16[128,64], index: 3, kind: input, shape index: {}]   ;;  %s7249_s4 = inlined_call_operand.vmem [shape: f32[128,1], index: 4, kind: input, shape index: {}]   ;;  %s7250_s5 = inlined_call_operand.vmem [shape: bf16[1024,128], index: 5, kind: input, shape index: {}]   ;;  %s7251_s6 = inlined_call_operand.vmem [shape: f32[1024,1], index: 6, kind: input, shape index: {}]   ;;  %s7252_s7 = inlined_call_operand.vmem [shape: f32[4,1024,1], index: 7, kind: output, shape index: {}]  }
   0x1   :  { %s5024_s26 = smov 0   ;;  %s5026_s27 = smov 0  }
   0x2   :  { %s5028_s28 = smov 0  }
   0x3 LB: > { %s26_s29 = sadd.s32 1, %s4966_s26  ;;  %s29_s30 = sadd.s32 1, %s4970_s27  ;;  %s4974_s28 = sphi %s5028_s28, %s17_s28   ;;  %s4970_s27 = sphi %s5026_s27, %s7336_s27   ;;  %s4966_s26 = sphi %s5024_s26, %s7335_s26   ;;  %s4962_s25 = sphi %s5022_s25, %s7334_s25   ;;  %s4958_s24 = sphi %s5020_s24, %s7333_s24  }
   0x4   : > { %p27_p0 = scmp.ge.s32.totalorder %s26_s29, 4  ;;  %p4697_p1 = scmp.ge.s32.totalorder %s4974_s28, 1 }
   0x5   : > { %p256_p2 = scmp.lt.s32.totalorder %s4974_s28, 17 }
   0x6   : > { %s7338_s29 = smov (%p27_p0, %s26_s29), 0  ;;  %s7340_s30 = smov (!%p27_p0, %s29_s30), %s4970_s27 }
   0x7   : > { %p257_p3 = pnand %p4697_p1, %p256_p2  ;;  %p31_p4 = scmp.ge.s32.totalorder %s7340_s30, 4 }
   0x9   : > { %s7342_s30 = smov (%p31_p4, %s7340_s30), 0  ;;  %260 = sbr.rel (%p257_p3) target bundleno = 1461 (0x5b5), region = 48 }
  0x10   : > { %s4698_s8 = sshll.u32 %s4958_s24, 1  ;;  %p293_p5 = scmp.lt.s32.totalorder %s4962_s25, 3 }
  0x11   : > { %p295_p6 = scmp.lt.s32.totalorder %s4698_s8, 7  ;;  %p4703_p7 = scmp.ne.s32.totalorder %s4958_s24, 0 }
  0x12   : > { %s7344_s25 = smov (!%p293_p5, %s4962_s25), 3  ;;  %v4976_v0 = vmov (!%p4703_p7), -inf  }
  0x13   : > { %s7346_s8 = smov (!%p295_p6, %s4698_s8), 7  ;;  %s4699_s9 = sshll.u32 %s7344_s25, 3  ;;  %312 = vst [vmem:[#allocation2] sm:$0xff] (!%p4703_p7), %v4976_v0  ;;  %313 = vst [vmem:[#allocation2 + $0x8] sm:$0xff] (!%p4703_p7), %v4976_v0 }
  0x14   : > { %s4788_s10 = sshll.u32 %s7344_s25, 10  ;;  %s298_s11 = sadd.s32 %s4699_s9, %s7346_s8  ;;  %314 = vst [vmem:[#allocation2 + $0x10] sm:$0xff] (!%p4703_p7), %v4976_v0  ;;  %315 = vst [vmem:[#allocation2 + $0x18] sm:$0xff] (!%p4703_p7), %v4976_v0 }
  0x15   : > { %s5056_s14 = scalar_lea.vmem %s7252_s7, %s4788_s10  ;;  %s4700_s15 = sshll.u32 %s298_s11, 2  ;;  %316 = vst [vmem:[#allocation2 + $0x20] sm:$0xff] (!%p4703_p7), %v4976_v0  ;;  %317 = vst [vmem:[#allocation2 + $0x28] sm:$0xff] (!%p4703_p7), %v4976_v0 }
  0x16   : > { %s5061_s18 = scalar_lea.vmem %s7245_s0, %s4700_s15  ;;  %311 = sbr.rel (%p4703_p7) target bundleno = 83 (0x53), region = 52  ;;  %318 = vst [vmem:[#allocation2 + $0x30] sm:$0xff] (!%p4703_p7), %v4976_v0  ;;  %319 = vst [vmem:[#allocation2 + $0x38] sm:$0xff] (!%p4703_p7), %v4976_v0 }
  0x17   : > { %320 = vst [vmem:[#allocation2 + $0x40] sm:$0xff] (!%p4703_p7), %v4976_v0  ;;  %321 = vst [vmem:[#allocation2 + $0x48] sm:$0xff] (!%p4703_p7), %v4976_v0 }
  0x18   : > { %322 = vst [vmem:[#allocation2 + $0x50] sm:$0xff] (!%p4703_p7), %v4976_v0  ;;  %323 = vst [vmem:[#allocation2 + $0x58] sm:$0xff] (!%p4703_p7), %v4976_v0 }
  0x19   : > { %324 = vst [vmem:[#allocation2 + $0x60] sm:$0xff] (!%p4703_p7), %v4976_v0  ;;  %325 = vst [vmem:[#allocation2 + $0x68] sm:$0xff] (!%p4703_p7), %v4976_v0 }
  0x1a   : > { %326 = vst [vmem:[#allocation2 + $0x70] sm:$0xff] (!%p4703_p7), %v4976_v0  ;;  %327 = vst [vmem:[#allocation2 + $0x78] sm:$0xff] (!%p4703_p7), %v4976_v0 }
  0x1b   : > { %328 = vst [vmem:[#allocation2 + $0x80] sm:$0xff] (!%p4703_p7), %v4976_v0  ;;  %329 = vst [vmem:[#allocation2 + $0x88] sm:$0xff] (!%p4703_p7), %v4976_v0 }
  0x1c   : > { %330 = vst [vmem:[#allocation2 + $0x90] sm:$0xff] (!%p4703_p7), %v4976_v0  ;;  %331 = vst [vmem:[#allocation2 + $0x98] sm:$0xff] (!%p4703_p7), %v4976_v0 }
  0x1d   : > { %332 = vst [vmem:[#allocation2 + $0xa0] sm:$0xff] %v4976_v0  ;;  %333 = vst [vmem:[#allocation2 + $0xa8] sm:$0xff] %v4976_v0 }
  0x1e   : > { %334 = vst [vmem:[#allocation2 + $0xb0] sm:$0xff] %v4976_v0  ;;  %335 = vst [vmem:[#allocation2 + $0xb8] sm:$0xff] %v4976_v0 }
  0x1f   : > { %336 = vst [vmem:[#allocation2 + $0xc0] sm:$0xff] %v4976_v0  ;;  %337 = vst [vmem:[#allocation2 + $0xc8] sm:$0xff] %v4976_v0 }
  0x20   : > { %338 = vst [vmem:[#allocation2 + $0xd0] sm:$0xff] %v4976_v0  ;;  %339 = vst [vmem:[#allocation2 + $0xd8] sm:$0xff] %v4976_v0 }
  0x21   : > { %340 = vst [vmem:[#allocation2 + $0xe0] sm:$0xff] %v4976_v0  ;;  %341 = vst [vmem:[#allocation2 + $0xe8] sm:$0xff] %v4976_v0 }
  0x22   : > { %342 = vst [vmem:[#allocation2 + $0xf0] sm:$0xff] %v4976_v0  ;;  %343 = vst [vmem:[#allocation2 + $0xf8] sm:$0xff] %v4976_v0 }
  0x23   : > { %344 = vst [vmem:[#allocation2 + $0x100] sm:$0xff] %v4976_v0  ;;  %345 = vst [vmem:[#allocation2 + $0x108] sm:$0xff] %v4976_v0 }
  0x24   : > { %346 = vst [vmem:[#allocation2 + $0x110] sm:$0xff] %v4976_v0  ;;  %347 = vst [vmem:[#allocation2 + $0x118] sm:$0xff] %v4976_v0 }
  0x25   : > { %348 = vst [vmem:[#allocation2 + $0x120] sm:$0xff] %v4976_v0  ;;  %349 = vst [vmem:[#allocation2 + $0x128] sm:$0xff] %v4976_v0 }
  0x26   : > { %350 = vst [vmem:[#allocation2 + $0x130] sm:$0xff] %v4976_v0  ;;  %351 = vst [vmem:[#allocation2 + $0x138] sm:$0xff] %v4976_v0 }
  0x27   : > { %352 = vst [vmem:[#allocation2 + $0x140] sm:$0xff] %v4976_v0  ;;  %353 = vst [vmem:[#allocation2 + $0x148] sm:$0xff] %v4976_v0 }
  0x28   : > { %354 = vst [vmem:[#allocation2 + $0x150] sm:$0xff] %v4976_v0  ;;  %355 = vst [vmem:[#allocation2 + $0x158] sm:$0xff] %v4976_v0 }
  0x29   : > { %356 = vst [vmem:[#allocation2 + $0x160] sm:$0xff] %v4976_v0  ;;  %357 = vst [vmem:[#allocation2 + $0x168] sm:$0xff] %v4976_v0 }
  0x2a   : > { %358 = vst [vmem:[#allocation2 + $0x170] sm:$0xff] %v4976_v0  ;;  %359 = vst [vmem:[#allocation2 + $0x178] sm:$0xff] %v4976_v0 }
  0x2b   : > { %360 = vst [vmem:[#allocation2 + $0x180] sm:$0xff] %v4976_v0  ;;  %361 = vst [vmem:[#allocation2 + $0x188] sm:$0xff] %v4976_v0 }
  0x2c   : > { %362 = vst [vmem:[#allocation2 + $0x190] sm:$0xff] %v4976_v0  ;;  %363 = vst [vmem:[#allocation2 + $0x198] sm:$0xff] %v4976_v0 }
  0x2d   : > { %364 = vst [vmem:[#allocation2 + $0x1a0] sm:$0xff] %v4976_v0  ;;  %365 = vst [vmem:[#allocation2 + $0x1a8] sm:$0xff] %v4976_v0 }
  0x2e   : > { %366 = vst [vmem:[#allocation2 + $0x1b0] sm:$0xff] %v4976_v0  ;;  %367 = vst [vmem:[#allocation2 + $0x1b8] sm:$0xff] %v4976_v0 }
  0x2f   : > { %368 = vst [vmem:[#allocation2 + $0x1c0] sm:$0xff] %v4976_v0  ;;  %369 = vst [vmem:[#allocation2 + $0x1c8] sm:$0xff] %v4976_v0 }
  0x30   : > { %370 = vst [vmem:[#allocation2 + $0x1d0] sm:$0xff] %v4976_v0  ;;  %371 = vst [vmem:[#allocation2 + $0x1d8] sm:$0xff] %v4976_v0 }
  0x31   : > { %372 = vst [vmem:[#allocation2 + $0x1e0] sm:$0xff] %v4976_v0  ;;  %373 = vst [vmem:[#allocation2 + $0x1e8] sm:$0xff] %v4976_v0 }
  0x32   : > { %374 = vst [vmem:[#allocation2 + $0x1f0] sm:$0xff] %v4976_v0  ;;  %375 = vst [vmem:[#allocation2 + $0x1f8] sm:$0xff] %v4976_v0 }
  0x33   : > { %376 = vst [vmem:[#allocation2 + $0x200] sm:$0xff] %v4976_v0  ;;  %377 = vst [vmem:[#allocation2 + $0x208] sm:$0xff] %v4976_v0 }
  0x34   : > { %378 = vst [vmem:[#allocation2 + $0x210] sm:$0xff] %v4976_v0  ;;  %379 = vst [vmem:[#allocation2 + $0x218] sm:$0xff] %v4976_v0 }
  0x35   : > { %380 = vst [vmem:[#allocation2 + $0x220] sm:$0xff] %v4976_v0  ;;  %381 = vst [vmem:[#allocation2 + $0x228] sm:$0xff] %v4976_v0 }
  0x36   : > { %382 = vst [vmem:[#allocation2 + $0x230] sm:$0xff] %v4976_v0  ;;  %383 = vst [vmem:[#allocation2 + $0x238] sm:$0xff] %v4976_v0 }
  0x37   : > { %384 = vst [vmem:[#allocation2 + $0x240] sm:$0xff] %v4976_v0  ;;  %385 = vst [vmem:[#allocation2 + $0x248] sm:$0xff] %v4976_v0 }
  0x38   : > { %386 = vst [vmem:[#allocation2 + $0x250] sm:$0xff] %v4976_v0  ;;  %387 = vst [vmem:[#allocation2 + $0x258] sm:$0xff] %v4976_v0 }
  0x39   : > { %388 = vst [vmem:[#allocation2 + $0x260] sm:$0xff] %v4976_v0  ;;  %389 = vst [vmem:[#allocation2 + $0x268] sm:$0xff] %v4976_v0 }
  0x3a   : > { %390 = vst [vmem:[#allocation2 + $0x270] sm:$0xff] %v4976_v0  ;;  %391 = vst [vmem:[#allocation2 + $0x278] sm:$0xff] %v4976_v0 }
  0x3b   : > { %392 = vst [vmem:[#allocation2 + $0x280] sm:$0xff] %v4976_v0  ;;  %393 = vst [vmem:[#allocation2 + $0x288] sm:$0xff] %v4976_v0 }
  0x3c   : > { %394 = vst [vmem:[#allocation2 + $0x290] sm:$0xff] %v4976_v0  ;;  %395 = vst [vmem:[#allocation2 + $0x298] sm:$0xff] %v4976_v0 }
  0x3d   : > { %396 = vst [vmem:[#allocation2 + $0x2a0] sm:$0xff] %v4976_v0  ;;  %397 = vst [vmem:[#allocation2 + $0x2a8] sm:$0xff] %v4976_v0 }
  0x3e   : > { %398 = vst [vmem:[#allocation2 + $0x2b0] sm:$0xff] %v4976_v0  ;;  %399 = vst [vmem:[#allocation2 + $0x2b8] sm:$0xff] %v4976_v0 }
  0x3f   : > { %400 = vst [vmem:[#allocation2 + $0x2c0] sm:$0xff] %v4976_v0  ;;  %401 = vst [vmem:[#allocation2 + $0x2c8] sm:$0xff] %v4976_v0 }
  0x40   : > { %402 = vst [vmem:[#allocation2 + $0x2d0] sm:$0xff] %v4976_v0  ;;  %403 = vst [vmem:[#allocation2 + $0x2d8] sm:$0xff] %v4976_v0 }
  0x41   : > { %404 = vst [vmem:[#allocation2 + $0x2e0] sm:$0xff] %v4976_v0  ;;  %405 = vst [vmem:[#allocation2 + $0x2e8] sm:$0xff] %v4976_v0 }
  0x42   : > { %406 = vst [vmem:[#allocation2 + $0x2f0] sm:$0xff] %v4976_v0  ;;  %407 = vst [vmem:[#allocation2 + $0x2f8] sm:$0xff] %v4976_v0 }
  0x43   : > { %408 = vst [vmem:[#allocation2 + $0x300] sm:$0xff] %v4976_v0  ;;  %409 = vst [vmem:[#allocation2 + $0x308] sm:$0xff] %v4976_v0 }
  0x44   : > { %410 = vst [vmem:[#allocation2 + $0x310] sm:$0xff] %v4976_v0  ;;  %411 = vst [vmem:[#allocation2 + $0x318] sm:$0xff] %v4976_v0 }
  0x45   : > { %412 = vst [vmem:[#allocation2 + $0x320] sm:$0xff] %v4976_v0  ;;  %413 = vst [vmem:[#allocation2 + $0x328] sm:$0xff] %v4976_v0 }
  0x46   : > { %414 = vst [vmem:[#allocation2 + $0x330] sm:$0xff] %v4976_v0  ;;  %415 = vst [vmem:[#allocation2 + $0x338] sm:$0xff] %v4976_v0 }
  0x47   : > { %416 = vst [vmem:[#allocation2 + $0x340] sm:$0xff] %v4976_v0  ;;  %417 = vst [vmem:[#allocation2 + $0x348] sm:$0xff] %v4976_v0 }
  0x48   : > { %418 = vst [vmem:[#allocation2 + $0x350] sm:$0xff] %v4976_v0  ;;  %419 = vst [vmem:[#allocation2 + $0x358] sm:$0xff] %v4976_v0 }
  0x49   : > { %420 = vst [vmem:[#allocation2 + $0x360] sm:$0xff] %v4976_v0  ;;  %421 = vst [vmem:[#allocation2 + $0x368] sm:$0xff] %v4976_v0 }
  0x4a   : > { %422 = vst [vmem:[#allocation2 + $0x370] sm:$0xff] %v4976_v0  ;;  %423 = vst [vmem:[#allocation2 + $0x378] sm:$0xff] %v4976_v0 }
  0x4b   : > { %424 = vst [vmem:[#allocation2 + $0x380] sm:$0xff] %v4976_v0  ;;  %425 = vst [vmem:[#allocation2 + $0x388] sm:$0xff] %v4976_v0 }
  0x4c   : > { %426 = vst [vmem:[#allocation2 + $0x390] sm:$0xff] %v4976_v0  ;;  %427 = vst [vmem:[#allocation2 + $0x398] sm:$0xff] %v4976_v0 }
  0x4d   : > { %428 = vst [vmem:[#allocation2 + $0x3a0] sm:$0xff] %v4976_v0  ;;  %429 = vst [vmem:[#allocation2 + $0x3a8] sm:$0xff] %v4976_v0 }
  0x4e   : > { %430 = vst [vmem:[#allocation2 + $0x3b0] sm:$0xff] %v4976_v0  ;;  %431 = vst [vmem:[#allocation2 + $0x3b8] sm:$0xff] %v4976_v0 }
  0x4f   : > { %432 = vst [vmem:[#allocation2 + $0x3c0] sm:$0xff] %v4976_v0  ;;  %433 = vst [vmem:[#allocation2 + $0x3c8] sm:$0xff] %v4976_v0 }
  0x50   : > { %434 = vst [vmem:[#allocation2 + $0x3d0] sm:$0xff] %v4976_v0  ;;  %435 = vst [vmem:[#allocation2 + $0x3d8] sm:$0xff] %v4976_v0 }
  0x51   : > { %436 = vst [vmem:[#allocation2 + $0x3e0] sm:$0xff] %v4976_v0  ;;  %437 = vst [vmem:[#allocation2 + $0x3e8] sm:$0xff] %v4976_v0 }
  0x52   : > { %438 = vst [vmem:[#allocation2 + $0x3f0] sm:$0xff] %v4976_v0  ;;  %439 = vst [vmem:[#allocation2 + $0x3f8] sm:$0xff] %v4976_v0 }
  0x53 PF: > { %v441_v1 = vld [vmem:[%s7246_s1] sm:$0xff]  ;;  %v4977_v2 = vmov 2   ;;  %v4978_v3 = vmov 1   ;;  %v443_v4 = vld [vmem:[%s7246_s1 + $0x10] sm:$0xff]  ;;  %v442_v5 = vld [vmem:[%s7246_s1 + $0x8] sm:$0xff]  ;;  %v7254_v6 = vmov 0   ;;  %v7253_v58 = vlaneseq }
  0x54   : > { %4850 = vset.pattern.permute.xlu0 %v4977_v2  ;;  %4849 = vset.pattern.permute.xlu1 %v4978_v3  ;;  %v446_v7 = vld [vmem:[%s7246_s1 + $0x28] sm:$0xff]  ;;  %v445_v8 = vld [vmem:[%s7246_s1 + $0x20] sm:$0xff]  ;;  %v448_v9 = vld [vmem:[%s7246_s1 + $0x38] sm:$0xff]  ;;  %vm928_vm0 = vcmask 523264   ;;  %s4784_s17 = sshll.u32 %s4958_s24, 8  ;;  %p4785_p8 = scmp.ne.s32.totalorder %s4958_s24, 3 }
  0x55   : > { %607 = vperm.xlu0 %4850, %v441_v1   ;;  %525 = vperm.xlu1 %4849, %v441_v1   ;;  %v444_v10 = vld [vmem:[%s7246_s1 + $0x18] sm:$0xff]  ;;  %v688_v11 = vld [vmem:[%s7247_s2] sm:$0xff]  ;;  %v689_v12 = vld [vmem:[%s7247_s2 + $0x8] sm:$0xff]  ;;  %v491_v63 = vshrl.u32 %v7253_v58, 7  ;;  %vm4492_vm3 = vcmask (!%p4785_p8), 7168  }
  0x56   : > { %985 = vmatprep.mubr.bf16.mxu0 %v7254_v6  ;;  %2716 = vmatprep.mubr.bf16.mxu1 %v7254_v6  ;;  %v447_v13 = vld [vmem:[%s7246_s1 + $0x30] sm:$0xff]  ;;  %v692_v14 = vld [vmem:[%s7247_s2 + $0x20] sm:$0xff]  ;;  %v695_v15 = vld [vmem:[%s7247_s2 + $0x38] sm:$0xff] }
  0x57   : > { %v793_v16 = vld [vmem:[%s7249_s4 + $0x8] sm:$0xff]  ;;  %v795_v17 = vld [vmem:[%s7249_s4 + $0x18] sm:$0xff]  ;;  %v690_v18 = vld [vmem:[%s7247_s2 + $0x10] sm:$0xff] }
  0x58   : > { %v797_v19 = vld [vmem:[%s7249_s4 + $0x28] sm:$0xff]  ;;  %v691_v20 = vld [vmem:[%s7247_s2 + $0x18] sm:$0xff]  ;;  %v694_v29 = vld [vmem:[%s7247_s2 + $0x30] sm:$0xff] }
  0x59   : > { %615 = vperm.xlu0 %4850, %v443_v4   ;;  %529 = vperm.xlu1 %4849, %v442_v5   ;;  %v799_v21 = vld [vmem:[%s7249_s4 + $0x38] sm:$0xff]  ;;  %v801_v22 = vld [vmem:[%s7249_s4 + $0x48] sm:$0xff]  ;;  %v792_v31 = vld [vmem:[%s7249_s4] sm:$0xff] }
  0x5a   : > { %v803_v23 = vld [vmem:[%s7249_s4 + $0x58] sm:$0xff]  ;;  %v805_v24 = vld [vmem:[%s7249_s4 + $0x68] sm:$0xff]  ;;  %v794_v33 = vld [vmem:[%s7249_s4 + $0x10] sm:$0xff] }
  0x5b   : > { %v807_v25 = vld [vmem:[%s7249_s4 + $0x78] sm:$0xff]  ;;  %v1243_v26 = vld [vmem:[%s7251_s6 + $0x8] sm:$0xff]  ;;  %v796_v35 = vld [vmem:[%s7249_s4 + $0x20] sm:$0xff] }
  0x5c   : > { %v693_v27 = vld [vmem:[%s7247_s2 + $0x28] sm:$0xff]  ;;  %v1245_v28 = vld [vmem:[%s7251_s6 + $0x18] sm:$0xff]  ;;  %v798_v37 = vld [vmem:[%s7249_s4 + $0x30] sm:$0xff] }
  0x5d   : > { %627 = vperm.xlu0 %4850, %v446_v7   ;;  %4851 = vset.pattern.permute.xlu1 %v4977_v2  ;;  %v1247_v30 = vld [vmem:[%s7251_s6 + $0x28] sm:$0xff]  ;;  %v1249_v32 = vld [vmem:[%s7251_s6 + $0x38] sm:$0xff]  ;;  %v800_v39 = vld [vmem:[%s7249_s4 + $0x40] sm:$0xff] }
  0x5e   : > { %611 = vperm.xlu1 %4851, %v442_v5   ;;  %v1251_v34 = vld [vmem:[%s7251_s6 + $0x48] sm:$0xff]  ;;  %v1253_v36 = vld [vmem:[%s7251_s6 + $0x58] sm:$0xff]  ;;  %v802_v41 = vld [vmem:[%s7249_s4 + $0x50] sm:$0xff] }
  0x5f   : > { %v1255_v38 = vld [vmem:[%s7251_s6 + $0x68] sm:$0xff]  ;;  %v1257_v40 = vld [vmem:[%s7251_s6 + $0x78] sm:$0xff]  ;;  %v804_v43 = vld [vmem:[%s7249_s4 + $0x60] sm:$0xff] }
  0x60   : > { %v1259_v42 = vld [vmem:[%s7251_s6 + $0x88] sm:$0xff]  ;;  %v1261_v44 = vld [vmem:[%s7251_s6 + $0x98] sm:$0xff]  ;;  %v806_v45 = vld [vmem:[%s7249_s4 + $0x70] sm:$0xff] }
  0x61   : > { %4858 = vset.pattern.permute.xlu0 %v4978_v3  ;;  %v1263_v46 = vld [vmem:[%s7251_s6 + $0xa8] sm:$0xff]  ;;  %v1242_v47 = vld [vmem:[%s7251_s6] sm:$0xff]  ;;  %v1265_v48 = vld [vmem:[%s7251_s6 + $0xb8] sm:$0xff] }
  0x62   : > { %541 = vperm.xlu0 %4858, %v445_v8   ;;  %4852 = vset.pattern.permute.xlu1 %v7254_v6  ;;  %v1244_v49 = vld [vmem:[%s7251_s6 + $0x10] sm:$0xff]  ;;  %v1267_v52 = vld [vmem:[%s7251_s6 + $0xc8] sm:$0xff]  ;;  %v1246_v53 = vld [vmem:[%s7251_s6 + $0x20] sm:$0xff] }
  0x63   : > { %461 = vperm.xlu1 %4852, %v443_v4   ;;  %v1269_v56 = vld [vmem:[%s7251_s6 + $0xd8] sm:$0xff]  ;;  %v1248_v57 = vld [vmem:[%s7251_s6 + $0x30] sm:$0xff]  ;;  %v1271_v60 = vld [vmem:[%s7251_s6 + $0xe8] sm:$0xff] }
  0x64   : > { %v1250_v62 = vld [vmem:[%s7251_s6 + $0x40] sm:$0xff]  ;;  %v1273_v0 = vld [vmem:[%s7251_s6 + $0xf8] sm:$0xff] }
  0x66   : > { %553 = vperm.xlu0 %4858, %v448_v9  }
  0x67   : > { %4853 = vset.pattern.permute.xlu1 %v4978_v3 }
  0x68   : > { %533 = vperm.xlu1 %4853, %v443_v4   ;;  %v562_v4 = vsub.s32 5, %v491_v63 }
  0x6a   : > { %4861 = vset.pattern.permute.xlu0 %v7254_v6 }
  0x6b   : > { %451 = vperm.xlu0 %4861, %v441_v1  }
  0x6c   : > { %537 = vperm.xlu1 %4853, %v444_v10  }
  0x6f   : > { %456 = vperm.xlu0 %4861, %v442_v5   ;;  %v492_v5 = vsub.s32 0, %v491_v63 }
  0x70   : > { %4854 = vset.pattern.permute.xlu1 %v4977_v2 }
  0x71   : > { %619 = vperm.xlu1 %4854, %v444_v10  }
  0x73   : > { %466 = vperm.xlu0 %4861, %v444_v10   ;;  %v1275_v10 = vld [vmem:[%s7251_s6 + $0x108] sm:$0xff] }
  0x75   : > { %4855 = vset.pattern.permute.xlu1 %v7254_v6 }
  0x76   : > { %698 = vperm.xlu1 %4855, %v688_v11   ;;  %v640_v11 = vsub.s32 2, %v491_v63 }
  0x77   : > { %703 = vperm.xlu0 %4861, %v689_v12   ;;  %v644_v12 = vsub.s32 6, %v491_v63 }
  0x7a   : > { %471 = vperm.xlu1 %4855, %v445_v8  }
  0x7b   : > { %481 = vperm.xlu0 %4861, %v447_v13  }
  0x7e   : > { %476 = vperm.xlu1 %4855, %v446_v7  }
  0x7f   : > { %718 = vperm.xlu0 %4861, %v692_v14   ;;  %v1254_v14 = vld [vmem:[%s7251_s6 + $0x60] sm:$0xff] }
  0x82   : > { %4856 = vset.pattern.permute.xlu1 %v4978_v3 }
  0x83   : > { %733 = vperm.xlu0 %4861, %v695_v15   ;;  %545 = vperm.xlu1 %4856, %v446_v7   ;;  %v496_v7 = vsub.s32 4, %v491_v63 }
  0x87   : > { %815 = vperm.xlu0 %4861, %v793_v16   ;;  %4857 = vset.pattern.permute.xlu1 %v4977_v2 }
  0x88   : > { %623 = vperm.xlu1 %4857, %v445_v8  }
  0x8b   : > { %825 = vperm.xlu0 %4861, %v795_v17  }
  0x8c   : > { %4859 = vset.pattern.permute.xlu1 %v7254_v6 }
  0x8d   : > { %708 = vperm.xlu1 %4859, %v690_v18  }
  0x8f   : > { %835 = vperm.xlu0 %4861, %v797_v19  }
  0x91   : > { %713 = vperm.xlu1 %4859, %v691_v20   ;;  %v1277_v20 = vld [vmem:[%s7251_s6 + $0x118] sm:$0xff] }
  0x93   : > { %845 = vperm.xlu0 %4861, %v799_v21  }
  0x95   : > { %486 = vperm.xlu1 %4859, %v448_v9  }
  0x97   : > { %855 = vperm.xlu0 %4861, %v801_v22  }
  0x99   : > { %4860 = vset.pattern.permute.xlu1 %v4978_v3  ;;  %v558_v3 = vsub.s32 1, %v491_v63 }
  0x9a   : > { %549 = vperm.xlu1 %4860, %v447_v13  }
  0x9b   : > { %865 = vperm.xlu0 %4861, %v803_v23   ;;  %v1256_v23 = vld [vmem:[%s7251_s6 + $0x70] sm:$0xff] }
  0x9e   : > { %4862 = vset.pattern.permute.xlu1 %v4977_v2  ;;  %v1252_v2 = vld [vmem:[%s7251_s6 + $0x50] sm:$0xff] }
  0x9f   : > { %875 = vperm.xlu0 %4861, %v805_v24   ;;  %631 = vperm.xlu1 %4862, %v447_v13  }
  0xa3   : > { %885 = vperm.xlu0 %4861, %v807_v25   ;;  %635 = vperm.xlu1 %4862, %v448_v9   ;;  %v440_v9 = vld [vmem:[%s5061_s18] sm:$0x77] }
  0xa4   : > { %v559_v15 = vrot.slane %v440_v9, %v558_v3  ;;  %v563_v16 = vrot.slane %v440_v9, %v562_v4  ;;  %v493_v17 = vrot.slane %v440_v9, %v492_v5  ;;  %v497_v18 = vrot.slane %v440_v9, %v496_v7 }
  0xa5   : > { %v641_v21 = vrot.slane %v440_v9, %v640_v11  ;;  %v645_v22 = vrot.slane %v440_v9, %v644_v12  ;;  %v1285_v9 = vld [vmem:[%s7251_s6 + $0x158] sm:$0xff] }
  0xa6   : > { %v5401_v24 = vrot.slane %v559_v15, %v558_v3  ;;  %v5403_v25 = vrot.slane %v563_v16, %v558_v3 }
  0xa7   : > { %1377 = vperm.xlu0 %4861, %v1243_v26   ;;  %4863 = vset.pattern.permute.xlu1 %v7254_v6  ;;  %v5405_v26 = vrot.slane %v493_v17, %v492_v5 }
  0xa8   : > { %723 = vperm.xlu1 %4863, %v693_v27   ;;  %v5407_v27 = vrot.slane %v497_v18, %v492_v5 }
  0xab   : > { %1387 = vperm.xlu0 %4861, %v1245_v28  }
  0xac   : > { %728 = vperm.xlu1 %4863, %v694_v29  }
  0xaf   : > { %1397 = vperm.xlu0 %4861, %v1247_v30  }
  0xb0   : > { %810 = vperm.xlu1 %4863, %v792_v31  }
  0xb3   : > { %1407 = vperm.xlu0 %4861, %v1249_v32   ;;  %v1279_v32 = vld [vmem:[%s7251_s6 + $0x128] sm:$0xff] }
  0xb4   : > { %820 = vperm.xlu1 %4863, %v794_v33   ;;  %v1258_v33 = vld [vmem:[%s7251_s6 + $0x80] sm:$0xff] }
  0xb7   : > { %1417 = vperm.xlu0 %4861, %v1251_v34  }
  0xb8   : > { %830 = vperm.xlu1 %4863, %v796_v35  }
  0xbb   : > { %1427 = vperm.xlu0 %4861, %v1253_v36   ;;  %v5421_v36 = vrot.slane %v641_v21, %v640_v11 }
  0xbc   : > { %840 = vperm.xlu1 %4863, %v798_v37   ;;  %v5423_v37 = vrot.slane %v645_v22, %v640_v11  ;;  %v1266_v22 = vld [vmem:[%s7251_s6 + $0xc0] sm:$0xff] }
  0xbf   : > { %1437 = vperm.xlu0 %4861, %v1255_v38  }
  0xc0   : > { %850 = vperm.xlu1 %4863, %v800_v39  }
  0xc3   : > { %1447 = vperm.xlu0 %4861, %v1257_v40  }
  0xc4   : > { %860 = vperm.xlu1 %4863, %v802_v41  }
  0xc7   : > { %1457 = vperm.xlu0 %4861, %v1259_v42  }
  0xc8   : > { %870 = vperm.xlu1 %4863, %v804_v43  }
  0xcb   : > { %1467 = vperm.xlu0 %4861, %v1261_v44  }
  0xcc   : > { %880 = vperm.xlu1 %4863, %v806_v45  }
  0xcf   : > { %1477 = vperm.xlu0 %4861, %v1263_v46  }
  0xd0   : > { %1372 = vperm.xlu1 %4863, %v1242_v47  }
  0xd3   : > { %1487 = vperm.xlu0 %4861, %v1265_v48   ;;  %v1281_v48 = vld [vmem:[%s7251_s6 + $0x138] sm:$0xff] }
  0xd4   : > { %1382 = vperm.xlu1 %4863, %v1244_v49   ;;  %v526_v50 = vpop.permute.xlu1 %525  ;;  %v5347_v51 = vpop.permute.xlu0 %607 }
  0xd5   : > { %v574_v34 = vmul.f32 %v5401_v24, %v526_v50  ;;  %v575_v35 = vmul.f32 %v5403_v25, %v526_v50  ;;  %v656_v43 = vmul.f32 %v5421_v36, %v5347_v51  ;;  %v657_v44 = vmul.f32 %v5423_v37, %v5347_v51 }
  0xd7   : > { %1497 = vperm.xlu0 %4861, %v1267_v52   ;;  %v1260_v52 = vld [vmem:[%s7251_s6 + $0x90] sm:$0xff] }
  0xd8   : > { %1392 = vperm.xlu1 %4863, %v1246_v53   ;;  %v530_v54 = vpop.permute.xlu1 %529  ;;  %v5355_v55 = vpop.permute.xlu0 %615 }
  0xd9   : > { %v576_v39 = vmul.f32 %v5401_v24, %v530_v54  ;;  %v577_v40 = vmul.f32 %v5403_v25, %v530_v54 }
  0xdb   : > { %1507 = vperm.xlu0 %4861, %v1269_v56  }
  0xdc   : > { %1402 = vperm.xlu1 %4863, %v1248_v57   ;;  %v5363_v59 = vpop.permute.xlu0 %627  ;;  %v1283_v57 = vld [vmem:[%s7251_s6 + $0x148] sm:$0xff] }
  0xdd   : > { %v5368_v61 = vpop.permute.xlu1 %611 }
  0xde   : > { %v658_v54 = vmul.f32 %v5421_v36, %v5368_v61  ;;  %v659_v51 = vmul.f32 %v5423_v37, %v5368_v61 }
  0xdf   : > { %1517 = vperm.xlu0 %4861, %v1271_v60  }
  0xe0   : > { %1412 = vperm.xlu1 %4863, %v1250_v62  }
  0xe1   : > { %v5377_v1 = vpop.permute.xlu0 %541 }
  0xe2   : > { %v5382_v8 = vpop.permute.xlu1 %461 }
  0xe3   : > { %1527 = vperm.xlu0 %4861, %v1273_v0   ;;  %v1262_v0 = vld [vmem:[%s7251_s6 + $0xa0] sm:$0xff] }
  0xe4   : > { %1422 = vperm.xlu1 %4863, %v1252_v2  }
  0xe5   : > { %v5388_v13 = vpop.permute.xlu0 %553 }
  0xe7   : > { %1537 = vperm.xlu0 %4861, %v1275_v10   ;;  %v5393_v19 = vpop.permute.xlu1 %533 }
  0xe8   : > { %1432 = vperm.xlu1 %4863, %v1254_v14   ;;  %v1264_v14 = vld [vmem:[%s7251_s6 + $0xb0] sm:$0xff] }
  0xea   : > { %v452_v28 = vpop.permute.xlu0 %451 }
  0xeb   : > { %1547 = vperm.xlu0 %4861, %v1277_v20   ;;  %v5409_v29 = vpop.permute.xlu1 %537  ;;  %v508_v30 = vmul.f32 %v5405_v26, %v452_v28  ;;  %v509_v31 = vmul.f32 %v5407_v27, %v452_v28  ;;  %v1287_v20 = vld [vmem:[%s7251_s6 + $0x168] sm:$0xff]  ;;  %v1268_v28 = vld [vmem:[%s7251_s6 + $0xd0] sm:$0xff] }
  0xec   : > { %1442 = vperm.xlu1 %4863, %v1256_v23   ;;  %v1289_v23 = vld [vmem:[%s7251_s6 + $0x178] sm:$0xff] }
  0xed   : > { %v590_v45 = vadd.f32 %v574_v34, %v508_v30  ;;  %v591_v46 = vadd.f32 %v575_v35, %v509_v31  ;;  %v1291_v31 = vld [vmem:[%s7251_s6 + $0x188] sm:$0xff]  ;;  %v1270_v34 = vld [vmem:[%s7251_s6 + $0xe0] sm:$0xff]  ;;  %v512_v35 = vmul.f32 %v5405_v26, %v5382_v8 }
  0xee   : > { %v457_v38 = vpop.permute.xlu0 %456 }
  0xef   : > { %v510_v41 = vmul.f32 %v5405_v26, %v457_v38  ;;  %v511_v42 = vmul.f32 %v5407_v27, %v457_v38  ;;  %1557 = vperm.xlu0 %4861, %v1279_v32   ;;  %v672_v56 = vadd.f32 %v656_v43, %v590_v45  ;;  %v673_v60 = vadd.f32 %v657_v44, %v591_v46  ;;  %v1293_v43 = vld [vmem:[%s7251_s6 + $0x198] sm:$0xff] }
  0xf0   : > { %1452 = vperm.xlu1 %4863, %v1258_v33   ;;  %v5433_v47 = vpop.permute.xlu1 %619  ;;  %v578_v32 = vmul.f32 %v5401_v24, %v5393_v19  ;;  %v579_v33 = vmul.f32 %v5403_v25, %v5393_v19  ;;  %v513_v38 = vmul.f32 %v5407_v27, %v5382_v8  ;;  %v661_v19 = vmul.f32 %v5423_v37, %v5355_v55 }
  0xf1   : > { %v592_v49 = vadd.f32 %v576_v39, %v510_v41  ;;  %v593_v50 = vadd.f32 %v577_v40, %v511_v42  ;;  %v660_v42 = vmul.f32 %v5421_v36, %v5355_v55  ;;  %v580_v8 = vmul.f32 %v5401_v24, %v5409_v29 }
  0xf2   : > { %v467_v53 = vpop.permute.xlu0 %466  ;;  %v594_v44 = vadd.f32 %v578_v32, %v512_v35  ;;  %v595_v45 = vadd.f32 %v579_v33, %v513_v38  ;;  %v581_v46 = vmul.f32 %v5403_v25, %v5409_v29  ;;  %v583_v32 = vmul.f32 %v5403_v25, %v5377_v1  ;;  %v1303_v35 = vld [vmem:[%s7251_s6 + $0x1e8] sm:$0xff] }
  0xf3   : > { %1567 = vperm.xlu0 %4861, %v1281_v48   ;;  %v674_v63 = vadd.f32 %v658_v54, %v592_v49  ;;  %v675_v2 = vadd.f32 %v659_v51, %v593_v50  ;;  %v514_v39 = vmul.f32 %v5405_v26, %v467_v53  ;;  %v515_v40 = vmul.f32 %v5407_v27, %v467_v53  ;;  %v1272_v48 = vld [vmem:[%s7251_s6 + $0xf0] sm:$0xff] }
  0xf4   : > { %1462 = vperm.xlu1 %4863, %v1260_v52   ;;  %v1295_v52 = vld [vmem:[%s7251_s6 + $0x1a8] sm:$0xff]  ;;  %v662_v53 = vmul.f32 %v5421_v36, %v5433_v47  ;;  %v663_v54 = vmul.f32 %v5423_v37, %v5433_v47  ;;  %v676_v51 = vadd.f32 %v660_v42, %v594_v44 }
  0xf5   : > { %v699_v62 = vpop.permute.xlu1 %698  ;;  %v596_v49 = vadd.f32 %v580_v8, %v514_v39  ;;  %v597_v50 = vadd.f32 %v581_v46, %v515_v40 }
  0xf6   : > { %v736_v3 = vadd.f32 %v699_v62, %v672_v56  ;;  %v704_v4 = vpop.permute.xlu0 %703  ;;  %v737_v5 = vadd.f32 %v699_v62, %v673_v60  ;;  %v677_v56 = vadd.f32 %v661_v19, %v595_v45 }
  0xf7   : > { %v738_v7 = vadd.f32 %v704_v4, %v674_v63  ;;  %1577 = vperm.xlu0 %4861, %v1283_v57   ;;  %v739_v61 = vadd.f32 %v704_v4, %v675_v2  ;;  %v1274_v57 = vld [vmem:[%s7251_s6 + $0x100] sm:$0xff]  ;;  %v678_v63 = vadd.f32 %v662_v53, %v596_v49  ;;  %v667_v49 = vmul.f32 %v5423_v37, %v5363_v59 }
  0xf8   : > { %1472 = vperm.xlu1 %4863, %v1262_v0   ;;  %v753_v10 = vmax.f32 %v737_v5, 0.0  ;;  %v752_v11 = vmax.f32 %v736_v3, 0.0  ;;  %v679_v0 = vadd.f32 %v663_v54, %v597_v50  ;;  %v1297_v3 = vld [vmem:[%s7251_s6 + $0x1b8] sm:$0xff]  ;;  %v1276_v5 = vld [vmem:[%s7251_s6 + $0x110] sm:$0xff]  ;;  %v589_v53 = vmul.f32 %v5403_v25, %v5388_v13 }
  0xf9   : > { %v5454_v12 = vpop.permute.xlu1 %471  ;;  %v755_v15 = vmax.f32 %v739_v61, 0.0  ;;  %v754_v16 = vmax.f32 %v738_v7, 0.0 }
  0xfa   : > { %v5512_v29 = vpop.permute.xlu0 %481  ;;  %v516_v33 = vmul.f32 %v5405_v26, %v5454_v12 }
  0xfb   : > { %1587 = vperm.xlu0 %4861, %v1285_v9   ;;  %v785_v17 = vpack.c.bf16 %v755_v15, %v753_v10  ;;  %v784_v18 = vpack.c.bf16 %v754_v16, %v752_v11  ;;  %v1299_v15 = vld [vmem:[%s7251_s6 + $0x1c8] sm:$0xff] }
  0xfc   : > { %1482 = vperm.xlu1 %4863, %v1264_v14  }
  0xfd   : > { %v5462_v21 = vpop.permute.xlu1 %476  ;;  %953 = vmatprep.subr.bf16.mxu0 %v785_v17  ;;  %v1278_v17 = vld [vmem:[%s7251_s6 + $0x120] sm:$0xff] }
  0xfe   : > { %954 = vmatpush1.bf16.msra.mxu0 %v784_v18  ;;  %v5523_v7 = vpop.permute.xlu0 %718  ;;  %v518_v45 = vmul.f32 %v5405_v26, %v5462_v21 }
  0xff   : > { %1597 = vperm.xlu0 %4861, %v1287_v20   ;;  %v1301_v20 = vld [vmem:[%s7251_s6 + $0x1d8] sm:$0xff] }
 0x100   : > { %1492 = vperm.xlu1 %4863, %v1266_v22  }
 0x102   : > { %v5473_v30 = vpop.permute.xlu1 %545  ;;  %v5534_v22 = vpop.permute.xlu0 %733 }
 0x103   : > { %1607 = vperm.xlu0 %4861, %v1289_v23   ;;  %v584_v40 = vmul.f32 %v5401_v24, %v5473_v30 }
 0x104   : > { %1502 = vperm.xlu1 %4863, %v1268_v28   ;;  %v1280_v28 = vld [vmem:[%s7251_s6 + $0x130] sm:$0xff] }
 0x105   : > { %v600_v54 = vadd.f32 %v584_v40, %v518_v45 }
 0x106   : > { %v5559_v44 = vpop.permute.xlu0 %815 }
 0x107   : > { %1617 = vperm.xlu0 %4861, %v1291_v31   ;;  %v624_v41 = vpop.permute.xlu1 %623  ;;  %v582_v31 = vmul.f32 %v5401_v24, %v5377_v1  ;;  %v1282_v1 = vld [vmem:[%s7251_s6 + $0x140] sm:$0xff] }
 0x108   : > { %1512 = vperm.xlu1 %4863, %v1270_v34   ;;  %v517_v34 = vmul.f32 %v5407_v27, %v5454_v12  ;;  %v664_v38 = vmul.f32 %v5421_v36, %v624_v41  ;;  %v665_v39 = vmul.f32 %v5423_v37, %v624_v41  ;;  %v585_v12 = vmul.f32 %v5403_v25, %v5473_v30  ;;  %v1305_v30 = vld [vmem:[%s7251_s6 + $0x1f8] sm:$0xff] }
 0x109   : > { %v598_v19 = vadd.f32 %v582_v31, %v516_v33  ;;  %v519_v41 = vmul.f32 %v5407_v27, %v5462_v21  ;;  %v1284_v21 = vld [vmem:[%s7251_s6 + $0x150] sm:$0xff] }
 0x10b   : > { %1627 = vperm.xlu0 %4861, %v1293_v43   ;;  %v599_v43 = vadd.f32 %v583_v32, %v517_v34  ;;  %v680_v50 = vadd.f32 %v664_v38, %v598_v19 }
 0x10c   : > { %1522 = vperm.xlu1 %4863, %v1272_v48   ;;  %v709_v55 = vpop.permute.xlu1 %708  ;;  %v666_v48 = vmul.f32 %v5421_v36, %v5363_v59 }
 0x10d   : > { %v740_v60 = vadd.f32 %v709_v55, %v676_v51  ;;  %v741_v62 = vadd.f32 %v709_v55, %v677_v56  ;;  %v681_v55 = vadd.f32 %v665_v39, %v599_v43  ;;  %v601_v51 = vadd.f32 %v585_v12, %v519_v41  ;;  %v1290_v12 = vld [vmem:[%s7251_s6 + $0x180] sm:$0xff]  ;;  %v1313_v41 = vld [vmem:[%s7251_s6 + $0x238] sm:$0xff] }
 0x10f   : > { %1637 = vperm.xlu0 %4861, %v1295_v52   ;;  %v756_v61 = vmax.f32 %v740_v60, 0.0  ;;  %v757_v9 = vmax.f32 %v741_v62, 0.0  ;;  %v588_v52 = vmul.f32 %v5401_v24, %v5388_v13 }
 0x110   : > { %1532 = vperm.xlu1 %4863, %v1274_v57   ;;  %v714_v2 = vpop.permute.xlu1 %713 }
 0x111   : > { %v742_v47 = vadd.f32 %v714_v2, %v678_v63  ;;  %v743_v4 = vadd.f32 %v714_v2, %v679_v0  ;;  %v520_v63 = vmul.f32 %v5405_v26, %v5512_v29  ;;  %v521_v0 = vmul.f32 %v5407_v27, %v5512_v29 }
 0x113   : > { %v758_v10 = vmax.f32 %v742_v47, 0.0  ;;  %v759_v11 = vmax.f32 %v743_v4, 0.0  ;;  %1647 = vperm.xlu0 %4861, %v1297_v3   ;;  %v5592_v3 = vpop.permute.xlu0 %825  ;;  %v745_v4 = vadd.f32 %v5523_v7, %v681_v55 }
 0x114   : > { %1542 = vperm.xlu1 %4863, %v1276_v5   ;;  %v487_v14 = vpop.permute.xlu1 %486 }
 0x115   : > { %v787_v16 = vpack.c.bf16 %v759_v11, %v757_v9  ;;  %v786_v18 = vpack.c.bf16 %v758_v10, %v756_v61  ;;  %v522_v8 = vmul.f32 %v5405_v26, %v487_v14  ;;  %v523_v46 = vmul.f32 %v5407_v27, %v487_v14  ;;  %v1286_v26 = vld [vmem:[%s7251_s6 + $0x160] sm:$0xff] }
 0x116   : > { %v744_v27 = vadd.f32 %v5523_v7, %v680_v50  ;;  %v682_v61 = vadd.f32 %v666_v48, %v600_v54  ;;  %v683_v9 = vadd.f32 %v667_v49, %v601_v51  ;;  %v1288_v7 = vld [vmem:[%s7251_s6 + $0x170] sm:$0xff]  ;;  %v4864_v48 = vld [vmem:[%s7248_s3] sm:$0xff]   ;;  %v1315_v49 = vld [vmem:[%s7251_s6 + $0x248] sm:$0xff] }
 0x117   : > { %1657 = vperm.xlu0 %4861, %v1299_v15   ;;  %955 = vmatprep.subr.bf16.mxu0 %v787_v16  ;;  %v604_v2 = vadd.f32 %v588_v52, %v522_v8  ;;  %v605_v13 = vadd.f32 %v589_v53, %v523_v46  ;;  %v5609_v33 = vpop.permute.xlu0 %835  ;;  %v1294_v50 = vld [vmem:[%s7251_s6 + $0x1a0] sm:$0xff]  ;;  %v1296_v52 = vld [vmem:[%s7251_s6 + $0x1b0] sm:$0xff]  ;;  %v4865_v53 = vld [vmem:[%s7248_s3 + $0x8] sm:$0xff]  }
 0x118   : > { %1552 = vperm.xlu1 %4863, %v1278_v17   ;;  %956 = vmatpush1.bf16.msra.mxu0 %v786_v18  ;;  %v761_v18 = vmax.f32 %v745_v4, 0.0  ;;  %v1319_v54 = vld [vmem:[%s7251_s6 + $0x268] sm:$0xff]  ;;  %v1306_v4 = vld [vmem:[%s7251_s6 + $0x200] sm:$0xff] }
 0x119   : > { %v550_v23 = vpop.permute.xlu1 %549 }
 0x11a   : > { %v586_v57 = vmul.f32 %v5401_v24, %v550_v23  ;;  %v587_v60 = vmul.f32 %v5403_v25, %v550_v23  ;;  %v1307_v24 = vld [vmem:[%s7251_s6 + $0x208] sm:$0xff] }
 0x11b   : > { %1667 = vperm.xlu0 %4861, %v1301_v20   ;;  %v760_v20 = vmax.f32 %v744_v27, 0.0  ;;  %v5620_v46 = vpop.permute.xlu0 %845 }
 0x11c   : > { %1562 = vperm.xlu1 %4863, %v1280_v28   ;;  %v602_v10 = vadd.f32 %v586_v57, %v520_v63  ;;  %v603_v11 = vadd.f32 %v587_v60, %v521_v0  ;;  %v1321_v57 = vld [vmem:[%s7251_s6 + $0x278] sm:$0xff]  ;;  %v1300_v60 = vld [vmem:[%s7251_s6 + $0x1d0] sm:$0xff]  ;;  %v1323_v63 = vld [vmem:[%s7251_s6 + $0x288] sm:$0xff] }
 0x11d   : > { %v1302_v0 = vld [vmem:[%s7251_s6 + $0x1e0] sm:$0xff] }
 0x11e   : > { %v632_v42 = vpop.permute.xlu1 %631 }
 0x11f   : > { %1677 = vperm.xlu0 %4861, %v1303_v35   ;;  %v668_v25 = vmul.f32 %v5421_v36, %v632_v42  ;;  %v669_v47 = vmul.f32 %v5423_v37, %v632_v42  ;;  %v5635_v55 = vpop.permute.xlu0 %855 }
 0x120   : > { %1572 = vperm.xlu1 %4863, %v1282_v1   ;;  %v1311_v1 = vld [vmem:[%s7251_s6 + $0x228] sm:$0xff] }
 0x121   : > { %v684_v16 = vadd.f32 %v668_v25, %v602_v10  ;;  %v685_v17 = vadd.f32 %v669_v47, %v603_v11  ;;  %v1304_v25 = vld [vmem:[%s7251_s6 + $0x1f0] sm:$0xff]  ;;  %v4867_v47 = vld [vmem:[%s7248_s3 + $0x18] sm:$0xff]   ;;  %v1331_v11 = vld [vmem:[%s7251_s6 + $0x2c8] sm:$0xff] }
 0x122   : > { %v636_v56 = vpop.permute.xlu1 %635 }
 0x123   : > { %v670_v59 = vmul.f32 %v5421_v36, %v636_v56  ;;  %v671_v62 = vmul.f32 %v5423_v37, %v636_v56  ;;  %1687 = vperm.xlu0 %4861, %v1305_v30   ;;  %v1309_v37 = vld [vmem:[%s7251_s6 + $0x218] sm:$0xff]  ;;  %v1292_v30 = vld [vmem:[%s7251_s6 + $0x190] sm:$0xff]  ;;  %v5650_v51 = vpop.permute.xlu0 %865  ;;  %v1298_v56 = vld [vmem:[%s7251_s6 + $0x1c0] sm:$0xff] }
 0x124   : > { %1582 = vperm.xlu1 %4863, %v1284_v21   ;;  %v1317_v21 = vld [vmem:[%s7251_s6 + $0x258] sm:$0xff] }
 0x125   : > { %v686_v29 = vadd.f32 %v670_v59, %v604_v2  ;;  %v687_v5 = vadd.f32 %v671_v62, %v605_v13  ;;  %v4866_v59 = vld [vmem:[%s7248_s3 + $0x10] sm:$0xff]   ;;  %v1325_v13 = vld [vmem:[%s7251_s6 + $0x298] sm:$0xff] }
 0x127   : > { %1697 = vperm.xlu0 %4861, %v1307_v24   ;;  %v724_v14 = vpop.permute.xlu1 %723  ;;  %v751_v31 = vadd.f32 %v5534_v22, %v687_v5  ;;  %v750_v32 = vadd.f32 %v5534_v22, %v686_v29  ;;  %v5666_v62 = vpop.permute.xlu0 %875  ;;  %v1329_v5 = vld [vmem:[%s7251_s6 + $0x2b8] sm:$0xff] }
 0x128   : > { %v746_v15 = vadd.f32 %v724_v14, %v682_v61  ;;  %v747_v36 = vadd.f32 %v724_v14, %v683_v9  ;;  %1592 = vperm.xlu1 %4863, %v1286_v26   ;;  %v1327_v26 = vld [vmem:[%s7251_s6 + $0x2a8] sm:$0xff]  ;;  %v1308_v61 = vld [vmem:[%s7251_s6 + $0x210] sm:$0xff]  ;;  %v4868_v9 = vld [vmem:[%s7248_s3 + $0x20] sm:$0xff]  }
 0x129   : > { %v767_v22 = vmax.f32 %v751_v31, 0.0  ;;  %v766_v43 = vmax.f32 %v750_v32, 0.0  ;;  %v1316_v32 = vld [vmem:[%s7251_s6 + $0x250] sm:$0xff] }
 0x12a   : > { %v762_v23 = vmax.f32 %v746_v15, 0.0  ;;  %v763_v28 = vmax.f32 %v747_v36, 0.0  ;;  %v1310_v15 = vld [vmem:[%s7251_s6 + $0x220] sm:$0xff]  ;;  %v1333_v36 = vld [vmem:[%s7251_s6 + $0x2d8] sm:$0xff] }
 0x12b   : > { %1707 = vperm.xlu0 %4861, %v1309_v37   ;;  %v729_v34 = vpop.permute.xlu1 %728  ;;  %v5681_v24 = vpop.permute.xlu0 %885  ;;  %v1312_v37 = vld [vmem:[%s7251_s6 + $0x230] sm:$0xff] }
 0x12c   : > { %v748_v35 = vadd.f32 %v729_v34, %v684_v16  ;;  %v749_v38 = vadd.f32 %v729_v34, %v685_v17  ;;  %1602 = vperm.xlu1 %4863, %v1288_v7   ;;  %v789_v39 = vpack.c.bf16 %v763_v28, %v761_v18  ;;  %v788_v40 = vpack.c.bf16 %v762_v23, %v760_v20  ;;  %v4869_v17 = vld [vmem:[%s7248_s3 + $0x28] sm:$0xff]   ;;  %v1314_v20 = vld [vmem:[%s7251_s6 + $0x240] sm:$0xff]  ;;  %v1337_v28 = vld [vmem:[%s7251_s6 + $0x2f8] sm:$0xff] }
 0x12d   : > { %v1335_v18 = vld [vmem:[%s7251_s6 + $0x2e8] sm:$0xff]  ;;  %v4870_v34 = vld [vmem:[%s7248_s3 + $0x30] sm:$0xff]  }
 0x12e   : > { %v764_v42 = vmax.f32 %v748_v35, 0.0  ;;  %v765_v19 = vmax.f32 %v749_v38, 0.0  ;;  %957 = vmatprep.subr.bf16.mxu0 %v789_v39  ;;  %v1339_v35 = vld [vmem:[%s7251_s6 + $0x308] sm:$0xff]  ;;  %v1318_v38 = vld [vmem:[%s7251_s6 + $0x260] sm:$0xff] }
 0x12f   : > { %1717 = vperm.xlu0 %4861, %v1311_v1   ;;  %958 = vmatpush1.bf16.msra.mxu0 %v788_v40  ;;  %v5676_v2 = vpop.permute.xlu1 %810  ;;  %v5698_v29 = vpop.permute.xlu0 %1377  ;;  %v1341_v40 = vld [vmem:[%s7251_s6 + $0x318] sm:$0xff] }
 0x130   : > { %1612 = vperm.xlu1 %4863, %v1290_v12   ;;  %v791_v45 = vpack.c.bf16 %v767_v22, %v765_v19  ;;  %v790_v8 = vpack.c.bf16 %v766_v43, %v764_v42  ;;  %v1320_v12 = vld [vmem:[%s7251_s6 + $0x270] sm:$0xff]  ;;  %v4871_v42 = vld [vmem:[%s7248_s3 + $0x38] sm:$0xff]   ;;  %v1343_v22 = vld [vmem:[%s7251_s6 + $0x328] sm:$0xff] }
 0x132   : > { %959 = vmatprep.subr.bf16.mxu0 %v791_v45  ;;  %v1322_v45 = vld [vmem:[%s7251_s6 + $0x280] sm:$0xff] }
 0x133   : > { %1727 = vperm.xlu0 %4861, %v1313_v41   ;;  %960 = vmatpush1.bf16.msra.mxu0 %v790_v8  ;;  %v5695_v27 = vpop.permute.xlu1 %820  ;;  %v5715_v14 = vpop.permute.xlu0 %1387  ;;  %v1345_v41 = vld [vmem:[%s7251_s6 + $0x338] sm:$0xff]  ;;  %v1324_v8 = vld [vmem:[%s7251_s6 + $0x290] sm:$0xff] }
 0x134   : > { %1622 = vperm.xlu1 %4863, %v1292_v30  }
 0x136   : > { %4712 = vmatmul.mubr.msk.bf16.vlgmr.msra.gmra.mrb[0].mxu0 %vm928_vm0, %v4864_v48 }
 0x137   : > { %1737 = vperm.xlu0 %4861, %v1315_v49   ;;  %995 = vmatprep.mubr.bf16.mxu0 %v7254_v6  ;;  %v5710_v10 = vpop.permute.xlu1 %830  ;;  %v5733_v7 = vpop.permute.xlu0 %1397  ;;  %v1347_v49 = vld [vmem:[%s7251_s6 + $0x348] sm:$0xff] }
 0x138   : > { %1632 = vperm.xlu1 %4863, %v1294_v50   ;;  %v1326_v50 = vld [vmem:[%s7251_s6 + $0x2a0] sm:$0xff] }
 0x13b   : > { %1747 = vperm.xlu0 %4861, %v1317_v21   ;;  %v5728_v16 = vpop.permute.xlu1 %840  ;;  %v5748_v31 = vpop.permute.xlu0 %1407 }
 0x13c   : > { %1642 = vperm.xlu1 %4863, %v1296_v52   ;;  %v1349_v52 = vld [vmem:[%s7251_s6 + $0x358] sm:$0xff] }
 0x13e   : > { %4713 = vmatmul.mubr.msk.bf16.gmra.mrb[4].mxu0 %vm928_vm0, %v4865_v53 }
 0x13f   : > { %1757 = vperm.xlu0 %4861, %v1319_v54   ;;  %1005 = vmatprep.mubr.bf16.mxu0 %v7254_v6  ;;  %v5743_v23 = vpop.permute.xlu1 %850  ;;  %v5765_v1 = vpop.permute.xlu0 %1417  ;;  %v1328_v54 = vld [vmem:[%s7251_s6 + $0x2b0] sm:$0xff] }
 0x140   : > { %1652 = vperm.xlu1 %4863, %v1298_v56   ;;  %v1351_v56 = vld [vmem:[%s7251_s6 + $0x368] sm:$0xff] }
 0x143   : > { %1767 = vperm.xlu0 %4861, %v1321_v57   ;;  %v5762_v39 = vpop.permute.xlu1 %860  ;;  %v5782_v43 = vpop.permute.xlu0 %1427  ;;  %v1330_v57 = vld [vmem:[%s7251_s6 + $0x2c0] sm:$0xff] }
 0x144   : > { %1662 = vperm.xlu1 %4863, %v1300_v60  }
 0x146   : > { %4714 = vmatmul.mubr.msk.bf16.gmra.mrb[8].mxu0 %vm928_vm0, %v4866_v59 }
 0x147   : > { %1777 = vperm.xlu0 %4861, %v1323_v63   ;;  %1015 = vmatprep.mubr.bf16.mxu0 %v7254_v6  ;;  %v5777_v19 = vpop.permute.xlu1 %870  ;;  %v5797_v48 = vpop.permute.xlu0 %1437  ;;  %v1353_v63 = vld [vmem:[%s7251_s6 + $0x378] sm:$0xff] }
 0x148   : > { %1672 = vperm.xlu1 %4863, %v1302_v0   ;;  %v1332_v0 = vld [vmem:[%s7251_s6 + $0x2d0] sm:$0xff] }
 0x14b   : > { %1787 = vperm.xlu0 %4861, %v1325_v13   ;;  %v5795_v30 = vpop.permute.xlu1 %880  ;;  %v5810_v53 = vpop.permute.xlu0 %1447 }
 0x14c   : > { %1682 = vperm.xlu1 %4863, %v1304_v25   ;;  %v1355_v25 = vld [vmem:[%s7251_s6 + $0x388] sm:$0xff] }
 0x14e   : > { %4715 = vmatmul.mubr.msk.bf16.gmra.mrb[12].mxu0 %vm928_vm0, %v4867_v47 }
 0x14f   : > { %1797 = vperm.xlu0 %4861, %v1327_v26   ;;  %1025 = vmatprep.mubr.bf16.mxu0 %v7254_v6  ;;  %v5805_v21 = vpop.permute.xlu1 %1372  ;;  %v5823_v59 = vpop.permute.xlu0 %1457  ;;  %v1334_v26 = vld [vmem:[%s7251_s6 + $0x2e0] sm:$0xff] }
 0x150   : > { %1692 = vperm.xlu1 %4863, %v1306_v4   ;;  %v1357_v4 = vld [vmem:[%s7251_s6 + $0x398] sm:$0xff] }
 0x153   : > { %1807 = vperm.xlu0 %4861, %v1329_v5   ;;  %v5821_v60 = vpop.permute.xlu1 %1382  ;;  %v5836_v47 = vpop.permute.xlu0 %1467  ;;  %v1336_v5 = vld [vmem:[%s7251_s6 + $0x2f0] sm:$0xff] }
 0x154   : > { %1702 = vperm.xlu1 %4863, %v1308_v61  }
 0x156   : > { %4716 = vmatmul.mubr.msk.bf16.gmra.mrb[16].mxu0 %vm928_vm0, %v4868_v9 }
 0x157   : > { %1817 = vperm.xlu0 %4861, %v1331_v11   ;;  %1035 = vmatprep.mubr.bf16.mxu0 %v7254_v6  ;;  %v5831_v13 = vpop.permute.xlu1 %1392  ;;  %v5849_v9 = vpop.permute.xlu0 %1477  ;;  %v1359_v11 = vld [vmem:[%s7251_s6 + $0x3a8] sm:$0xff] }
 0x158   : > { %1712 = vperm.xlu1 %4863, %v1310_v15   ;;  %v1338_v15 = vld [vmem:[%s7251_s6 + $0x300] sm:$0xff] }
 0x15b   : > { %1827 = vperm.xlu0 %4861, %v1333_v36   ;;  %v5847_v61 = vpop.permute.xlu1 %1402 }
 0x15c   : > { %1722 = vperm.xlu1 %4863, %v1312_v37   ;;  %v1361_v37 = vld [vmem:[%s7251_s6 + $0x3b8] sm:$0xff] }
 0x15e   : > { %4717 = vmatmul.mubr.msk.bf16.gmra.mrb[20].mxu0 %vm928_vm0, %v4869_v17  ;;  %v5862_v17 = vpop.permute.xlu0 %1487 }
 0x15f   : > { %1837 = vperm.xlu0 %4861, %v1335_v18   ;;  %1045 = vmatprep.mubr.bf16.mxu0 %v7254_v6  ;;  %v5857_v36 = vpop.permute.xlu1 %1412  ;;  %v1340_v18 = vld [vmem:[%s7251_s6 + $0x310] sm:$0xff] }
 0x160   : > { %1732 = vperm.xlu1 %4863, %v1314_v20   ;;  %v1363_v20 = vld [vmem:[%s7251_s6 + $0x3c8] sm:$0xff] }
 0x163   : > { %1847 = vperm.xlu0 %4861, %v1337_v28   ;;  %v1342_v28 = vld [vmem:[%s7251_s6 + $0x320] sm:$0xff] }
 0x164   : > { %1742 = vperm.xlu1 %4863, %v1316_v32   ;;  %v5873_v32 = vpop.permute.xlu1 %1422 }
 0x166   : > { %4718 = vmatmul.mubr.msk.bf16.gmra.mrb[24].mxu0 %vm928_vm0, %v4870_v34  ;;  %v5875_v34 = vpop.permute.xlu0 %1497 }
 0x167   : > { %1857 = vperm.xlu0 %4861, %v1339_v35   ;;  %1055 = vmatprep.mubr.bf16.mxu0 %v7254_v6  ;;  %v1365_v35 = vld [vmem:[%s7251_s6 + $0x3d8] sm:$0xff] }
 0x168   : > { %1752 = vperm.xlu1 %4863, %v1318_v38   ;;  %v1344_v38 = vld [vmem:[%s7251_s6 + $0x330] sm:$0xff] }
 0x16b   : > { %1867 = vperm.xlu0 %4861, %v1341_v40   ;;  %v5883_v40 = vpop.permute.xlu1 %1432 }
 0x16c   : > { %1762 = vperm.xlu1 %4863, %v1320_v12   ;;  %v1367_v12 = vld [vmem:[%s7251_s6 + $0x3e8] sm:$0xff] }
 0x16e   : > { %4719 = vmatmul.mubr.msk.bf16.gmra.mrb[28].mxu0 %vm928_vm0, %v4871_v42  ;;  %v5888_v42 = vpop.permute.xlu0 %1507 }
 0x16f   : > { %1877 = vperm.xlu0 %4861, %v1343_v22   ;;  %2426 = vmatprep.mubr.bf16.mxu0 %v7254_v6  ;;  %v1346_v22 = vld [vmem:[%s7251_s6 + $0x340] sm:$0xff] }
 0x170   : > { %1772 = vperm.xlu1 %4863, %v1322_v45   ;;  %v1369_v45 = vld [vmem:[%s7251_s6 + $0x3f8] sm:$0xff] }
 0x173   : > { %1887 = vperm.xlu0 %4861, %v1345_v41   ;;  %v1348_v41 = vld [vmem:[%s7251_s6 + $0x350] sm:$0xff] }
 0x174   : > { %1782 = vperm.xlu1 %4863, %v1324_v8   ;;  %v5899_v8 = vpop.permute.xlu1 %1442 }
 0x177   : > { %1897 = vperm.xlu0 %4861, %v1347_v49   ;;  %v5901_v49 = vpop.permute.xlu0 %1517 }
 0x178   : > { %1792 = vperm.xlu1 %4863, %v1326_v50   ;;  %v1350_v50 = vld [vmem:[%s7251_s6 + $0x360] sm:$0xff] }
 0x17b   : > { %1907 = vperm.xlu0 %4861, %v1349_v52   ;;  %v5906_v52 = vpop.permute.xlu1 %1452 }
 0x17c   : > { %1802 = vperm.xlu1 %4863, %v1328_v54   ;;  %v1352_v54 = vld [vmem:[%s7251_s6 + $0x370] sm:$0xff] }
 0x17f   : > { %1917 = vperm.xlu0 %4861, %v1351_v56   ;;  %v1354_v56 = vld [vmem:[%s7251_s6 + $0x380] sm:$0xff] }
 0x180   : > { %1812 = vperm.xlu1 %4863, %v1330_v57   ;;  %v5914_v57 = vpop.permute.xlu1 %1462 }
 0x183   : > { %1927 = vperm.xlu0 %4861, %v1353_v63   ;;  %v1356_v63 = vld [vmem:[%s7251_s6 + $0x390] sm:$0xff] }
 0x184   : > { %1822 = vperm.xlu1 %4863, %v1332_v0   ;;  %v5919_v0 = vpop.permute.xlu1 %1472 }
 0x187   : > { %1937 = vperm.xlu0 %4861, %v1355_v25   ;;  %v1358_v25 = vld [vmem:[%s7251_s6 + $0x3a0] sm:$0xff] }
 0x188   : > { %1832 = vperm.xlu1 %4863, %v1334_v26   ;;  %v1360_v26 = vld [vmem:[%s7251_s6 + $0x3b0] sm:$0xff] }
 0x18b   : > { %1947 = vperm.xlu0 %4861, %v1357_v4   ;;  %v5927_v4 = vpop.permute.xlu1 %1482 }
 0x18c   : > { %1842 = vperm.xlu1 %4863, %v1336_v5   ;;  %v1362_v5 = vld [vmem:[%s7251_s6 + $0x3c0] sm:$0xff] }
 0x18f   : > { %1957 = vperm.xlu0 %4861, %v1359_v11   ;;  %v5932_v11 = vpop.permute.xlu1 %1492 }
 0x190   : > { %1852 = vperm.xlu1 %4863, %v1338_v15   ;;  %v1364_v15 = vld [vmem:[%s7251_s6 + $0x3d0] sm:$0xff] }
 0x193   : > { %1967 = vperm.xlu0 %4861, %v1361_v37   ;;  %v1366_v37 = vld [vmem:[%s7251_s6 + $0x3e0] sm:$0xff] }
 0x194   : > { %1862 = vperm.xlu1 %4863, %v1340_v18   ;;  %v5940_v18 = vpop.permute.xlu1 %1502 }
 0x197   : > { %1977 = vperm.xlu0 %4861, %v1363_v20   ;;  %v1368_v20 = vld [vmem:[%s7251_s6 + $0x3f0] sm:$0xff] }
 0x198   : > { %1872 = vperm.xlu1 %4863, %v1342_v28   ;;  %v5945_v28 = vpop.permute.xlu1 %1512 }
 0x19b   : > { %1987 = vperm.xlu0 %4861, %v1365_v35  }
 0x19c   : > { %1882 = vperm.xlu1 %4863, %v1344_v38  }
 0x19f   : > { %1997 = vperm.xlu0 %4861, %v1367_v12  }
 0x1a0   : > { %1892 = vperm.xlu1 %4863, %v1346_v22  }
 0x1a3   : > { %2007 = vperm.xlu0 %4861, %v1369_v45  }
 0x1a4   : > { %1902 = vperm.xlu1 %4863, %v1348_v41  }
 0x1a8   : > { %1912 = vperm.xlu1 %4863, %v1350_v50  }
 0x1ac   : > { %1922 = vperm.xlu1 %4863, %v1352_v54  }
 0x1b0   : > { %1932 = vperm.xlu1 %4863, %v1354_v56  }
 0x1b4   : > { %1942 = vperm.xlu1 %4863, %v1356_v63  }
 0x1b8   : > { %1952 = vperm.xlu1 %4863, %v1358_v25  }
 0x1bc   : > { %1962 = vperm.xlu1 %4863, %v1360_v26  }
 0x1c0   : > { %1972 = vperm.xlu1 %4863, %v1362_v5  }
 0x1c4   : > { %1982 = vperm.xlu1 %4863, %v1364_v15  }
 0x1c8   : > { %1992 = vperm.xlu1 %4863, %v1366_v37  }
 0x1cc   : > { %2002 = vperm.xlu1 %4863, %v1368_v20  }
 0x209   : > { %v987_v35 = vpop.f32.mrb[0].mxu0 }
 0x20a   : > { %v988_v38 = vadd.f32 %v987_v35, %v5676_v2  ;;  %v989_v12 = vpop.f32.mrb[1].mxu0 }
 0x20b   : > { %v990_v22 = vadd.f32 %v989_v12, %v5676_v2  ;;  %v991_v45 = vpop.f32.mrb[2].mxu0 }
 0x20c   : > { %v992_v41 = vadd.f32 %v991_v45, %v5559_v44  ;;  %v993_v50 = vpop.f32.mrb[3].mxu0  ;;  %v1066_v56 = vmax.f32 %v988_v38, 0.0 }
 0x20d   : > { %v994_v54 = vadd.f32 %v993_v50, %v5559_v44  ;;  %v1067_v25 = vmax.f32 %v990_v22, 0.0 }
 0x20e   : > { %v1068_v63 = vmax.f32 %v992_v41, 0.0 }
 0x20f   : > { %v1069_v26 = vmax.f32 %v994_v54, 0.0 }
 0x210   : > { %v1226_v5 = vpack.c.bf16 %v1068_v63, %v1066_v56 }
 0x211   : > { %v1227_v15 = vpack.c.bf16 %v1069_v26, %v1067_v25  ;;  %v997_v37 = vpop.f32.mrb[4].mxu0 }
 0x212   : > { %v998_v20 = vadd.f32 %v997_v37, %v5695_v27  ;;  %v999_v58 = vpop.f32.mrb[5].mxu0 }
 0x213   : > { %v1000_v35 = vadd.f32 %v999_v58, %v5695_v27  ;;  %v1001_v6 = vpop.f32.mrb[6].mxu0  ;;  %2394 = vmatprep.subr.bf16.mxu0 %v1227_v15  ;;  %4789 = vmatprep.subr.bf16.mxu1 %v1227_v15 }
 0x214   : > { %v1002_v2 = vadd.f32 %v1001_v6, %v5592_v3  ;;  %v1003_v12 = vpop.f32.mrb[7].mxu0  ;;  %2395 = vmatpush1.bf16.msra.mxu0 %v1226_v5  ;;  %4797 = vmatpush1.bf16.msra.mxu1 %v1226_v5  ;;  %v1070_v38 = vmax.f32 %v998_v20, 0.0 }
 0x215   : > { %v1004_v44 = vadd.f32 %v1003_v12, %v5592_v3  ;;  %v1071_v45 = vmax.f32 %v1000_v35, 0.0 }
 0x216   : > { %v1072_v22 = vmax.f32 %v1002_v2, 0.0 }
 0x217   : > { %v1073_v41 = vmax.f32 %v1004_v44, 0.0 }
 0x218   : > { %v1228_v50 = vpack.c.bf16 %v1072_v22, %v1070_v38 }
 0x219   : > { %v1229_v54 = vpack.c.bf16 %v1073_v41, %v1071_v45  ;;  %v1007_v56 = vpop.f32.mrb[8].mxu0 }
 0x21a   : > { %v1008_v63 = vadd.f32 %v1007_v56, %v5710_v10  ;;  %v1009_v58 = vpop.f32.mrb[9].mxu0 }
 0x21b   : > { %v1010_v27 = vadd.f32 %v1009_v58, %v5710_v10  ;;  %v1011_v25 = vpop.f32.mrb[10].mxu0  ;;  %2396 = vmatprep.subr.bf16.mxu0 %v1229_v54  ;;  %4790 = vmatprep.subr.bf16.mxu1 %v1229_v54 }
 0x21c   : > { %v1012_v6 = vadd.f32 %v1011_v25, %v5609_v33  ;;  %v1013_v26 = vpop.f32.mrb[11].mxu0  ;;  %2397 = vmatpush1.bf16.msra.mxu0 %v1228_v50  ;;  %4798 = vmatpush1.bf16.msra.mxu1 %v1228_v50  ;;  %v1074_v5 = vmax.f32 %v1008_v63, 0.0 }
 0x21d   : > { %v1014_v3 = vadd.f32 %v1013_v26, %v5609_v33  ;;  %v1075_v37 = vmax.f32 %v1010_v27, 0.0 }
 0x21e   : > { %v1076_v15 = vmax.f32 %v1012_v6, 0.0 }
 0x21f   : > { %v1077_v20 = vmax.f32 %v1014_v3, 0.0 }
 0x220   : > { %v1230_v35 = vpack.c.bf16 %v1076_v15, %v1074_v5 }
 0x221   : > { %v1231_v2 = vpack.c.bf16 %v1077_v20, %v1075_v37  ;;  %v1017_v12 = vpop.f32.mrb[12].mxu0 }
 0x222   : > { %v1018_v44 = vadd.f32 %v1017_v12, %v5728_v16  ;;  %v1019_v10 = vpop.f32.mrb[13].mxu0 }
 0x223   : > { %v1020_v38 = vadd.f32 %v1019_v10, %v5728_v16  ;;  %v1021_v22 = vpop.f32.mrb[14].mxu0  ;;  %2398 = vmatprep.subr.bf16.mxu0 %v1231_v2  ;;  %4791 = vmatprep.subr.bf16.mxu1 %v1231_v2 }
 0x224   : > { %v1022_v45 = vadd.f32 %v1021_v22, %v5620_v46  ;;  %v1023_v41 = vpop.f32.mrb[15].mxu0  ;;  %2399 = vmatpush1.bf16.msra.mxu0 %v1230_v35  ;;  %4799 = vmatpush1.bf16.msra.mxu1 %v1230_v35  ;;  %v1078_v50 = vmax.f32 %v1018_v44, 0.0 }
 0x225   : > { %v1024_v33 = vadd.f32 %v1023_v41, %v5620_v46  ;;  %v1079_v56 = vmax.f32 %v1020_v38, 0.0 }
 0x226   : > { %v1080_v54 = vmax.f32 %v1022_v45, 0.0 }
 0x227   : > { %v1081_v63 = vmax.f32 %v1024_v33, 0.0 }
 0x228   : > { %v1232_v58 = vpack.c.bf16 %v1080_v54, %v1078_v50 }
 0x229   : > { %v1233_v27 = vpack.c.bf16 %v1081_v63, %v1079_v56  ;;  %v1027_v25 = vpop.f32.mrb[16].mxu0 }
 0x22a   : > { %v1028_v6 = vadd.f32 %v1027_v25, %v5743_v23  ;;  %v1029_v16 = vpop.f32.mrb[17].mxu0 }
 0x22b   : > { %v1030_v26 = vadd.f32 %v1029_v16, %v5743_v23  ;;  %v1031_v3 = vpop.f32.mrb[18].mxu0  ;;  %2400 = vmatprep.subr.bf16.mxu0 %v1233_v27  ;;  %4792 = vmatprep.subr.bf16.mxu1 %v1233_v27 }
 0x22c   : > { %v1032_v5 = vadd.f32 %v1031_v3, %v5635_v55  ;;  %v1033_v15 = vpop.f32.mrb[19].mxu0  ;;  %2401 = vmatpush1.bf16.msra.mxu0 %v1232_v58  ;;  %4800 = vmatpush1.bf16.msra.mxu1 %v1232_v58  ;;  %v1082_v37 = vmax.f32 %v1028_v6, 0.0 }
 0x22d   : > { %v1034_v46 = vadd.f32 %v1033_v15, %v5635_v55  ;;  %v1083_v35 = vmax.f32 %v1030_v26, 0.0 }
 0x22e   : > { %v1084_v20 = vmax.f32 %v1032_v5, 0.0 }
 0x22f   : > { %v1085_v2 = vmax.f32 %v1034_v46, 0.0 }
 0x230   : > { %v1234_v12 = vpack.c.bf16 %v1084_v20, %v1082_v37 }
 0x231   : > { %v1235_v44 = vpack.c.bf16 %v1085_v2, %v1083_v35  ;;  %v1037_v10 = vpop.f32.mrb[20].mxu0 }
 0x232   : > { %v1038_v38 = vadd.f32 %v1037_v10, %v5762_v39  ;;  %v1039_v23 = vpop.f32.mrb[21].mxu0 }
 0x233   : > { %v1040_v22 = vadd.f32 %v1039_v23, %v5762_v39  ;;  %v1041_v45 = vpop.f32.mrb[22].mxu0  ;;  %2402 = vmatprep.subr.bf16.mxu0 %v1235_v44  ;;  %4793 = vmatprep.subr.bf16.mxu1 %v1235_v44 }
 0x234   : > { %v1042_v41 = vadd.f32 %v1041_v45, %v5650_v51  ;;  %v1043_v33 = vpop.f32.mrb[23].mxu0  ;;  %2403 = vmatpush1.bf16.msra.mxu0 %v1234_v12  ;;  %4801 = vmatpush1.bf16.msra.mxu1 %v1234_v12  ;;  %v1086_v50 = vmax.f32 %v1038_v38, 0.0 }
 0x235   : > { %v1044_v55 = vadd.f32 %v1043_v33, %v5650_v51  ;;  %v1087_v56 = vmax.f32 %v1040_v22, 0.0 }
 0x236   : > { %v1088_v54 = vmax.f32 %v1042_v41, 0.0 }
 0x237   : > { %v1089_v63 = vmax.f32 %v1044_v55, 0.0 }
 0x238   : > { %v1236_v58 = vpack.c.bf16 %v1088_v54, %v1086_v50 }
 0x239   : > { %v1237_v27 = vpack.c.bf16 %v1089_v63, %v1087_v56  ;;  %v1047_v25 = vpop.f32.mrb[24].mxu0  ;;  %v4873_v56 = vld [vmem:[%s7250_s5 + $0xe8] sm:$0xff]  }
 0x23a   : > { %v1048_v6 = vadd.f32 %v1047_v25, %v5777_v19  ;;  %v1049_v39 = vpop.f32.mrb[25].mxu0  ;;  %v4874_v63 = vld [vmem:[%s7250_s5 + $0x8] sm:$0xff]   ;;  %v4877_v25 = vld [vmem:[%s7250_s5 + $0xf8] sm:$0xff]  }
 0x23b   : > { %v1050_v16 = vadd.f32 %v1049_v39, %v5777_v19  ;;  %v1051_v26 = vpop.f32.mrb[26].mxu0  ;;  %2404 = vmatprep.subr.bf16.mxu0 %v1237_v27  ;;  %4794 = vmatprep.subr.bf16.mxu1 %v1237_v27  ;;  %v4876_v27 = vld [vmem:[%s7250_s5 + $0x10] sm:$0xff]   ;;  %v4879_v39 = vld [vmem:[%s7250_s5 + $0x100] sm:$0xff]  }
 0x23c   : > { %v1052_v3 = vadd.f32 %v1051_v26, %v5666_v62  ;;  %v1053_v5 = vpop.f32.mrb[27].mxu0  ;;  %2405 = vmatpush1.bf16.msra.mxu0 %v1236_v58  ;;  %4802 = vmatpush1.bf16.msra.mxu1 %v1236_v58  ;;  %v1090_v15 = vmax.f32 %v1048_v6, 0.0  ;;  %v4875_v58 = vld [vmem:[%s7250_s5 + $0xf0] sm:$0xff]   ;;  %v4878_v6 = vld [vmem:[%s7250_s5 + $0x18] sm:$0xff]   ;;  %v4881_v26 = vld [vmem:[%s7250_s5 + $0x108] sm:$0xff]  }
 0x23d   : > { %v1054_v51 = vadd.f32 %v1053_v5, %v5666_v62  ;;  %v1091_v37 = vmax.f32 %v1050_v16, 0.0  ;;  %v4880_v16 = vld [vmem:[%s7250_s5 + $0x20] sm:$0xff]   ;;  %v4883_v5 = vld [vmem:[%s7250_s5 + $0x110] sm:$0xff]  }
 0x23e   : > { %v1092_v46 = vmax.f32 %v1052_v3, 0.0  ;;  %v4882_v3 = vld [vmem:[%s7250_s5 + $0x28] sm:$0xff]  }
 0x23f   : > { %v1093_v20 = vmax.f32 %v1054_v51, 0.0  ;;  %v4884_v51 = vld [vmem:[%s7250_s5 + $0x30] sm:$0xff]  }
 0x240   : > { %v1238_v35 = vpack.c.bf16 %v1092_v46, %v1090_v15  ;;  %v4885_v15 = vld [vmem:[%s7250_s5 + $0x118] sm:$0xff]  }
 0x241   : > { %v1239_v2 = vpack.c.bf16 %v1093_v20, %v1091_v37  ;;  %v1057_v12 = vpop.f32.mrb[28].mxu0  ;;  %v4886_v46 = vld [vmem:[%s7250_s5 + $0x38] sm:$0xff]   ;;  %v4887_v37 = vld [vmem:[%s7250_s5 + $0x120] sm:$0xff]  }
 0x242   : > { %v1058_v44 = vadd.f32 %v1057_v12, %v5795_v30  ;;  %v1059_v19 = vpop.f32.mrb[29].mxu0  ;;  %v4888_v20 = vld [vmem:[%s7250_s5 + $0x40] sm:$0xff]   ;;  %v4891_v12 = vld [vmem:[%s7250_s5 + $0x130] sm:$0xff]  }
 0x243   : > { %v1060_v10 = vadd.f32 %v1059_v19, %v5795_v30  ;;  %v1061_v38 = vpop.f32.mrb[30].mxu0  ;;  %2406 = vmatprep.subr.bf16.mxu0 %v1239_v2  ;;  %4795 = vmatprep.subr.bf16.mxu1 %v1239_v2  ;;  %v4872_v30 = vld [vmem:[%s7250_s5] sm:$0xff]   ;;  %v4890_v2 = vld [vmem:[%s7250_s5 + $0x48] sm:$0xff]   ;;  %v4893_v19 = vld [vmem:[%s7250_s5 + $0x138] sm:$0xff]  }
 0x244   : > { %v1062_v23 = vadd.f32 %v1061_v38, %v5681_v24  ;;  %v1063_v22 = vpop.f32.mrb[31].mxu0  ;;  %2407 = vmatpush1.bf16.msra.mxu0 %v1238_v35  ;;  %4803 = vmatpush1.bf16.msra.mxu1 %v1238_v35  ;;  %v1094_v45 = vmax.f32 %v1058_v44, 0.0  ;;  %v4889_v35 = vld [vmem:[%s7250_s5 + $0x128] sm:$0xff]   ;;  %v4892_v44 = vld [vmem:[%s7250_s5 + $0x50] sm:$0xff]   ;;  %v4895_v38 = vld [vmem:[%s7250_s5 + $0x140] sm:$0xff]  }
 0x245   : > { %v1064_v62 = vadd.f32 %v1063_v22, %v5681_v24  ;;  %v1095_v33 = vmax.f32 %v1060_v10, 0.0  ;;  %v7281_v24 = vmov 0   ;;  %v4894_v10 = vld [vmem:[%s7250_s5 + $0x58] sm:$0xff]   ;;  %v4897_v22 = vld [vmem:[%s7250_s5 + $0x148] sm:$0xff]  }
 0x246   : > { %v1096_v41 = vmax.f32 %v1062_v23, 0.0  ;;  %v4896_v23 = vld [vmem:[%s7250_s5 + $0x60] sm:$0xff]  }
 0x247   : > { %v1097_v55 = vmax.f32 %v1064_v62, 0.0  ;;  %v4898_v62 = vld [vmem:[%s7250_s5 + $0x68] sm:$0xff]  }
 0x248   : > { %v1240_v50 = vpack.c.bf16 %v1096_v41, %v1094_v45  ;;  %v4899_v45 = vld [vmem:[%s7250_s5 + $0x150] sm:$0xff]  }
 0x249   : > { %v1241_v54 = vpack.c.bf16 %v1097_v55, %v1095_v33  ;;  %v4900_v41 = vld [vmem:[%s7250_s5 + $0x70] sm:$0xff]   ;;  %v4901_v33 = vld [vmem:[%s7250_s5 + $0x158] sm:$0xff]  }
 0x24a   : > { %v4902_v55 = vld [vmem:[%s7250_s5 + $0x78] sm:$0xff]  }
 0x24b   : > { %2408 = vmatprep.subr.bf16.mxu0 %v1241_v54  ;;  %4796 = vmatprep.subr.bf16.mxu1 %v1241_v54  ;;  %v4904_v54 = vld [vmem:[%s7250_s5 + $0x80] sm:$0xff]  }
 0x24c   : > { %2409 = vmatpush1.bf16.msra.mxu0 %v1240_v50  ;;  %4804 = vmatpush1.bf16.msra.mxu1 %v1240_v50  ;;  %v4903_v50 = vld [vmem:[%s7250_s5 + $0x160] sm:$0xff]  }
 0x24f   : > { %2427 = vmatmul.mubr.bf16.vlgmr.msra.gmra.mrb[32].mxu0 %v4872_v30  ;;  %2717 = vmatmul.mubr.bf16.vlgmr.msra.gmra.mrb[0].mxu1 %v4873_v56  ;;  %v4905_v30 = vld [vmem:[%s7250_s5 + $0x168] sm:$0xff]   ;;  %v6113_v56 = vpop.permute.xlu0 %1527 }
 0x250   : > { %2436 = vmatprep.mubr.bf16.mxu0 %v7281_v24  ;;  %2726 = vmatprep.mubr.bf16.mxu1 %v7281_v24 }
 0x257   : > { %2437 = vmatmul.mubr.bf16.gmra.mrb[36].mxu0 %v4874_v63  ;;  %2727 = vmatmul.mubr.bf16.gmra.mrb[4].mxu1 %v4875_v58  ;;  %v6115_v63 = vpop.permute.xlu1 %1522  ;;  %v6119_v58 = vpop.permute.xlu0 %1537 }
 0x258   : > { %2446 = vmatprep.mubr.bf16.mxu0 %v7281_v24  ;;  %2736 = vmatprep.mubr.bf16.mxu1 %v7281_v24  ;;  %7282 = vst [vmem:[#allocation3_spill] sm:$0xff] %v6119_v58 }
 0x25f   : > { %2447 = vmatmul.mubr.bf16.gmra.mrb[40].mxu0 %v4876_v27  ;;  %2737 = vmatmul.mubr.bf16.gmra.mrb[8].mxu1 %v4877_v25  ;;  %v6121_v27 = vpop.permute.xlu1 %1532  ;;  %v4906_v25 = vld [vmem:[%s7250_s5 + $0x88] sm:$0xff]  }
 0x260   : > { %2456 = vmatprep.mubr.bf16.mxu0 %v7281_v24  ;;  %2746 = vmatprep.mubr.bf16.mxu1 %v7281_v24 }
 0x267   : > { %2457 = vmatmul.mubr.bf16.gmra.mrb[44].mxu0 %v4878_v6  ;;  %2747 = vmatmul.mubr.bf16.gmra.mrb[12].mxu1 %v4879_v39  ;;  %v4907_v6 = vld [vmem:[%s7250_s5 + $0x170] sm:$0xff]   ;;  %v6131_v39 = vpop.permute.xlu0 %1547 }
 0x268   : > { %2466 = vmatprep.mubr.bf16.mxu0 %v7281_v24  ;;  %2756 = vmatprep.mubr.bf16.mxu1 %v7281_v24  ;;  %7283 = vst [vmem:[#allocation4_spill] sm:$0xff] %v6131_v39 }
 0x26f   : > { %2467 = vmatmul.mubr.bf16.gmra.mrb[48].mxu0 %v4880_v16  ;;  %2757 = vmatmul.mubr.bf16.gmra.mrb[16].mxu1 %v4881_v26  ;;  %v6133_v16 = vpop.permute.xlu1 %1542  ;;  %v4908_v26 = vld [vmem:[%s7250_s5 + $0x90] sm:$0xff]  }
 0x270   : > { %2476 = vmatprep.mubr.bf16.mxu0 %v7281_v24  ;;  %2766 = vmatprep.mubr.bf16.mxu1 %v7281_v24  ;;  %7284 = vst [vmem:[#allocation5_spill] sm:$0xff] %v6133_v16 }
 0x277   : > { %2477 = vmatmul.mubr.bf16.gmra.mrb[52].mxu0 %v4882_v3  ;;  %2767 = vmatmul.mubr.bf16.gmra.mrb[20].mxu1 %v4883_v5  ;;  %v4909_v3 = vld [vmem:[%s7250_s5 + $0x178] sm:$0xff]   ;;  %v6141_v5 = vpop.permute.xlu0 %1557 }
 0x278   : > { %2486 = vmatprep.mubr.bf16.mxu0 %v7281_v24  ;;  %2776 = vmatprep.mubr.bf16.mxu1 %v7281_v24  ;;  %7285 = vst [vmem:[#allocation6_spill] sm:$0xff] %v6141_v5 }
 0x27f   : > { %2487 = vmatmul.mubr.bf16.gmra.mrb[56].mxu0 %v4884_v51  ;;  %2777 = vmatmul.mubr.bf16.gmra.mrb[24].mxu1 %v4885_v15  ;;  %v6143_v51 = vpop.permute.xlu1 %1552  ;;  %v4910_v15 = vld [vmem:[%s7250_s5 + $0x98] sm:$0xff]  }
 0x280   : > { %2496 = vmatprep.mubr.bf16.mxu0 %v7281_v24  ;;  %2786 = vmatprep.mubr.bf16.mxu1 %v7281_v24  ;;  %7286 = vst [vmem:[#allocation7_spill] sm:$0xff] %v6143_v51 }
 0x287   : > { %2497 = vmatmul.mubr.bf16.gmra.mrb[60].mxu0 %v4886_v46  ;;  %2787 = vmatmul.mubr.bf16.gmra.mrb[28].mxu1 %v4887_v37  ;;  %v4911_v46 = vld [vmem:[%s7250_s5 + $0x180] sm:$0xff]   ;;  %v6153_v37 = vpop.permute.xlu0 %1567 }
 0x288   : > { %2506 = vmatprep.mubr.bf16.mxu0 %v7281_v24  ;;  %2796 = vmatprep.mubr.bf16.mxu1 %v7281_v24  ;;  %7287 = vst [vmem:[#allocation8_spill] sm:$0xff] %v6153_v37 }
 0x28f   : > { %2507 = vmatmul.mubr.bf16.gmra.mrb[64].mxu0 %v4888_v20  ;;  %2797 = vmatmul.mubr.bf16.gmra.mrb[32].mxu1 %v4889_v35  ;;  %v6155_v20 = vpop.permute.xlu1 %1562  ;;  %v6159_v35 = vpop.permute.xlu0 %1577 }
 0x290   : > { %2516 = vmatprep.mubr.bf16.mxu0 %v7281_v24  ;;  %2806 = vmatprep.mubr.bf16.mxu1 %v7281_v24  ;;  %7288 = vst [vmem:[#allocation9_spill] sm:$0xff] %v6155_v20  ;;  %7289 = vst [vmem:[#allocation10_spill] sm:$0xff] %v6159_v35 }
 0x297   : > { %2517 = vmatmul.mubr.bf16.gmra.mrb[68].mxu0 %v4890_v2  ;;  %2807 = vmatmul.mubr.bf16.gmra.mrb[36].mxu1 %v4891_v12  ;;  %v6161_v2 = vpop.permute.xlu1 %1572  ;;  %v4912_v12 = vld [vmem:[%s7250_s5 + $0xa0] sm:$0xff]  }
 0x298   : > { %2526 = vmatprep.mubr.bf16.mxu0 %v7281_v24  ;;  %2816 = vmatprep.mubr.bf16.mxu1 %v7281_v24  ;;  %7290 = vst [vmem:[#allocation11_spill] sm:$0xff] %v6161_v2 }
 0x29f   : > { %2527 = vmatmul.mubr.bf16.gmra.mrb[72].mxu0 %v4892_v44  ;;  %2817 = vmatmul.mubr.bf16.gmra.mrb[40].mxu1 %v4893_v19  ;;  %v4913_v44 = vld [vmem:[%s7250_s5 + $0x188] sm:$0xff]   ;;  %v6171_v19 = vpop.permute.xlu0 %1587 }
 0x2a0   : > { %2536 = vmatprep.mubr.bf16.mxu0 %v7281_v24  ;;  %2826 = vmatprep.mubr.bf16.mxu1 %v7281_v24  ;;  %7291 = vst [vmem:[#allocation12_spill] sm:$0xff] %v6171_v19 }
 0x2a7   : > { %2537 = vmatmul.mubr.bf16.gmra.mrb[76].mxu0 %v4894_v10  ;;  %2827 = vmatmul.mubr.bf16.gmra.mrb[44].mxu1 %v4895_v38  ;;  %v6173_v10 = vpop.permute.xlu1 %1582  ;;  %v4914_v38 = vld [vmem:[%s7250_s5 + $0xa8] sm:$0xff]  }
 0x2a8   : > { %2546 = vmatprep.mubr.bf16.mxu0 %v7281_v24  ;;  %2836 = vmatprep.mubr.bf16.mxu1 %v7281_v24  ;;  %7292 = vst [vmem:[#allocation13_spill] sm:$0xff] %v6173_v10 }
 0x2af   : > { %2547 = vmatmul.mubr.bf16.gmra.mrb[80].mxu0 %v4896_v23  ;;  %2837 = vmatmul.mubr.bf16.gmra.mrb[48].mxu1 %v4897_v22  ;;  %v4915_v23 = vld [vmem:[%s7250_s5 + $0x190] sm:$0xff]   ;;  %v6181_v22 = vpop.permute.xlu0 %1597 }
 0x2b0   : > { %2556 = vmatprep.mubr.bf16.mxu0 %v7281_v24  ;;  %2846 = vmatprep.mubr.bf16.mxu1 %v7281_v24  ;;  %7293 = vst [vmem:[#allocation14_spill] sm:$0xff] %v6181_v22 }
 0x2b7   : > { %2557 = vmatmul.mubr.bf16.gmra.mrb[84].mxu0 %v4898_v62  ;;  %2847 = vmatmul.mubr.bf16.gmra.mrb[52].mxu1 %v4899_v45  ;;  %v6183_v62 = vpop.permute.xlu1 %1592  ;;  %v4916_v45 = vld [vmem:[%s7250_s5 + $0xb0] sm:$0xff]  }
 0x2b8   : > { %2566 = vmatprep.mubr.bf16.mxu0 %v7281_v24  ;;  %2856 = vmatprep.mubr.bf16.mxu1 %v7281_v24  ;;  %7294 = vst [vmem:[#allocation15_spill] sm:$0xff] %v6183_v62 }
 0x2bf   : > { %2567 = vmatmul.mubr.bf16.gmra.mrb[88].mxu0 %v4900_v41  ;;  %2857 = vmatmul.mubr.bf16.gmra.mrb[56].mxu1 %v4901_v33  ;;  %v4917_v41 = vld [vmem:[%s7250_s5 + $0x198] sm:$0xff]   ;;  %v6193_v33 = vpop.permute.xlu0 %1607 }
 0x2c0   : > { %2576 = vmatprep.mubr.bf16.mxu0 %v7281_v24  ;;  %2866 = vmatprep.mubr.bf16.mxu1 %v7281_v24  ;;  %7295 = vst [vmem:[#allocation16_spill] sm:$0xff] %v6193_v33 }
 0x2c7   : > { %2577 = vmatmul.mubr.bf16.gmra.mrb[92].mxu0 %v4902_v55  ;;  %2867 = vmatmul.mubr.bf16.gmra.mrb[60].mxu1 %v4903_v50  ;;  %v6195_v55 = vpop.permute.xlu1 %1602  ;;  %v6199_v50 = vpop.permute.xlu0 %1617 }
 0x2c8   : > { %2586 = vmatprep.mubr.bf16.mxu0 %v7281_v24  ;;  %2876 = vmatprep.mubr.bf16.mxu1 %v7281_v24  ;;  %7296 = vst [vmem:[#allocation17_spill] sm:$0xff] %v6195_v55  ;;  %7297 = vst [vmem:[#allocation18_spill] sm:$0xff] %v6199_v50 }
 0x2cf   : > { %2587 = vmatmul.mubr.bf16.gmra.mrb[96].mxu0 %v4904_v54  ;;  %2877 = vmatmul.mubr.bf16.gmra.mrb[64].mxu1 %v4905_v30  ;;  %v6201_v54 = vpop.permute.xlu1 %1612  ;;  %v4918_v30 = vld [vmem:[%s7250_s5 + $0xb8] sm:$0xff]  }
 0x2d0   : > { %2596 = vmatprep.mubr.bf16.mxu0 %v7281_v24  ;;  %2886 = vmatprep.mubr.bf16.mxu1 %v7281_v24  ;;  %7298 = vst [vmem:[#allocation19_spill] sm:$0xff] %v6201_v54 }
 0x2d7   : > { %2597 = vmatmul.mubr.bf16.gmra.mrb[100].mxu0 %v4906_v25  ;;  %2887 = vmatmul.mubr.bf16.gmra.mrb[68].mxu1 %v4907_v6  ;;  %v4919_v25 = vld [vmem:[%s7250_s5 + $0x1a0] sm:$0xff]   ;;  %v6211_v6 = vpop.permute.xlu0 %1627 }
 0x2d8   : > { %2606 = vmatprep.mubr.bf16.mxu0 %v7281_v24  ;;  %2896 = vmatprep.mubr.bf16.mxu1 %v7281_v24  ;;  %7299 = vst [vmem:[#allocation20_spill] sm:$0xff] %v6211_v6 }
 0x2df   : > { %2607 = vmatmul.mubr.bf16.gmra.mrb[104].mxu0 %v4908_v26  ;;  %2897 = vmatmul.mubr.bf16.gmra.mrb[72].mxu1 %v4909_v3  ;;  %v6213_v26 = vpop.permute.xlu1 %1622  ;;  %v4920_v3 = vld [vmem:[%s7250_s5 + $0xc0] sm:$0xff]  }
 0x2e0   : > { %2616 = vmatprep.mubr.bf16.mxu0 %v7281_v24  ;;  %2906 = vmatprep.mubr.bf16.mxu1 %v7281_v24  ;;  %7300 = vst [vmem:[#allocation21_spill] sm:$0xff] %v6213_v26 }
 0x2e7   : > { %2617 = vmatmul.mubr.bf16.gmra.mrb[108].mxu0 %v4910_v15  ;;  %2907 = vmatmul.mubr.bf16.gmra.mrb[76].mxu1 %v4911_v46  ;;  %v4921_v15 = vld [vmem:[%s7250_s5 + $0x1a8] sm:$0xff]   ;;  %v6221_v46 = vpop.permute.xlu0 %1637 }
 0x2e8   : > { %2626 = vmatprep.mubr.bf16.mxu0 %v7281_v24  ;;  %2916 = vmatprep.mubr.bf16.mxu1 %v7281_v24  ;;  %7301 = vst [vmem:[#allocation22_spill] sm:$0xff] %v6221_v46 }
 0x2ef   : > { %2627 = vmatmul.mubr.bf16.gmra.mrb[112].mxu0 %v4912_v12  ;;  %2917 = vmatmul.mubr.bf16.gmra.mrb[80].mxu1 %v4913_v44  ;;  %v6223_v12 = vpop.permute.xlu1 %1632  ;;  %v4922_v44 = vld [vmem:[%s7250_s5 + $0xc8] sm:$0xff]  }
 0x2f0   : > { %2636 = vmatprep.mubr.bf16.mxu0 %v7281_v24  ;;  %2926 = vmatprep.mubr.bf16.mxu1 %v7281_v24  ;;  %7302 = vst [vmem:[#allocation23_spill] sm:$0xff] %v6223_v12 }
 0x2f7   : > { %2637 = vmatmul.mubr.bf16.gmra.mrb[116].mxu0 %v4914_v38  ;;  %2927 = vmatmul.mubr.bf16.gmra.mrb[84].mxu1 %v4915_v23  ;;  %v4923_v38 = vld [vmem:[%s7250_s5 + $0x1b0] sm:$0xff]   ;;  %v6233_v23 = vpop.permute.xlu0 %1647 }
 0x2f8   : > { %2646 = vmatprep.mubr.bf16.mxu0 %v7281_v24  ;;  %2936 = vmatprep.mubr.bf16.mxu1 %v7281_v24  ;;  %7303 = vst [vmem:[#allocation24_spill] sm:$0xff] %v6233_v23  ;;  %v3327_v23 = vstv %s4784_s17 }
 0x2ff   : > { %2647 = vmatmul.mubr.bf16.gmra.mrb[120].mxu0 %v4916_v45  ;;  %2937 = vmatmul.mubr.bf16.gmra.mrb[88].mxu1 %v4917_v41  ;;  %v6235_v45 = vpop.permute.xlu1 %1642  ;;  %v7305_v41 = vlaneseq }
 0x300   : > { %2656 = vmatprep.mubr.bf16.mxu0 %v7281_v24  ;;  %2946 = vmatprep.mubr.bf16.mxu1 %v7281_v24  ;;  %7304 = vst [vmem:[#allocation25_spill] sm:$0xff] %v6235_v45 }
 0x307   : > { %2657 = vmatmul.mubr.bf16.gmra.mrb[124].mxu0 %v4918_v30  ;;  %2947 = vmatmul.mubr.bf16.gmra.mrb[92].mxu1 %v4919_v25  ;;  %v3325_v30 = vand.u32 127, %v7305_v41  ;;  %v6241_v25 = vpop.permute.xlu0 %1657 }
 0x308   : > { %2666 = vmatprep.mubr.bf16.mxu0 %v7281_v24  ;;  %2956 = vmatprep.mubr.bf16.mxu1 %v7281_v24  ;;  %7306 = vst [vmem:[#allocation26_spill] sm:$0xff] %v6241_v25 }
 0x309   : > { %v6251_v45 = vadd.s32 %v3327_v23, %v3325_v30 }
 0x30b   : > { %v1668_v25 = vpop.permute.xlu0 %1667  ;;  %vm3330_vm1 = vcmp.lt.s32.totalorder %v6251_v45, 1000 }
 0x30f   : > { %2667 = vmatmul.mubr.bf16.gmra.mrb[128].mxu0 %v4920_v3  ;;  %2957 = vmatmul.mubr.bf16.gmra.mrb[96].mxu1 %v4921_v15  ;;  %v6243_v3 = vpop.permute.xlu1 %1652  ;;  %v4924_v15 = vld [vmem:[%s7250_s5 + $0xd0] sm:$0xff]  }
 0x310   : > { %2676 = vmatprep.mubr.bf16.mxu0 %v7281_v24  ;;  %2966 = vmatprep.mubr.bf16.mxu1 %v7281_v24  ;;  %7307 = vst [vmem:[#allocation27_spill] sm:$0xff] %v6243_v3 }
 0x313   : > { %v1663_v3 = vpop.permute.xlu1 %1662 }
 0x317   : > { %2677 = vmatmul.mubr.bf16.gmra.mrb[132].mxu0 %v4922_v44  ;;  %2967 = vmatmul.mubr.bf16.gmra.mrb[100].mxu1 %v4923_v38  ;;  %v4925_v44 = vld [vmem:[%s7250_s5 + $0x1b8] sm:$0xff]   ;;  %v3326_v38 = vadd.s32 128, %v3325_v30 }
 0x318   : > { %2686 = vmatprep.mubr.bf16.mxu0 %v7281_v24  ;;  %2976 = vmatprep.mubr.bf16.mxu1 %v7281_v24  ;;  %v4926_v30 = vld [vmem:[%s7250_s5 + $0xd8] sm:$0xff]  }
 0x319   : > { %v6253_v41 = vadd.s32 %v3327_v23, %v3326_v38  ;;  %v4927_v23 = vld [vmem:[%s7250_s5 + $0x1c0] sm:$0xff]  }
 0x31b   : > { %vm3331_vm2 = vcmp.lt.s32.totalorder %v6253_v41, 1000 }
 0x31f   : > { %2687 = vmatmul.mubr.bf16.gmra.mrb[136].mxu0 %v4924_v15  ;;  %2977 = vmatmul.mubr.bf16.gmra.mrb[104].mxu1 %v4925_v44 }
 0x320   : > { %2696 = vmatprep.mubr.bf16.mxu0 %v7281_v24  ;;  %2986 = vmatprep.mubr.bf16.mxu1 %v7281_v24 }
 0x322   : > { %v2428_v46 = vpop.f32.mrb[32].mxu0  ;;  %v2718_v12 = vpop.f32.mrb[0].mxu1 }
 0x323   : > { %v2429_v6 = vadd.f32 %v2428_v46, %v5805_v21  ;;  %v2719_v26 = vadd.f32 %v2718_v12, %v1663_v3  ;;  %v2430_v50 = vpop.f32.mrb[33].mxu0  ;;  %v2720_v54 = vpop.f32.mrb[1].mxu1 }
 0x324   : > { %v2431_v15 = vadd.f32 %v2430_v50, %v5805_v21  ;;  %v2721_v44 = vadd.f32 %v2720_v54, %v1663_v3  ;;  %v2432_v38 = vpop.f32.mrb[34].mxu0  ;;  %v2722_v46 = vpop.f32.mrb[2].mxu1 }
 0x325   : > { %v3067_v12 = vmax.f32 %v2429_v6, 0.0  ;;  %v3183_v33 = vmax.f32 %v2719_v26, 0.0  ;;  %v2433_v55 = vadd.f32 %v2432_v38, %v5698_v29  ;;  %v2723_v22 = vadd.f32 %v2722_v46, %v1668_v25  ;;  %v2434_v62 = vpop.f32.mrb[35].mxu0  ;;  %v2724_v19 = vpop.f32.mrb[3].mxu1  ;;  %v3720_v26 = vld [vmem:[#allocation2] sm:$0xff] }
 0x326   : > { %v3068_v10 = vmax.f32 %v2431_v15, 0.0  ;;  %v3184_v35 = vmax.f32 %v2721_v44, 0.0  ;;  %v2435_v2 = vadd.f32 %v2434_v62, %v5698_v29  ;;  %v2725_v37 = vadd.f32 %v2724_v19, %v1668_v25  ;;  %v3778_v44 = vld [vmem:[#allocation2 + $0x1d0] sm:$0xff]  ;;  %v1678_v62 = vpop.permute.xlu0 %1677 }
 0x327   : > { %v3336_v21 = vsel %vm3330_vm1, %v3067_v12, -inf  ;;  %v3452_v50 = vsel %vm3330_vm1, %v3183_v33, -inf  ;;  %v3069_v54 = vmax.f32 %v2433_v55, 0.0  ;;  %v3185_v3 = vmax.f32 %v2723_v22, 0.0  ;;  %2697 = vmatmul.mubr.bf16.gmra.mrb[140].mxu0 %v4926_v30  ;;  %2987 = vmatmul.mubr.bf16.gmra.mrb[108].mxu1 %v4927_v23  ;;  %v1673_v33 = vpop.permute.xlu1 %1672  ;;  %v3721_v30 = vld [vmem:[#allocation2 + $0x8] sm:$0xff] }
 0x328   : > { %v3337_v6 = vsel %vm3331_vm2, %v3068_v10, -inf  ;;  %v3453_v15 = vsel %vm3331_vm2, %v3184_v35, -inf  ;;  %v3070_v29 = vmax.f32 %v2435_v2, 0.0  ;;  %v3186_v19 = vmax.f32 %v2725_v37, 0.0  ;;  %2706 = vmatprep.mubr.bf16.mxu0 %v7281_v24  ;;  %2996 = vmatprep.mubr.bf16.mxu1 %v7281_v24  ;;  %v3779_v2 = vld [vmem:[#allocation2 + $0x1d8] sm:$0xff] }
 0x329   : > { %v3592_v55 = vmax.f32 %v3336_v21, %v3337_v6  ;;  %v3650_v22 = vmax.f32 %v3452_v50, %v3453_v15  ;;  %v3338_v25 = vsel %vm3330_vm1, %v3069_v54, -inf  ;;  %v3454_v10 = vsel %vm3330_vm1, %v3185_v3, -inf  ;;  %v4928_v54 = vld [vmem:[%s7250_s5 + $0xe0] sm:$0xff]   ;;  %v4929_v3 = vld [vmem:[%s7250_s5 + $0x1c8] sm:$0xff]  }
 0x32a   : > { %v3339_v35 = vsel %vm3331_vm2, %v3070_v29, -inf  ;;  %v3455_v37 = vsel %vm3331_vm2, %v3186_v19, -inf  ;;  %v2438_v23 = vpop.f32.mrb[36].mxu0  ;;  %v2728_v38 = vpop.f32.mrb[4].mxu1 }
 0x32b   : > { %v3848_v46 = vmax.f32 %v3720_v26, %v3592_v55  ;;  %v3906_v12 = vmax.f32 %v3778_v44, %v3650_v22  ;;  %v3593_v21 = vmax.f32 %v3338_v25, %v3339_v35  ;;  %v3651_v50 = vmax.f32 %v3454_v10, %v3455_v37  ;;  %v2440_v6 = vpop.f32.mrb[37].mxu0  ;;  %v2730_v15 = vpop.f32.mrb[5].mxu1 }
 0x32c   : > { %v2439_v29 = vadd.f32 %v2438_v23, %v5821_v60  ;;  %v2729_v19 = vadd.f32 %v2728_v38, %v1673_v33  ;;  %v2441_v20 = vadd.f32 %v2440_v6, %v5821_v60  ;;  %v2731_v5 = vadd.f32 %v2730_v15, %v1673_v33  ;;  %v2442_v26 = vpop.f32.mrb[38].mxu0  ;;  %v2732_v44 = vpop.f32.mrb[6].mxu1 }
 0x32d   : > { %3976 = vst [vmem:[#allocation2] sm:$0xff] %v3848_v46  ;;  %4034 = vst [vmem:[#allocation2 + $0x1d0] sm:$0xff] %v3906_v12  ;;  %v3849_v55 = vmax.f32 %v3721_v30, %v3593_v21  ;;  %v3907_v22 = vmax.f32 %v3779_v2, %v3651_v50  ;;  %v2443_v25 = vadd.f32 %v2442_v26, %v5715_v14  ;;  %v2444_v35 = vpop.f32.mrb[39].mxu0  ;;  %v2734_v37 = vpop.f32.mrb[7].mxu1  ;;  %v3780_v12 = vld [vmem:[#allocation2 + $0x1e0] sm:$0xff] }
 0x32e   : > { %v2733_v10 = vadd.f32 %v2732_v44, %v1678_v62  ;;  %v3071_v51 = vmax.f32 %v2439_v29, 0.0  ;;  %v3187_v39 = vmax.f32 %v2729_v19, 0.0  ;;  %v3072_v16 = vmax.f32 %v2441_v20, 0.0  ;;  %v3722_v20 = vld [vmem:[#allocation2 + $0x10] sm:$0xff] }
 0x32f   : > { %v3188_v58 = vmax.f32 %v2731_v5, 0.0  ;;  %3977 = vst [vmem:[#allocation2 + $0x8] sm:$0xff] %v3849_v55  ;;  %4035 = vst [vmem:[#allocation2 + $0x1d8] sm:$0xff] %v3907_v22  ;;  %v3073_v23 = vmax.f32 %v2443_v25, 0.0  ;;  %v2445_v33 = vadd.f32 %v2444_v35, %v5715_v14  ;;  %v2735_v38 = vadd.f32 %v2734_v37, %v1678_v62  ;;  %2707 = vmatmul.mubr.bf16.gmra.mrb[144].mxu0 %v4928_v54  ;;  %v1688_v14 = vpop.permute.xlu0 %1687  ;;  %v1683_v62 = vpop.permute.xlu1 %1682  ;;  %v4930_v55 = vld [vmem:[%s7250_s5 + $0x1d0] sm:$0xff]   ;;  %v3723_v25 = vld [vmem:[#allocation2 + $0x18] sm:$0xff] }
 0x330   : > { %v3189_v60 = vmax.f32 %v2733_v10, 0.0  ;;  %2997 = vmatmul.mubr.bf16.gmra.mrb[112].mxu1 %v4929_v3  ;;  %v3340_v30 = vsel %vm3330_vm1, %v3071_v51, -inf  ;;  %v3456_v2 = vsel %vm3330_vm1, %v3187_v39, -inf  ;;  %v3341_v46 = vsel %vm3331_vm2, %v3072_v16, -inf  ;;  %v3781_v35 = vld [vmem:[#allocation2 + $0x1e8] sm:$0xff] }
 0x331   : > { %v3457_v5 = vsel %vm3331_vm2, %v3188_v58, -inf  ;;  %3006 = vmatprep.mubr.bf16.mxu1 %v7281_v24  ;;  %v3594_v21 = vmax.f32 %v3340_v30, %v3341_v46  ;;  %v3342_v51 = vsel %vm3330_vm1, %v3073_v23, -inf  ;;  %v3074_v6 = vmax.f32 %v2445_v33, 0.0 }
 0x332   : > { %v3652_v50 = vmax.f32 %v3456_v2, %v3457_v5  ;;  %v3458_v39 = vsel %vm3330_vm1, %v3189_v60, -inf  ;;  %v3190_v15 = vmax.f32 %v2735_v38, 0.0  ;;  %v2448_v16 = vpop.f32.mrb[40].mxu0  ;;  %v2738_v54 = vpop.f32.mrb[8].mxu1 }
 0x333   : > { %v3850_v3 = vmax.f32 %v3722_v20, %v3594_v21  ;;  %v2449_v58 = vadd.f32 %v2448_v16, %v5831_v13  ;;  %v2739_v19 = vadd.f32 %v2738_v54, %v1683_v62  ;;  %v2450_v26 = vpop.f32.mrb[41].mxu0  ;;  %v2740_v44 = vpop.f32.mrb[9].mxu1  ;;  %v3343_v22 = vsel %vm3331_vm2, %v3074_v6, -inf }
 0x334   : > { %v3908_v29 = vmax.f32 %v3780_v12, %v3652_v50  ;;  %v3459_v10 = vsel %vm3331_vm2, %v3190_v15, -inf  ;;  %v2451_v37 = vadd.f32 %v2450_v26, %v5831_v13  ;;  %v2741_v23 = vadd.f32 %v2740_v44, %v1683_v62  ;;  %v2452_v60 = vpop.f32.mrb[42].mxu0  ;;  %v2742_v33 = vpop.f32.mrb[10].mxu1 }
 0x335   : > { %3978 = vst [vmem:[#allocation2 + $0x10] sm:$0xff] %v3850_v3  ;;  %v3595_v38 = vmax.f32 %v3342_v51, %v3343_v22  ;;  %v3653_v30 = vmax.f32 %v3458_v39, %v3459_v10  ;;  %v3075_v2 = vmax.f32 %v2449_v58, 0.0  ;;  %v3191_v46 = vmax.f32 %v2739_v19, 0.0  ;;  %v2454_v20 = vpop.f32.mrb[43].mxu0  ;;  %v2744_v5 = vpop.f32.mrb[11].mxu1  ;;  %v3724_v39 = vld [vmem:[#allocation2 + $0x20] sm:$0xff] }
 0x336   : > { %4036 = vst [vmem:[#allocation2 + $0x1e0] sm:$0xff] %v3908_v29  ;;  %v3076_v12 = vmax.f32 %v2451_v37, 0.0  ;;  %v3192_v21 = vmax.f32 %v2741_v23, 0.0  ;;  %v2453_v50 = vadd.f32 %v2452_v60, %v5733_v7  ;;  %v2743_v6 = vadd.f32 %v2742_v33, %v1688_v14  ;;  %v3782_v3 = vld [vmem:[#allocation2 + $0x1f0] sm:$0xff]  ;;  %v1698_v19 = vpop.permute.xlu0 %1697  ;;  %v1693_v26 = vpop.permute.xlu1 %1692 }
 0x337   : > { %v3851_v15 = vmax.f32 %v3723_v25, %v3595_v38  ;;  %v3909_v16 = vmax.f32 %v3781_v35, %v3653_v30  ;;  %v3344_v13 = vsel %vm3330_vm1, %v3075_v2, -inf  ;;  %v3460_v62 = vsel %vm3330_vm1, %v3191_v46, -inf }
 0x338   : > { %3007 = vmatmul.mubr.bf16.gmra.mrb[116].mxu1 %v4930_v55  ;;  %v3345_v51 = vsel %vm3331_vm2, %v3076_v12, -inf  ;;  %v3461_v54 = vsel %vm3331_vm2, %v3192_v21, -inf  ;;  %v3077_v29 = vmax.f32 %v2453_v50, 0.0  ;;  %v3193_v58 = vmax.f32 %v2743_v6, 0.0  ;;  %v4931_v12 = vld [vmem:[%s7250_s5 + $0x1d8] sm:$0xff]  }
 0x339   : > { %3016 = vmatprep.mubr.bf16.mxu1 %v7281_v24  ;;  %3979 = vst [vmem:[#allocation2 + $0x18] sm:$0xff] %v3851_v15  ;;  %4037 = vst [vmem:[#allocation2 + $0x1e8] sm:$0xff] %v3909_v16  ;;  %v3596_v44 = vmax.f32 %v3344_v13, %v3345_v51  ;;  %v3654_v22 = vmax.f32 %v3460_v62, %v3461_v54  ;;  %v2455_v55 = vadd.f32 %v2454_v20, %v5733_v7  ;;  %v3725_v15 = vld [vmem:[#allocation2 + $0x28] sm:$0xff]  ;;  %v3783_v13 = vld [vmem:[#allocation2 + $0x1f8] sm:$0xff] }
 0x33a   : > { %v2745_v25 = vadd.f32 %v2744_v5, %v1688_v14  ;;  %v3346_v10 = vsel %vm3330_vm1, %v3077_v29, -inf  ;;  %v3462_v35 = vsel %vm3330_vm1, %v3193_v58, -inf  ;;  %v2458_v37 = vpop.f32.mrb[44].mxu0  ;;  %v2748_v23 = vpop.f32.mrb[12].mxu1 }
 0x33b   : > { %v3852_v60 = vmax.f32 %v3724_v39, %v3596_v44  ;;  %v3910_v33 = vmax.f32 %v3782_v3, %v3654_v22  ;;  %v3078_v38 = vmax.f32 %v2455_v55, 0.0  ;;  %v2460_v2 = vpop.f32.mrb[45].mxu0  ;;  %v2750_v46 = vpop.f32.mrb[13].mxu1  ;;  %v2459_v7 = vadd.f32 %v2458_v37, %v5847_v61 }
 0x33c   : > { %v3194_v30 = vmax.f32 %v2745_v25, 0.0  ;;  %v2749_v14 = vadd.f32 %v2748_v23, %v1693_v26  ;;  %v2461_v20 = vadd.f32 %v2460_v2, %v5847_v61  ;;  %v2751_v5 = vadd.f32 %v2750_v46, %v1693_v26  ;;  %v2462_v21 = vpop.f32.mrb[46].mxu0  ;;  %v2752_v50 = vpop.f32.mrb[14].mxu1  ;;  %v3784_v2 = vld [vmem:[#allocation2 + $0x200] sm:$0xff] }
 0x33d   : > { %3980 = vst [vmem:[#allocation2 + $0x20] sm:$0xff] %v3852_v60  ;;  %4038 = vst [vmem:[#allocation2 + $0x1f0] sm:$0xff] %v3910_v33  ;;  %v3347_v6 = vsel %vm3331_vm2, %v3078_v38, -inf  ;;  %v2463_v62 = vadd.f32 %v2462_v21, %v5748_v31  ;;  %v2753_v51 = vadd.f32 %v2752_v50, %v1698_v19  ;;  %v2464_v39 = vpop.f32.mrb[47].mxu0  ;;  %v2754_v54 = vpop.f32.mrb[15].mxu1  ;;  %v3079_v29 = vmax.f32 %v2459_v7, 0.0 }
 0x33e   : > { %v3463_v16 = vsel %vm3331_vm2, %v3194_v30, -inf  ;;  %v3597_v3 = vmax.f32 %v3346_v10, %v3347_v6  ;;  %v3195_v58 = vmax.f32 %v2749_v14, 0.0  ;;  %v3080_v26 = vmax.f32 %v2461_v20, 0.0  ;;  %v1708_v33 = vpop.permute.xlu0 %1707  ;;  %v1703_v10 = vpop.permute.xlu1 %1702  ;;  %v3726_v38 = vld [vmem:[#allocation2 + $0x30] sm:$0xff] }
 0x33f   : > { %v3655_v61 = vmax.f32 %v3462_v35, %v3463_v16  ;;  %v3196_v44 = vmax.f32 %v2751_v5, 0.0  ;;  %v3081_v22 = vmax.f32 %v2463_v62, 0.0  ;;  %v3197_v55 = vmax.f32 %v2753_v51, 0.0  ;;  %v4932_v62 = vld [vmem:[%s7250_s5 + $0x1e0] sm:$0xff]  }
 0x340   : > { %3017 = vmatmul.mubr.bf16.gmra.mrb[120].mxu1 %v4931_v12  ;;  %v3853_v25 = vmax.f32 %v3725_v15, %v3597_v3  ;;  %v3348_v23 = vsel %vm3330_vm1, %v3079_v29, -inf  ;;  %v3464_v60 = vsel %vm3330_vm1, %v3195_v58, -inf  ;;  %v3349_v35 = vsel %vm3331_vm2, %v3080_v26, -inf }
 0x341   : > { %v3911_v37 = vmax.f32 %v3783_v13, %v3655_v61  ;;  %3026 = vmatprep.mubr.bf16.mxu1 %v7281_v24  ;;  %v3465_v30 = vsel %vm3331_vm2, %v3196_v44, -inf  ;;  %v3598_v46 = vmax.f32 %v3348_v23, %v3349_v35  ;;  %v2465_v7 = vadd.f32 %v2464_v39, %v5748_v31  ;;  %v3785_v23 = vld [vmem:[#allocation2 + $0x208] sm:$0xff] }
 0x342   : > { %3981 = vst [vmem:[#allocation2 + $0x28] sm:$0xff] %v3853_v25  ;;  %v3656_v12 = vmax.f32 %v3464_v60, %v3465_v30  ;;  %v2755_v14 = vadd.f32 %v2754_v54, %v1698_v19  ;;  %v2468_v20 = vpop.f32.mrb[48].mxu0  ;;  %v2758_v5 = vpop.f32.mrb[16].mxu1  ;;  %v3350_v21 = vsel %vm3330_vm1, %v3081_v22, -inf  ;;  %v3466_v50 = vsel %vm3330_vm1, %v3197_v55, -inf  ;;  %v3727_v25 = vld [vmem:[#allocation2 + $0x38] sm:$0xff] }
 0x343   : > { %4039 = vst [vmem:[#allocation2 + $0x1f8] sm:$0xff] %v3911_v37  ;;  %v2469_v6 = vadd.f32 %v2468_v20, %v5857_v36  ;;  %v2759_v15 = vadd.f32 %v2758_v5, %v1703_v10  ;;  %v2470_v16 = vpop.f32.mrb[49].mxu0  ;;  %v2760_v13 = vpop.f32.mrb[17].mxu1  ;;  %v3854_v51 = vmax.f32 %v3726_v38, %v3598_v46  ;;  %v3082_v19 = vmax.f32 %v2465_v7, 0.0 }
 0x344   : > { %v3912_v31 = vmax.f32 %v3784_v2, %v3656_v12  ;;  %v3198_v39 = vmax.f32 %v2755_v14, 0.0  ;;  %v2472_v54 = vpop.f32.mrb[50].mxu0  ;;  %v2762_v3 = vpop.f32.mrb[18].mxu1  ;;  %v2471_v58 = vadd.f32 %v2470_v16, %v5857_v36  ;;  %v2761_v26 = vadd.f32 %v2760_v13, %v1703_v10  ;;  %v4112_v41 = vld [vmem:[#allocation2 + $0x20] sm:$0xff] (!%p4785_p8) }
 0x345   : > { %v3083_v61 = vmax.f32 %v2469_v6, 0.0  ;;  %v3199_v29 = vmax.f32 %v2759_v15, 0.0  ;;  %v2474_v44 = vpop.f32.mrb[51].mxu0  ;;  %v2764_v22 = vpop.f32.mrb[19].mxu1  ;;  %3982 = vst [vmem:[#allocation2 + $0x30] sm:$0xff] %v3854_v51  ;;  %v3351_v55 = vsel %vm3331_vm2, %v3082_v19, -inf  ;;  %v2473_v60 = vadd.f32 %v2472_v54, %v5765_v1 }
 0x346   : > { %4040 = vst [vmem:[#allocation2 + $0x200] sm:$0xff] %v3912_v31  ;;  %v3467_v37 = vsel %vm3331_vm2, %v3198_v39, -inf  ;;  %v2763_v35 = vadd.f32 %v2762_v3, %v1708_v33  ;;  %v3599_v38 = vmax.f32 %v3350_v21, %v3351_v55  ;;  %v3084_v2 = vmax.f32 %v2471_v58, 0.0  ;;  %v6373_v14 = vpop.permute.xlu0 %1717  ;;  %v1713_v20 = vpop.permute.xlu1 %1712  ;;  %v3728_v21 = vld [vmem:[#allocation2 + $0x40] sm:$0xff]  ;;  %v4933_v58 = vld [vmem:[%s7250_s5 + $0x1e8] sm:$0xff]  }
 0x347   : > { %v3657_v30 = vmax.f32 %v3466_v50, %v3467_v37  ;;  %v3352_v36 = vsel %vm3330_vm1, %v3083_v61, -inf  ;;  %v3468_v10 = vsel %vm3330_vm1, %v3199_v29, -inf  ;;  %v3200_v46 = vmax.f32 %v2761_v26, 0.0  ;;  %v3786_v50 = vld [vmem:[#allocation2 + $0x210] sm:$0xff] }
 0x348   : > { %3027 = vmatmul.mubr.bf16.gmra.mrb[124].mxu1 %v4932_v62  ;;  %v3085_v12 = vmax.f32 %v2473_v60, 0.0  ;;  %v3201_v7 = vmax.f32 %v2763_v35, 0.0  ;;  %v3855_v5 = vmax.f32 %v3727_v25, %v3599_v38  ;;  %v2475_v15 = vadd.f32 %v2474_v44, %v5765_v1  ;;  %v3729_v38 = vld [vmem:[#allocation2 + $0x48] sm:$0xff] }
 0x349   : > { %3036 = vmatprep.mubr.bf16.mxu1 %v7281_v24  ;;  %v3913_v6 = vmax.f32 %v3785_v23, %v3657_v30  ;;  %v2765_v16 = vadd.f32 %v2764_v22, %v1708_v33  ;;  %v3353_v13 = vsel %vm3331_vm2, %v3084_v2, -inf  ;;  %v3469_v62 = vsel %vm3331_vm2, %v3200_v46, -inf  ;;  %v4113_v45 = vld [vmem:[#allocation2 + $0x28] sm:$0xff] (!%p4785_p8) }
 0x34a   : > { %v3354_v51 = vsel %vm3330_vm1, %v3085_v12, -inf  ;;  %v3470_v31 = vsel %vm3330_vm1, %v3201_v7, -inf  ;;  %v2478_v19 = vpop.f32.mrb[52].mxu0  ;;  %v2768_v39 = vpop.f32.mrb[20].mxu1  ;;  %3983 = vst [vmem:[#allocation2 + $0x38] sm:$0xff] %v3855_v5  ;;  %v3600_v54 = vmax.f32 %v3352_v36, %v3353_v13  ;;  %v3658_v3 = vmax.f32 %v3468_v10, %v3469_v62  ;;  %v3787_v36 = vld [vmem:[#allocation2 + $0x218] sm:$0xff] }
 0x34b   : > { %4041 = vst [vmem:[#allocation2 + $0x208] sm:$0xff] %v3913_v6  ;;  %v3086_v1 = vmax.f32 %v2475_v15, 0.0  ;;  %v3202_v33 = vmax.f32 %v2765_v16, 0.0  ;;  %v2480_v61 = vpop.f32.mrb[53].mxu0  ;;  %v2770_v29 = vpop.f32.mrb[21].mxu1  ;;  %v2479_v26 = vadd.f32 %v2478_v19, %v5873_v32  ;;  %v2769_v44 = vadd.f32 %v2768_v39, %v1713_v20  ;;  %v3730_v19 = vld [vmem:[#allocation2 + $0x50] sm:$0xff] }
 0x34c   : > { %v2481_v22 = vadd.f32 %v2480_v61, %v5873_v32  ;;  %v2771_v55 = vadd.f32 %v2770_v29, %v1713_v20  ;;  %v2482_v25 = vpop.f32.mrb[54].mxu0  ;;  %v2772_v37 = vpop.f32.mrb[22].mxu1  ;;  %v3856_v23 = vmax.f32 %v3728_v21, %v3600_v54  ;;  %v3914_v60 = vmax.f32 %v3786_v50, %v3658_v3  ;;  %v3788_v54 = vld [vmem:[#allocation2 + $0x220] sm:$0xff] }
 0x34d   : > { %v3355_v35 = vsel %vm3331_vm2, %v3086_v1, -inf  ;;  %v3471_v30 = vsel %vm3331_vm2, %v3202_v33, -inf  ;;  %v2484_v10 = vpop.f32.mrb[55].mxu0  ;;  %v2774_v2 = vpop.f32.mrb[23].mxu1  ;;  %v3087_v7 = vmax.f32 %v2479_v26, 0.0  ;;  %v3203_v5 = vmax.f32 %v2769_v44, 0.0 }
 0x34e   : > { %v3601_v46 = vmax.f32 %v3354_v51, %v3355_v35  ;;  %v3659_v12 = vmax.f32 %v3470_v31, %v3471_v30  ;;  %3984 = vst [vmem:[#allocation2 + $0x40] sm:$0xff] %v3856_v23  ;;  %4042 = vst [vmem:[#allocation2 + $0x210] sm:$0xff] %v3914_v60  ;;  %v3088_v32 = vmax.f32 %v2481_v22, 0.0  ;;  %v3204_v20 = vmax.f32 %v2771_v55, 0.0  ;;  %v1728_v62 = vpop.permute.xlu0 %1727  ;;  %v1723_v51 = vpop.permute.xlu1 %1722  ;;  %v4934_v35 = vld [vmem:[%s7250_s5 + $0x1f0] sm:$0xff]  }
 0x34f   : > { %v2483_v6 = vadd.f32 %v2482_v25, %v5782_v43  ;;  %v2773_v21 = vadd.f32 %v2772_v37, %v6373_v14  ;;  %v3356_v16 = vsel %vm3330_vm1, %v3087_v7, -inf  ;;  %v3472_v13 = vsel %vm3330_vm1, %v3203_v5, -inf }
 0x350   : > { %3037 = vmatmul.mubr.bf16.gmra.mrb[128].mxu1 %v4933_v58  ;;  %v3857_v50 = vmax.f32 %v3729_v38, %v3601_v46  ;;  %v3915_v15 = vmax.f32 %v3787_v36, %v3659_v12  ;;  %v3357_v31 = vsel %vm3331_vm2, %v3088_v32, -inf  ;;  %v3473_v39 = vsel %vm3331_vm2, %v3204_v20, -inf }
 0x351   : > { %3046 = vmatprep.mubr.bf16.mxu1 %v7281_v24  ;;  %v3089_v3 = vmax.f32 %v2483_v6, 0.0  ;;  %v3205_v1 = vmax.f32 %v2773_v21, 0.0  ;;  %v3602_v33 = vmax.f32 %v3356_v16, %v3357_v31  ;;  %v3660_v61 = vmax.f32 %v3472_v13, %v3473_v39  ;;  %v3731_v6 = vld [vmem:[#allocation2 + $0x58] sm:$0xff] }
 0x352   : > { %3985 = vst [vmem:[#allocation2 + $0x48] sm:$0xff] %v3857_v50  ;;  %4043 = vst [vmem:[#allocation2 + $0x218] sm:$0xff] %v3915_v15  ;;  %v2485_v29 = vadd.f32 %v2484_v10, %v5782_v43  ;;  %v2775_v58 = vadd.f32 %v2774_v2, %v6373_v14  ;;  %v2488_v26 = vpop.f32.mrb[56].mxu0  ;;  %v2778_v44 = vpop.f32.mrb[24].mxu1  ;;  %v3789_v50 = vld [vmem:[#allocation2 + $0x228] sm:$0xff] }
 0x353   : > { %v3358_v22 = vsel %vm3330_vm1, %v3089_v3, -inf  ;;  %v3474_v55 = vsel %vm3330_vm1, %v3205_v1, -inf  ;;  %v2489_v25 = vadd.f32 %v2488_v26, %v5883_v40  ;;  %v2779_v37 = vadd.f32 %v2778_v44, %v1723_v51  ;;  %v2490_v23 = vpop.f32.mrb[57].mxu0  ;;  %v2780_v60 = vpop.f32.mrb[25].mxu1  ;;  %v3790_v26 = vld [vmem:[#allocation2 + $0x230] sm:$0xff] }
 0x354   : > { %v3858_v43 = vmax.f32 %v3730_v19, %v3602_v33  ;;  %v3916_v38 = vmax.f32 %v3788_v54, %v3660_v61  ;;  %v3090_v14 = vmax.f32 %v2485_v29, 0.0  ;;  %v3206_v30 = vmax.f32 %v2775_v58, 0.0  ;;  %v2492_v36 = vpop.f32.mrb[58].mxu0  ;;  %v2782_v10 = vpop.f32.mrb[26].mxu1  ;;  %v3732_v58 = vld [vmem:[#allocation2 + $0x60] sm:$0xff] }
 0x355   : > { %v3091_v2 = vmax.f32 %v2489_v25, 0.0  ;;  %v3207_v46 = vmax.f32 %v2779_v37, 0.0  ;;  %v2491_v12 = vadd.f32 %v2490_v23, %v5883_v40  ;;  %v2781_v7 = vadd.f32 %v2780_v60, %v1723_v51  ;;  %v2494_v5 = vpop.f32.mrb[59].mxu0  ;;  %v2784_v32 = vpop.f32.mrb[27].mxu1 }
 0x356   : > { %3986 = vst [vmem:[#allocation2 + $0x50] sm:$0xff] %v3858_v43  ;;  %4044 = vst [vmem:[#allocation2 + $0x220] sm:$0xff] %v3916_v38  ;;  %v3359_v20 = vsel %vm3331_vm2, %v3090_v14, -inf  ;;  %v3475_v21 = vsel %vm3331_vm2, %v3206_v30, -inf  ;;  %v2493_v15 = vadd.f32 %v2492_v36, %v5797_v48  ;;  %v2783_v16 = vadd.f32 %v2782_v10, %v1728_v62  ;;  %v6425_v1 = vpop.permute.xlu0 %1737  ;;  %v1733_v33 = vpop.permute.xlu1 %1732  ;;  %v4935_v30 = vld [vmem:[%s7250_s5 + $0x1f8] sm:$0xff]  }
 0x357   : > { %v3603_v13 = vmax.f32 %v3358_v22, %v3359_v20  ;;  %v3661_v31 = vmax.f32 %v3474_v55, %v3475_v21  ;;  %v3360_v40 = vsel %vm3330_vm1, %v3091_v2, -inf  ;;  %v3476_v51 = vsel %vm3330_vm1, %v3207_v46, -inf }
 0x358   : > { %3047 = vmatmul.mubr.bf16.gmra.mrb[132].mxu1 %v4934_v35  ;;  %v3092_v19 = vmax.f32 %v2491_v12, 0.0  ;;  %v3208_v39 = vmax.f32 %v2781_v7, 0.0  ;;  %v3093_v54 = vmax.f32 %v2493_v15, 0.0  ;;  %v3209_v3 = vmax.f32 %v2783_v16, 0.0 }
 0x359   : > { %3056 = vmatprep.mubr.bf16.mxu1 %v7281_v24  ;;  %v3859_v61 = vmax.f32 %v3731_v6, %v3603_v13  ;;  %v3917_v29 = vmax.f32 %v3789_v50, %v3661_v31  ;;  %v2495_v44 = vadd.f32 %v2494_v5, %v5797_v48  ;;  %v2785_v22 = vadd.f32 %v2784_v32, %v1728_v62  ;;  %v3733_v6 = vld [vmem:[#allocation2 + $0x68] sm:$0xff]  ;;  %v3791_v50 = vld [vmem:[#allocation2 + $0x238] sm:$0xff] }
 0x35a   : > { %v3361_v55 = vsel %vm3331_vm2, %v3092_v19, -inf  ;;  %v3477_v25 = vsel %vm3331_vm2, %v3208_v39, -inf  ;;  %v3362_v37 = vsel %vm3330_vm1, %v3093_v54, -inf  ;;  %v3478_v24 = vsel %vm3330_vm1, %v3209_v3, -inf  ;;  %v2498_v23 = vpop.f32.mrb[60].mxu0  ;;  %v2788_v60 = vpop.f32.mrb[28].mxu1 }
 0x35b   : > { %3987 = vst [vmem:[#allocation2 + $0x58] sm:$0xff] %v3859_v61  ;;  %4045 = vst [vmem:[#allocation2 + $0x228] sm:$0xff] %v3917_v29  ;;  %v3604_v35 = vmax.f32 %v3360_v40, %v3361_v55  ;;  %v3662_v43 = vmax.f32 %v3476_v51, %v3477_v25  ;;  %v3094_v48 = vmax.f32 %v2495_v44, 0.0  ;;  %v3210_v62 = vmax.f32 %v2785_v22, 0.0  ;;  %v2500_v38 = vpop.f32.mrb[61].mxu0  ;;  %v2790_v14 = vpop.f32.mrb[29].mxu1 }
 0x35c   : > { %v2499_v36 = vadd.f32 %v2498_v23, %v5899_v8  ;;  %v2789_v10 = vadd.f32 %v2788_v60, %v1733_v33  ;;  %v2501_v2 = vadd.f32 %v2500_v38, %v5899_v8  ;;  %v2791_v46 = vadd.f32 %v2790_v14, %v1733_v33  ;;  %v2502_v12 = vpop.f32.mrb[62].mxu0  ;;  %v2792_v7 = vpop.f32.mrb[30].mxu1  ;;  %v3734_v22 = vld [vmem:[#allocation2 + $0x70] sm:$0xff]  ;;  %v3792_v25 = vld [vmem:[#allocation2 + $0x240] sm:$0xff] }
 0x35d   : > { %v3860_v5 = vmax.f32 %v3732_v58, %v3604_v35  ;;  %v3918_v32 = vmax.f32 %v3790_v26, %v3662_v43  ;;  %v3363_v20 = vsel %vm3331_vm2, %v3094_v48, -inf  ;;  %v3479_v21 = vsel %vm3331_vm2, %v3210_v62, -inf  ;;  %v2504_v15 = vpop.f32.mrb[63].mxu0  ;;  %v2794_v16 = vpop.f32.mrb[31].mxu1 }
 0x35e   : > { %v3605_v13 = vmax.f32 %v3362_v37, %v3363_v20  ;;  %v3663_v31 = vmax.f32 %v3478_v24, %v3479_v21  ;;  %v3095_v40 = vmax.f32 %v2499_v36, 0.0  ;;  %v3211_v51 = vmax.f32 %v2789_v10, 0.0  ;;  %v1748_v58 = vpop.permute.xlu0 %1747  ;;  %v1743_v26 = vpop.permute.xlu1 %1742 }
 0x35f   : > { %3988 = vst [vmem:[#allocation2 + $0x60] sm:$0xff] %v3860_v5  ;;  %4046 = vst [vmem:[#allocation2 + $0x230] sm:$0xff] %v3918_v32  ;;  %v3096_v8 = vmax.f32 %v2501_v2, 0.0  ;;  %v3212_v19 = vmax.f32 %v2791_v46, 0.0  ;;  %v2503_v39 = vadd.f32 %v2502_v12, %v5810_v53  ;;  %v2793_v54 = vadd.f32 %v2792_v7, %v6425_v1 }
 0x360   : > { %3057 = vmatmul.mubr.bf16.gmra.mrb[136].mxu1 %v4935_v30  ;;  %v3861_v3 = vmax.f32 %v3733_v6, %v3605_v13  ;;  %v3919_v33 = vmax.f32 %v3791_v50, %v3663_v31  ;;  %v3364_v61 = vsel %vm3330_vm1, %v3095_v40, -inf  ;;  %v3480_v29 = vsel %vm3330_vm1, %v3211_v51, -inf  ;;  %v3735_v13 = vld [vmem:[#allocation2 + $0x78] sm:$0xff]  ;;  %v3793_v40 = vld [vmem:[#allocation2 + $0x248] sm:$0xff] }
 0x361   : > { %v3365_v44 = vsel %vm3331_vm2, %v3096_v8, -inf  ;;  %v3481_v55 = vsel %vm3331_vm2, %v3212_v19, -inf  ;;  %v3097_v37 = vmax.f32 %v2503_v39, 0.0  ;;  %v3213_v24 = vmax.f32 %v2793_v54, 0.0 }
 0x362   : > { %3989 = vst [vmem:[#allocation2 + $0x68] sm:$0xff] %v3861_v3  ;;  %4047 = vst [vmem:[#allocation2 + $0x238] sm:$0xff] %v3919_v33  ;;  %v3606_v23 = vmax.f32 %v3364_v61, %v3365_v44  ;;  %v3664_v60 = vmax.f32 %v3480_v29, %v3481_v55  ;;  %v2505_v35 = vadd.f32 %v2504_v15, %v5810_v53  ;;  %v2508_v48 = vpop.f32.mrb[64].mxu0  ;;  %v2798_v62 = vpop.f32.mrb[32].mxu1 }
 0x363   : > { %v2795_v43 = vadd.f32 %v2794_v16, %v6425_v1  ;;  %v3366_v38 = vsel %vm3330_vm1, %v3097_v37, -inf  ;;  %v3482_v14 = vsel %vm3330_vm1, %v3213_v24, -inf  ;;  %v2509_v30 = vadd.f32 %v2508_v48, %v5906_v52  ;;  %v2510_v10 = vpop.f32.mrb[65].mxu0  ;;  %v2800_v2 = vpop.f32.mrb[33].mxu1  ;;  %v3794_v37 = vld [vmem:[#allocation2 + $0x250] sm:$0xff] }
 0x364   : > { %v2799_v36 = vadd.f32 %v2798_v62, %v1743_v26  ;;  %v3862_v46 = vmax.f32 %v3734_v22, %v3606_v23  ;;  %v3920_v12 = vmax.f32 %v3792_v25, %v3664_v60  ;;  %v3098_v7 = vmax.f32 %v2505_v35, 0.0  ;;  %v2512_v53 = vpop.f32.mrb[66].mxu0  ;;  %v2802_v32 = vpop.f32.mrb[34].mxu1  ;;  %v3736_v25 = vld [vmem:[#allocation2 + $0x80] sm:$0xff] }
 0x365   : > { %v3214_v5 = vmax.f32 %v2795_v43, 0.0  ;;  %v3099_v1 = vmax.f32 %v2509_v30, 0.0  ;;  %v2511_v6 = vadd.f32 %v2510_v10, %v5906_v52  ;;  %v2801_v21 = vadd.f32 %v2800_v2, %v1743_v26  ;;  %v2514_v50 = vpop.f32.mrb[67].mxu0  ;;  %v2804_v15 = vpop.f32.mrb[35].mxu1 }
 0x366   : > { %v3215_v20 = vmax.f32 %v2799_v36, 0.0  ;;  %3990 = vst [vmem:[#allocation2 + $0x70] sm:$0xff] %v3862_v46  ;;  %4048 = vst [vmem:[#allocation2 + $0x240] sm:$0xff] %v3920_v12  ;;  %v3367_v16 = vsel %vm3331_vm2, %v3098_v7, -inf  ;;  %v2513_v51 = vadd.f32 %v2512_v53, %v5823_v59  ;;  %v2803_v8 = vadd.f32 %v2802_v32, %v1748_v58  ;;  %v6472_v26 = vpop.permute.xlu0 %1757  ;;  %v1753_v44 = vpop.permute.xlu1 %1752 }
 0x367   : > { %v3483_v31 = vsel %vm3331_vm2, %v3214_v5, -inf  ;;  %v3607_v19 = vmax.f32 %v3366_v38, %v3367_v16  ;;  %v3368_v52 = vsel %vm3330_vm1, %v3099_v1, -inf  ;;  %v3100_v3 = vmax.f32 %v2511_v6, 0.0  ;;  %v3737_v6 = vld [vmem:[#allocation2 + $0x88] sm:$0xff] }
 0x368   : > { %v3665_v39 = vmax.f32 %v3482_v14, %v3483_v31  ;;  %v3484_v54 = vsel %vm3330_vm1, %v3215_v20, -inf  ;;  %v3216_v33 = vmax.f32 %v2801_v21, 0.0  ;;  %v3101_v61 = vmax.f32 %v2513_v51, 0.0 }
 0x369   : > { %v3217_v29 = vmax.f32 %v2803_v8, 0.0  ;;  %v3863_v22 = vmax.f32 %v3735_v13, %v3607_v19  ;;  %v2515_v24 = vadd.f32 %v2514_v50, %v5823_v59  ;;  %v2805_v23 = vadd.f32 %v2804_v15, %v1748_v58  ;;  %v3795_v50 = vld [vmem:[#allocation2 + $0x258] sm:$0xff] }
 0x36a   : > { %v3921_v55 = vmax.f32 %v3793_v40, %v3665_v39  ;;  %v3369_v60 = vsel %vm3331_vm2, %v3100_v3, -inf  ;;  %v3485_v35 = vsel %vm3331_vm2, %v3216_v33, -inf  ;;  %v3370_v43 = vsel %vm3330_vm1, %v3101_v61, -inf  ;;  %v2518_v62 = vpop.f32.mrb[68].mxu0  ;;  %v2808_v38 = vpop.f32.mrb[36].mxu1 }
 0x36b   : > { %v3486_v48 = vsel %vm3330_vm1, %v3217_v29, -inf  ;;  %3991 = vst [vmem:[#allocation2 + $0x78] sm:$0xff] %v3863_v22  ;;  %v3608_v14 = vmax.f32 %v3368_v52, %v3369_v60  ;;  %v3666_v30 = vmax.f32 %v3484_v54, %v3485_v35  ;;  %v3102_v59 = vmax.f32 %v2515_v24, 0.0  ;;  %v2520_v36 = vpop.f32.mrb[69].mxu0  ;;  %v2810_v10 = vpop.f32.mrb[37].mxu1  ;;  %v3738_v22 = vld [vmem:[#allocation2 + $0x90] sm:$0xff] }
 0x36c   : > { %4049 = vst [vmem:[#allocation2 + $0x248] sm:$0xff] %v3921_v55  ;;  %v3218_v58 = vmax.f32 %v2805_v23, 0.0  ;;  %v2519_v2 = vadd.f32 %v2518_v62, %v5914_v57  ;;  %v2809_v46 = vadd.f32 %v2808_v38, %v1753_v44  ;;  %v2521_v12 = vadd.f32 %v2520_v36, %v5914_v57  ;;  %v2522_v5 = vpop.f32.mrb[70].mxu0  ;;  %v2812_v53 = vpop.f32.mrb[38].mxu1 }
 0x36d   : > { %v2811_v7 = vadd.f32 %v2810_v10, %v1753_v44  ;;  %v3864_v32 = vmax.f32 %v3736_v25, %v3608_v14  ;;  %v3922_v1 = vmax.f32 %v3794_v37, %v3666_v30  ;;  %v3371_v20 = vsel %vm3331_vm2, %v3102_v59, -inf  ;;  %v2524_v15 = vpop.f32.mrb[71].mxu0  ;;  %v2814_v16 = vpop.f32.mrb[39].mxu1  ;;  %v3796_v25 = vld [vmem:[#allocation2 + $0x260] sm:$0xff] }
 0x36e   : > { %v3487_v21 = vsel %vm3331_vm2, %v3218_v58, -inf  ;;  %v3609_v13 = vmax.f32 %v3370_v43, %v3371_v20  ;;  %v3103_v40 = vmax.f32 %v2519_v2, 0.0  ;;  %v3219_v51 = vmax.f32 %v2809_v46, 0.0  ;;  %v1768_v61 = vpop.permute.xlu0 %1767  ;;  %v1763_v29 = vpop.permute.xlu1 %1762 }
 0x36f   : > { %v3667_v31 = vmax.f32 %v3486_v48, %v3487_v21  ;;  %3992 = vst [vmem:[#allocation2 + $0x80] sm:$0xff] %v3864_v32  ;;  %4050 = vst [vmem:[#allocation2 + $0x250] sm:$0xff] %v3922_v1  ;;  %v3104_v57 = vmax.f32 %v2521_v12, 0.0  ;;  %v3220_v8 = vmax.f32 %v2811_v7, 0.0  ;;  %v2523_v19 = vadd.f32 %v2522_v5, %v5836_v47  ;;  %v3739_v21 = vld [vmem:[#allocation2 + $0x98] sm:$0xff] }
 0x370   : > { %v2813_v39 = vadd.f32 %v2812_v53, %v6472_v26  ;;  %v3865_v52 = vmax.f32 %v3737_v6, %v3609_v13  ;;  %v3372_v3 = vsel %vm3330_vm1, %v3103_v40, -inf  ;;  %v3488_v33 = vsel %vm3330_vm1, %v3219_v51, -inf }
 0x371   : > { %v3923_v54 = vmax.f32 %v3795_v50, %v3667_v31  ;;  %v3373_v44 = vsel %vm3331_vm2, %v3104_v57, -inf  ;;  %v3489_v55 = vsel %vm3331_vm2, %v3220_v8, -inf  ;;  %v3105_v37 = vmax.f32 %v2523_v19, 0.0 }
 0x372   : > { %v3221_v24 = vmax.f32 %v2813_v39, 0.0  ;;  %3993 = vst [vmem:[#allocation2 + $0x88] sm:$0xff] %v3865_v52  ;;  %v3610_v23 = vmax.f32 %v3372_v3, %v3373_v44  ;;  %v3668_v60 = vmax.f32 %v3488_v33, %v3489_v55  ;;  %v2525_v35 = vadd.f32 %v2524_v15, %v5836_v47  ;;  %v2528_v48 = vpop.f32.mrb[72].mxu0  ;;  %v2818_v62 = vpop.f32.mrb[40].mxu1  ;;  %v3797_v15 = vld [vmem:[#allocation2 + $0x268] sm:$0xff]  ;;  %v3798_v44 = vld [vmem:[#allocation2 + $0x270] sm:$0xff] }
 0x373   : > { %4051 = vst [vmem:[#allocation2 + $0x258] sm:$0xff] %v3923_v54  ;;  %v2815_v43 = vadd.f32 %v2814_v16, %v6472_v26  ;;  %v3374_v38 = vsel %vm3330_vm1, %v3105_v37, -inf  ;;  %v2529_v30 = vadd.f32 %v2528_v48, %v5919_v0  ;;  %v2819_v59 = vadd.f32 %v2818_v62, %v1763_v29  ;;  %v2530_v58 = vpop.f32.mrb[73].mxu0  ;;  %v2820_v36 = vpop.f32.mrb[41].mxu1 }
 0x374   : > { %v3490_v14 = vsel %vm3330_vm1, %v3221_v24, -inf  ;;  %v3866_v10 = vmax.f32 %v3738_v22, %v3610_v23  ;;  %v3924_v2 = vmax.f32 %v3796_v25, %v3668_v60  ;;  %v3106_v46 = vmax.f32 %v2525_v35, 0.0  ;;  %v2532_v47 = vpop.f32.mrb[74].mxu0  ;;  %v2822_v7 = vpop.f32.mrb[42].mxu1 }
 0x375   : > { %v3222_v12 = vmax.f32 %v2815_v43, 0.0  ;;  %v3107_v26 = vmax.f32 %v2529_v30, 0.0  ;;  %v3223_v5 = vmax.f32 %v2819_v59, 0.0  ;;  %v2531_v53 = vadd.f32 %v2530_v58, %v5919_v0  ;;  %v2534_v1 = vpop.f32.mrb[75].mxu0  ;;  %v2824_v20 = vpop.f32.mrb[43].mxu1 }
 0x376   : > { %v2821_v32 = vadd.f32 %v2820_v36, %v1763_v29  ;;  %3994 = vst [vmem:[#allocation2 + $0x90] sm:$0xff] %v3866_v10  ;;  %4052 = vst [vmem:[#allocation2 + $0x260] sm:$0xff] %v3924_v2  ;;  %v3375_v6 = vsel %vm3331_vm2, %v3106_v46, -inf  ;;  %v2533_v16 = vadd.f32 %v2532_v47, %v5849_v9  ;;  %v2823_v13 = vadd.f32 %v2822_v7, %v1768_v61  ;;  %v6516_v52 = vpop.permute.xlu0 %1777  ;;  %v1773_v54 = vpop.permute.xlu1 %1772  ;;  %v3740_v29 = vld [vmem:[#allocation2 + $0xa0] sm:$0xff]  ;;  %v3741_v47 = vld [vmem:[#allocation2 + $0xa8] sm:$0xff] }
 0x377   : > { %v3491_v50 = vsel %vm3331_vm2, %v3222_v12, -inf  ;;  %v3611_v31 = vmax.f32 %v3374_v38, %v3375_v6  ;;  %v3376_v0 = vsel %vm3330_vm1, %v3107_v26, -inf  ;;  %v3492_v51 = vsel %vm3330_vm1, %v3223_v5, -inf  ;;  %v3799_v26 = vld [vmem:[#allocation2 + $0x278] sm:$0xff] }
 0x378   : > { %v3669_v40 = vmax.f32 %v3490_v14, %v3491_v50  ;;  %v3108_v57 = vmax.f32 %v2531_v53, 0.0  ;;  %v3224_v8 = vmax.f32 %v2821_v32, 0.0  ;;  %v3109_v19 = vmax.f32 %v2533_v16, 0.0 }
 0x379   : > { %v3225_v39 = vmax.f32 %v2823_v13, 0.0  ;;  %v3867_v3 = vmax.f32 %v3739_v21, %v3611_v31  ;;  %v2535_v22 = vadd.f32 %v2534_v1, %v5849_v9  ;;  %v2825_v55 = vadd.f32 %v2824_v20, %v1768_v61 }
 0x37a   : > { %v3925_v33 = vmax.f32 %v3797_v15, %v3669_v40  ;;  %v3377_v25 = vsel %vm3331_vm2, %v3108_v57, -inf  ;;  %v3493_v37 = vsel %vm3331_vm2, %v3224_v8, -inf  ;;  %v3378_v24 = vsel %vm3330_vm1, %v3109_v19, -inf  ;;  %v2538_v60 = vpop.f32.mrb[76].mxu0  ;;  %v2828_v35 = vpop.f32.mrb[44].mxu1  ;;  %v3742_v8 = vld [vmem:[#allocation2 + $0xb0] sm:$0xff] }
 0x37b   : > { %v3494_v23 = vsel %vm3330_vm1, %v3225_v39, -inf  ;;  %3995 = vst [vmem:[#allocation2 + $0x98] sm:$0xff] %v3867_v3  ;;  %v3612_v43 = vmax.f32 %v3376_v0, %v3377_v25  ;;  %v3670_v48 = vmax.f32 %v3492_v51, %v3493_v37  ;;  %v3110_v9 = vmax.f32 %v2535_v22, 0.0  ;;  %v2540_v62 = vpop.f32.mrb[77].mxu0  ;;  %v2830_v38 = vpop.f32.mrb[45].mxu1  ;;  %v3800_v39 = vld [vmem:[#allocation2 + $0x280] sm:$0xff] }
 0x37c   : > { %4053 = vst [vmem:[#allocation2 + $0x268] sm:$0xff] %v3925_v33  ;;  %v3226_v61 = vmax.f32 %v2825_v55, 0.0  ;;  %v2539_v14 = vadd.f32 %v2538_v60, %v5927_v4  ;;  %v2829_v30 = vadd.f32 %v2828_v35, %v1773_v54  ;;  %v2541_v59 = vadd.f32 %v2540_v62, %v5927_v4  ;;  %v2542_v36 = vpop.f32.mrb[78].mxu0  ;;  %v2832_v10 = vpop.f32.mrb[46].mxu1 }
 0x37d   : > { %v2831_v58 = vadd.f32 %v2830_v38, %v1773_v54  ;;  %v3868_v2 = vmax.f32 %v3740_v29, %v3612_v43  ;;  %v3926_v46 = vmax.f32 %v3798_v44, %v3670_v48  ;;  %v3379_v12 = vsel %vm3331_vm2, %v3110_v9, -inf  ;;  %v2544_v5 = vpop.f32.mrb[79].mxu0  ;;  %v2834_v53 = vpop.f32.mrb[47].mxu1 }
 0x37e   : > { %v3495_v7 = vsel %vm3331_vm2, %v3226_v61, -inf  ;;  %v3613_v32 = vmax.f32 %v3378_v24, %v3379_v12  ;;  %v3111_v20 = vmax.f32 %v2539_v14, 0.0  ;;  %v3227_v6 = vmax.f32 %v2829_v30, 0.0  ;;  %v1788_v0 = vpop.permute.xlu0 %1787  ;;  %v1783_v51 = vpop.permute.xlu1 %1782  ;;  %v3801_v12 = vld [vmem:[#allocation2 + $0x288] sm:$0xff] }
 0x37f   : > { %v3671_v1 = vmax.f32 %v3494_v23, %v3495_v7  ;;  %3996 = vst [vmem:[#allocation2 + $0xa0] sm:$0xff] %v3868_v2  ;;  %4054 = vst [vmem:[#allocation2 + $0x270] sm:$0xff] %v3926_v46  ;;  %v3112_v4 = vmax.f32 %v2541_v59, 0.0  ;;  %v3228_v21 = vmax.f32 %v2831_v58, 0.0  ;;  %v2543_v50 = vadd.f32 %v2542_v36, %v5862_v17  ;;  %v3743_v2 = vld [vmem:[#allocation2 + $0xb8] sm:$0xff] }
 0x380   : > { %v2833_v15 = vadd.f32 %v2832_v10, %v6516_v52  ;;  %v3869_v16 = vmax.f32 %v3741_v47, %v3613_v32  ;;  %v3380_v31 = vsel %vm3330_vm1, %v3111_v20, -inf  ;;  %v3496_v40 = vsel %vm3330_vm1, %v3227_v6, -inf }
 0x381   : > { %v3927_v13 = vmax.f32 %v3799_v26, %v3671_v1  ;;  %v3381_v57 = vsel %vm3331_vm2, %v3112_v4, -inf  ;;  %v3497_v19 = vsel %vm3331_vm2, %v3228_v21, -inf  ;;  %v3113_v54 = vmax.f32 %v2543_v50, 0.0 }
 0x382   : > { %v3229_v3 = vmax.f32 %v2833_v15, 0.0  ;;  %3997 = vst [vmem:[#allocation2 + $0xa8] sm:$0xff] %v3869_v16  ;;  %v3614_v33 = vmax.f32 %v3380_v31, %v3381_v57  ;;  %v3672_v29 = vmax.f32 %v3496_v40, %v3497_v19  ;;  %v2545_v44 = vadd.f32 %v2544_v5, %v5862_v17  ;;  %v2548_v55 = vpop.f32.mrb[80].mxu0  ;;  %v2838_v25 = vpop.f32.mrb[48].mxu1  ;;  %v3744_v16 = vld [vmem:[#allocation2 + $0xc0] sm:$0xff] }
 0x383   : > { %4055 = vst [vmem:[#allocation2 + $0x278] sm:$0xff] %v3927_v13  ;;  %v2835_v22 = vadd.f32 %v2834_v53, %v6516_v52  ;;  %v3382_v37 = vsel %vm3330_vm1, %v3113_v54, -inf  ;;  %v2549_v23 = vadd.f32 %v2548_v55, %v5932_v11  ;;  %v2839_v60 = vadd.f32 %v2838_v25, %v1783_v51  ;;  %v2550_v35 = vpop.f32.mrb[81].mxu0  ;;  %v2840_v43 = vpop.f32.mrb[49].mxu1  ;;  %v3802_v13 = vld [vmem:[#allocation2 + $0x290] sm:$0xff] }
 0x384   : > { %v3498_v24 = vsel %vm3330_vm1, %v3229_v3, -inf  ;;  %v3870_v48 = vmax.f32 %v3742_v8, %v3614_v33  ;;  %v3928_v9 = vmax.f32 %v3800_v39, %v3672_v29  ;;  %v3114_v61 = vmax.f32 %v2545_v44, 0.0  ;;  %v2552_v17 = vpop.f32.mrb[82].mxu0  ;;  %v2842_v38 = vpop.f32.mrb[50].mxu1 }
 0x385   : > { %v3230_v62 = vmax.f32 %v2835_v22, 0.0  ;;  %v3115_v52 = vmax.f32 %v2549_v23, 0.0  ;;  %v3231_v14 = vmax.f32 %v2839_v60, 0.0  ;;  %v2551_v30 = vadd.f32 %v2550_v35, %v5932_v11  ;;  %v2554_v58 = vpop.f32.mrb[83].mxu0  ;;  %v2844_v36 = vpop.f32.mrb[51].mxu1 }
 0x386   : > { %v2841_v59 = vadd.f32 %v2840_v43, %v1783_v51  ;;  %3998 = vst [vmem:[#allocation2 + $0xb0] sm:$0xff] %v3870_v48  ;;  %4056 = vst [vmem:[#allocation2 + $0x280] sm:$0xff] %v3928_v9  ;;  %v3383_v10 = vsel %vm3331_vm2, %v3114_v61, -inf  ;;  %v2553_v47 = vadd.f32 %v2552_v17, %v5875_v34  ;;  %v2843_v7 = vadd.f32 %v2842_v38, %v1788_v0  ;;  %v6560_v4 = vpop.permute.xlu0 %1797  ;;  %v1793_v21 = vpop.permute.xlu1 %1792  ;;  %v3745_v48 = vld [vmem:[#allocation2 + $0xc8] sm:$0xff]  ;;  %v3803_v61 = vld [vmem:[#allocation2 + $0x298] sm:$0xff] }
 0x387   : > { %v3499_v46 = vsel %vm3331_vm2, %v3230_v62, -inf  ;;  %v3615_v26 = vmax.f32 %v3382_v37, %v3383_v10  ;;  %v3384_v11 = vsel %vm3330_vm1, %v3115_v52, -inf  ;;  %v3500_v53 = vsel %vm3330_vm1, %v3231_v14, -inf }
 0x388   : > { %v3673_v5 = vmax.f32 %v3498_v24, %v3499_v46  ;;  %v3116_v32 = vmax.f32 %v2551_v30, 0.0  ;;  %v3232_v1 = vmax.f32 %v2841_v59, 0.0  ;;  %v3117_v20 = vmax.f32 %v2553_v47, 0.0 }
 0x389   : > { %v3233_v6 = vmax.f32 %v2843_v7, 0.0  ;;  %v3871_v50 = vmax.f32 %v3743_v2, %v3615_v26  ;;  %v2555_v31 = vadd.f32 %v2554_v58, %v5875_v34  ;;  %v2845_v40 = vadd.f32 %v2844_v36, %v1788_v0 }
 0x38a   : > { %v3929_v15 = vmax.f32 %v3801_v12, %v3673_v5  ;;  %v3385_v51 = vsel %vm3331_vm2, %v3116_v32, -inf  ;;  %v3501_v57 = vsel %vm3331_vm2, %v3232_v1, -inf  ;;  %v3386_v8 = vsel %vm3330_vm1, %v3117_v20, -inf  ;;  %v2558_v39 = vpop.f32.mrb[84].mxu0  ;;  %v2848_v54 = vpop.f32.mrb[52].mxu1  ;;  %v3746_v5 = vld [vmem:[#allocation2 + $0xd0] sm:$0xff] }
 0x38b   : > { %v3502_v19 = vsel %vm3330_vm1, %v3233_v6, -inf  ;;  %3999 = vst [vmem:[#allocation2 + $0xb8] sm:$0xff] %v3871_v50  ;;  %v3616_v3 = vmax.f32 %v3384_v11, %v3385_v51  ;;  %v3674_v33 = vmax.f32 %v3500_v53, %v3501_v57  ;;  %v3118_v34 = vmax.f32 %v2555_v31, 0.0  ;;  %v2560_v29 = vpop.f32.mrb[85].mxu0  ;;  %v2850_v44 = vpop.f32.mrb[53].mxu1  ;;  %v3804_v53 = vld [vmem:[#allocation2 + $0x2a0] sm:$0xff] }
 0x38c   : > { %4057 = vst [vmem:[#allocation2 + $0x288] sm:$0xff] %v3929_v15  ;;  %v3234_v0 = vmax.f32 %v2845_v40, 0.0  ;;  %v2559_v22 = vadd.f32 %v2558_v39, %v5940_v18  ;;  %v2849_v55 = vadd.f32 %v2848_v54, %v1793_v21  ;;  %v2561_v25 = vadd.f32 %v2560_v29, %v5940_v18  ;;  %v2562_v24 = vpop.f32.mrb[86].mxu0  ;;  %v2852_v23 = vpop.f32.mrb[54].mxu1 }
 0x38d   : > { %v2851_v37 = vadd.f32 %v2850_v44, %v1793_v21  ;;  %v3872_v60 = vmax.f32 %v3744_v16, %v3616_v3  ;;  %v3930_v35 = vmax.f32 %v3802_v13, %v3674_v33  ;;  %v3387_v43 = vsel %vm3331_vm2, %v3118_v34, -inf  ;;  %v2564_v62 = vpop.f32.mrb[87].mxu0  ;;  %v2854_v17 = vpop.f32.mrb[55].mxu1 }
 0x38e   : > { %v3503_v9 = vsel %vm3331_vm2, %v3234_v0, -inf  ;;  %v3617_v38 = vmax.f32 %v3386_v8, %v3387_v43  ;;  %v3119_v14 = vmax.f32 %v2559_v22, 0.0  ;;  %v3235_v30 = vmax.f32 %v2849_v55, 0.0  ;;  %v1808_v47 = vpop.permute.xlu0 %1807  ;;  %v1803_v7 = vpop.permute.xlu1 %1802 }
 0x38f   : > { %v3675_v52 = vmax.f32 %v3502_v19, %v3503_v9  ;;  %4000 = vst [vmem:[#allocation2 + $0xc0] sm:$0xff] %v3872_v60  ;;  %4058 = vst [vmem:[#allocation2 + $0x290] sm:$0xff] %v3930_v35  ;;  %v3120_v18 = vmax.f32 %v2561_v25, 0.0  ;;  %v3236_v59 = vmax.f32 %v2851_v37, 0.0  ;;  %v2563_v58 = vadd.f32 %v2562_v24, %v5888_v42  ;;  %v3747_v25 = vld [vmem:[#allocation2 + $0xd8] sm:$0xff]  ;;  %v3805_v24 = vld [vmem:[#allocation2 + $0x2a8] sm:$0xff] }
 0x390   : > { %v2853_v36 = vadd.f32 %v2852_v23, %v6560_v4  ;;  %v3873_v10 = vmax.f32 %v3745_v48, %v3617_v38  ;;  %v3388_v46 = vsel %vm3330_vm1, %v3119_v14, -inf  ;;  %v3504_v12 = vsel %vm3330_vm1, %v3235_v30, -inf }
 0x391   : > { %v3931_v2 = vmax.f32 %v3803_v61, %v3675_v52  ;;  %v3389_v26 = vsel %vm3331_vm2, %v3120_v18, -inf  ;;  %v3505_v11 = vsel %vm3331_vm2, %v3236_v59, -inf  ;;  %v3121_v32 = vmax.f32 %v2563_v58, 0.0  ;;  %v3748_v18 = vld [vmem:[#allocation2 + $0xe0] sm:$0xff]  ;;  %v3806_v59 = vld [vmem:[#allocation2 + $0x2b0] sm:$0xff] }
 0x392   : > { %v3237_v1 = vmax.f32 %v2853_v36, 0.0  ;;  %4001 = vst [vmem:[#allocation2 + $0xc8] sm:$0xff] %v3873_v10  ;;  %v3618_v20 = vmax.f32 %v3388_v46, %v3389_v26  ;;  %v3676_v6 = vmax.f32 %v3504_v12, %v3505_v11  ;;  %v2565_v21 = vadd.f32 %v2564_v62, %v5888_v42  ;;  %v2568_v15 = vpop.f32.mrb[88].mxu0  ;;  %v2858_v16 = vpop.f32.mrb[56].mxu1 }
 0x393   : > { %4059 = vst [vmem:[#allocation2 + $0x298] sm:$0xff] %v3931_v2  ;;  %v2855_v50 = vadd.f32 %v2854_v17, %v6560_v4  ;;  %v3390_v13 = vsel %vm3330_vm1, %v3121_v32, -inf  ;;  %v2569_v40 = vadd.f32 %v2568_v15, %v5945_v28  ;;  %v2859_v51 = vadd.f32 %v2858_v16, %v1803_v7  ;;  %v2570_v57 = vpop.f32.mrb[89].mxu0  ;;  %v2860_v8 = vpop.f32.mrb[57].mxu1 }
 0x394   : > { %v3506_v31 = vsel %vm3330_vm1, %v3237_v1, -inf  ;;  %v3874_v19 = vmax.f32 %v3746_v5, %v3618_v20  ;;  %v3932_v39 = vmax.f32 %v3804_v53, %v3676_v6  ;;  %v3122_v54 = vmax.f32 %v2565_v21, 0.0  ;;  %v2572_v42 = vpop.f32.mrb[90].mxu0  ;;  %v2862_v33 = vpop.f32.mrb[58].mxu1 }
 0x395   : > { %v3238_v3 = vmax.f32 %v2855_v50, 0.0  ;;  %v3123_v4 = vmax.f32 %v2569_v40, 0.0  ;;  %v3239_v34 = vmax.f32 %v2859_v51, 0.0  ;;  %v2571_v0 = vadd.f32 %v2570_v57, %v5945_v28  ;;  %v2574_v44 = vpop.f32.mrb[91].mxu0  ;;  %v2864_v22 = vpop.f32.mrb[59].mxu1  ;;  %v3749_v40 = vld [vmem:[#allocation2 + $0xe8] sm:$0xff] }
 0x396   : > { %v2861_v29 = vadd.f32 %v2860_v8, %v1803_v7  ;;  %4002 = vst [vmem:[#allocation2 + $0xd0] sm:$0xff] %v3874_v19  ;;  %4060 = vst [vmem:[#allocation2 + $0x2a0] sm:$0xff] %v3932_v39  ;;  %v3391_v55 = vsel %vm3331_vm2, %v3122_v54, -inf  ;;  %v2573_v23 = vadd.f32 %v2572_v42, %v5901_v49  ;;  %v2863_v60 = vadd.f32 %v2862_v33, %v1808_v47  ;;  %v6604_v38 = vpop.permute.xlu0 %1817  ;;  %v1813_v52 = vpop.permute.xlu1 %1812  ;;  %v3807_v57 = vld [vmem:[#allocation2 + $0x2b8] sm:$0xff] }
 0x397   : > { %v3507_v37 = vsel %vm3331_vm2, %v3238_v3, -inf  ;;  %v3619_v35 = vmax.f32 %v3390_v13, %v3391_v55  ;;  %v3392_v28 = vsel %vm3330_vm1, %v3123_v4, -inf  ;;  %v3508_v48 = vsel %vm3330_vm1, %v3239_v34, -inf }
 0x398   : > { %v3677_v43 = vmax.f32 %v3506_v31, %v3507_v37  ;;  %v3124_v9 = vmax.f32 %v2571_v0, 0.0  ;;  %v3240_v61 = vmax.f32 %v2861_v29, 0.0  ;;  %v3125_v62 = vmax.f32 %v2573_v23, 0.0 }
 0x399   : > { %v3241_v17 = vmax.f32 %v2863_v60, 0.0  ;;  %v3875_v14 = vmax.f32 %v3747_v25, %v3619_v35  ;;  %v2575_v58 = vadd.f32 %v2574_v44, %v5901_v49  ;;  %v2865_v36 = vadd.f32 %v2864_v22, %v1808_v47  ;;  %v3808_v60 = vld [vmem:[#allocation2 + $0x2c0] sm:$0xff] }
 0x39a   : > { %v3933_v30 = vmax.f32 %v3805_v24, %v3677_v43  ;;  %v3393_v10 = vsel %vm3331_vm2, %v3124_v9, -inf  ;;  %v3509_v2 = vsel %vm3331_vm2, %v3240_v61, -inf  ;;  %v3394_v46 = vsel %vm3330_vm1, %v3125_v62, -inf  ;;  %v2578_v7 = vpop.f32.mrb[92].mxu0  ;;  %v2868_v26 = vpop.f32.mrb[60].mxu1  ;;  %v3750_v24 = vld [vmem:[#allocation2 + $0xf0] sm:$0xff] }
 0x39b   : > { %v3510_v12 = vsel %vm3330_vm1, %v3241_v17, -inf  ;;  %4003 = vst [vmem:[#allocation2 + $0xd8] sm:$0xff] %v3875_v14  ;;  %v3620_v5 = vmax.f32 %v3392_v28, %v3393_v10  ;;  %v3678_v11 = vmax.f32 %v3508_v48, %v3509_v2  ;;  %v3126_v49 = vmax.f32 %v2575_v58, 0.0  ;;  %v2580_v53 = vpop.f32.mrb[93].mxu0  ;;  %v2870_v32 = vpop.f32.mrb[61].mxu1 }
 0x39c   : > { %4061 = vst [vmem:[#allocation2 + $0x2a8] sm:$0xff] %v3933_v30  ;;  %v3242_v47 = vmax.f32 %v2865_v36, 0.0  ;;  %v2579_v1 = vadd.f32 %v2578_v7, %v6115_v63  ;;  %v2869_v20 = vadd.f32 %v2868_v26, %v1813_v52  ;;  %v2581_v6 = vadd.f32 %v2580_v53, %v6115_v63  ;;  %v2582_v50 = vpop.f32.mrb[94].mxu0  ;;  %v2872_v15 = vpop.f32.mrb[62].mxu1  ;;  %v3751_v53 = vld [vmem:[#allocation2 + $0xf8] sm:$0xff] }
 0x39d   : > { %v2871_v21 = vadd.f32 %v2870_v32, %v1813_v52  ;;  %v3876_v16 = vmax.f32 %v3748_v18, %v3620_v5  ;;  %v3934_v13 = vmax.f32 %v3806_v59, %v3678_v11  ;;  %v3395_v31 = vsel %vm3331_vm2, %v3126_v49, -inf  ;;  %v2584_v8 = vpop.f32.mrb[95].mxu0  ;;  %v2874_v19 = vpop.f32.mrb[63].mxu1 }
 0x39e   : > { %v3511_v51 = vsel %vm3331_vm2, %v3242_v47, -inf  ;;  %v3621_v39 = vmax.f32 %v3394_v46, %v3395_v31  ;;  %v3127_v3 = vmax.f32 %v2579_v1, 0.0  ;;  %v3243_v42 = vmax.f32 %v2869_v20, 0.0  ;;  %v1828_v55 = vpop.permute.xlu0 %1827  ;;  %v1823_v25 = vpop.permute.xlu1 %1822  ;;  %v3809_v1 = vld [vmem:[#allocation2 + $0x2c8] sm:$0xff]  ;;  %v7308_v20 = vld [vmem:[#allocation3_spill] sm:$0xff] }
 0x39f   : > { %v3679_v54 = vmax.f32 %v3510_v12, %v3511_v51  ;;  %4004 = vst [vmem:[#allocation2 + $0xe0] sm:$0xff] %v3876_v16  ;;  %4062 = vst [vmem:[#allocation2 + $0x2b0] sm:$0xff] %v3934_v13  ;;  %v3128_v63 = vmax.f32 %v2581_v6, 0.0  ;;  %v3244_v33 = vmax.f32 %v2871_v21, 0.0  ;;  %v2583_v4 = vadd.f32 %v2582_v50, %v6113_v56 }
 0x3a0   : > { %v2873_v34 = vadd.f32 %v2872_v15, %v6604_v38  ;;  %v3877_v0 = vmax.f32 %v3749_v40, %v3621_v39  ;;  %v3396_v44 = vsel %vm3330_vm1, %v3127_v3, -inf  ;;  %v3512_v22 = vsel %vm3330_vm1, %v3243_v42, -inf  ;;  %v3810_v3 = vld [vmem:[#allocation2 + $0x2d0] sm:$0xff] }
 0x3a1   : > { %v3935_v29 = vmax.f32 %v3807_v57, %v3679_v54  ;;  %v3397_v37 = vsel %vm3331_vm2, %v3128_v63, -inf  ;;  %v3513_v23 = vsel %vm3331_vm2, %v3244_v33, -inf  ;;  %v3129_v35 = vmax.f32 %v2583_v4, 0.0  ;;  %v3752_v54 = vld [vmem:[#allocation2 + $0x100] sm:$0xff] }
 0x3a2   : > { %v3245_v43 = vmax.f32 %v2873_v34, 0.0  ;;  %4005 = vst [vmem:[#allocation2 + $0xe8] sm:$0xff] %v3877_v0  ;;  %v3622_v28 = vmax.f32 %v3396_v44, %v3397_v37  ;;  %v3680_v48 = vmax.f32 %v3512_v22, %v3513_v23  ;;  %v2585_v9 = vadd.f32 %v2584_v8, %v6113_v56  ;;  %v2588_v62 = vpop.f32.mrb[96].mxu0  ;;  %v2878_v17 = vpop.f32.mrb[64].mxu1 }
 0x3a3   : > { %4063 = vst [vmem:[#allocation2 + $0x2b8] sm:$0xff] %v3935_v29  ;;  %v2875_v61 = vadd.f32 %v2874_v19, %v6604_v38  ;;  %v3398_v52 = vsel %vm3330_vm1, %v3129_v35, -inf  ;;  %v2589_v30 = vadd.f32 %v2588_v62, %v6121_v27  ;;  %v2879_v18 = vadd.f32 %v2878_v17, %v1823_v25  ;;  %v2590_v59 = vpop.f32.mrb[97].mxu0  ;;  %v2880_v58 = vpop.f32.mrb[65].mxu1 }
 0x3a4   : > { %v3514_v14 = vsel %vm3330_vm1, %v3245_v43, -inf  ;;  %v3878_v36 = vmax.f32 %v3750_v24, %v3622_v28  ;;  %v3936_v10 = vmax.f32 %v3808_v60, %v3680_v48  ;;  %v3130_v2 = vmax.f32 %v2585_v9, 0.0  ;;  %v2592_v56 = vpop.f32.mrb[98].mxu0  ;;  %v2882_v12 = vpop.f32.mrb[66].mxu1  ;;  %v7309_v60 = vld [vmem:[#allocation5_spill] sm:$0xff] }
 0x3a5   : > { %v3246_v46 = vmax.f32 %v2875_v61, 0.0  ;;  %v3131_v38 = vmax.f32 %v2589_v30, 0.0  ;;  %v3247_v7 = vmax.f32 %v2879_v18, 0.0  ;;  %v2591_v26 = vadd.f32 %v2590_v59, %v6121_v27  ;;  %v2594_v11 = vpop.f32.mrb[99].mxu0  ;;  %v2884_v49 = vpop.f32.mrb[67].mxu1  ;;  %v3811_v18 = vld [vmem:[#allocation2 + $0x2d8] sm:$0xff] }
 0x3a6   : > { %v2881_v5 = vadd.f32 %v2880_v58, %v1823_v25  ;;  %4006 = vst [vmem:[#allocation2 + $0xf0] sm:$0xff] %v3878_v36  ;;  %4064 = vst [vmem:[#allocation2 + $0x2c0] sm:$0xff] %v3936_v10  ;;  %v3399_v47 = vsel %vm3331_vm2, %v3130_v2, -inf  ;;  %v2593_v6 = vadd.f32 %v2592_v56, %v7308_v20  ;;  %v2883_v21 = vadd.f32 %v2882_v12, %v1828_v55  ;;  %v6648_v57 = vpop.permute.xlu0 %1837  ;;  %v1833_v8 = vpop.permute.xlu1 %1832 }
 0x3a7   : > { %v3515_v32 = vsel %vm3331_vm2, %v3246_v46, -inf  ;;  %v3623_v50 = vmax.f32 %v3398_v52, %v3399_v47  ;;  %v3400_v27 = vsel %vm3330_vm1, %v3131_v38, -inf  ;;  %v3516_v16 = vsel %vm3330_vm1, %v3247_v7, -inf  ;;  %v7310_v38 = vld [vmem:[#allocation4_spill] sm:$0xff] }
 0x3a8   : > { %v3681_v15 = vmax.f32 %v3514_v14, %v3515_v32  ;;  %v3132_v13 = vmax.f32 %v2591_v26, 0.0  ;;  %v3248_v31 = vmax.f32 %v2881_v5, 0.0  ;;  %v3133_v40 = vmax.f32 %v2593_v6, 0.0  ;;  %v3753_v14 = vld [vmem:[#allocation2 + $0x108] sm:$0xff] }
 0x3a9   : > { %v3249_v51 = vmax.f32 %v2883_v21, 0.0  ;;  %v3879_v19 = vmax.f32 %v3751_v53, %v3623_v50  ;;  %v2595_v42 = vadd.f32 %v2594_v11, %v7308_v20  ;;  %v2885_v63 = vadd.f32 %v2884_v49, %v1828_v55  ;;  %v3754_v20 = vld [vmem:[#allocation2 + $0x110] sm:$0xff]  ;;  %v3812_v21 = vld [vmem:[#allocation2 + $0x2e0] sm:$0xff] }
 0x3aa   : > { %v3937_v39 = vmax.f32 %v3809_v1, %v3681_v15  ;;  %v3401_v33 = vsel %vm3331_vm2, %v3132_v13, -inf  ;;  %v3517_v4 = vsel %vm3331_vm2, %v3248_v31, -inf  ;;  %v3402_v34 = vsel %vm3330_vm1, %v3133_v40, -inf  ;;  %v2598_v29 = vpop.f32.mrb[100].mxu0  ;;  %v2888_v44 = vpop.f32.mrb[68].mxu1 }
 0x3ab   : > { %v3518_v0 = vsel %vm3330_vm1, %v3249_v51, -inf  ;;  %4007 = vst [vmem:[#allocation2 + $0xf8] sm:$0xff] %v3879_v19  ;;  %v3624_v22 = vmax.f32 %v3400_v27, %v3401_v33  ;;  %v3682_v25 = vmax.f32 %v3516_v16, %v3517_v4  ;;  %v3134_v37 = vmax.f32 %v2595_v42, 0.0  ;;  %v2600_v24 = vpop.f32.mrb[101].mxu0  ;;  %v2890_v23 = vpop.f32.mrb[69].mxu1 }
 0x3ac   : > { %4065 = vst [vmem:[#allocation2 + $0x2c8] sm:$0xff] %v3937_v39  ;;  %v3250_v55 = vmax.f32 %v2885_v63, 0.0  ;;  %v2599_v35 = vadd.f32 %v2598_v29, %v7309_v60  ;;  %v2889_v43 = vadd.f32 %v2888_v44, %v1833_v8  ;;  %v2601_v28 = vadd.f32 %v2600_v24, %v7309_v60  ;;  %v2602_v9 = vpop.f32.mrb[102].mxu0  ;;  %v2892_v61 = vpop.f32.mrb[70].mxu1  ;;  %v7311_v39 = vld [vmem:[#allocation7_spill] sm:$0xff]  ;;  %v3755_v60 = vld [vmem:[#allocation2 + $0x118] sm:$0xff] }
 0x3ad   : > { %v2891_v48 = vadd.f32 %v2890_v23, %v1833_v8  ;;  %v3880_v62 = vmax.f32 %v3752_v54, %v3624_v22  ;;  %v3938_v17 = vmax.f32 %v3810_v3, %v3682_v25  ;;  %v3403_v52 = vsel %vm3331_vm2, %v3134_v37, -inf  ;;  %v2604_v59 = vpop.f32.mrb[103].mxu0  ;;  %v2894_v58 = vpop.f32.mrb[71].mxu1 }
 0x3ae   : > { %v3519_v30 = vsel %vm3331_vm2, %v3250_v55, -inf  ;;  %v3625_v36 = vmax.f32 %v3402_v34, %v3403_v52  ;;  %v3135_v2 = vmax.f32 %v2599_v35, 0.0  ;;  %v3251_v46 = vmax.f32 %v2889_v43, 0.0  ;;  %v1848_v53 = vpop.permute.xlu0 %1847  ;;  %v1843_v32 = vpop.permute.xlu1 %1842  ;;  %v3813_v43 = vld [vmem:[#allocation2 + $0x2e8] sm:$0xff] }
 0x3af   : > { %v3683_v10 = vmax.f32 %v3518_v0, %v3519_v30  ;;  %4008 = vst [vmem:[#allocation2 + $0x100] sm:$0xff] %v3880_v62  ;;  %4066 = vst [vmem:[#allocation2 + $0x2d0] sm:$0xff] %v3938_v17  ;;  %v3136_v56 = vmax.f32 %v2601_v28, 0.0  ;;  %v3252_v12 = vmax.f32 %v2891_v48, 0.0  ;;  %v2603_v7 = vadd.f32 %v2602_v9, %v7310_v38  ;;  %v7312_v28 = vld [vmem:[#allocation6_spill] sm:$0xff] }
 0x3b0   : > { %v2893_v26 = vadd.f32 %v2892_v61, %v6648_v57  ;;  %v3881_v5 = vmax.f32 %v3753_v14, %v3625_v36  ;;  %v3404_v49 = vsel %vm3330_vm1, %v3135_v2, -inf  ;;  %v3520_v47 = vsel %vm3330_vm1, %v3251_v46, -inf  ;;  %v3756_v46 = vld [vmem:[#allocation2 + $0x120] sm:$0xff] }
 0x3b1   : > { %v3939_v11 = vmax.f32 %v3811_v18, %v3683_v10  ;;  %v3405_v1 = vsel %vm3331_vm2, %v3136_v56, -inf  ;;  %v3521_v6 = vsel %vm3331_vm2, %v3252_v12, -inf  ;;  %v3137_v50 = vmax.f32 %v2603_v7, 0.0  ;;  %v3814_v56 = vld [vmem:[#allocation2 + $0x2f0] sm:$0xff] }
 0x3b2   : > { %v3253_v15 = vmax.f32 %v2893_v26, 0.0  ;;  %4009 = vst [vmem:[#allocation2 + $0x108] sm:$0xff] %v3881_v5  ;;  %v3626_v27 = vmax.f32 %v3404_v49, %v3405_v1  ;;  %v3684_v16 = vmax.f32 %v3520_v47, %v3521_v6  ;;  %v2605_v13 = vadd.f32 %v2604_v59, %v7310_v38  ;;  %v2608_v40 = vpop.f32.mrb[104].mxu0  ;;  %v2898_v51 = vpop.f32.mrb[72].mxu1 }
 0x3b3   : > { %4067 = vst [vmem:[#allocation2 + $0x2d8] sm:$0xff] %v3939_v11  ;;  %v2895_v31 = vadd.f32 %v2894_v58, %v6648_v57  ;;  %v3406_v8 = vsel %vm3330_vm1, %v3137_v50, -inf  ;;  %v2609_v54 = vadd.f32 %v2608_v40, %v7311_v39  ;;  %v2899_v3 = vadd.f32 %v2898_v51, %v1843_v32  ;;  %v2610_v42 = vpop.f32.mrb[105].mxu0  ;;  %v2900_v63 = vpop.f32.mrb[73].mxu1  ;;  %v7313_v50 = vld [vmem:[#allocation9_spill] sm:$0xff] }
 0x3b4   : > { %v3522_v19 = vsel %vm3330_vm1, %v3253_v15, -inf  ;;  %v3882_v33 = vmax.f32 %v3754_v20, %v3626_v27  ;;  %v3940_v4 = vmax.f32 %v3812_v21, %v3684_v16  ;;  %v3138_v34 = vmax.f32 %v2605_v13, 0.0  ;;  %v2612_v29 = vpop.f32.mrb[106].mxu0  ;;  %v2902_v44 = vpop.f32.mrb[74].mxu1 }
 0x3b5   : > { %v3254_v0 = vmax.f32 %v2895_v31, 0.0  ;;  %v3139_v57 = vmax.f32 %v2609_v54, 0.0  ;;  %v3255_v22 = vmax.f32 %v2899_v3, 0.0  ;;  %v2611_v25 = vadd.f32 %v2610_v42, %v7311_v39  ;;  %v2614_v55 = vpop.f32.mrb[107].mxu0  ;;  %v2904_v24 = vpop.f32.mrb[75].mxu1  ;;  %v3757_v39 = vld [vmem:[#allocation2 + $0x128] sm:$0xff] }
 0x3b6   : > { %v2901_v37 = vadd.f32 %v2900_v63, %v1843_v32  ;;  %4010 = vst [vmem:[#allocation2 + $0x110] sm:$0xff] %v3882_v33  ;;  %4068 = vst [vmem:[#allocation2 + $0x2e0] sm:$0xff] %v3940_v4  ;;  %v3407_v23 = vsel %vm3331_vm2, %v3138_v34, -inf  ;;  %v2613_v48 = vadd.f32 %v2612_v29, %v7312_v28  ;;  %v2903_v9 = vadd.f32 %v2902_v44, %v1848_v53  ;;  %v6692_v58 = vpop.permute.xlu0 %1857  ;;  %v1853_v36 = vpop.permute.xlu1 %1852  ;;  %v3815_v3 = vld [vmem:[#allocation2 + $0x2f8] sm:$0xff] }
 0x3b7   : > { %v3523_v35 = vsel %vm3331_vm2, %v3254_v0, -inf  ;;  %v3627_v61 = vmax.f32 %v3406_v8, %v3407_v23  ;;  %v3408_v17 = vsel %vm3330_vm1, %v3139_v57, -inf  ;;  %v3524_v52 = vsel %vm3330_vm1, %v3255_v22, -inf  ;;  %v7314_v57 = vld [vmem:[#allocation8_spill] sm:$0xff] }
 0x3b8   : > { %v3685_v62 = vmax.f32 %v3522_v19, %v3523_v35  ;;  %v3140_v14 = vmax.f32 %v2611_v25, 0.0  ;;  %v3256_v30 = vmax.f32 %v2901_v37, 0.0  ;;  %v3141_v18 = vmax.f32 %v2613_v48, 0.0 }
 0x3b9   : > { %v3257_v59 = vmax.f32 %v2903_v9, 0.0  ;;  %v3883_v10 = vmax.f32 %v3755_v60, %v3627_v61  ;;  %v2615_v12 = vadd.f32 %v2614_v55, %v7312_v28  ;;  %v2905_v38 = vadd.f32 %v2904_v24, %v1848_v53  ;;  %v3758_v28 = vld [vmem:[#allocation2 + $0x130] sm:$0xff]  ;;  %v3816_v9 = vld [vmem:[#allocation2 + $0x300] sm:$0xff] }
 0x3ba   : > { %v3941_v2 = vmax.f32 %v3813_v43, %v3685_v62  ;;  %v3409_v7 = vsel %vm3331_vm2, %v3140_v14, -inf  ;;  %v3525_v26 = vsel %vm3331_vm2, %v3256_v30, -inf  ;;  %v3410_v5 = vsel %vm3330_vm1, %v3141_v18, -inf  ;;  %v2618_v49 = vpop.f32.mrb[108].mxu0  ;;  %v2908_v47 = vpop.f32.mrb[76].mxu1 }
 0x3bb   : > { %v3526_v11 = vsel %vm3330_vm1, %v3257_v59, -inf  ;;  %4011 = vst [vmem:[#allocation2 + $0x118] sm:$0xff] %v3883_v10  ;;  %v3628_v32 = vmax.f32 %v3408_v17, %v3409_v7  ;;  %v3686_v1 = vmax.f32 %v3524_v52, %v3525_v26  ;;  %v3142_v20 = vmax.f32 %v2615_v12, 0.0  ;;  %v2620_v6 = vpop.f32.mrb[109].mxu0  ;;  %v2910_v21 = vpop.f32.mrb[77].mxu1 }
 0x3bc   : > { %4069 = vst [vmem:[#allocation2 + $0x2e8] sm:$0xff] %v3941_v2  ;;  %v3258_v53 = vmax.f32 %v2905_v38, 0.0  ;;  %v2619_v15 = vadd.f32 %v2618_v49, %v7313_v50  ;;  %v2909_v27 = vadd.f32 %v2908_v47, %v1853_v36  ;;  %v2621_v16 = vadd.f32 %v2620_v6, %v7313_v50  ;;  %v2622_v31 = vpop.f32.mrb[110].mxu0  ;;  %v2912_v40 = vpop.f32.mrb[78].mxu1  ;;  %v7315_v2 = vld [vmem:[#allocation11_spill] sm:$0xff]  ;;  %v3759_v50 = vld [vmem:[#allocation2 + $0x138] sm:$0xff] }
 0x3bd   : > { %v2911_v13 = vadd.f32 %v2910_v21, %v1853_v36  ;;  %v3884_v51 = vmax.f32 %v3756_v46, %v3628_v32  ;;  %v3942_v8 = vmax.f32 %v3814_v56, %v3686_v1  ;;  %v3411_v19 = vsel %vm3331_vm2, %v3142_v20, -inf  ;;  %v2624_v42 = vpop.f32.mrb[111].mxu0  ;;  %v2914_v63 = vpop.f32.mrb[79].mxu1 }
 0x3be   : > { %v3527_v54 = vsel %vm3331_vm2, %v3258_v53, -inf  ;;  %v3629_v33 = vmax.f32 %v3410_v5, %v3411_v19  ;;  %v3143_v34 = vmax.f32 %v2619_v15, 0.0  ;;  %v3259_v0 = vmax.f32 %v2909_v27, 0.0  ;;  %v1868_v60 = vpop.permute.xlu0 %1867  ;;  %v1863_v35 = vpop.permute.xlu1 %1862  ;;  %v3817_v27 = vld [vmem:[#allocation2 + $0x308] sm:$0xff] }
 0x3bf   : > { %v3687_v4 = vmax.f32 %v3526_v11, %v3527_v54  ;;  %4012 = vst [vmem:[#allocation2 + $0x120] sm:$0xff] %v3884_v51  ;;  %4070 = vst [vmem:[#allocation2 + $0x2f0] sm:$0xff] %v3942_v8  ;;  %v3144_v29 = vmax.f32 %v2621_v16, 0.0  ;;  %v3260_v44 = vmax.f32 %v2911_v13, 0.0  ;;  %v2623_v22 = vadd.f32 %v2622_v31, %v7314_v57  ;;  %v7316_v16 = vld [vmem:[#allocation10_spill] sm:$0xff] }
 0x3c0   : > { %v2913_v25 = vadd.f32 %v2912_v40, %v6692_v58  ;;  %v3885_v37 = vmax.f32 %v3757_v39, %v3629_v33  ;;  %v3412_v24 = vsel %vm3330_vm1, %v3143_v34, -inf  ;;  %v3528_v23 = vsel %vm3330_vm1, %v3259_v0, -inf  ;;  %v3760_v0 = vld [vmem:[#allocation2 + $0x140] sm:$0xff] }
 0x3c1   : > { %v3943_v55 = vmax.f32 %v3815_v3, %v3687_v4  ;;  %v3413_v43 = vsel %vm3331_vm2, %v3144_v29, -inf  ;;  %v3529_v48 = vsel %vm3331_vm2, %v3260_v44, -inf  ;;  %v3145_v61 = vmax.f32 %v2623_v22, 0.0  ;;  %v3818_v29 = vld [vmem:[#allocation2 + $0x310] sm:$0xff] }
 0x3c2   : > { %v3261_v62 = vmax.f32 %v2913_v25, 0.0  ;;  %4013 = vst [vmem:[#allocation2 + $0x128] sm:$0xff] %v3885_v37  ;;  %v3630_v17 = vmax.f32 %v3412_v24, %v3413_v43  ;;  %v3688_v52 = vmax.f32 %v3528_v23, %v3529_v48  ;;  %v2625_v14 = vadd.f32 %v2624_v42, %v7314_v57  ;;  %v2628_v18 = vpop.f32.mrb[112].mxu0  ;;  %v2918_v59 = vpop.f32.mrb[80].mxu1 }
 0x3c3   : > { %4071 = vst [vmem:[#allocation2 + $0x2f8] sm:$0xff] %v3943_v55  ;;  %v2915_v30 = vadd.f32 %v2914_v63, %v6692_v58  ;;  %v3414_v36 = vsel %vm3330_vm1, %v3145_v61, -inf  ;;  %v2629_v46 = vadd.f32 %v2628_v18, %v7315_v2  ;;  %v2919_v56 = vadd.f32 %v2918_v59, %v1863_v35  ;;  %v2630_v12 = vpop.f32.mrb[113].mxu0  ;;  %v2920_v38 = vpop.f32.mrb[81].mxu1  ;;  %v7317_v61 = vld [vmem:[#allocation13_spill] sm:$0xff] }
 0x3c4   : > { %v3530_v10 = vsel %vm3330_vm1, %v3261_v62, -inf  ;;  %v3886_v7 = vmax.f32 %v3758_v28, %v3630_v17  ;;  %v3944_v26 = vmax.f32 %v3816_v9, %v3688_v52  ;;  %v3146_v5 = vmax.f32 %v2625_v14, 0.0  ;;  %v2632_v49 = vpop.f32.mrb[114].mxu0  ;;  %v2922_v47 = vpop.f32.mrb[82].mxu1 }
 0x3c5   : > { %v3262_v11 = vmax.f32 %v2915_v30, 0.0  ;;  %v3147_v58 = vmax.f32 %v2629_v46, 0.0  ;;  %v3263_v32 = vmax.f32 %v2919_v56, 0.0  ;;  %v2631_v1 = vadd.f32 %v2630_v12, %v7315_v2  ;;  %v2634_v53 = vpop.f32.mrb[115].mxu0  ;;  %v2924_v6 = vpop.f32.mrb[83].mxu1  ;;  %v3761_v2 = vld [vmem:[#allocation2 + $0x148] sm:$0xff] }
 0x3c6   : > { %v2921_v20 = vadd.f32 %v2920_v38, %v1863_v35  ;;  %4014 = vst [vmem:[#allocation2 + $0x130] sm:$0xff] %v3886_v7  ;;  %4072 = vst [vmem:[#allocation2 + $0x300] sm:$0xff] %v3944_v26  ;;  %v3415_v21 = vsel %vm3331_vm2, %v3146_v5, -inf  ;;  %v2633_v13 = vadd.f32 %v2632_v49, %v7316_v16  ;;  %v2923_v31 = vadd.f32 %v2922_v47, %v1868_v60  ;;  %v6736_v63 = vpop.permute.xlu0 %1877  ;;  %v1873_v33 = vpop.permute.xlu1 %1872  ;;  %v3819_v56 = vld [vmem:[#allocation2 + $0x318] sm:$0xff] }
 0x3c7   : > { %v3531_v15 = vsel %vm3331_vm2, %v3262_v11, -inf  ;;  %v3631_v40 = vmax.f32 %v3414_v36, %v3415_v21  ;;  %v3416_v8 = vsel %vm3330_vm1, %v3147_v58, -inf  ;;  %v3532_v19 = vsel %vm3330_vm1, %v3263_v32, -inf  ;;  %v7318_v58 = vld [vmem:[#allocation12_spill] sm:$0xff] }
 0x3c8   : > { %v3689_v51 = vmax.f32 %v3530_v10, %v3531_v15  ;;  %v3148_v39 = vmax.f32 %v2631_v1, 0.0  ;;  %v3264_v54 = vmax.f32 %v2921_v20, 0.0  ;;  %v3149_v3 = vmax.f32 %v2633_v13, 0.0 }
 0x3c9   : > { %v3265_v42 = vmax.f32 %v2923_v31, 0.0  ;;  %v3887_v4 = vmax.f32 %v3759_v50, %v3631_v40  ;;  %v2635_v44 = vadd.f32 %v2634_v53, %v7316_v16  ;;  %v2925_v57 = vadd.f32 %v2924_v6, %v1868_v60  ;;  %v3762_v16 = vld [vmem:[#allocation2 + $0x150] sm:$0xff]  ;;  %v3820_v31 = vld [vmem:[#allocation2 + $0x320] sm:$0xff] }
 0x3ca   : > { %v3945_v34 = vmax.f32 %v3817_v27, %v3689_v51  ;;  %v3417_v22 = vsel %vm3331_vm2, %v3148_v39, -inf  ;;  %v3533_v25 = vsel %vm3331_vm2, %v3264_v54, -inf  ;;  %v3418_v37 = vsel %vm3330_vm1, %v3149_v3, -inf  ;;  %v2638_v24 = vpop.f32.mrb[116].mxu0  ;;  %v2928_v23 = vpop.f32.mrb[84].mxu1 }
 0x3cb   : > { %v3534_v55 = vsel %vm3330_vm1, %v3265_v42, -inf  ;;  %4015 = vst [vmem:[#allocation2 + $0x138] sm:$0xff] %v3887_v4  ;;  %v3632_v35 = vmax.f32 %v3416_v8, %v3417_v22  ;;  %v3690_v43 = vmax.f32 %v3532_v19, %v3533_v25  ;;  %v3150_v28 = vmax.f32 %v2635_v44, 0.0  ;;  %v2640_v48 = vpop.f32.mrb[117].mxu0  ;;  %v2930_v9 = vpop.f32.mrb[85].mxu1 }
 0x3cc   : > { %4073 = vst [vmem:[#allocation2 + $0x308] sm:$0xff] %v3945_v34  ;;  %v3266_v60 = vmax.f32 %v2925_v57, 0.0  ;;  %v2639_v62 = vadd.f32 %v2638_v24, %v7317_v61  ;;  %v2929_v17 = vadd.f32 %v2928_v23, %v1873_v33  ;;  %v2641_v52 = vadd.f32 %v2640_v48, %v7317_v61  ;;  %v2642_v30 = vpop.f32.mrb[118].mxu0  ;;  %v2932_v18 = vpop.f32.mrb[86].mxu1  ;;  %v7319_v34 = vld [vmem:[#allocation15_spill] sm:$0xff]  ;;  %v3763_v61 = vld [vmem:[#allocation2 + $0x158] sm:$0xff] }
 0x3cd   : > { %v2931_v14 = vadd.f32 %v2930_v9, %v1873_v33  ;;  %v3888_v59 = vmax.f32 %v3760_v0, %v3632_v35  ;;  %v3946_v36 = vmax.f32 %v3818_v29, %v3690_v43  ;;  %v3419_v10 = vsel %vm3331_vm2, %v3150_v28, -inf  ;;  %v2644_v12 = vpop.f32.mrb[119].mxu0  ;;  %v2934_v38 = vpop.f32.mrb[87].mxu1 }
 0x3ce   : > { %v3535_v46 = vsel %vm3331_vm2, %v3266_v60, -inf  ;;  %v3633_v7 = vmax.f32 %v3418_v37, %v3419_v10  ;;  %v3151_v5 = vmax.f32 %v2639_v62, 0.0  ;;  %v3267_v11 = vmax.f32 %v2929_v17, 0.0  ;;  %v1888_v50 = vpop.permute.xlu0 %1887  ;;  %v1883_v15 = vpop.permute.xlu1 %1882  ;;  %v3821_v17 = vld [vmem:[#allocation2 + $0x328] sm:$0xff] }
 0x3cf   : > { %v3691_v26 = vmax.f32 %v3534_v55, %v3535_v46  ;;  %4016 = vst [vmem:[#allocation2 + $0x140] sm:$0xff] %v3888_v59  ;;  %4074 = vst [vmem:[#allocation2 + $0x310] sm:$0xff] %v3946_v36  ;;  %v3152_v49 = vmax.f32 %v2641_v52, 0.0  ;;  %v3268_v47 = vmax.f32 %v2931_v14, 0.0  ;;  %v2643_v32 = vadd.f32 %v2642_v30, %v7318_v58  ;;  %v7320_v52 = vld [vmem:[#allocation14_spill] sm:$0xff] }
 0x3d0   : > { %v2933_v1 = vadd.f32 %v2932_v18, %v6736_v63  ;;  %v3889_v20 = vmax.f32 %v3761_v2, %v3633_v7  ;;  %v3420_v6 = vsel %vm3330_vm1, %v3151_v5, -inf  ;;  %v3536_v21 = vsel %vm3330_vm1, %v3267_v11, -inf  ;;  %v3764_v11 = vld [vmem:[#allocation2 + $0x160] sm:$0xff] }
 0x3d1   : > { %v3947_v53 = vmax.f32 %v3819_v56, %v3691_v26  ;;  %v3421_v27 = vsel %vm3331_vm2, %v3152_v49, -inf  ;;  %v3537_v13 = vsel %vm3331_vm2, %v3268_v47, -inf  ;;  %v3153_v40 = vmax.f32 %v2643_v32, 0.0  ;;  %v3822_v49 = vld [vmem:[#allocation2 + $0x330] sm:$0xff] }
 0x3d2   : > { %v3269_v51 = vmax.f32 %v2933_v1, 0.0  ;;  %4017 = vst [vmem:[#allocation2 + $0x148] sm:$0xff] %v3889_v20  ;;  %v3634_v8 = vmax.f32 %v3420_v6, %v3421_v27  ;;  %v3692_v19 = vmax.f32 %v3536_v21, %v3537_v13  ;;  %v2645_v39 = vadd.f32 %v2644_v12, %v7318_v58  ;;  %v2648_v3 = vpop.f32.mrb[120].mxu0  ;;  %v2938_v42 = vpop.f32.mrb[88].mxu1 }
 0x3d3   : > { %4075 = vst [vmem:[#allocation2 + $0x318] sm:$0xff] %v3947_v53  ;;  %v2935_v54 = vadd.f32 %v2934_v38, %v6736_v63  ;;  %v3422_v33 = vsel %vm3330_vm1, %v3153_v40, -inf  ;;  %v2649_v0 = vadd.f32 %v2648_v3, %v7319_v34  ;;  %v2939_v29 = vadd.f32 %v2938_v42, %v1883_v15  ;;  %v2650_v44 = vpop.f32.mrb[121].mxu0  ;;  %v2940_v57 = vpop.f32.mrb[89].mxu1  ;;  %v7321_v40 = vld [vmem:[#allocation17_spill] sm:$0xff] }
 0x3d4   : > { %v3538_v4 = vsel %vm3330_vm1, %v3269_v51, -inf  ;;  %v3890_v22 = vmax.f32 %v3762_v16, %v3634_v8  ;;  %v3948_v25 = vmax.f32 %v3820_v31, %v3692_v19  ;;  %v3154_v37 = vmax.f32 %v2645_v39, 0.0  ;;  %v2652_v24 = vpop.f32.mrb[122].mxu0  ;;  %v2942_v23 = vpop.f32.mrb[90].mxu1 }
 0x3d5   : > { %v3270_v55 = vmax.f32 %v2935_v54, 0.0  ;;  %v3155_v63 = vmax.f32 %v2649_v0, 0.0  ;;  %v3271_v35 = vmax.f32 %v2939_v29, 0.0  ;;  %v2651_v43 = vadd.f32 %v2650_v44, %v7319_v34  ;;  %v2654_v60 = vpop.f32.mrb[123].mxu0  ;;  %v2944_v48 = vpop.f32.mrb[91].mxu1  ;;  %v3765_v34 = vld [vmem:[#allocation2 + $0x168] sm:$0xff] }
 0x3d6   : > { %v2941_v28 = vadd.f32 %v2940_v57, %v1883_v15  ;;  %4018 = vst [vmem:[#allocation2 + $0x150] sm:$0xff] %v3890_v22  ;;  %4076 = vst [vmem:[#allocation2 + $0x320] sm:$0xff] %v3948_v25  ;;  %v3423_v9 = vsel %vm3331_vm2, %v3154_v37, -inf  ;;  %v2653_v14 = vadd.f32 %v2652_v24, %v7320_v52  ;;  %v2943_v30 = vadd.f32 %v2942_v23, %v1888_v50  ;;  %v6780_v38 = vpop.permute.xlu0 %1897  ;;  %v1893_v7 = vpop.permute.xlu1 %1892  ;;  %v3823_v29 = vld [vmem:[#allocation2 + $0x338] sm:$0xff] }
 0x3d7   : > { %v3539_v62 = vsel %vm3331_vm2, %v3270_v55, -inf  ;;  %v3635_v18 = vmax.f32 %v3422_v33, %v3423_v9  ;;  %v3424_v36 = vsel %vm3330_vm1, %v3155_v63, -inf  ;;  %v3540_v10 = vsel %vm3330_vm1, %v3271_v35, -inf  ;;  %v7322_v63 = vld [vmem:[#allocation16_spill] sm:$0xff] }
 0x3d8   : > { %v3693_v59 = vmax.f32 %v3538_v4, %v3539_v62  ;;  %v3156_v2 = vmax.f32 %v2651_v43, 0.0  ;;  %v3272_v46 = vmax.f32 %v2941_v28, 0.0  ;;  %v3157_v56 = vmax.f32 %v2653_v14, 0.0 }
 0x3d9   : > { %v3273_v12 = vmax.f32 %v2943_v30, 0.0  ;;  %v3891_v26 = vmax.f32 %v3763_v61, %v3635_v18  ;;  %v2655_v47 = vadd.f32 %v2654_v60, %v7320_v52  ;;  %v2945_v58 = vadd.f32 %v2944_v48, %v1888_v50  ;;  %v3766_v52 = vld [vmem:[#allocation2 + $0x170] sm:$0xff]  ;;  %v3824_v30 = vld [vmem:[#allocation2 + $0x340] sm:$0xff] }
 0x3da   : > { %v3949_v5 = vmax.f32 %v3821_v17, %v3693_v59  ;;  %v3425_v32 = vsel %vm3331_vm2, %v3156_v2, -inf  ;;  %v3541_v1 = vsel %vm3331_vm2, %v3272_v46, -inf  ;;  %v3426_v20 = vsel %vm3330_vm1, %v3157_v56, -inf  ;;  %v2658_v6 = vpop.f32.mrb[124].mxu0  ;;  %v2948_v21 = vpop.f32.mrb[92].mxu1 }
 0x3db   : > { %v3542_v53 = vsel %vm3330_vm1, %v3273_v12, -inf  ;;  %4019 = vst [vmem:[#allocation2 + $0x158] sm:$0xff] %v3891_v26  ;;  %v3636_v15 = vmax.f32 %v3424_v36, %v3425_v32  ;;  %v3694_v27 = vmax.f32 %v3540_v10, %v3541_v1  ;;  %v3158_v16 = vmax.f32 %v2655_v47, 0.0  ;;  %v2660_v13 = vpop.f32.mrb[125].mxu0  ;;  %v2950_v31 = vpop.f32.mrb[93].mxu1 }
 0x3dc   : > { %4077 = vst [vmem:[#allocation2 + $0x328] sm:$0xff] %v3949_v5  ;;  %v3274_v50 = vmax.f32 %v2945_v58, 0.0  ;;  %v2659_v51 = vadd.f32 %v2658_v6, %v7321_v40  ;;  %v2949_v8 = vadd.f32 %v2948_v21, %v1893_v7  ;;  %v2661_v19 = vadd.f32 %v2660_v13, %v7321_v40  ;;  %v2662_v54 = vpop.f32.mrb[126].mxu0  ;;  %v2952_v3 = vpop.f32.mrb[94].mxu1  ;;  %v7323_v5 = vld [vmem:[#allocation19_spill] sm:$0xff]  ;;  %v3767_v40 = vld [vmem:[#allocation2 + $0x178] sm:$0xff] }
 0x3dd   : > { %v2951_v39 = vadd.f32 %v2950_v31, %v1893_v7  ;;  %v3892_v42 = vmax.f32 %v3764_v11, %v3636_v15  ;;  %v3950_v33 = vmax.f32 %v3822_v49, %v3694_v27  ;;  %v3427_v4 = vsel %vm3331_vm2, %v3158_v16, -inf  ;;  %v2664_v44 = vpop.f32.mrb[127].mxu0  ;;  %v2954_v57 = vpop.f32.mrb[95].mxu1 }
 0x3de   : > { %v3543_v0 = vsel %vm3331_vm2, %v3274_v50, -inf  ;;  %v3637_v22 = vmax.f32 %v3426_v20, %v3427_v4  ;;  %v3159_v37 = vmax.f32 %v2659_v51, 0.0  ;;  %v3275_v55 = vmax.f32 %v2949_v8, 0.0  ;;  %v1908_v61 = vpop.permute.xlu0 %1907  ;;  %v1903_v62 = vpop.permute.xlu1 %1902  ;;  %v3825_v8 = vld [vmem:[#allocation2 + $0x348] sm:$0xff] }
 0x3df   : > { %v3695_v25 = vmax.f32 %v3542_v53, %v3543_v0  ;;  %4020 = vst [vmem:[#allocation2 + $0x160] sm:$0xff] %v3892_v42  ;;  %4078 = vst [vmem:[#allocation2 + $0x330] sm:$0xff] %v3950_v33  ;;  %v3160_v24 = vmax.f32 %v2661_v19, 0.0  ;;  %v3276_v23 = vmax.f32 %v2951_v39, 0.0  ;;  %v2663_v35 = vadd.f32 %v2662_v54, %v7322_v63  ;;  %v7324_v19 = vld [vmem:[#allocation18_spill] sm:$0xff] }
 0x3e0   : > { %v2953_v43 = vadd.f32 %v2952_v3, %v6780_v38  ;;  %v3893_v28 = vmax.f32 %v3765_v34, %v3637_v22  ;;  %v3428_v48 = vsel %vm3330_vm1, %v3159_v37, -inf  ;;  %v3544_v9 = vsel %vm3330_vm1, %v3275_v55, -inf  ;;  %v3768_v55 = vld [vmem:[#allocation2 + $0x180] sm:$0xff] }
 0x3e1   : > { %v3951_v60 = vmax.f32 %v3823_v29, %v3695_v25  ;;  %v3429_v17 = vsel %vm3331_vm2, %v3160_v24, -inf  ;;  %v3545_v14 = vsel %vm3331_vm2, %v3276_v23, -inf  ;;  %v3161_v18 = vmax.f32 %v2663_v35, 0.0  ;;  %v3826_v24 = vld [vmem:[#allocation2 + $0x350] sm:$0xff] }
 0x3e2   : > { %v3277_v59 = vmax.f32 %v2953_v43, 0.0  ;;  %4021 = vst [vmem:[#allocation2 + $0x168] sm:$0xff] %v3893_v28  ;;  %v3638_v36 = vmax.f32 %v3428_v48, %v3429_v17  ;;  %v3696_v10 = vmax.f32 %v3544_v9, %v3545_v14  ;;  %v2665_v2 = vadd.f32 %v2664_v44, %v7322_v63  ;;  %v2668_v56 = vpop.f32.mrb[128].mxu0  ;;  %v2958_v12 = vpop.f32.mrb[96].mxu1 }
 0x3e3   : > { %4079 = vst [vmem:[#allocation2 + $0x338] sm:$0xff] %v3951_v60  ;;  %v2955_v46 = vadd.f32 %v2954_v57, %v6780_v38  ;;  %v3430_v7 = vsel %vm3330_vm1, %v3161_v18, -inf  ;;  %v2669_v11 = vadd.f32 %v2668_v56, %v7323_v5  ;;  %v2959_v49 = vadd.f32 %v2958_v12, %v1903_v62  ;;  %v2670_v47 = vpop.f32.mrb[129].mxu0  ;;  %v2960_v58 = vpop.f32.mrb[97].mxu1  ;;  %v7325_v18 = vld [vmem:[#allocation21_spill] sm:$0xff] }
 0x3e4   : > { %v3546_v26 = vsel %vm3330_vm1, %v3277_v59, -inf  ;;  %v3894_v32 = vmax.f32 %v3766_v52, %v3638_v36  ;;  %v3952_v1 = vmax.f32 %v3824_v30, %v3696_v10  ;;  %v3162_v20 = vmax.f32 %v2665_v2, 0.0  ;;  %v2672_v6 = vpop.f32.mrb[130].mxu0  ;;  %v2962_v21 = vpop.f32.mrb[98].mxu1 }
 0x3e5   : > { %v3278_v53 = vmax.f32 %v2955_v46, 0.0  ;;  %v3163_v38 = vmax.f32 %v2669_v11, 0.0  ;;  %v3279_v15 = vmax.f32 %v2959_v49, 0.0  ;;  %v2671_v27 = vadd.f32 %v2670_v47, %v7323_v5  ;;  %v2674_v50 = vpop.f32.mrb[131].mxu0  ;;  %v2964_v13 = vpop.f32.mrb[99].mxu1  ;;  %v3769_v5 = vld [vmem:[#allocation2 + $0x188] sm:$0xff] }
 0x3e6   : > { %v2961_v16 = vadd.f32 %v2960_v58, %v1903_v62  ;;  %4022 = vst [vmem:[#allocation2 + $0x170] sm:$0xff] %v3894_v32  ;;  %4080 = vst [vmem:[#allocation2 + $0x340] sm:$0xff] %v3952_v1  ;;  %v3431_v31 = vsel %vm3331_vm2, %v3162_v20, -inf  ;;  %v2673_v39 = vadd.f32 %v2672_v6, %v7324_v19  ;;  %v2963_v54 = vadd.f32 %v2962_v21, %v1908_v61  ;;  %v6824_v57 = vpop.permute.xlu0 %1917  ;;  %v1913_v22 = vpop.permute.xlu1 %1912  ;;  %v3827_v49 = vld [vmem:[#allocation2 + $0x358] sm:$0xff] }
 0x3e7   : > { %v3547_v51 = vsel %vm3331_vm2, %v3278_v53, -inf  ;;  %v3639_v3 = vmax.f32 %v3430_v7, %v3431_v31  ;;  %v3432_v33 = vsel %vm3330_vm1, %v3163_v38, -inf  ;;  %v3548_v4 = vsel %vm3330_vm1, %v3279_v15, -inf  ;;  %v7326_v38 = vld [vmem:[#allocation20_spill] sm:$0xff] }
 0x3e8   : > { %v3697_v42 = vmax.f32 %v3546_v26, %v3547_v51  ;;  %v3164_v34 = vmax.f32 %v2671_v27, 0.0  ;;  %v3280_v0 = vmax.f32 %v2961_v16, 0.0  ;;  %v3165_v29 = vmax.f32 %v2673_v39, 0.0 }
 0x3e9   : > { %v3281_v44 = vmax.f32 %v2963_v54, 0.0  ;;  %v3895_v25 = vmax.f32 %v3767_v40, %v3639_v3  ;;  %v2675_v23 = vadd.f32 %v2674_v50, %v7324_v19  ;;  %v2965_v63 = vadd.f32 %v2964_v13, %v1908_v61  ;;  %v3770_v19 = vld [vmem:[#allocation2 + $0x190] sm:$0xff]  ;;  %v3828_v54 = vld [vmem:[#allocation2 + $0x360] sm:$0xff] }
 0x3ea   : > { %v3953_v37 = vmax.f32 %v3825_v8, %v3697_v42  ;;  %v3433_v35 = vsel %vm3331_vm2, %v3164_v34, -inf  ;;  %v3549_v43 = vsel %vm3331_vm2, %v3280_v0, -inf  ;;  %v3434_v28 = vsel %vm3330_vm1, %v3165_v29, -inf  ;;  %v2678_v48 = vpop.f32.mrb[132].mxu0  ;;  %v2968_v9 = vpop.f32.mrb[100].mxu1 }
 0x3eb   : > { %v3550_v60 = vsel %vm3330_vm1, %v3281_v44, -inf  ;;  %4023 = vst [vmem:[#allocation2 + $0x178] sm:$0xff] %v3895_v25  ;;  %v3640_v62 = vmax.f32 %v3432_v33, %v3433_v35  ;;  %v3698_v17 = vmax.f32 %v3548_v4, %v3549_v43  ;;  %v3166_v52 = vmax.f32 %v2675_v23, 0.0  ;;  %v2680_v14 = vpop.f32.mrb[133].mxu0  ;;  %v2970_v30 = vpop.f32.mrb[101].mxu1 }
 0x3ec   : > { %4081 = vst [vmem:[#allocation2 + $0x348] sm:$0xff] %v3953_v37  ;;  %v3282_v61 = vmax.f32 %v2965_v63, 0.0  ;;  %v2679_v59 = vadd.f32 %v2678_v48, %v7325_v18  ;;  %v2969_v36 = vadd.f32 %v2968_v9, %v1913_v22  ;;  %v2681_v10 = vadd.f32 %v2680_v14, %v7325_v18  ;;  %v2682_v46 = vpop.f32.mrb[134].mxu0  ;;  %v2972_v56 = vpop.f32.mrb[102].mxu1  ;;  %v7327_v37 = vld [vmem:[#allocation23_spill] sm:$0xff]  ;;  %v3771_v18 = vld [vmem:[#allocation2 + $0x198] sm:$0xff] }
 0x3ed   : > { %v2971_v2 = vadd.f32 %v2970_v30, %v1913_v22  ;;  %v3896_v12 = vmax.f32 %v3768_v55, %v3640_v62  ;;  %v3954_v7 = vmax.f32 %v3826_v24, %v3698_v17  ;;  %v3435_v26 = vsel %vm3331_vm2, %v3166_v52, -inf  ;;  %v2684_v47 = vpop.f32.mrb[135].mxu0  ;;  %v2974_v58 = vpop.f32.mrb[103].mxu1 }
 0x3ee   : > { %v3551_v11 = vsel %vm3331_vm2, %v3282_v61, -inf  ;;  %v3641_v32 = vmax.f32 %v3434_v28, %v3435_v26  ;;  %v3167_v20 = vmax.f32 %v2679_v59, 0.0  ;;  %v3283_v53 = vmax.f32 %v2969_v36, 0.0  ;;  %v1928_v40 = vpop.permute.xlu0 %1927  ;;  %v1923_v51 = vpop.permute.xlu1 %1922  ;;  %v3829_v36 = vld [vmem:[#allocation2 + $0x368] sm:$0xff] }
 0x3ef   : > { %v3699_v1 = vmax.f32 %v3550_v60, %v3551_v11  ;;  %4024 = vst [vmem:[#allocation2 + $0x180] sm:$0xff] %v3896_v12  ;;  %4082 = vst [vmem:[#allocation2 + $0x350] sm:$0xff] %v3954_v7  ;;  %v3168_v6 = vmax.f32 %v2681_v10, 0.0  ;;  %v3284_v21 = vmax.f32 %v2971_v2, 0.0  ;;  %v2683_v15 = vadd.f32 %v2682_v46, %v7326_v38  ;;  %v7328_v10 = vld [vmem:[#allocation22_spill] sm:$0xff] }
 0x3f0   : > { %v2973_v27 = vadd.f32 %v2972_v56, %v6824_v57  ;;  %v3897_v16 = vmax.f32 %v3769_v5, %v3641_v32  ;;  %v3436_v13 = vsel %vm3330_vm1, %v3167_v20, -inf  ;;  %v3552_v31 = vsel %vm3330_vm1, %v3283_v53, -inf  ;;  %v3772_v53 = vld [vmem:[#allocation2 + $0x1a0] sm:$0xff] }
 0x3f1   : > { %v3955_v50 = vmax.f32 %v3827_v49, %v3699_v1  ;;  %v3437_v8 = vsel %vm3331_vm2, %v3168_v6, -inf  ;;  %v3553_v39 = vsel %vm3331_vm2, %v3284_v21, -inf  ;;  %v3169_v3 = vmax.f32 %v2683_v15, 0.0  ;;  %v3830_v6 = vld [vmem:[#allocation2 + $0x370] sm:$0xff] }
 0x3f2   : > { %v3285_v42 = vmax.f32 %v2973_v27, 0.0  ;;  %4025 = vst [vmem:[#allocation2 + $0x188] sm:$0xff] %v3897_v16  ;;  %v3642_v33 = vmax.f32 %v3436_v13, %v3437_v8  ;;  %v3700_v4 = vmax.f32 %v3552_v31, %v3553_v39  ;;  %v2685_v34 = vadd.f32 %v2684_v47, %v7326_v38  ;;  %v2688_v29 = vpop.f32.mrb[136].mxu0  ;;  %v2978_v44 = vpop.f32.mrb[104].mxu1 }
 0x3f3   : > { %4083 = vst [vmem:[#allocation2 + $0x358] sm:$0xff] %v3955_v50  ;;  %v2975_v0 = vadd.f32 %v2974_v58, %v6824_v57  ;;  %v3438_v22 = vsel %vm3330_vm1, %v3169_v3, -inf  ;;  %v2689_v55 = vadd.f32 %v2688_v29, %v7327_v37  ;;  %v2979_v24 = vadd.f32 %v2978_v44, %v1923_v51  ;;  %v2690_v23 = vpop.f32.mrb[137].mxu0  ;;  %v2980_v63 = vpop.f32.mrb[105].mxu1  ;;  %v7329_v3 = vld [vmem:[#allocation25_spill] sm:$0xff] }
 0x3f4   : > { %v3554_v25 = vsel %vm3330_vm1, %v3285_v42, -inf  ;;  %v3898_v35 = vmax.f32 %v3770_v19, %v3642_v33  ;;  %v3956_v43 = vmax.f32 %v3828_v54, %v3700_v4  ;;  %v3170_v28 = vmax.f32 %v2685_v34, 0.0  ;;  %v2692_v48 = vpop.f32.mrb[138].mxu0  ;;  %v2982_v9 = vpop.f32.mrb[106].mxu1 }
 0x3f5   : > { %v3286_v60 = vmax.f32 %v2975_v0, 0.0  ;;  %v3171_v57 = vmax.f32 %v2689_v55, 0.0  ;;  %v3287_v62 = vmax.f32 %v2979_v24, 0.0  ;;  %v2691_v17 = vadd.f32 %v2690_v23, %v7327_v37  ;;  %v2694_v61 = vpop.f32.mrb[139].mxu0  ;;  %v2984_v14 = vpop.f32.mrb[107].mxu1  ;;  %v3773_v37 = vld [vmem:[#allocation2 + $0x1a8] sm:$0xff] }
 0x3f6   : > { %v2981_v52 = vadd.f32 %v2980_v63, %v1923_v51  ;;  %4026 = vst [vmem:[#allocation2 + $0x190] sm:$0xff] %v3898_v35  ;;  %4084 = vst [vmem:[#allocation2 + $0x360] sm:$0xff] %v3956_v43  ;;  %v3439_v30 = vsel %vm3331_vm2, %v3170_v28, -inf  ;;  %v2693_v2 = vadd.f32 %v2692_v48, %v7328_v10  ;;  %v2983_v46 = vadd.f32 %v2982_v9, %v1928_v40  ;;  %v6868_v58 = vpop.permute.xlu0 %1937  ;;  %v1933_v32 = vpop.permute.xlu1 %1932  ;;  %v3831_v24 = vld [vmem:[#allocation2 + $0x378] sm:$0xff] }
 0x3f7   : > { %v3555_v59 = vsel %vm3331_vm2, %v3286_v60, -inf  ;;  %v3643_v56 = vmax.f32 %v3438_v22, %v3439_v30  ;;  %v3440_v7 = vsel %vm3330_vm1, %v3171_v57, -inf  ;;  %v3556_v26 = vsel %vm3330_vm1, %v3287_v62, -inf  ;;  %v7330_v57 = vld [vmem:[#allocation24_spill] sm:$0xff] }
 0x3f8   : > { %v3701_v12 = vmax.f32 %v3554_v25, %v3555_v59  ;;  %v3172_v5 = vmax.f32 %v2691_v17, 0.0  ;;  %v3288_v11 = vmax.f32 %v2981_v52, 0.0  ;;  %v3173_v49 = vmax.f32 %v2693_v2, 0.0 }
 0x3f9   : > { %v3289_v47 = vmax.f32 %v2983_v46, 0.0  ;;  %v3899_v1 = vmax.f32 %v3771_v18, %v3643_v56  ;;  %v2695_v21 = vadd.f32 %v2694_v61, %v7328_v10  ;;  %v2985_v38 = vadd.f32 %v2984_v14, %v1928_v40  ;;  %v3774_v10 = vld [vmem:[#allocation2 + $0x1b0] sm:$0xff]  ;;  %v3832_v46 = vld [vmem:[#allocation2 + $0x380] sm:$0xff] }
 0x3fa   : > { %v3957_v20 = vmax.f32 %v3829_v36, %v3701_v12  ;;  %v3441_v15 = vsel %vm3331_vm2, %v3172_v5, -inf  ;;  %v3557_v27 = vsel %vm3331_vm2, %v3288_v11, -inf  ;;  %v3442_v16 = vsel %vm3330_vm1, %v3173_v49, -inf  ;;  %v2698_v13 = vpop.f32.mrb[140].mxu0  ;;  %v2988_v31 = vpop.f32.mrb[108].mxu1 }
 0x3fb   : > { %v3558_v50 = vsel %vm3330_vm1, %v3289_v47, -inf  ;;  %4027 = vst [vmem:[#allocation2 + $0x198] sm:$0xff] %v3899_v1  ;;  %v3644_v51 = vmax.f32 %v3440_v7, %v3441_v15  ;;  %v3702_v8 = vmax.f32 %v3556_v26, %v3557_v27  ;;  %v3174_v19 = vmax.f32 %v2695_v21, 0.0  ;;  %v2700_v39 = vpop.f32.mrb[141].mxu0  ;;  %v2990_v54 = vpop.f32.mrb[109].mxu1 }
 0x3fc   : > { %4085 = vst [vmem:[#allocation2 + $0x368] sm:$0xff] %v3957_v20  ;;  %v3290_v40 = vmax.f32 %v2985_v38, 0.0  ;;  %v2699_v42 = vadd.f32 %v2698_v13, %v7329_v3  ;;  %v2989_v33 = vadd.f32 %v2988_v31, %v1933_v32  ;;  %v2701_v4 = vadd.f32 %v2700_v39, %v7329_v3  ;;  %v2702_v0 = vpop.f32.mrb[142].mxu0  ;;  %v2992_v29 = vpop.f32.mrb[110].mxu1  ;;  %v7331_v20 = vld [vmem:[#allocation27_spill] sm:$0xff]  ;;  %v3775_v3 = vld [vmem:[#allocation2 + $0x1b8] sm:$0xff] }
 0x3fd   : > { %v2991_v34 = vadd.f32 %v2990_v54, %v1933_v32  ;;  %v3900_v44 = vmax.f32 %v3772_v53, %v3644_v51  ;;  %v3958_v22 = vmax.f32 %v3830_v6, %v3702_v8  ;;  %v3443_v25 = vsel %vm3331_vm2, %v3174_v19, -inf  ;;  %v2704_v23 = vpop.f32.mrb[143].mxu0  ;;  %v2994_v63 = vpop.f32.mrb[111].mxu1 }
 0x3fe   : > { %v3559_v55 = vsel %vm3331_vm2, %v3290_v40, -inf  ;;  %v3645_v35 = vmax.f32 %v3442_v16, %v3443_v25  ;;  %v3175_v28 = vmax.f32 %v2699_v42, 0.0  ;;  %v3291_v60 = vmax.f32 %v2989_v33, 0.0  ;;  %v1948_v18 = vpop.permute.xlu0 %1947  ;;  %v1943_v59 = vpop.permute.xlu1 %1942  ;;  %v3833_v33 = vld [vmem:[#allocation2 + $0x388] sm:$0xff] }
 0x3ff   : > { %v3703_v43 = vmax.f32 %v3558_v50, %v3559_v55  ;;  %4028 = vst [vmem:[#allocation2 + $0x1a0] sm:$0xff] %v3900_v44  ;;  %4086 = vst [vmem:[#allocation2 + $0x370] sm:$0xff] %v3958_v22  ;;  %v3176_v48 = vmax.f32 %v2701_v4, 0.0  ;;  %v3292_v9 = vmax.f32 %v2991_v34, 0.0  ;;  %v2703_v62 = vadd.f32 %v2702_v0, %v7330_v57  ;;  %v7332_v4 = vld [vmem:[#allocation26_spill] sm:$0xff] }
 0x400   : > { %v2993_v17 = vadd.f32 %v2992_v29, %v6868_v58  ;;  %v3901_v52 = vmax.f32 %v3773_v37, %v3645_v35  ;;  %v3444_v14 = vsel %vm3330_vm1, %v3175_v28, -inf  ;;  %v3560_v30 = vsel %vm3330_vm1, %v3291_v60, -inf }
 0x401   : > { %v3959_v61 = vmax.f32 %v3831_v24, %v3703_v43  ;;  %v3445_v36 = vsel %vm3331_vm2, %v3176_v48, -inf  ;;  %v3561_v2 = vsel %vm3331_vm2, %v3292_v9, -inf  ;;  %v3177_v56 = vmax.f32 %v2703_v62, 0.0  ;;  %v3776_v43 = vld [vmem:[#allocation2 + $0x1c0] sm:$0xff] }
 0x402   : > { %v3293_v12 = vmax.f32 %v2993_v17, 0.0  ;;  %4029 = vst [vmem:[#allocation2 + $0x1a8] sm:$0xff] %v3901_v52  ;;  %v3646_v7 = vmax.f32 %v3444_v14, %v3445_v36  ;;  %v3704_v26 = vmax.f32 %v3560_v30, %v3561_v2  ;;  %v2705_v5 = vadd.f32 %v2704_v23, %v7330_v57  ;;  %v2708_v49 = vpop.f32.mrb[144].mxu0  ;;  %v3834_v57 = vld [vmem:[#allocation2 + $0x390] sm:$0xff] }
 0x403   : > { %4087 = vst [vmem:[#allocation2 + $0x378] sm:$0xff] %v3959_v61  ;;  %v2995_v11 = vadd.f32 %v2994_v63, %v6868_v58  ;;  %v2998_v47 = vpop.f32.mrb[112].mxu1  ;;  %v3446_v32 = vsel %vm3330_vm1, %v3177_v56, -inf  ;;  %v2709_v53 = vadd.f32 %v2708_v49, %v7331_v20  ;;  %v2710_v21 = vpop.f32.mrb[145].mxu0 }
 0x404   : > { %v3562_v1 = vsel %vm3330_vm1, %v3293_v12, -inf  ;;  %v2999_v6 = vadd.f32 %v2998_v47, %v1943_v59  ;;  %v3000_v38 = vpop.f32.mrb[113].mxu1  ;;  %v3902_v15 = vmax.f32 %v3774_v10, %v3646_v7  ;;  %v3960_v27 = vmax.f32 %v3832_v46, %v3704_v26  ;;  %v2712_v13 = vpop.f32.mrb[146].mxu0  ;;  %v3777_v26 = vld [vmem:[#allocation2 + $0x1c8] sm:$0xff] }
 0x405   : > { %v3178_v16 = vmax.f32 %v2705_v5, 0.0  ;;  %v3294_v50 = vmax.f32 %v2995_v11, 0.0  ;;  %v3002_v31 = vpop.f32.mrb[114].mxu1  ;;  %v3179_v58 = vmax.f32 %v2709_v53, 0.0  ;;  %v2711_v8 = vadd.f32 %v2710_v21, %v7331_v20  ;;  %v2714_v40 = vpop.f32.mrb[147].mxu0  ;;  %v3835_v11 = vld [vmem:[#allocation2 + $0x398] sm:$0xff] }
 0x406   : > { %v3295_v51 = vmax.f32 %v2999_v6, 0.0  ;;  %v3001_v19 = vadd.f32 %v3000_v38, %v1943_v59  ;;  %v3004_v39 = vpop.f32.mrb[115].mxu1  ;;  %4030 = vst [vmem:[#allocation2 + $0x1b0] sm:$0xff] %v3902_v15  ;;  %4088 = vst [vmem:[#allocation2 + $0x380] sm:$0xff] %v3960_v27  ;;  %v2713_v34 = vadd.f32 %v2712_v13, %v7332_v4  ;;  %v3003_v0 = vadd.f32 %v3002_v31, %v1948_v18  ;;  %v1953_v61 = vpop.permute.xlu1 %1952 }
 0x407   : > { %v3447_v54 = vsel %vm3331_vm2, %v3178_v16, -inf  ;;  %v3563_v42 = vsel %vm3331_vm2, %v3294_v50, -inf  ;;  %v3448_v22 = vsel %vm3330_vm1, %v3179_v58, -inf  ;;  %v3180_v37 = vmax.f32 %v2711_v8, 0.0  ;;  %v1958_v47 = vpop.permute.xlu0 %1957  ;;  %v3836_v50 = vld [vmem:[#allocation2 + $0x3a0] sm:$0xff] }
 0x408   : > { %v3647_v29 = vmax.f32 %v3446_v32, %v3447_v54  ;;  %v3705_v44 = vmax.f32 %v3562_v1, %v3563_v42  ;;  %v3564_v25 = vsel %vm3330_vm1, %v3295_v51, -inf  ;;  %v3296_v55 = vmax.f32 %v3001_v19, 0.0  ;;  %v3837_v54 = vld [vmem:[#allocation2 + $0x3a8] sm:$0xff] }
 0x409   : > { %v3181_v24 = vmax.f32 %v2713_v34, 0.0  ;;  %v3297_v23 = vmax.f32 %v3003_v0, 0.0  ;;  %v2715_v28 = vadd.f32 %v2714_v40, %v7332_v4  ;;  %v3005_v60 = vadd.f32 %v3004_v39, %v1948_v18 }
 0x40a   : > { %v3903_v63 = vmax.f32 %v3775_v3, %v3647_v29  ;;  %v3961_v35 = vmax.f32 %v3833_v33, %v3705_v44  ;;  %v3449_v48 = vsel %vm3331_vm2, %v3180_v37, -inf  ;;  %v3565_v9 = vsel %vm3331_vm2, %v3296_v55, -inf  ;;  %v1963_v51 = vpop.permute.xlu1 %1962 }
 0x40b   : > { %v3450_v62 = vsel %vm3330_vm1, %v3181_v24, -inf  ;;  %v3566_v17 = vsel %vm3330_vm1, %v3297_v23, -inf  ;;  %v3008_v52 = vpop.f32.mrb[116].mxu1  ;;  %v3648_v14 = vmax.f32 %v3448_v22, %v3449_v48  ;;  %v3706_v30 = vmax.f32 %v3564_v25, %v3565_v9  ;;  %v1968_v33 = vpop.permute.xlu0 %1967 }
 0x40c   : > { %4031 = vst [vmem:[#allocation2 + $0x1b8] sm:$0xff] %v3903_v63  ;;  %4089 = vst [vmem:[#allocation2 + $0x388] sm:$0xff] %v3961_v35  ;;  %v3182_v18 = vmax.f32 %v2715_v28, 0.0  ;;  %v3298_v59 = vmax.f32 %v3005_v60, 0.0  ;;  %v3010_v36 = vpop.f32.mrb[117].mxu1  ;;  %v3009_v10 = vadd.f32 %v3008_v52, %v1953_v61  ;;  %v3838_v35 = vld [vmem:[#allocation2 + $0x3b0] sm:$0xff] }
 0x40d   : > { %v3011_v2 = vadd.f32 %v3010_v36, %v1953_v61  ;;  %v3012_v46 = vpop.f32.mrb[118].mxu1  ;;  %v3904_v56 = vmax.f32 %v3776_v43, %v3648_v14  ;;  %v3962_v12 = vmax.f32 %v3834_v57, %v3706_v30  ;;  %v3839_v57 = vld [vmem:[#allocation2 + $0x3b8] sm:$0xff] }
 0x40e   : > { %v3451_v7 = vsel %vm3331_vm2, %v3182_v18, -inf  ;;  %v3567_v5 = vsel %vm3331_vm2, %v3298_v59, -inf  ;;  %v3014_v49 = vpop.f32.mrb[119].mxu1  ;;  %v3299_v20 = vmax.f32 %v3009_v10, 0.0  ;;  %v3013_v6 = vadd.f32 %v3012_v46, %v1958_v47  ;;  %v1973_v48 = vpop.permute.xlu1 %1972 }
 0x40f   : > { %v3649_v32 = vmax.f32 %v3450_v62, %v3451_v7  ;;  %v3707_v1 = vmax.f32 %v3566_v17, %v3567_v5  ;;  %v3300_v53 = vmax.f32 %v3011_v2, 0.0  ;;  %4032 = vst [vmem:[#allocation2 + $0x1c0] sm:$0xff] %v3904_v56  ;;  %4090 = vst [vmem:[#allocation2 + $0x390] sm:$0xff] %v3962_v12  ;;  %v3015_v21 = vadd.f32 %v3014_v49, %v1958_v47  ;;  %v1978_v30 = vpop.permute.xlu0 %1977 }
 0x410   : > { %v3568_v27 = vsel %vm3330_vm1, %v3299_v20, -inf  ;;  %v3301_v31 = vmax.f32 %v3013_v6, 0.0 }
 0x411   : > { %v3905_v38 = vmax.f32 %v3777_v26, %v3649_v32  ;;  %v3963_v15 = vmax.f32 %v3835_v11, %v3707_v1  ;;  %v3569_v16 = vsel %vm3331_vm2, %v3300_v53, -inf  ;;  %v3302_v58 = vmax.f32 %v3015_v21, 0.0  ;;  %v3840_v11 = vld [vmem:[#allocation2 + $0x3c0] sm:$0xff]  ;;  %v3841_v53 = vld [vmem:[#allocation2 + $0x3c8] sm:$0xff] }
 0x412   : > { %v3708_v13 = vmax.f32 %v3568_v27, %v3569_v16  ;;  %v3570_v40 = vsel %vm3330_vm1, %v3301_v31, -inf  ;;  %v1983_v1 = vpop.permute.xlu1 %1982 }
 0x413   : > { %4033 = vst [vmem:[#allocation2 + $0x1c8] sm:$0xff] %v3905_v38  ;;  %4091 = vst [vmem:[#allocation2 + $0x398] sm:$0xff] %v3963_v15  ;;  %v3018_v8 = vpop.f32.mrb[120].mxu1  ;;  %v3571_v39 = vsel %vm3331_vm2, %v3302_v58, -inf  ;;  %v1988_v16 = vpop.permute.xlu0 %1987 }
 0x414   : > { %v3964_v19 = vmax.f32 %v3836_v50, %v3708_v13  ;;  %v3019_v3 = vadd.f32 %v3018_v8, %v1963_v51  ;;  %v3020_v42 = vpop.f32.mrb[121].mxu1  ;;  %v3709_v4 = vmax.f32 %v3570_v40, %v3571_v39 }
 0x415   : > { %v3021_v34 = vadd.f32 %v3020_v42, %v1963_v51  ;;  %v3022_v0 = vpop.f32.mrb[122].mxu1  ;;  %v3842_v42 = vld [vmem:[#allocation2 + $0x3d0] sm:$0xff] }
 0x416   : > { %4092 = vst [vmem:[#allocation2 + $0x3a0] sm:$0xff] %v3964_v19  ;;  %v3303_v29 = vmax.f32 %v3019_v3, 0.0  ;;  %v3023_v44 = vadd.f32 %v3022_v0, %v1968_v33  ;;  %v3024_v22 = vpop.f32.mrb[123].mxu1  ;;  %v3965_v25 = vmax.f32 %v3837_v54, %v3709_v4  ;;  %v1993_v0 = vpop.permute.xlu1 %1992 }
 0x417   : > { %v3304_v37 = vmax.f32 %v3021_v34, 0.0  ;;  %v3025_v55 = vadd.f32 %v3024_v22, %v1968_v33 }
 0x418   : > { %v3572_v24 = vsel %vm3330_vm1, %v3303_v29, -inf  ;;  %v3305_v23 = vmax.f32 %v3023_v44, 0.0  ;;  %4093 = vst [vmem:[#allocation2 + $0x3a8] sm:$0xff] %v3965_v25  ;;  %v3843_v44 = vld [vmem:[#allocation2 + $0x3d8] sm:$0xff] }
 0x419   : > { %v3573_v63 = vsel %vm3331_vm2, %v3304_v37, -inf  ;;  %v3306_v43 = vmax.f32 %v3025_v55, 0.0 }
 0x41a   : > { %v3710_v28 = vmax.f32 %v3572_v24, %v3573_v63  ;;  %v3574_v60 = vsel %vm3330_vm1, %v3305_v23, -inf  ;;  %v1998_v23 = vpop.permute.xlu0 %1997 }
 0x41b   : > { %v3575_v9 = vsel %vm3331_vm2, %v3306_v43, -inf  ;;  %v3028_v62 = vpop.f32.mrb[124].mxu1 }
 0x41c   : > { %v3966_v17 = vmax.f32 %v3838_v35, %v3710_v28  ;;  %v3711_v52 = vmax.f32 %v3574_v60, %v3575_v9  ;;  %v3029_v61 = vadd.f32 %v3028_v62, %v1973_v48  ;;  %v3030_v14 = vpop.f32.mrb[125].mxu1 }
 0x41d   : > { %v3031_v18 = vadd.f32 %v3030_v14, %v1973_v48  ;;  %v3032_v59 = vpop.f32.mrb[126].mxu1 }
 0x41e   : > { %4094 = vst [vmem:[#allocation2 + $0x3b0] sm:$0xff] %v3966_v17  ;;  %v3967_v36 = vmax.f32 %v3839_v57, %v3711_v52  ;;  %v3307_v10 = vmax.f32 %v3029_v61, 0.0  ;;  %v3033_v2 = vadd.f32 %v3032_v59, %v1978_v30  ;;  %v3034_v46 = vpop.f32.mrb[127].mxu1  ;;  %v3844_v61 = vld [vmem:[#allocation2 + $0x3e0] sm:$0xff]  ;;  %v2003_v59 = vpop.permute.xlu1 %2002 }
 0x41f   : > { %v3308_v56 = vmax.f32 %v3031_v18, 0.0  ;;  %v3035_v12 = vadd.f32 %v3034_v46, %v1978_v30 }
 0x420   : > { %4095 = vst [vmem:[#allocation2 + $0x3b8] sm:$0xff] %v3967_v36  ;;  %v3576_v7 = vsel %vm3330_vm1, %v3307_v10, -inf  ;;  %v3309_v26 = vmax.f32 %v3033_v2, 0.0  ;;  %v3845_v10 = vld [vmem:[#allocation2 + $0x3e8] sm:$0xff] }
 0x421   : > { %v3577_v5 = vsel %vm3331_vm2, %v3308_v56, -inf  ;;  %v3310_v49 = vmax.f32 %v3035_v12, 0.0 }
 0x422   : > { %v3712_v47 = vmax.f32 %v3576_v7, %v3577_v5  ;;  %v3578_v32 = vsel %vm3330_vm1, %v3309_v26, -inf  ;;  %v2008_v26 = vpop.permute.xlu0 %2007 }
 0x423   : > { %v3579_v20 = vsel %vm3331_vm2, %v3310_v49, -inf  ;;  %v3038_v6 = vpop.f32.mrb[128].mxu1 }
 0x424   : > { %v3968_v21 = vmax.f32 %v3840_v11, %v3712_v47  ;;  %v3713_v38 = vmax.f32 %v3578_v32, %v3579_v20  ;;  %v3039_v15 = vadd.f32 %v3038_v6, %v1983_v1  ;;  %v3040_v27 = vpop.f32.mrb[129].mxu1 }
 0x425   : > { %v3041_v50 = vadd.f32 %v3040_v27, %v1983_v1  ;;  %v3042_v13 = vpop.f32.mrb[130].mxu1 }
 0x426   : > { %4096 = vst [vmem:[#allocation2 + $0x3c0] sm:$0xff] %v3968_v21  ;;  %v3969_v31 = vmax.f32 %v3841_v53, %v3713_v38  ;;  %v3311_v58 = vmax.f32 %v3039_v15, 0.0  ;;  %v3043_v51 = vadd.f32 %v3042_v13, %v1988_v16  ;;  %v3044_v8 = vpop.f32.mrb[131].mxu1  ;;  %v3846_v15 = vld [vmem:[#allocation2 + $0x3f0] sm:$0xff] }
 0x427   : > { %v3312_v19 = vmax.f32 %v3041_v50, 0.0  ;;  %v3045_v40 = vadd.f32 %v3044_v8, %v1988_v16 }
 0x428   : > { %4097 = vst [vmem:[#allocation2 + $0x3c8] sm:$0xff] %v3969_v31  ;;  %v3580_v39 = vsel %vm3330_vm1, %v3311_v58, -inf  ;;  %v3313_v54 = vmax.f32 %v3043_v51, 0.0  ;;  %v3847_v31 = vld [vmem:[#allocation2 + $0x3f8] sm:$0xff] }
 0x429   : > { %v3581_v3 = vsel %vm3331_vm2, %v3312_v19, -inf  ;;  %v3314_v33 = vmax.f32 %v3045_v40, 0.0  ;;  %v4110_v19 = vld [vmem:[#allocation2 + $0x10] sm:$0xff] (!%p4785_p8)  ;;  %v4108_v40 = vld [vmem:[#allocation2] sm:$0xff] (!%p4785_p8) }
 0x42a   : > { %v3714_v4 = vmax.f32 %v3580_v39, %v3581_v3  ;;  %v3582_v34 = vsel %vm3330_vm1, %v3313_v54, -inf  ;;  %4240 = vmax.xlane.f32.xlu1 (!%p4785_p8), %v4110_v19  ;;  %4236 = vmax.xlane.f32.xlu0 (!%p4785_p8), %v4108_v40  ;;  %v4111_v39 = vld [vmem:[#allocation2 + $0x18] sm:$0xff] (!%p4785_p8)  ;;  %v4109_v54 = vld [vmem:[#allocation2 + $0x8] sm:$0xff] (!%p4785_p8)  ;;  %v4172_v40 = vld [vmem:[#allocation2 + $0x200] sm:$0xff] (!%p4785_p8) }
 0x42b   : > { %v3583_v29 = vsel %vm3331_vm2, %v3314_v33, -inf  ;;  %v3048_v22 = vpop.f32.mrb[132].mxu1  ;;  %v4115_v3 = vld [vmem:[#allocation2 + $0x38] sm:$0xff] (!%p4785_p8)  ;;  %v4117_v33 = vld [vmem:[#allocation2 + $0x48] sm:$0xff] (!%p4785_p8) }
 0x42c   : > { %v3970_v25 = vmax.f32 %v3842_v42, %v3714_v4  ;;  %v3715_v37 = vmax.f32 %v3582_v34, %v3583_v29  ;;  %v3049_v55 = vadd.f32 %v3048_v22, %v1993_v0  ;;  %v3050_v24 = vpop.f32.mrb[133].mxu1  ;;  %v4114_v42 = vld [vmem:[#allocation2 + $0x30] sm:$0xff] (!%p4785_p8)  ;;  %v4116_v4 = vld [vmem:[#allocation2 + $0x40] sm:$0xff] (!%p4785_p8)  ;;  %v4119_v34 = vld [vmem:[#allocation2 + $0x58] sm:$0xff] (!%p4785_p8) }
 0x42d   : > { %v3051_v63 = vadd.f32 %v3050_v24, %v1993_v0  ;;  %v3052_v35 = vpop.f32.mrb[134].mxu1  ;;  %v4118_v0 = vld [vmem:[#allocation2 + $0x50] sm:$0xff] (!%p4785_p8)  ;;  %v4121_v29 = vld [vmem:[#allocation2 + $0x68] sm:$0xff] (!%p4785_p8)  ;;  %v4123_v22 = vld [vmem:[#allocation2 + $0x78] sm:$0xff] (!%p4785_p8) }
 0x42e   : > { %4098 = vst [vmem:[#allocation2 + $0x3d0] sm:$0xff] %v3970_v25  ;;  %v3971_v43 = vmax.f32 %v3843_v44, %v3715_v37  ;;  %v3315_v28 = vmax.f32 %v3049_v55, 0.0  ;;  %v3053_v60 = vadd.f32 %v3052_v35, %v1998_v23  ;;  %v3054_v48 = vpop.f32.mrb[135].mxu1  ;;  %4242 = vmax.xlane.f32.xlu1 (!%p4785_p8), %v4111_v39  ;;  %4238 = vmax.xlane.f32.xlu0 (!%p4785_p8), %v4109_v54  ;;  %v4120_v44 = vld [vmem:[#allocation2 + $0x60] sm:$0xff] (!%p4785_p8)  ;;  %v4122_v25 = vld [vmem:[#allocation2 + $0x70] sm:$0xff] (!%p4785_p8)  ;;  %v4125_v37 = vld [vmem:[#allocation2 + $0x88] sm:$0xff] (!%p4785_p8) }
 0x42f   : > { %v3316_v9 = vmax.f32 %v3051_v63, 0.0  ;;  %v3055_v57 = vadd.f32 %v3054_v48, %v1998_v23  ;;  %v4124_v55 = vld [vmem:[#allocation2 + $0x80] sm:$0xff] (!%p4785_p8)  ;;  %v4127_v24 = vld [vmem:[#allocation2 + $0x98] sm:$0xff] (!%p4785_p8)  ;;  %v4126_v23 = vld [vmem:[#allocation2 + $0x90] sm:$0xff] (!%p4785_p8) }
 0x430   : > { %4099 = vst [vmem:[#allocation2 + $0x3d8] sm:$0xff] %v3971_v43  ;;  %v3584_v62 = vsel %vm3330_vm1, %v3315_v28, -inf  ;;  %v3317_v17 = vmax.f32 %v3053_v60, 0.0  ;;  %v4129_v63 = vld [vmem:[#allocation2 + $0xa8] sm:$0xff] (!%p4785_p8)  ;;  %v4128_v35 = vld [vmem:[#allocation2 + $0xa0] sm:$0xff] (!%p4785_p8)  ;;  %v4131_v43 = vld [vmem:[#allocation2 + $0xb8] sm:$0xff] (!%p4785_p8) }
 0x431   : > { %v3585_v52 = vsel %vm3331_vm2, %v3316_v9, -inf  ;;  %v3318_v14 = vmax.f32 %v3055_v57, 0.0  ;;  %v4130_v28 = vld [vmem:[#allocation2 + $0xb0] sm:$0xff] (!%p4785_p8)  ;;  %v4133_v60 = vld [vmem:[#allocation2 + $0xc8] sm:$0xff] (!%p4785_p8)  ;;  %v4132_v48 = vld [vmem:[#allocation2 + $0xc0] sm:$0xff] (!%p4785_p8) }
 0x432   : > { %v3716_v30 = vmax.f32 %v3584_v62, %v3585_v52  ;;  %v3586_v18 = vsel %vm3330_vm1, %v3317_v17, -inf  ;;  %4246 = vmax.xlane.f32.xlu1 (!%p4785_p8), %v4113_v45  ;;  %4244 = vmax.xlane.f32.xlu0 (!%p4785_p8), %v4112_v41  ;;  %v4135_v9 = vld [vmem:[#allocation2 + $0xd8] sm:$0xff] (!%p4785_p8)  ;;  %v4134_v57 = vld [vmem:[#allocation2 + $0xd0] sm:$0xff] (!%p4785_p8)  ;;  %v4137_v62 = vld [vmem:[#allocation2 + $0xe8] sm:$0xff] (!%p4785_p8) }
 0x433   : > { %v3587_v36 = vsel %vm3331_vm2, %v3318_v14, -inf  ;;  %v3058_v2 = vpop.f32.mrb[136].mxu1  ;;  %v4136_v17 = vld [vmem:[#allocation2 + $0xe0] sm:$0xff] (!%p4785_p8)  ;;  %v4139_v52 = vld [vmem:[#allocation2 + $0xf8] sm:$0xff] (!%p4785_p8)  ;;  %v4141_v14 = vld [vmem:[#allocation2 + $0x108] sm:$0xff] (!%p4785_p8) }
 0x434   : > { %v3972_v46 = vmax.f32 %v3844_v61, %v3716_v30  ;;  %v3717_v56 = vmax.f32 %v3586_v18, %v3587_v36  ;;  %v3059_v12 = vadd.f32 %v3058_v2, %v2003_v59  ;;  %v3060_v7 = vpop.f32.mrb[137].mxu1  ;;  %v4138_v61 = vld [vmem:[#allocation2 + $0xf0] sm:$0xff] (!%p4785_p8)  ;;  %v4140_v30 = vld [vmem:[#allocation2 + $0x100] sm:$0xff] (!%p4785_p8)  ;;  %v4143_v18 = vld [vmem:[#allocation2 + $0x118] sm:$0xff] (!%p4785_p8) }
 0x435   : > { %v3061_v5 = vadd.f32 %v3060_v7, %v2003_v59  ;;  %v3062_v11 = vpop.f32.mrb[138].mxu1  ;;  %v4142_v59 = vld [vmem:[#allocation2 + $0x110] sm:$0xff] (!%p4785_p8)  ;;  %v4145_v36 = vld [vmem:[#allocation2 + $0x128] sm:$0xff] (!%p4785_p8)  ;;  %v4147_v2 = vld [vmem:[#allocation2 + $0x138] sm:$0xff] (!%p4785_p8) }
 0x436   : > { %4100 = vst [vmem:[#allocation2 + $0x3e0] sm:$0xff] %v3972_v46  ;;  %v3973_v49 = vmax.f32 %v3845_v10, %v3717_v56  ;;  %v3319_v47 = vmax.f32 %v3059_v12, 0.0  ;;  %v3063_v32 = vadd.f32 %v3062_v11, %v2008_v26  ;;  %v3064_v1 = vpop.f32.mrb[139].mxu1  ;;  %4250 = vmax.xlane.f32.xlu1 (!%p4785_p8), %v4115_v3  ;;  %4248 = vmax.xlane.f32.xlu0 (!%p4785_p8), %v4114_v42  ;;  %v4144_v10 = vld [vmem:[#allocation2 + $0x120] sm:$0xff] (!%p4785_p8)  ;;  %v4146_v46 = vld [vmem:[#allocation2 + $0x130] sm:$0xff] (!%p4785_p8)  ;;  %v4149_v56 = vld [vmem:[#allocation2 + $0x148] sm:$0xff] (!%p4785_p8) }
 0x437   : > { %v3320_v20 = vmax.f32 %v3061_v5, 0.0  ;;  %v3065_v53 = vadd.f32 %v3064_v1, %v2008_v26  ;;  %v4148_v12 = vld [vmem:[#allocation2 + $0x140] sm:$0xff] (!%p4785_p8)  ;;  %v4151_v7 = vld [vmem:[#allocation2 + $0x158] sm:$0xff] (!%p4785_p8)  ;;  %v4150_v26 = vld [vmem:[#allocation2 + $0x150] sm:$0xff] (!%p4785_p8) }
 0x438   : > { %4101 = vst [vmem:[#allocation2 + $0x3e8] sm:$0xff] %v3973_v49  ;;  %v3588_v6 = vsel %vm3330_vm1, %v3319_v47, -inf  ;;  %v3321_v21 = vmax.f32 %v3063_v32, 0.0  ;;  %v4153_v5 = vld [vmem:[#allocation2 + $0x168] sm:$0xff] (!%p4785_p8)  ;;  %v4152_v11 = vld [vmem:[#allocation2 + $0x160] sm:$0xff] (!%p4785_p8)  ;;  %v4155_v49 = vld [vmem:[#allocation2 + $0x178] sm:$0xff] (!%p4785_p8) }
 0x439   : > { %v3589_v38 = vsel %vm3331_vm2, %v3320_v20, -inf  ;;  %v3322_v27 = vmax.f32 %v3065_v53, 0.0  ;;  %v4154_v47 = vld [vmem:[#allocation2 + $0x170] sm:$0xff] (!%p4785_p8)  ;;  %v4157_v32 = vld [vmem:[#allocation2 + $0x188] sm:$0xff] (!%p4785_p8)  ;;  %v4156_v1 = vld [vmem:[#allocation2 + $0x180] sm:$0xff] (!%p4785_p8) }
 0x43a   : > { %v3718_v16 = vmax.f32 %v3588_v6, %v3589_v38  ;;  %v3590_v50 = vsel %vm3330_vm1, %v3321_v21, -inf  ;;  %4107 = sbr.rel (%p4785_p8) target bundleno = 1461 (0x5b5), region = 56  ;;  %4254 = vmax.xlane.f32.xlu1 (!%p4785_p8), %v4117_v33  ;;  %4252 = vmax.xlane.f32.xlu0 (!%p4785_p8), %v4116_v4  ;;  %v4159_v20 = vld [vmem:[#allocation2 + $0x198] sm:$0xff] (!%p4785_p8)  ;;  %v4158_v53 = vld [vmem:[#allocation2 + $0x190] sm:$0xff] (!%p4785_p8)  ;;  %v4161_v6 = vld [vmem:[#allocation2 + $0x1a8] sm:$0xff] (!%p4785_p8) }
 0x43b   : > { %v3591_v13 = vsel %vm3331_vm2, %v3322_v27, -inf  ;;  %v4160_v21 = vld [vmem:[#allocation2 + $0x1a0] sm:$0xff] (!%p4785_p8)  ;;  %v4163_v38 = vld [vmem:[#allocation2 + $0x1b8] sm:$0xff] (!%p4785_p8)  ;;  %v4165_v27 = vld [vmem:[#allocation2 + $0x1c8] sm:$0xff] (!%p4785_p8) }
 0x43c   : > { %v3974_v58 = vmax.f32 %v3846_v15, %v3718_v16  ;;  %v3719_v51 = vmax.f32 %v3590_v50, %v3591_v13  ;;  %v4162_v15 = vld [vmem:[#allocation2 + $0x1b0] sm:$0xff] (!%p4785_p8)  ;;  %v4164_v16 = vld [vmem:[#allocation2 + $0x1c0] sm:$0xff] (!%p4785_p8)  ;;  %v4167_v50 = vld [vmem:[#allocation2 + $0x1d8] sm:$0xff] (!%p4785_p8) }
 0x43d   : > { %v4166_v13 = vld [vmem:[#allocation2 + $0x1d0] sm:$0xff] (!%p4785_p8)  ;;  %v4173_v19 = vld [vmem:[#allocation2 + $0x208] sm:$0xff] (!%p4785_p8)  ;;  %v4175_v39 = vld [vmem:[#allocation2 + $0x218] sm:$0xff] (!%p4785_p8) }
 0x43e   : > { %4102 = vst [vmem:[#allocation2 + $0x3f0] sm:$0xff] %v3974_v58  ;;  %v3975_v8 = vmax.f32 %v3847_v31, %v3719_v51  ;;  %4258 = vmax.xlane.f32.xlu1 (!%p4785_p8), %v4119_v34  ;;  %4256 = vmax.xlane.f32.xlu0 (!%p4785_p8), %v4118_v0  ;;  %v4169_v31 = vld [vmem:[#allocation2 + $0x1e8] sm:$0xff] (!%p4785_p8)  ;;  %v4168_v58 = vld [vmem:[#allocation2 + $0x1e0] sm:$0xff] (!%p4785_p8)  ;;  %v4171_v51 = vld [vmem:[#allocation2 + $0x1f8] sm:$0xff] (!%p4785_p8) }
 0x43f   : > { %v4174_v54 = vld [vmem:[#allocation2 + $0x210] sm:$0xff] (!%p4785_p8)  ;;  %v4177_v45 = vld [vmem:[#allocation2 + $0x228] sm:$0xff] (!%p4785_p8)  ;;  %v4176_v41 = vld [vmem:[#allocation2 + $0x220] sm:$0xff] (!%p4785_p8) }
 0x440   : > { %4103 = vst [vmem:[#allocation2 + $0x3f8] sm:$0xff] %v3975_v8  ;;  %v4170_v8 = vld [vmem:[#allocation2 + $0x1f0] sm:$0xff] (!%p4785_p8)  ;;  %v4179_v3 = vld [vmem:[#allocation2 + $0x238] sm:$0xff] (!%p4785_p8)  ;;  %v4181_v34 = vld [vmem:[#allocation2 + $0x248] sm:$0xff] (!%p4785_p8) }
 0x441   : > { %v4178_v42 = vld [vmem:[#allocation2 + $0x230] sm:$0xff]  ;;  %v4180_v0 = vld [vmem:[#allocation2 + $0x240] sm:$0xff] }
 0x442   : > { %4262 = vmax.xlane.f32.xlu1 %v4121_v29  ;;  %4260 = vmax.xlane.f32.xlu0 %v4120_v44 }
 0x446   : > { %4266 = vmax.xlane.f32.xlu1 %v4123_v22  ;;  %4264 = vmax.xlane.f32.xlu0 %v4122_v25  ;;  %v4183_v22 = vld [vmem:[#allocation2 + $0x258] sm:$0xff]  ;;  %v4182_v25 = vld [vmem:[#allocation2 + $0x250] sm:$0xff] }
 0x44a   : > { %4270 = vmax.xlane.f32.xlu1 %v4125_v37  ;;  %4268 = vmax.xlane.f32.xlu0 %v4124_v55 }
 0x44e   : > { %4274 = vmax.xlane.f32.xlu1 %v4127_v24  ;;  %4272 = vmax.xlane.f32.xlu0 %v4126_v23  ;;  %v4185_v24 = vld [vmem:[#allocation2 + $0x268] sm:$0xff]  ;;  %v4184_v23 = vld [vmem:[#allocation2 + $0x260] sm:$0xff] }
 0x452   : > { %4278 = vmax.xlane.f32.xlu1 %v4129_v63  ;;  %4276 = vmax.xlane.f32.xlu0 %v4128_v35 }
 0x456   : > { %4282 = vmax.xlane.f32.xlu1 %v4131_v43  ;;  %4280 = vmax.xlane.f32.xlu0 %v4130_v28  ;;  %v4187_v43 = vld [vmem:[#allocation2 + $0x278] sm:$0xff]  ;;  %v4186_v28 = vld [vmem:[#allocation2 + $0x270] sm:$0xff] }
 0x45a   : > { %4286 = vmax.xlane.f32.xlu1 %v4133_v60  ;;  %4284 = vmax.xlane.f32.xlu0 %v4132_v48 }
 0x45e   : > { %4290 = vmax.xlane.f32.xlu1 %v4135_v9  ;;  %4288 = vmax.xlane.f32.xlu0 %v4134_v57  ;;  %v4189_v9 = vld [vmem:[#allocation2 + $0x288] sm:$0xff]  ;;  %v4188_v57 = vld [vmem:[#allocation2 + $0x280] sm:$0xff] }
 0x462   : > { %4294 = vmax.xlane.f32.xlu1 %v4137_v62  ;;  %4292 = vmax.xlane.f32.xlu0 %v4136_v17 }
 0x466   : > { %4298 = vmax.xlane.f32.xlu1 %v4139_v52  ;;  %4296 = vmax.xlane.f32.xlu0 %v4138_v61  ;;  %v4191_v52 = vld [vmem:[#allocation2 + $0x298] sm:$0xff]  ;;  %v4190_v61 = vld [vmem:[#allocation2 + $0x290] sm:$0xff] }
 0x46a   : > { %4302 = vmax.xlane.f32.xlu1 %v4141_v14  ;;  %4300 = vmax.xlane.f32.xlu0 %v4140_v30 }
 0x46e   : > { %4306 = vmax.xlane.f32.xlu1 %v4143_v18  ;;  %4304 = vmax.xlane.f32.xlu0 %v4142_v59  ;;  %v4193_v18 = vld [vmem:[#allocation2 + $0x2a8] sm:$0xff]  ;;  %v4192_v59 = vld [vmem:[#allocation2 + $0x2a0] sm:$0xff] }
 0x472   : > { %4310 = vmax.xlane.f32.xlu1 %v4145_v36  ;;  %4308 = vmax.xlane.f32.xlu0 %v4144_v10 }
 0x476   : > { %4314 = vmax.xlane.f32.xlu1 %v4147_v2  ;;  %4312 = vmax.xlane.f32.xlu0 %v4146_v46  ;;  %v4195_v2 = vld [vmem:[#allocation2 + $0x2b8] sm:$0xff]  ;;  %v4194_v46 = vld [vmem:[#allocation2 + $0x2b0] sm:$0xff] }
 0x47a   : > { %4318 = vmax.xlane.f32.xlu1 %v4149_v56  ;;  %4316 = vmax.xlane.f32.xlu0 %v4148_v12 }
 0x47e   : > { %4322 = vmax.xlane.f32.xlu1 %v4151_v7  ;;  %4320 = vmax.xlane.f32.xlu0 %v4150_v26  ;;  %v4197_v7 = vld [vmem:[#allocation2 + $0x2c8] sm:$0xff]  ;;  %v4196_v26 = vld [vmem:[#allocation2 + $0x2c0] sm:$0xff] }
 0x482   : > { %4326 = vmax.xlane.f32.xlu1 %v4153_v5  ;;  %4324 = vmax.xlane.f32.xlu0 %v4152_v11 }
 0x486   : > { %4330 = vmax.xlane.f32.xlu1 %v4155_v49  ;;  %4328 = vmax.xlane.f32.xlu0 %v4154_v47  ;;  %v4199_v49 = vld [vmem:[#allocation2 + $0x2d8] sm:$0xff]  ;;  %v4198_v47 = vld [vmem:[#allocation2 + $0x2d0] sm:$0xff] }
 0x48a   : > { %4334 = vmax.xlane.f32.xlu1 %v4157_v32  ;;  %4332 = vmax.xlane.f32.xlu0 %v4156_v1 }
 0x48e   : > { %4338 = vmax.xlane.f32.xlu1 %v4159_v20  ;;  %4336 = vmax.xlane.f32.xlu0 %v4158_v53  ;;  %v4201_v20 = vld [vmem:[#allocation2 + $0x2e8] sm:$0xff]  ;;  %v4200_v53 = vld [vmem:[#allocation2 + $0x2e0] sm:$0xff] }
 0x492   : > { %4342 = vmax.xlane.f32.xlu1 %v4161_v6  ;;  %4340 = vmax.xlane.f32.xlu0 %v4160_v21 }
 0x496   : > { %4346 = vmax.xlane.f32.xlu1 %v4163_v38  ;;  %4344 = vmax.xlane.f32.xlu0 %v4162_v15  ;;  %v4203_v38 = vld [vmem:[#allocation2 + $0x2f8] sm:$0xff]  ;;  %v4202_v15 = vld [vmem:[#allocation2 + $0x2f0] sm:$0xff] }
 0x49a   : > { %4350 = vmax.xlane.f32.xlu1 %v4165_v27  ;;  %4348 = vmax.xlane.f32.xlu0 %v4164_v16 }
 0x49e   : > { %4354 = vmax.xlane.f32.xlu1 %v4167_v50  ;;  %4352 = vmax.xlane.f32.xlu0 %v4166_v13  ;;  %v4205_v50 = vld [vmem:[#allocation2 + $0x308] sm:$0xff]  ;;  %v4204_v13 = vld [vmem:[#allocation2 + $0x300] sm:$0xff] }
 0x4a2   : > { %4358 = vmax.xlane.f32.xlu1 %v4169_v31  ;;  %4356 = vmax.xlane.f32.xlu0 %v4168_v58 }
 0x4a6   : > { %4362 = vmax.xlane.f32.xlu1 %v4171_v51  ;;  %4360 = vmax.xlane.f32.xlu0 %v4170_v8  ;;  %v4207_v51 = vld [vmem:[#allocation2 + $0x318] sm:$0xff]  ;;  %v4206_v8 = vld [vmem:[#allocation2 + $0x310] sm:$0xff] }
 0x4aa   : > { %4366 = vmax.xlane.f32.xlu1 %v4173_v19  ;;  %4364 = vmax.xlane.f32.xlu0 %v4172_v40 }
 0x4ae   : > { %4370 = vmax.xlane.f32.xlu1 %v4175_v39  ;;  %4368 = vmax.xlane.f32.xlu0 %v4174_v54  ;;  %v4209_v39 = vld [vmem:[#allocation2 + $0x328] sm:$0xff]  ;;  %v4208_v54 = vld [vmem:[#allocation2 + $0x320] sm:$0xff] }
 0x4b2   : > { %4374 = vmax.xlane.f32.xlu1 %v4177_v45  ;;  %4372 = vmax.xlane.f32.xlu0 %v4176_v41 }
 0x4b6   : > { %4378 = vmax.xlane.f32.xlu1 %v4179_v3  ;;  %4376 = vmax.xlane.f32.xlu0 %v4178_v42  ;;  %v4211_v3 = vld [vmem:[#allocation2 + $0x338] sm:$0xff]  ;;  %v4210_v42 = vld [vmem:[#allocation2 + $0x330] sm:$0xff] }
 0x4b7   : > { %v4241_v33 = vpop.xlane.xlu1 %4240  ;;  %v4237_v4 = vpop.xlane.xlu0 %4236 }
 0x4b8   : > { %4495 = vst.msk [vmem:[%s5056_s14 + $0x10] sm:$0xff] %vm4492_vm3, %v4241_v33  ;;  %4493 = vst.msk [vmem:[%s5056_s14] sm:$0xff] %vm4492_vm3, %v4237_v4 }
 0x4ba   : > { %4382 = vmax.xlane.f32.xlu1 %v4181_v34  ;;  %4380 = vmax.xlane.f32.xlu0 %v4180_v0  ;;  %v4213_v34 = vld [vmem:[#allocation2 + $0x348] sm:$0xff]  ;;  %v4212_v0 = vld [vmem:[#allocation2 + $0x340] sm:$0xff] }
 0x4bb   : > { %v4243_v29 = vpop.xlane.xlu1 %4242  ;;  %v4239_v44 = vpop.xlane.xlu0 %4238 }
 0x4bc   : > { %4496 = vst.msk [vmem:[%s5056_s14 + $0x18] sm:$0xff] %vm4492_vm3, %v4243_v29  ;;  %4494 = vst.msk [vmem:[%s5056_s14 + $0x8] sm:$0xff] %vm4492_vm3, %v4239_v44 }
 0x4be   : > { %4386 = vmax.xlane.f32.xlu1 %v4183_v22  ;;  %4384 = vmax.xlane.f32.xlu0 %v4182_v25  ;;  %v4215_v22 = vld [vmem:[#allocation2 + $0x358] sm:$0xff]  ;;  %v4214_v25 = vld [vmem:[#allocation2 + $0x350] sm:$0xff] }
 0x4bf   : > { %v4247_v37 = vpop.xlane.xlu1 %4246  ;;  %v4245_v55 = vpop.xlane.xlu0 %4244 }
 0x4c0   : > { %4498 = vst.msk [vmem:[%s5056_s14 + $0x28] sm:$0xff] %vm4492_vm3, %v4247_v37  ;;  %4497 = vst.msk [vmem:[%s5056_s14 + $0x20] sm:$0xff] %vm4492_vm3, %v4245_v55 }
 0x4c2   : > { %4390 = vmax.xlane.f32.xlu1 %v4185_v24  ;;  %4388 = vmax.xlane.f32.xlu0 %v4184_v23  ;;  %v4217_v24 = vld [vmem:[#allocation2 + $0x368] sm:$0xff]  ;;  %v4216_v23 = vld [vmem:[#allocation2 + $0x360] sm:$0xff] }
 0x4c3   : > { %v4251_v63 = vpop.xlane.xlu1 %4250  ;;  %v4249_v35 = vpop.xlane.xlu0 %4248 }
 0x4c4   : > { %4500 = vst.msk [vmem:[%s5056_s14 + $0x38] sm:$0xff] %vm4492_vm3, %v4251_v63  ;;  %4499 = vst.msk [vmem:[%s5056_s14 + $0x30] sm:$0xff] %vm4492_vm3, %v4249_v35 }
 0x4c6   : > { %4394 = vmax.xlane.f32.xlu1 %v4187_v43  ;;  %4392 = vmax.xlane.f32.xlu0 %v4186_v28  ;;  %v4219_v43 = vld [vmem:[#allocation2 + $0x378] sm:$0xff]  ;;  %v4218_v28 = vld [vmem:[#allocation2 + $0x370] sm:$0xff] }
 0x4c7   : > { %v4255_v60 = vpop.xlane.xlu1 %4254  ;;  %v4253_v48 = vpop.xlane.xlu0 %4252 }
 0x4c8   : > { %4502 = vst.msk [vmem:[%s5056_s14 + $0x48] sm:$0xff] %vm4492_vm3, %v4255_v60  ;;  %4501 = vst.msk [vmem:[%s5056_s14 + $0x40] sm:$0xff] %vm4492_vm3, %v4253_v48 }
 0x4ca   : > { %4398 = vmax.xlane.f32.xlu1 %v4189_v9  ;;  %4396 = vmax.xlane.f32.xlu0 %v4188_v57  ;;  %v4221_v9 = vld [vmem:[#allocation2 + $0x388] sm:$0xff]  ;;  %v4220_v57 = vld [vmem:[#allocation2 + $0x380] sm:$0xff] }
 0x4cb   : > { %v4259_v62 = vpop.xlane.xlu1 %4258  ;;  %v4257_v17 = vpop.xlane.xlu0 %4256 }
 0x4cc   : > { %4504 = vst.msk [vmem:[%s5056_s14 + $0x58] sm:$0xff] %vm4492_vm3, %v4259_v62  ;;  %4503 = vst.msk [vmem:[%s5056_s14 + $0x50] sm:$0xff] %vm4492_vm3, %v4257_v17 }
 0x4ce   : > { %4402 = vmax.xlane.f32.xlu1 %v4191_v52  ;;  %4400 = vmax.xlane.f32.xlu0 %v4190_v61  ;;  %v4223_v52 = vld [vmem:[#allocation2 + $0x398] sm:$0xff]  ;;  %v4222_v61 = vld [vmem:[#allocation2 + $0x390] sm:$0xff] }
 0x4cf   : > { %v4263_v14 = vpop.xlane.xlu1 %4262  ;;  %v4261_v30 = vpop.xlane.xlu0 %4260 }
 0x4d0   : > { %4506 = vst.msk [vmem:[%s5056_s14 + $0x68] sm:$0xff] %vm4492_vm3, %v4263_v14  ;;  %4505 = vst.msk [vmem:[%s5056_s14 + $0x60] sm:$0xff] %vm4492_vm3, %v4261_v30 }
 0x4d2   : > { %4406 = vmax.xlane.f32.xlu1 %v4193_v18  ;;  %4404 = vmax.xlane.f32.xlu0 %v4192_v59  ;;  %v4225_v18 = vld [vmem:[#allocation2 + $0x3a8] sm:$0xff]  ;;  %v4224_v59 = vld [vmem:[#allocation2 + $0x3a0] sm:$0xff] }
 0x4d3   : > { %v4267_v36 = vpop.xlane.xlu1 %4266  ;;  %v4265_v10 = vpop.xlane.xlu0 %4264 }
 0x4d4   : > { %4508 = vst.msk [vmem:[%s5056_s14 + $0x78] sm:$0xff] %vm4492_vm3, %v4267_v36  ;;  %4507 = vst.msk [vmem:[%s5056_s14 + $0x70] sm:$0xff] %vm4492_vm3, %v4265_v10 }
 0x4d6   : > { %4410 = vmax.xlane.f32.xlu1 %v4195_v2  ;;  %4408 = vmax.xlane.f32.xlu0 %v4194_v46  ;;  %v4227_v2 = vld [vmem:[#allocation2 + $0x3b8] sm:$0xff]  ;;  %v4226_v46 = vld [vmem:[#allocation2 + $0x3b0] sm:$0xff] }
 0x4d7   : > { %v4271_v56 = vpop.xlane.xlu1 %4270  ;;  %v4269_v12 = vpop.xlane.xlu0 %4268 }
 0x4d8   : > { %4510 = vst.msk [vmem:[%s5056_s14 + $0x88] sm:$0xff] %vm4492_vm3, %v4271_v56  ;;  %4509 = vst.msk [vmem:[%s5056_s14 + $0x80] sm:$0xff] %vm4492_vm3, %v4269_v12 }
 0x4da   : > { %4414 = vmax.xlane.f32.xlu1 %v4197_v7  ;;  %4412 = vmax.xlane.f32.xlu0 %v4196_v26  ;;  %v4229_v7 = vld [vmem:[#allocation2 + $0x3c8] sm:$0xff]  ;;  %v4228_v26 = vld [vmem:[#allocation2 + $0x3c0] sm:$0xff] }
 0x4db   : > { %v4275_v5 = vpop.xlane.xlu1 %4274  ;;  %v4273_v11 = vpop.xlane.xlu0 %4272 }
 0x4dc   : > { %4512 = vst.msk [vmem:[%s5056_s14 + $0x98] sm:$0xff] %vm4492_vm3, %v4275_v5  ;;  %4511 = vst.msk [vmem:[%s5056_s14 + $0x90] sm:$0xff] %vm4492_vm3, %v4273_v11 }
 0x4de   : > { %4418 = vmax.xlane.f32.xlu1 %v4199_v49  ;;  %4416 = vmax.xlane.f32.xlu0 %v4198_v47  ;;  %v4231_v49 = vld [vmem:[#allocation2 + $0x3d8] sm:$0xff]  ;;  %v4230_v47 = vld [vmem:[#allocation2 + $0x3d0] sm:$0xff] }
 0x4df   : > { %v4279_v32 = vpop.xlane.xlu1 %4278  ;;  %v4277_v1 = vpop.xlane.xlu0 %4276 }
 0x4e0   : > { %4514 = vst.msk [vmem:[%s5056_s14 + $0xa8] sm:$0xff] %vm4492_vm3, %v4279_v32  ;;  %4513 = vst.msk [vmem:[%s5056_s14 + $0xa0] sm:$0xff] %vm4492_vm3, %v4277_v1 }
 0x4e2   : > { %4422 = vmax.xlane.f32.xlu1 %v4201_v20  ;;  %4420 = vmax.xlane.f32.xlu0 %v4200_v53  ;;  %v4233_v20 = vld [vmem:[#allocation2 + $0x3e8] sm:$0xff]  ;;  %v4232_v53 = vld [vmem:[#allocation2 + $0x3e0] sm:$0xff] }
 0x4e3   : > { %v4283_v6 = vpop.xlane.xlu1 %4282  ;;  %v4281_v21 = vpop.xlane.xlu0 %4280 }
 0x4e4   : > { %4516 = vst.msk [vmem:[%s5056_s14 + $0xb8] sm:$0xff] %vm4492_vm3, %v4283_v6  ;;  %4515 = vst.msk [vmem:[%s5056_s14 + $0xb0] sm:$0xff] %vm4492_vm3, %v4281_v21 }
 0x4e6   : > { %4426 = vmax.xlane.f32.xlu1 %v4203_v38  ;;  %4424 = vmax.xlane.f32.xlu0 %v4202_v15  ;;  %v4235_v38 = vld [vmem:[#allocation2 + $0x3f8] sm:$0xff]  ;;  %v4234_v15 = vld [vmem:[#allocation2 + $0x3f0] sm:$0xff] }
 0x4e7   : > { %v4287_v27 = vpop.xlane.xlu1 %4286  ;;  %v4285_v16 = vpop.xlane.xlu0 %4284 }
 0x4e8   : > { %4518 = vst.msk [vmem:[%s5056_s14 + $0xc8] sm:$0xff] %vm4492_vm3, %v4287_v27  ;;  %4517 = vst.msk [vmem:[%s5056_s14 + $0xc0] sm:$0xff] %vm4492_vm3, %v4285_v16 }
 0x4ea   : > { %4430 = vmax.xlane.f32.xlu1 %v4205_v50  ;;  %4428 = vmax.xlane.f32.xlu0 %v4204_v13 }
 0x4eb   : > { %v4291_v31 = vpop.xlane.xlu1 %4290  ;;  %v4289_v58 = vpop.xlane.xlu0 %4288 }
 0x4ec   : > { %4520 = vst.msk [vmem:[%s5056_s14 + $0xd8] sm:$0xff] %vm4492_vm3, %v4291_v31  ;;  %4519 = vst.msk [vmem:[%s5056_s14 + $0xd0] sm:$0xff] %vm4492_vm3, %v4289_v58 }
 0x4ee   : > { %4434 = vmax.xlane.f32.xlu1 %v4207_v51  ;;  %4432 = vmax.xlane.f32.xlu0 %v4206_v8 }
 0x4ef   : > { %v4295_v19 = vpop.xlane.xlu1 %4294  ;;  %v4293_v40 = vpop.xlane.xlu0 %4292 }
 0x4f0   : > { %4522 = vst.msk [vmem:[%s5056_s14 + $0xe8] sm:$0xff] %vm4492_vm3, %v4295_v19  ;;  %4521 = vst.msk [vmem:[%s5056_s14 + $0xe0] sm:$0xff] %vm4492_vm3, %v4293_v40 }
 0x4f2   : > { %4438 = vmax.xlane.f32.xlu1 %v4209_v39  ;;  %4436 = vmax.xlane.f32.xlu0 %v4208_v54 }
 0x4f3   : > { %v4299_v45 = vpop.xlane.xlu1 %4298  ;;  %v4297_v41 = vpop.xlane.xlu0 %4296 }
 0x4f4   : > { %4524 = vst.msk [vmem:[%s5056_s14 + $0xf8] sm:$0xff] %vm4492_vm3, %v4299_v45  ;;  %4523 = vst.msk [vmem:[%s5056_s14 + $0xf0] sm:$0xff] %vm4492_vm3, %v4297_v41 }
 0x4f6   : > { %4442 = vmax.xlane.f32.xlu1 %v4211_v3  ;;  %4440 = vmax.xlane.f32.xlu0 %v4210_v42 }
 0x4f7   : > { %v4303_v33 = vpop.xlane.xlu1 %4302  ;;  %v4301_v4 = vpop.xlane.xlu0 %4300 }
 0x4f8   : > { %4526 = vst.msk [vmem:[%s5056_s14 + $0x108] sm:$0xff] %vm4492_vm3, %v4303_v33  ;;  %4525 = vst.msk [vmem:[%s5056_s14 + $0x100] sm:$0xff] %vm4492_vm3, %v4301_v4 }
 0x4fa   : > { %4446 = vmax.xlane.f32.xlu1 %v4213_v34  ;;  %4444 = vmax.xlane.f32.xlu0 %v4212_v0 }
 0x4fb   : > { %v4307_v29 = vpop.xlane.xlu1 %4306  ;;  %v4305_v44 = vpop.xlane.xlu0 %4304 }
 0x4fc   : > { %4528 = vst.msk [vmem:[%s5056_s14 + $0x118] sm:$0xff] %vm4492_vm3, %v4307_v29  ;;  %4527 = vst.msk [vmem:[%s5056_s14 + $0x110] sm:$0xff] %vm4492_vm3, %v4305_v44 }
 0x4fe   : > { %4450 = vmax.xlane.f32.xlu1 %v4215_v22  ;;  %4448 = vmax.xlane.f32.xlu0 %v4214_v25 }
 0x4ff   : > { %v4311_v37 = vpop.xlane.xlu1 %4310  ;;  %v4309_v55 = vpop.xlane.xlu0 %4308 }
 0x500   : > { %4530 = vst.msk [vmem:[%s5056_s14 + $0x128] sm:$0xff] %vm4492_vm3, %v4311_v37  ;;  %4529 = vst.msk [vmem:[%s5056_s14 + $0x120] sm:$0xff] %vm4492_vm3, %v4309_v55 }
 0x502   : > { %4454 = vmax.xlane.f32.xlu1 %v4217_v24  ;;  %4452 = vmax.xlane.f32.xlu0 %v4216_v23 }
 0x503   : > { %v4315_v63 = vpop.xlane.xlu1 %4314  ;;  %v4313_v35 = vpop.xlane.xlu0 %4312 }
 0x504   : > { %4532 = vst.msk [vmem:[%s5056_s14 + $0x138] sm:$0xff] %vm4492_vm3, %v4315_v63  ;;  %4531 = vst.msk [vmem:[%s5056_s14 + $0x130] sm:$0xff] %vm4492_vm3, %v4313_v35 }
 0x506   : > { %4458 = vmax.xlane.f32.xlu1 %v4219_v43  ;;  %4456 = vmax.xlane.f32.xlu0 %v4218_v28 }
 0x507   : > { %v4319_v60 = vpop.xlane.xlu1 %4318  ;;  %v4317_v48 = vpop.xlane.xlu0 %4316 }
 0x508   : > { %4534 = vst.msk [vmem:[%s5056_s14 + $0x148] sm:$0xff] %vm4492_vm3, %v4319_v60  ;;  %4533 = vst.msk [vmem:[%s5056_s14 + $0x140] sm:$0xff] %vm4492_vm3, %v4317_v48 }
 0x50a   : > { %4462 = vmax.xlane.f32.xlu1 %v4221_v9  ;;  %4460 = vmax.xlane.f32.xlu0 %v4220_v57 }
 0x50b   : > { %v4323_v62 = vpop.xlane.xlu1 %4322  ;;  %v4321_v17 = vpop.xlane.xlu0 %4320 }
 0x50c   : > { %4536 = vst.msk [vmem:[%s5056_s14 + $0x158] sm:$0xff] %vm4492_vm3, %v4323_v62  ;;  %4535 = vst.msk [vmem:[%s5056_s14 + $0x150] sm:$0xff] %vm4492_vm3, %v4321_v17 }
 0x50e   : > { %4466 = vmax.xlane.f32.xlu1 %v4223_v52  ;;  %4464 = vmax.xlane.f32.xlu0 %v4222_v61 }
 0x50f   : > { %v4327_v14 = vpop.xlane.xlu1 %4326  ;;  %v4325_v30 = vpop.xlane.xlu0 %4324 }
 0x510   : > { %4538 = vst.msk [vmem:[%s5056_s14 + $0x168] sm:$0xff] %vm4492_vm3, %v4327_v14  ;;  %4537 = vst.msk [vmem:[%s5056_s14 + $0x160] sm:$0xff] %vm4492_vm3, %v4325_v30 }
 0x512   : > { %4470 = vmax.xlane.f32.xlu1 %v4225_v18  ;;  %4468 = vmax.xlane.f32.xlu0 %v4224_v59 }
 0x513   : > { %v4331_v36 = vpop.xlane.xlu1 %4330  ;;  %v4329_v10 = vpop.xlane.xlu0 %4328 }
 0x514   : > { %4540 = vst.msk [vmem:[%s5056_s14 + $0x178] sm:$0xff] %vm4492_vm3, %v4331_v36  ;;  %4539 = vst.msk [vmem:[%s5056_s14 + $0x170] sm:$0xff] %vm4492_vm3, %v4329_v10 }
 0x516   : > { %4474 = vmax.xlane.f32.xlu1 %v4227_v2  ;;  %4472 = vmax.xlane.f32.xlu0 %v4226_v46 }
 0x517   : > { %v4335_v56 = vpop.xlane.xlu1 %4334  ;;  %v4333_v12 = vpop.xlane.xlu0 %4332 }
 0x518   : > { %4542 = vst.msk [vmem:[%s5056_s14 + $0x188] sm:$0xff] %vm4492_vm3, %v4335_v56  ;;  %4541 = vst.msk [vmem:[%s5056_s14 + $0x180] sm:$0xff] %vm4492_vm3, %v4333_v12 }
 0x51a   : > { %4478 = vmax.xlane.f32.xlu1 %v4229_v7  ;;  %4476 = vmax.xlane.f32.xlu0 %v4228_v26 }
 0x51b   : > { %v4339_v5 = vpop.xlane.xlu1 %4338  ;;  %v4337_v11 = vpop.xlane.xlu0 %4336 }
 0x51c   : > { %4544 = vst.msk [vmem:[%s5056_s14 + $0x198] sm:$0xff] %vm4492_vm3, %v4339_v5  ;;  %4543 = vst.msk [vmem:[%s5056_s14 + $0x190] sm:$0xff] %vm4492_vm3, %v4337_v11 }
 0x51e   : > { %4482 = vmax.xlane.f32.xlu1 %v4231_v49  ;;  %4480 = vmax.xlane.f32.xlu0 %v4230_v47 }
 0x51f   : > { %v4343_v32 = vpop.xlane.xlu1 %4342  ;;  %v4341_v1 = vpop.xlane.xlu0 %4340 }
 0x520   : > { %4546 = vst.msk [vmem:[%s5056_s14 + $0x1a8] sm:$0xff] %vm4492_vm3, %v4343_v32  ;;  %4545 = vst.msk [vmem:[%s5056_s14 + $0x1a0] sm:$0xff] %vm4492_vm3, %v4341_v1 }
 0x522   : > { %4486 = vmax.xlane.f32.xlu1 %v4233_v20  ;;  %4484 = vmax.xlane.f32.xlu0 %v4232_v53 }
 0x523   : > { %v4347_v6 = vpop.xlane.xlu1 %4346  ;;  %v4345_v21 = vpop.xlane.xlu0 %4344 }
 0x524   : > { %4548 = vst.msk [vmem:[%s5056_s14 + $0x1b8] sm:$0xff] %vm4492_vm3, %v4347_v6  ;;  %4547 = vst.msk [vmem:[%s5056_s14 + $0x1b0] sm:$0xff] %vm4492_vm3, %v4345_v21 }
 0x526   : > { %4490 = vmax.xlane.f32.xlu1 %v4235_v38  ;;  %4488 = vmax.xlane.f32.xlu0 %v4234_v15 }
 0x527   : > { %v4351_v27 = vpop.xlane.xlu1 %4350  ;;  %v4349_v16 = vpop.xlane.xlu0 %4348 }
 0x528   : > { %4550 = vst.msk [vmem:[%s5056_s14 + $0x1c8] sm:$0xff] %vm4492_vm3, %v4351_v27  ;;  %4549 = vst.msk [vmem:[%s5056_s14 + $0x1c0] sm:$0xff] %vm4492_vm3, %v4349_v16 }
 0x52b   : > { %v4355_v50 = vpop.xlane.xlu1 %4354  ;;  %v4353_v13 = vpop.xlane.xlu0 %4352 }
 0x52c   : > { %4552 = vst.msk [vmem:[%s5056_s14 + $0x1d8] sm:$0xff] %vm4492_vm3, %v4355_v50  ;;  %4551 = vst.msk [vmem:[%s5056_s14 + $0x1d0] sm:$0xff] %vm4492_vm3, %v4353_v13 }
 0x52f   : > { %v4359_v31 = vpop.xlane.xlu1 %4358  ;;  %v4357_v58 = vpop.xlane.xlu0 %4356 }
 0x530   : > { %4554 = vst.msk [vmem:[%s5056_s14 + $0x1e8] sm:$0xff] %vm4492_vm3, %v4359_v31  ;;  %4553 = vst.msk [vmem:[%s5056_s14 + $0x1e0] sm:$0xff] %vm4492_vm3, %v4357_v58 }
 0x533   : > { %v4363_v51 = vpop.xlane.xlu1 %4362  ;;  %v4361_v8 = vpop.xlane.xlu0 %4360 }
 0x534   : > { %4556 = vst.msk [vmem:[%s5056_s14 + $0x1f8] sm:$0xff] %vm4492_vm3, %v4363_v51  ;;  %4555 = vst.msk [vmem:[%s5056_s14 + $0x1f0] sm:$0xff] %vm4492_vm3, %v4361_v8 }
 0x537   : > { %v4367_v19 = vpop.xlane.xlu1 %4366  ;;  %v4365_v40 = vpop.xlane.xlu0 %4364 }
 0x538   : > { %4558 = vst.msk [vmem:[%s5056_s14 + $0x208] sm:$0xff] %vm4492_vm3, %v4367_v19  ;;  %4557 = vst.msk [vmem:[%s5056_s14 + $0x200] sm:$0xff] %vm4492_vm3, %v4365_v40 }
 0x53b   : > { %v4371_v39 = vpop.xlane.xlu1 %4370  ;;  %v4369_v54 = vpop.xlane.xlu0 %4368 }
 0x53c   : > { %4560 = vst.msk [vmem:[%s5056_s14 + $0x218] sm:$0xff] %vm4492_vm3, %v4371_v39  ;;  %4559 = vst.msk [vmem:[%s5056_s14 + $0x210] sm:$0xff] %vm4492_vm3, %v4369_v54 }
 0x53f   : > { %v4375_v45 = vpop.xlane.xlu1 %4374  ;;  %v4373_v41 = vpop.xlane.xlu0 %4372 }
 0x540   : > { %4562 = vst.msk [vmem:[%s5056_s14 + $0x228] sm:$0xff] %vm4492_vm3, %v4375_v45  ;;  %4561 = vst.msk [vmem:[%s5056_s14 + $0x220] sm:$0xff] %vm4492_vm3, %v4373_v41 }
 0x543   : > { %v4379_v3 = vpop.xlane.xlu1 %4378  ;;  %v4377_v42 = vpop.xlane.xlu0 %4376 }
 0x544   : > { %4564 = vst.msk [vmem:[%s5056_s14 + $0x238] sm:$0xff] %vm4492_vm3, %v4379_v3  ;;  %4563 = vst.msk [vmem:[%s5056_s14 + $0x230] sm:$0xff] %vm4492_vm3, %v4377_v42 }
 0x547   : > { %v4383_v33 = vpop.xlane.xlu1 %4382  ;;  %v4381_v4 = vpop.xlane.xlu0 %4380 }
 0x548   : > { %4566 = vst.msk [vmem:[%s5056_s14 + $0x248] sm:$0xff] %vm4492_vm3, %v4383_v33  ;;  %4565 = vst.msk [vmem:[%s5056_s14 + $0x240] sm:$0xff] %vm4492_vm3, %v4381_v4 }
 0x54b   : > { %v4387_v34 = vpop.xlane.xlu1 %4386  ;;  %v4385_v0 = vpop.xlane.xlu0 %4384 }
 0x54c   : > { %4568 = vst.msk [vmem:[%s5056_s14 + $0x258] sm:$0xff] %vm4492_vm3, %v4387_v34  ;;  %4567 = vst.msk [vmem:[%s5056_s14 + $0x250] sm:$0xff] %vm4492_vm3, %v4385_v0 }
 0x54f   : > { %v4391_v29 = vpop.xlane.xlu1 %4390  ;;  %v4389_v44 = vpop.xlane.xlu0 %4388 }
 0x550   : > { %4570 = vst.msk [vmem:[%s5056_s14 + $0x268] sm:$0xff] %vm4492_vm3, %v4391_v29  ;;  %4569 = vst.msk [vmem:[%s5056_s14 + $0x260] sm:$0xff] %vm4492_vm3, %v4389_v44 }
 0x553   : > { %v4395_v22 = vpop.xlane.xlu1 %4394  ;;  %v4393_v25 = vpop.xlane.xlu0 %4392 }
 0x554   : > { %4572 = vst.msk [vmem:[%s5056_s14 + $0x278] sm:$0xff] %vm4492_vm3, %v4395_v22  ;;  %4571 = vst.msk [vmem:[%s5056_s14 + $0x270] sm:$0xff] %vm4492_vm3, %v4393_v25 }
 0x557   : > { %v4399_v37 = vpop.xlane.xlu1 %4398  ;;  %v4397_v55 = vpop.xlane.xlu0 %4396 }
 0x558   : > { %4574 = vst.msk [vmem:[%s5056_s14 + $0x288] sm:$0xff] %vm4492_vm3, %v4399_v37  ;;  %4573 = vst.msk [vmem:[%s5056_s14 + $0x280] sm:$0xff] %vm4492_vm3, %v4397_v55 }
 0x55b   : > { %v4403_v24 = vpop.xlane.xlu1 %4402  ;;  %v4401_v23 = vpop.xlane.xlu0 %4400 }
 0x55c   : > { %4576 = vst.msk [vmem:[%s5056_s14 + $0x298] sm:$0xff] %vm4492_vm3, %v4403_v24  ;;  %4575 = vst.msk [vmem:[%s5056_s14 + $0x290] sm:$0xff] %vm4492_vm3, %v4401_v23 }
 0x55f   : > { %v4407_v63 = vpop.xlane.xlu1 %4406  ;;  %v4405_v35 = vpop.xlane.xlu0 %4404 }
 0x560   : > { %4578 = vst.msk [vmem:[%s5056_s14 + $0x2a8] sm:$0xff] %vm4492_vm3, %v4407_v63  ;;  %4577 = vst.msk [vmem:[%s5056_s14 + $0x2a0] sm:$0xff] %vm4492_vm3, %v4405_v35 }
 0x563   : > { %v4411_v43 = vpop.xlane.xlu1 %4410  ;;  %v4409_v28 = vpop.xlane.xlu0 %4408 }
 0x564   : > { %4580 = vst.msk [vmem:[%s5056_s14 + $0x2b8] sm:$0xff] %vm4492_vm3, %v4411_v43  ;;  %4579 = vst.msk [vmem:[%s5056_s14 + $0x2b0] sm:$0xff] %vm4492_vm3, %v4409_v28 }
 0x567   : > { %v4415_v60 = vpop.xlane.xlu1 %4414  ;;  %v4413_v48 = vpop.xlane.xlu0 %4412 }
 0x568   : > { %4582 = vst.msk [vmem:[%s5056_s14 + $0x2c8] sm:$0xff] %vm4492_vm3, %v4415_v60  ;;  %4581 = vst.msk [vmem:[%s5056_s14 + $0x2c0] sm:$0xff] %vm4492_vm3, %v4413_v48 }
 0x56b   : > { %v4419_v9 = vpop.xlane.xlu1 %4418  ;;  %v4417_v57 = vpop.xlane.xlu0 %4416 }
 0x56c   : > { %4584 = vst.msk [vmem:[%s5056_s14 + $0x2d8] sm:$0xff] %vm4492_vm3, %v4419_v9  ;;  %4583 = vst.msk [vmem:[%s5056_s14 + $0x2d0] sm:$0xff] %vm4492_vm3, %v4417_v57 }
 0x56f   : > { %v4423_v62 = vpop.xlane.xlu1 %4422  ;;  %v4421_v17 = vpop.xlane.xlu0 %4420 }
 0x570   : > { %4586 = vst.msk [vmem:[%s5056_s14 + $0x2e8] sm:$0xff] %vm4492_vm3, %v4423_v62  ;;  %4585 = vst.msk [vmem:[%s5056_s14 + $0x2e0] sm:$0xff] %vm4492_vm3, %v4421_v17 }
 0x573   : > { %v4427_v52 = vpop.xlane.xlu1 %4426  ;;  %v4425_v61 = vpop.xlane.xlu0 %4424 }
 0x574   : > { %4588 = vst.msk [vmem:[%s5056_s14 + $0x2f8] sm:$0xff] %vm4492_vm3, %v4427_v52  ;;  %4587 = vst.msk [vmem:[%s5056_s14 + $0x2f0] sm:$0xff] %vm4492_vm3, %v4425_v61 }
 0x577   : > { %v4431_v14 = vpop.xlane.xlu1 %4430  ;;  %v4429_v30 = vpop.xlane.xlu0 %4428 }
 0x578   : > { %4590 = vst.msk [vmem:[%s5056_s14 + $0x308] sm:$0xff] %vm4492_vm3, %v4431_v14  ;;  %4589 = vst.msk [vmem:[%s5056_s14 + $0x300] sm:$0xff] %vm4492_vm3, %v4429_v30 }
 0x57b   : > { %v4435_v18 = vpop.xlane.xlu1 %4434  ;;  %v4433_v59 = vpop.xlane.xlu0 %4432 }
 0x57c   : > { %4592 = vst.msk [vmem:[%s5056_s14 + $0x318] sm:$0xff] %vm4492_vm3, %v4435_v18  ;;  %4591 = vst.msk [vmem:[%s5056_s14 + $0x310] sm:$0xff] %vm4492_vm3, %v4433_v59 }
 0x57f   : > { %v4439_v36 = vpop.xlane.xlu1 %4438  ;;  %v4437_v10 = vpop.xlane.xlu0 %4436 }
 0x580   : > { %4594 = vst.msk [vmem:[%s5056_s14 + $0x328] sm:$0xff] %vm4492_vm3, %v4439_v36  ;;  %4593 = vst.msk [vmem:[%s5056_s14 + $0x320] sm:$0xff] %vm4492_vm3, %v4437_v10 }
 0x583   : > { %v4443_v2 = vpop.xlane.xlu1 %4442  ;;  %v4441_v46 = vpop.xlane.xlu0 %4440 }
 0x584   : > { %4596 = vst.msk [vmem:[%s5056_s14 + $0x338] sm:$0xff] %vm4492_vm3, %v4443_v2  ;;  %4595 = vst.msk [vmem:[%s5056_s14 + $0x330] sm:$0xff] %vm4492_vm3, %v4441_v46 }
 0x587   : > { %v4447_v56 = vpop.xlane.xlu1 %4446  ;;  %v4445_v12 = vpop.xlane.xlu0 %4444 }
 0x588   : > { %4598 = vst.msk [vmem:[%s5056_s14 + $0x348] sm:$0xff] %vm4492_vm3, %v4447_v56  ;;  %4597 = vst.msk [vmem:[%s5056_s14 + $0x340] sm:$0xff] %vm4492_vm3, %v4445_v12 }
 0x58b   : > { %v4451_v7 = vpop.xlane.xlu1 %4450  ;;  %v4449_v26 = vpop.xlane.xlu0 %4448 }
 0x58c   : > { %4600 = vst.msk [vmem:[%s5056_s14 + $0x358] sm:$0xff] %vm4492_vm3, %v4451_v7  ;;  %4599 = vst.msk [vmem:[%s5056_s14 + $0x350] sm:$0xff] %vm4492_vm3, %v4449_v26 }
 0x58f   : > { %v4455_v5 = vpop.xlane.xlu1 %4454  ;;  %v4453_v11 = vpop.xlane.xlu0 %4452 }
 0x590   : > { %4602 = vst.msk [vmem:[%s5056_s14 + $0x368] sm:$0xff] %vm4492_vm3, %v4455_v5  ;;  %4601 = vst.msk [vmem:[%s5056_s14 + $0x360] sm:$0xff] %vm4492_vm3, %v4453_v11 }
 0x593   : > { %v4459_v49 = vpop.xlane.xlu1 %4458  ;;  %v4457_v47 = vpop.xlane.xlu0 %4456 }
 0x594   : > { %4604 = vst.msk [vmem:[%s5056_s14 + $0x378] sm:$0xff] %vm4492_vm3, %v4459_v49  ;;  %4603 = vst.msk [vmem:[%s5056_s14 + $0x370] sm:$0xff] %vm4492_vm3, %v4457_v47 }
 0x597   : > { %v4463_v32 = vpop.xlane.xlu1 %4462  ;;  %v4461_v1 = vpop.xlane.xlu0 %4460 }
 0x598   : > { %4606 = vst.msk [vmem:[%s5056_s14 + $0x388] sm:$0xff] %vm4492_vm3, %v4463_v32  ;;  %4605 = vst.msk [vmem:[%s5056_s14 + $0x380] sm:$0xff] %vm4492_vm3, %v4461_v1 }
 0x59b   : > { %v4467_v20 = vpop.xlane.xlu1 %4466  ;;  %v4465_v53 = vpop.xlane.xlu0 %4464 }
 0x59c   : > { %4608 = vst.msk [vmem:[%s5056_s14 + $0x398] sm:$0xff] %vm4492_vm3, %v4467_v20  ;;  %4607 = vst.msk [vmem:[%s5056_s14 + $0x390] sm:$0xff] %vm4492_vm3, %v4465_v53 }
 0x59f   : > { %v4471_v6 = vpop.xlane.xlu1 %4470  ;;  %v4469_v21 = vpop.xlane.xlu0 %4468 }
 0x5a0   : > { %4610 = vst.msk [vmem:[%s5056_s14 + $0x3a8] sm:$0xff] %vm4492_vm3, %v4471_v6  ;;  %4609 = vst.msk [vmem:[%s5056_s14 + $0x3a0] sm:$0xff] %vm4492_vm3, %v4469_v21 }
 0x5a3   : > { %v4475_v38 = vpop.xlane.xlu1 %4474  ;;  %v4473_v15 = vpop.xlane.xlu0 %4472 }
 0x5a4   : > { %4612 = vst.msk [vmem:[%s5056_s14 + $0x3b8] sm:$0xff] %vm4492_vm3, %v4475_v38  ;;  %4611 = vst.msk [vmem:[%s5056_s14 + $0x3b0] sm:$0xff] %vm4492_vm3, %v4473_v15 }
 0x5a7   : > { %v4479_v27 = vpop.xlane.xlu1 %4478  ;;  %v4477_v16 = vpop.xlane.xlu0 %4476 }
 0x5a8   : > { %4614 = vst.msk [vmem:[%s5056_s14 + $0x3c8] sm:$0xff] %vm4492_vm3, %v4479_v27  ;;  %4613 = vst.msk [vmem:[%s5056_s14 + $0x3c0] sm:$0xff] %vm4492_vm3, %v4477_v16 }
 0x5ab   : > { %v4483_v50 = vpop.xlane.xlu1 %4482  ;;  %v4481_v13 = vpop.xlane.xlu0 %4480 }
 0x5ac   : > { %4616 = vst.msk [vmem:[%s5056_s14 + $0x3d8] sm:$0xff] %vm4492_vm3, %v4483_v50  ;;  %4615 = vst.msk [vmem:[%s5056_s14 + $0x3d0] sm:$0xff] %vm4492_vm3, %v4481_v13 }
 0x5af   : > { %v4487_v31 = vpop.xlane.xlu1 %4486  ;;  %v4485_v58 = vpop.xlane.xlu0 %4484 }
 0x5b0   : > { %4618 = vst.msk [vmem:[%s5056_s14 + $0x3e8] sm:$0xff] %vm4492_vm3, %v4487_v31  ;;  %4617 = vst.msk [vmem:[%s5056_s14 + $0x3e0] sm:$0xff] %vm4492_vm3, %v4485_v58 }
 0x5b3   : > { %v4491_v51 = vpop.xlane.xlu1 %4490  ;;  %v4489_v8 = vpop.xlane.xlu0 %4488 }
 0x5b4   : > { %4620 = vst.msk [vmem:[%s5056_s14 + $0x3f8] sm:$0xff] %vm4492_vm3, %v4491_v51  ;;  %4619 = vst.msk [vmem:[%s5056_s14 + $0x3f0] sm:$0xff] %vm4492_vm3, %v4489_v8 }
 0x5b5 PF: > { %s17_s28 = sadd.s32 1, %s4974_s28   ;;  %s7333_s24 = smov %s4966_s26 }
 0x5b6   : > { %p14_p9 = scmp.ge.s32.totalorder %s17_s28, 18   ;;  %s7334_s25 = smov %s4970_s27 }
 0x5b7   : > { %s7335_s26 = smov %s7338_s29  ;;  %s7336_s27 = smov %s7342_s30 }
 0x5b8   :  { %16 = sbr.rel (!%p14_p9) target bundleno = 3 (0x3), region = 86 }

// kernel: _lambda_.3
= control target key start
LH: loop header
LB: loop body
LE: loop exit
PB: predicated region body
PF: predicated region fallthrough
CT: control target
= control target key end

     0   :  { %vm1541_vm0 = vcmask 68608   ;;  %s4434_s1 = inlined_call_operand.vmem [shape: f32[1024,512], index: 1, kind: input, shape index: {}]   ;;  %s4435_s0 = inlined_call_operand.vmem [shape: f32[4,1024], index: 0, kind: input, shape index: {}]   ;;  %s4436_s3 = inlined_call_operand.vmem [shape: f32[512,256], index: 3, kind: input, shape index: {}]   ;;  %s4437_s2 = inlined_call_operand.vmem [shape: f32[1,512], index: 2, kind: input, shape index: {}]   ;;  %s4438_s5 = inlined_call_operand.vmem [shape: f32[256,9], index: 5, kind: input, shape index: {}]   ;;  %s4439_s4 = inlined_call_operand.vmem [shape: f32[1,256], index: 4, kind: input, shape index: {}]   ;;  %s4440_s6 = inlined_call_operand.vmem [shape: f32[1,9], index: 6, kind: input, shape index: {}]   ;;  %s4441_s7 = inlined_call_operand.vmem [shape: f32[4,9], index: 7, kind: output, shape index: {}]  }
   0x1   :  { %v31_v0 = vld [vmem:[%s4434_s1 + $0x8] sm:$0xff]  ;;  %v30_v5 = vld [vmem:[%s4434_s1] sm:$0xff] }
   0x2   :  { %v35_v1 = vld [vmem:[%s4434_s1 + $0x28] sm:$0xff]  ;;  %v34_v6 = vld [vmem:[%s4434_s1 + $0x20] sm:$0xff] }
   0x3   :  { %v159_v2 = vld [vmem:[%s4434_s1 + $0x408] sm:$0xff]  ;;  %v1583_v3 = vpack.c.bf16 %v35_v1, %v31_v0  ;;  %v1585_v8 = vpack.c.bf16 %v34_v6, %v30_v5  ;;  %v158_v9 = vld [vmem:[%s4434_s1 + $0x400] sm:$0xff] }
   0x4   :  { %v163_v4 = vld [vmem:[%s4434_s1 + $0x428] sm:$0xff]  ;;  %v162_v10 = vld [vmem:[%s4434_s1 + $0x420] sm:$0xff] }
   0x5   :  { %v1647_v7 = vpack.c.bf16 %v163_v4, %v159_v2  ;;  %v39_v11 = vld [vmem:[%s4434_s1 + $0x48] sm:$0xff]  ;;  %1584 = vmatprep.subr.bf16.mxu1 %v1583_v3  ;;  %v1649_v12 = vpack.c.bf16 %v162_v10, %v158_v9  ;;  %v38_v18 = vld [vmem:[%s4434_s1 + $0x40] sm:$0xff] }
   0x6   :  { %v43_v13 = vld [vmem:[%s4434_s1 + $0x68] sm:$0xff]  ;;  %1586 = vmatpush1.bf16.msra.mxu1 %v1585_v8  ;;  %v42_v19 = vld [vmem:[%s4434_s1 + $0x60] sm:$0xff] }
   0x7   :  { %v167_v14 = vld [vmem:[%s4434_s1 + $0x448] sm:$0xff]  ;;  %1648 = vmatprep.subr.bf16.mxu0 %v1647_v7  ;;  %v1587_v16 = vpack.c.bf16 %v43_v13, %v39_v11  ;;  %v166_v20 = vld [vmem:[%s4434_s1 + $0x440] sm:$0xff]  ;;  %v1589_v21 = vpack.c.bf16 %v42_v19, %v38_v18 }
   0x8   :  { %v171_v15 = vld [vmem:[%s4434_s1 + $0x468] sm:$0xff]  ;;  %1650 = vmatpush1.bf16.msra.mxu0 %v1649_v12  ;;  %v170_v22 = vld [vmem:[%s4434_s1 + $0x460] sm:$0xff] }
   0x9   :  { %v1651_v17 = vpack.c.bf16 %v171_v15, %v167_v14  ;;  %v47_v23 = vld [vmem:[%s4434_s1 + $0x88] sm:$0xff]  ;;  %1588 = vmatprep.subr.bf16.mxu1 %v1587_v16  ;;  %v1653_v25 = vpack.c.bf16 %v170_v22, %v166_v20  ;;  %v46_v29 = vld [vmem:[%s4434_s1 + $0x80] sm:$0xff] }
   0xa   :  { %v51_v24 = vld [vmem:[%s4434_s1 + $0xa8] sm:$0xff]  ;;  %v50_v31 = vld [vmem:[%s4434_s1 + $0xa0] sm:$0xff]  ;;  %1590 = vmatpush1.bf16.msra.mxu1 %v1589_v21 }
   0xb   :  { %1652 = vmatprep.subr.bf16.mxu0 %v1651_v17  ;;  %v1591_v26 = vpack.c.bf16 %v51_v24, %v47_v23  ;;  %v175_v27 = vld [vmem:[%s4434_s1 + $0x488] sm:$0xff]  ;;  %v174_v32 = vld [vmem:[%s4434_s1 + $0x480] sm:$0xff]  ;;  %v1593_v34 = vpack.c.bf16 %v50_v31, %v46_v29 }
   0xc   :  { %v179_v28 = vld [vmem:[%s4434_s1 + $0x4a8] sm:$0xff]  ;;  %v178_v33 = vld [vmem:[%s4434_s1 + $0x4a0] sm:$0xff]  ;;  %1654 = vmatpush1.bf16.msra.mxu0 %v1653_v25 }
   0xd   :  { %v1655_v30 = vpack.c.bf16 %v179_v28, %v175_v27  ;;  %v55_v35 = vld [vmem:[%s4434_s1 + $0xc8] sm:$0xff]  ;;  %1592 = vmatprep.subr.bf16.mxu1 %v1591_v26  ;;  %v1657_v38 = vpack.c.bf16 %v178_v33, %v174_v32  ;;  %v54_v41 = vld [vmem:[%s4434_s1 + $0xc0] sm:$0xff] }
   0xe   :  { %v59_v36 = vld [vmem:[%s4434_s1 + $0xe8] sm:$0xff]  ;;  %v58_v42 = vld [vmem:[%s4434_s1 + $0xe0] sm:$0xff]  ;;  %1594 = vmatpush1.bf16.msra.mxu1 %v1593_v34 }
   0xf   :  { %v183_v37 = vld [vmem:[%s4434_s1 + $0x4c8] sm:$0xff]  ;;  %v1595_v39 = vpack.c.bf16 %v59_v36, %v55_v35  ;;  %1656 = vmatprep.subr.bf16.mxu0 %v1655_v30  ;;  %v182_v44 = vld [vmem:[%s4434_s1 + $0x4c0] sm:$0xff]  ;;  %v1597_v50 = vpack.c.bf16 %v58_v42, %v54_v41 }
  0x10   :  { %v187_v40 = vld [vmem:[%s4434_s1 + $0x4e8] sm:$0xff]  ;;  %v186_v45 = vld [vmem:[%s4434_s1 + $0x4e0] sm:$0xff]  ;;  %1658 = vmatpush1.bf16.msra.mxu0 %v1657_v38 }
  0x11   :  { %v1659_v43 = vpack.c.bf16 %v187_v40, %v183_v37  ;;  %v63_v46 = vld [vmem:[%s4434_s1 + $0x108] sm:$0xff]  ;;  %1596 = vmatprep.subr.bf16.mxu1 %v1595_v39  ;;  %v1661_v51 = vpack.c.bf16 %v186_v45, %v182_v44  ;;  %v62_v53 = vld [vmem:[%s4434_s1 + $0x100] sm:$0xff] }
  0x12   :  { %v67_v47 = vld [vmem:[%s4434_s1 + $0x128] sm:$0xff]  ;;  %v66_v54 = vld [vmem:[%s4434_s1 + $0x120] sm:$0xff]  ;;  %1598 = vmatpush1.bf16.msra.mxu1 %v1597_v50 }
  0x13   :  { %v191_v48 = vld [vmem:[%s4434_s1 + $0x508] sm:$0xff]  ;;  %v1599_v52 = vpack.c.bf16 %v67_v47, %v63_v46  ;;  %v190_v55 = vld [vmem:[%s4434_s1 + $0x500] sm:$0xff]  ;;  %1660 = vmatprep.subr.bf16.mxu0 %v1659_v43  ;;  %v1601_v62 = vpack.c.bf16 %v66_v54, %v62_v53 }
  0x14   :  { %v195_v49 = vld [vmem:[%s4434_s1 + $0x528] sm:$0xff]  ;;  %v194_v57 = vld [vmem:[%s4434_s1 + $0x520] sm:$0xff]  ;;  %1662 = vmatpush1.bf16.msra.mxu0 %v1661_v51 }
  0x15   :  { %v1663_v56 = vpack.c.bf16 %v195_v49, %v191_v48  ;;  %v71_v58 = vld [vmem:[%s4434_s1 + $0x148] sm:$0xff]  ;;  %1600 = vmatprep.subr.bf16.mxu1 %v1599_v52  ;;  %v1665_v63 = vpack.c.bf16 %v194_v57, %v190_v55  ;;  %v70_v1 = vld [vmem:[%s4434_s1 + $0x140] sm:$0xff] }
  0x16   :  { %v75_v59 = vld [vmem:[%s4434_s1 + $0x168] sm:$0xff]  ;;  %v74_v2 = vld [vmem:[%s4434_s1 + $0x160] sm:$0xff]  ;;  %1602 = vmatpush1.bf16.msra.mxu1 %v1601_v62 }
  0x17   :  { %v199_v60 = vld [vmem:[%s4434_s1 + $0x548] sm:$0xff]  ;;  %v1603_v0 = vpack.c.bf16 %v75_v59, %v71_v58  ;;  %v198_v3 = vld [vmem:[%s4434_s1 + $0x540] sm:$0xff]  ;;  %1664 = vmatprep.subr.bf16.mxu0 %v1663_v56  ;;  %v1605_v10 = vpack.c.bf16 %v74_v2, %v70_v1 }
  0x18   :  { %v203_v61 = vld [vmem:[%s4434_s1 + $0x568] sm:$0xff]  ;;  %v202_v5 = vld [vmem:[%s4434_s1 + $0x560] sm:$0xff]  ;;  %1666 = vmatpush1.bf16.msra.mxu0 %v1665_v63 }
  0x19   :  { %v1667_v4 = vpack.c.bf16 %v203_v61, %v199_v60  ;;  %v79_v6 = vld [vmem:[%s4434_s1 + $0x188] sm:$0xff]  ;;  %1604 = vmatprep.subr.bf16.mxu1 %v1603_v0  ;;  %v1669_v11 = vpack.c.bf16 %v202_v5, %v198_v3  ;;  %v78_v13 = vld [vmem:[%s4434_s1 + $0x180] sm:$0xff] }
  0x1a   :  { %v83_v7 = vld [vmem:[%s4434_s1 + $0x1a8] sm:$0xff]  ;;  %v82_v14 = vld [vmem:[%s4434_s1 + $0x1a0] sm:$0xff]  ;;  %1606 = vmatpush1.bf16.msra.mxu1 %v1605_v10 }
  0x1b   :  { %v207_v8 = vld [vmem:[%s4434_s1 + $0x588] sm:$0xff]  ;;  %v1607_v12 = vpack.c.bf16 %v83_v7, %v79_v6  ;;  %v206_v15 = vld [vmem:[%s4434_s1 + $0x580] sm:$0xff]  ;;  %1668 = vmatprep.subr.bf16.mxu0 %v1667_v4  ;;  %v1609_v22 = vpack.c.bf16 %v82_v14, %v78_v13 }
  0x1c   :  { %v211_v9 = vld [vmem:[%s4434_s1 + $0x5a8] sm:$0xff]  ;;  %v210_v17 = vld [vmem:[%s4434_s1 + $0x5a0] sm:$0xff]  ;;  %1670 = vmatpush1.bf16.msra.mxu0 %v1669_v11 }
  0x1d   :  { %v1671_v16 = vpack.c.bf16 %v211_v9, %v207_v8  ;;  %v87_v18 = vld [vmem:[%s4434_s1 + $0x1c8] sm:$0xff]  ;;  %1608 = vmatprep.subr.bf16.mxu1 %v1607_v12  ;;  %v1673_v23 = vpack.c.bf16 %v210_v17, %v206_v15  ;;  %v86_v25 = vld [vmem:[%s4434_s1 + $0x1c0] sm:$0xff] }
  0x1e   :  { %v91_v19 = vld [vmem:[%s4434_s1 + $0x1e8] sm:$0xff]  ;;  %v90_v26 = vld [vmem:[%s4434_s1 + $0x1e0] sm:$0xff]  ;;  %1610 = vmatpush1.bf16.msra.mxu1 %v1609_v22 }
  0x1f   :  { %v215_v20 = vld [vmem:[%s4434_s1 + $0x5c8] sm:$0xff]  ;;  %v1611_v24 = vpack.c.bf16 %v91_v19, %v87_v18  ;;  %v214_v27 = vld [vmem:[%s4434_s1 + $0x5c0] sm:$0xff]  ;;  %1672 = vmatprep.subr.bf16.mxu0 %v1671_v16  ;;  %v1613_v34 = vpack.c.bf16 %v90_v26, %v86_v25 }
  0x20   :  { %v219_v21 = vld [vmem:[%s4434_s1 + $0x5e8] sm:$0xff]  ;;  %v218_v29 = vld [vmem:[%s4434_s1 + $0x5e0] sm:$0xff]  ;;  %1674 = vmatpush1.bf16.msra.mxu0 %v1673_v23 }
  0x21   :  { %v1675_v28 = vpack.c.bf16 %v219_v21, %v215_v20  ;;  %v95_v30 = vld [vmem:[%s4434_s1 + $0x208] sm:$0xff]  ;;  %1612 = vmatprep.subr.bf16.mxu1 %v1611_v24  ;;  %v1677_v35 = vpack.c.bf16 %v218_v29, %v214_v27  ;;  %v94_v37 = vld [vmem:[%s4434_s1 + $0x200] sm:$0xff] }
  0x22   :  { %v99_v31 = vld [vmem:[%s4434_s1 + $0x228] sm:$0xff]  ;;  %v98_v38 = vld [vmem:[%s4434_s1 + $0x220] sm:$0xff]  ;;  %1614 = vmatpush1.bf16.msra.mxu1 %v1613_v34 }
  0x23   :  { %v223_v32 = vld [vmem:[%s4434_s1 + $0x608] sm:$0xff]  ;;  %v1615_v36 = vpack.c.bf16 %v99_v31, %v95_v30  ;;  %v222_v39 = vld [vmem:[%s4434_s1 + $0x600] sm:$0xff]  ;;  %1676 = vmatprep.subr.bf16.mxu0 %v1675_v28  ;;  %v1617_v46 = vpack.c.bf16 %v98_v38, %v94_v37 }
  0x24   :  { %v227_v33 = vld [vmem:[%s4434_s1 + $0x628] sm:$0xff]  ;;  %v226_v41 = vld [vmem:[%s4434_s1 + $0x620] sm:$0xff]  ;;  %1678 = vmatpush1.bf16.msra.mxu0 %v1677_v35 }
  0x25   :  { %v1679_v40 = vpack.c.bf16 %v227_v33, %v223_v32  ;;  %v103_v42 = vld [vmem:[%s4434_s1 + $0x248] sm:$0xff]  ;;  %1616 = vmatprep.subr.bf16.mxu1 %v1615_v36  ;;  %v1681_v47 = vpack.c.bf16 %v226_v41, %v222_v39  ;;  %v102_v49 = vld [vmem:[%s4434_s1 + $0x240] sm:$0xff] }
  0x26   :  { %v107_v43 = vld [vmem:[%s4434_s1 + $0x268] sm:$0xff]  ;;  %v106_v50 = vld [vmem:[%s4434_s1 + $0x260] sm:$0xff]  ;;  %1618 = vmatpush1.bf16.msra.mxu1 %v1617_v46 }
  0x27   :  { %v231_v44 = vld [vmem:[%s4434_s1 + $0x648] sm:$0xff]  ;;  %v1619_v48 = vpack.c.bf16 %v107_v43, %v103_v42  ;;  %v230_v51 = vld [vmem:[%s4434_s1 + $0x640] sm:$0xff]  ;;  %1680 = vmatprep.subr.bf16.mxu0 %v1679_v40  ;;  %v1621_v58 = vpack.c.bf16 %v106_v50, %v102_v49 }
  0x28   :  { %v235_v45 = vld [vmem:[%s4434_s1 + $0x668] sm:$0xff]  ;;  %v234_v53 = vld [vmem:[%s4434_s1 + $0x660] sm:$0xff]  ;;  %1682 = vmatpush1.bf16.msra.mxu0 %v1681_v47 }
  0x29   :  { %v1683_v52 = vpack.c.bf16 %v235_v45, %v231_v44  ;;  %v111_v54 = vld [vmem:[%s4434_s1 + $0x288] sm:$0xff]  ;;  %1620 = vmatprep.subr.bf16.mxu1 %v1619_v48  ;;  %v1685_v59 = vpack.c.bf16 %v234_v53, %v230_v51  ;;  %v110_v61 = vld [vmem:[%s4434_s1 + $0x280] sm:$0xff] }
  0x2a   :  { %v115_v55 = vld [vmem:[%s4434_s1 + $0x2a8] sm:$0xff]  ;;  %v114_v62 = vld [vmem:[%s4434_s1 + $0x2a0] sm:$0xff]  ;;  %1622 = vmatpush1.bf16.msra.mxu1 %v1621_v58 }
  0x2b   :  { %v239_v56 = vld [vmem:[%s4434_s1 + $0x688] sm:$0xff]  ;;  %v1623_v60 = vpack.c.bf16 %v115_v55, %v111_v54  ;;  %v238_v63 = vld [vmem:[%s4434_s1 + $0x680] sm:$0xff]  ;;  %1684 = vmatprep.subr.bf16.mxu0 %v1683_v52  ;;  %v1625_v6 = vpack.c.bf16 %v114_v62, %v110_v61 }
  0x2c   :  { %v243_v57 = vld [vmem:[%s4434_s1 + $0x6a8] sm:$0xff]  ;;  %v242_v1 = vld [vmem:[%s4434_s1 + $0x6a0] sm:$0xff]  ;;  %1686 = vmatpush1.bf16.msra.mxu0 %v1685_v59 }
  0x2d   :  { %v1687_v0 = vpack.c.bf16 %v243_v57, %v239_v56  ;;  %v119_v2 = vld [vmem:[%s4434_s1 + $0x2c8] sm:$0xff]  ;;  %v118_v7 = vld [vmem:[%s4434_s1 + $0x2c0] sm:$0xff]  ;;  %1624 = vmatprep.subr.bf16.mxu1 %v1623_v60  ;;  %v1689_v8 = vpack.c.bf16 %v242_v1, %v238_v63 }
  0x2e   :  { %v123_v3 = vld [vmem:[%s4434_s1 + $0x2e8] sm:$0xff]  ;;  %v122_v10 = vld [vmem:[%s4434_s1 + $0x2e0] sm:$0xff]  ;;  %1626 = vmatpush1.bf16.msra.mxu1 %v1625_v6 }
  0x2f   :  { %v247_v4 = vld [vmem:[%s4434_s1 + $0x6c8] sm:$0xff]  ;;  %v1627_v9 = vpack.c.bf16 %v123_v3, %v119_v2  ;;  %v246_v11 = vld [vmem:[%s4434_s1 + $0x6c0] sm:$0xff]  ;;  %1688 = vmatprep.subr.bf16.mxu0 %v1687_v0  ;;  %v1629_v21 = vpack.c.bf16 %v122_v10, %v118_v7  ;;  %v33_v2 = vld [vmem:[%s4434_s1 + $0x18] sm:$0xff] }
  0x30   :  { %v251_v5 = vld [vmem:[%s4434_s1 + $0x6e8] sm:$0xff]  ;;  %v250_v12 = vld [vmem:[%s4434_s1 + $0x6e0] sm:$0xff]  ;;  %1690 = vmatpush1.bf16.msra.mxu0 %v1689_v8  ;;  %v37_v3 = vld [vmem:[%s4434_s1 + $0x38] sm:$0xff] }
  0x31   :  { %v1691_v13 = vpack.c.bf16 %v251_v5, %v247_v4  ;;  %v127_v14 = vld [vmem:[%s4434_s1 + $0x308] sm:$0xff]  ;;  %v2619_v16 = vld [vmem:[%s4435_s0] sm:$0xff]  ;;  %1628 = vmatprep.subr.bf16.mxu1 %v1627_v9  ;;  %v1693_v23 = vpack.c.bf16 %v250_v12, %v246_v11  ;;  %v1839_v8 = vpack.c.bf16 %v37_v3, %v33_v2  ;;  %v32_v10 = vld [vmem:[%s4434_s1 + $0x10] sm:$0xff] }
  0x32   :  { %v131_v15 = vld [vmem:[%s4434_s1 + $0x328] sm:$0xff]  ;;  %v2629_v19 = vcombine.high %v2619_v16, %v2619_v16  ;;  %v126_v25 = vld [vmem:[%s4434_s1 + $0x300] sm:$0xff]  ;;  %1630 = vmatpush1.bf16.msra.mxu1 %v1629_v21  ;;  %v36_v11 = vld [vmem:[%s4434_s1 + $0x30] sm:$0xff] }
  0x33   :  { %v255_v17 = vld [vmem:[%s4434_s1 + $0x708] sm:$0xff]  ;;  %v1631_v24 = vpack.c.bf16 %v131_v15, %v127_v14  ;;  %v130_v26 = vld [vmem:[%s4434_s1 + $0x320] sm:$0xff]  ;;  %1692 = vmatprep.subr.bf16.mxu0 %v1691_v13  ;;  %v41_v14 = vld [vmem:[%s4434_s1 + $0x58] sm:$0xff]  ;;  %v1841_v21 = vpack.c.bf16 %v36_v11, %v32_v10 }
  0x34   :  { %v259_v18 = vld [vmem:[%s4434_s1 + $0x728] sm:$0xff]  ;;  %v254_v27 = vld [vmem:[%s4434_s1 + $0x700] sm:$0xff]  ;;  %640 = vmatprep.mubr.f32.mxu1 %v2629_v19  ;;  %v1633_v34 = vpack.c.bf16 %v130_v26, %v126_v25  ;;  %1694 = vmatpush1.bf16.msra.mxu0 %v1693_v23  ;;  %v45_v15 = vld [vmem:[%s4434_s1 + $0x78] sm:$0xff] }
  0x35   :  { %v2634_v20 = vld [vmem:[%s4435_s0 + $0x8] sm:$0xff]  ;;  %v1695_v28 = vpack.c.bf16 %v259_v18, %v255_v17  ;;  %v258_v29 = vld [vmem:[%s4434_s1 + $0x720] sm:$0xff]  ;;  %1632 = vmatprep.subr.bf16.mxu1 %v1631_v24  ;;  %v1843_v24 = vpack.c.bf16 %v45_v15, %v41_v14  ;;  %v40_v26 = vld [vmem:[%s4434_s1 + $0x50] sm:$0xff] }
  0x36   :  { %v2638_v22 = vcombine.high %v2634_v20, %v2634_v20  ;;  %v135_v30 = vld [vmem:[%s4434_s1 + $0x348] sm:$0xff]  ;;  %v1697_v35 = vpack.c.bf16 %v258_v29, %v254_v27  ;;  %v134_v37 = vld [vmem:[%s4434_s1 + $0x340] sm:$0xff]  ;;  %1634 = vmatpush1.bf16.msra.mxu1 %v1633_v34  ;;  %v44_v27 = vld [vmem:[%s4434_s1 + $0x70] sm:$0xff] }
  0x37   :  { %v139_v31 = vld [vmem:[%s4434_s1 + $0x368] sm:$0xff]  ;;  %v138_v38 = vld [vmem:[%s4434_s1 + $0x360] sm:$0xff]  ;;  %1696 = vmatprep.subr.bf16.mxu0 %v1695_v28  ;;  %v1845_v34 = vpack.c.bf16 %v44_v27, %v40_v26  ;;  %v84_v26 = vld [vmem:[%s4434_s1 + $0x1b0] sm:$0xff] }
  0x38   :  { %v263_v32 = vld [vmem:[%s4434_s1 + $0x748] sm:$0xff]  ;;  %711 = vmatprep.mubr.f32.mxu0 %v2638_v22  ;;  %v1635_v36 = vpack.c.bf16 %v139_v31, %v135_v30  ;;  %v262_v39 = vld [vmem:[%s4434_s1 + $0x740] sm:$0xff]  ;;  %v1637_v46 = vpack.c.bf16 %v138_v38, %v134_v37  ;;  %1698 = vmatpush1.bf16.msra.mxu0 %v1697_v35  ;;  %v49_v30 = vld [vmem:[%s4434_s1 + $0x98] sm:$0xff] }
  0x39   :  { %v267_v33 = vld [vmem:[%s4434_s1 + $0x768] sm:$0xff]  ;;  %v266_v41 = vld [vmem:[%s4434_s1 + $0x760] sm:$0xff]  ;;  %v53_v31 = vld [vmem:[%s4434_s1 + $0xb8] sm:$0xff] }
  0x3a   :  { %v1699_v40 = vpack.c.bf16 %v267_v33, %v263_v32  ;;  %v143_v42 = vld [vmem:[%s4434_s1 + $0x388] sm:$0xff]  ;;  %1636 = vmatprep.subr.bf16.mxu1 %v1635_v36  ;;  %v1701_v47 = vpack.c.bf16 %v266_v41, %v262_v39  ;;  %v142_v49 = vld [vmem:[%s4434_s1 + $0x380] sm:$0xff]  ;;  %v1847_v36 = vpack.c.bf16 %v53_v31, %v49_v30  ;;  %v48_v38 = vld [vmem:[%s4434_s1 + $0x90] sm:$0xff] }
  0x3b   :  { %v147_v43 = vld [vmem:[%s4434_s1 + $0x3a8] sm:$0xff]  ;;  %v146_v50 = vld [vmem:[%s4434_s1 + $0x3a0] sm:$0xff]  ;;  %1638 = vmatpush1.bf16.msra.mxu1 %v1637_v46  ;;  %v52_v39 = vld [vmem:[%s4434_s1 + $0xb0] sm:$0xff] }
  0x3c   :  { %v271_v44 = vld [vmem:[%s4434_s1 + $0x788] sm:$0xff]  ;;  %v1639_v48 = vpack.c.bf16 %v147_v43, %v143_v42  ;;  %v270_v51 = vld [vmem:[%s4434_s1 + $0x780] sm:$0xff]  ;;  %1700 = vmatprep.subr.bf16.mxu0 %v1699_v40  ;;  %v1641_v58 = vpack.c.bf16 %v146_v50, %v142_v49  ;;  %v57_v41 = vld [vmem:[%s4434_s1 + $0xd8] sm:$0xff] }
  0x3d   :  { %v275_v45 = vld [vmem:[%s4434_s1 + $0x7a8] sm:$0xff]  ;;  %v274_v53 = vld [vmem:[%s4434_s1 + $0x7a0] sm:$0xff]  ;;  %1702 = vmatpush1.bf16.msra.mxu0 %v1701_v47  ;;  %v61_v42 = vld [vmem:[%s4434_s1 + $0xf8] sm:$0xff] }
  0x3e   :  { %v1703_v52 = vpack.c.bf16 %v275_v45, %v271_v44  ;;  %v151_v54 = vld [vmem:[%s4434_s1 + $0x3c8] sm:$0xff]  ;;  %1640 = vmatprep.subr.bf16.mxu1 %v1639_v48  ;;  %v1705_v59 = vpack.c.bf16 %v274_v53, %v270_v51  ;;  %v150_v61 = vld [vmem:[%s4434_s1 + $0x3c0] sm:$0xff]  ;;  %v1849_v45 = vpack.c.bf16 %v52_v39, %v48_v38  ;;  %v1851_v47 = vpack.c.bf16 %v61_v42, %v57_v41  ;;  %v60_v49 = vld [vmem:[%s4434_s1 + $0xf0] sm:$0xff] }
  0x3f   :  { %v155_v55 = vld [vmem:[%s4434_s1 + $0x3e8] sm:$0xff]  ;;  %v154_v62 = vld [vmem:[%s4434_s1 + $0x3e0] sm:$0xff]  ;;  %1642 = vmatpush1.bf16.msra.mxu1 %v1641_v58  ;;  %v69_v53 = vld [vmem:[%s4434_s1 + $0x138] sm:$0xff] }
  0x40   :  { %v279_v56 = vld [vmem:[%s4434_s1 + $0x7c8] sm:$0xff]  ;;  %v1643_v60 = vpack.c.bf16 %v155_v55, %v151_v54  ;;  %v278_v63 = vld [vmem:[%s4434_s1 + $0x7c0] sm:$0xff]  ;;  %1704 = vmatprep.subr.bf16.mxu0 %v1703_v52  ;;  %v1645_v6 = vpack.c.bf16 %v154_v62, %v150_v61  ;;  %v65_v52 = vld [vmem:[%s4434_s1 + $0x118] sm:$0xff] }
  0x41   :  { %v283_v57 = vld [vmem:[%s4434_s1 + $0x7e8] sm:$0xff]  ;;  %v282_v1 = vld [vmem:[%s4434_s1 + $0x7e0] sm:$0xff]  ;;  %1706 = vmatpush1.bf16.msra.mxu0 %v1705_v59  ;;  %v1855_v58 = vpack.c.bf16 %v69_v53, %v65_v52  ;;  %v68_v61 = vld [vmem:[%s4434_s1 + $0x130] sm:$0xff] }
  0x42   :  { %v1707_v0 = vpack.c.bf16 %v283_v57, %v279_v56  ;;  %v287_v4 = vld [vmem:[%s4434_s1 + $0x808] sm:$0xff]  ;;  %1644 = vmatprep.subr.bf16.mxu1 %v1643_v60  ;;  %v1709_v7 = vpack.c.bf16 %v282_v1, %v278_v63  ;;  %v286_v9 = vld [vmem:[%s4434_s1 + $0x800] sm:$0xff]  ;;  %v64_v60 = vld [vmem:[%s4434_s1 + $0x110] sm:$0xff] }
  0x43   :  { %v291_v5 = vld [vmem:[%s4434_s1 + $0x828] sm:$0xff]  ;;  %v290_v13 = vld [vmem:[%s4434_s1 + $0x820] sm:$0xff]  ;;  %1646 = vmatpush1.bf16.msra.mxu1 %v1645_v6  ;;  %v77_v1 = vld [vmem:[%s4434_s1 + $0x178] sm:$0xff] }
  0x44   :  { %1708 = vmatprep.subr.bf16.mxu0 %v1707_v0  ;;  %v1711_v12 = vpack.c.bf16 %v291_v5, %v287_v4  ;;  %v295_v17 = vld [vmem:[%s4434_s1 + $0x848] sm:$0xff]  ;;  %1840 = vmatprep.subr.bf16.mxu1 %v1839_v8  ;;  %v1713_v23 = vpack.c.bf16 %v290_v13, %v286_v9  ;;  %v294_v25 = vld [vmem:[%s4434_s1 + $0x840] sm:$0xff]  ;;  %v73_v0 = vld [vmem:[%s4434_s1 + $0x158] sm:$0xff]  ;;  %v1857_v4 = vpack.c.bf16 %v68_v61, %v64_v60 }
  0x45   :  { %v299_v18 = vld [vmem:[%s4434_s1 + $0x868] sm:$0xff]  ;;  %1710 = vmatpush1.bf16.msra.mxu0 %v1709_v7  ;;  %v298_v29 = vld [vmem:[%s4434_s1 + $0x860] sm:$0xff]  ;;  %v1859_v6 = vpack.c.bf16 %v77_v1, %v73_v0  ;;  %v72_v8 = vld [vmem:[%s4434_s1 + $0x150] sm:$0xff] }
  0x46   :  { %1712 = vmatprep.subr.bf16.mxu0 %v1711_v12  ;;  %v1715_v28 = vpack.c.bf16 %v299_v18, %v295_v17  ;;  %641 = vmatmul.mubr.f32.vlgmr.msra.gmra.mrb[0].mxu1 %v2619_v16  ;;  %v303_v32 = vld [vmem:[%s4434_s1 + $0x888] sm:$0xff]  ;;  %v1717_v35 = vpack.c.bf16 %v298_v29, %v294_v25  ;;  %v302_v37 = vld [vmem:[%s4434_s1 + $0x880] sm:$0xff]  ;;  %v76_v9 = vld [vmem:[%s4434_s1 + $0x170] sm:$0xff] }
  0x47   :  { %v307_v33 = vld [vmem:[%s4434_s1 + $0x8a8] sm:$0xff]  ;;  %1842 = vmatpush1.bf16.msra.mxu1 %v1841_v21  ;;  %v306_v40 = vld [vmem:[%s4434_s1 + $0x8a0] sm:$0xff]  ;;  %924 = vmatprep.mubr.f32.mxu1 %v2629_v19  ;;  %v56_v19 = vld [vmem:[%s4434_s1 + $0xd0] sm:$0xff]  ;;  %v1861_v17 = vpack.c.bf16 %v76_v9, %v72_v8 }
  0x48   :  { %712 = vmatmul.mubr.f32.vlgmr.msra.gmra.mrb[0].mxu0 %v2634_v20  ;;  %1844 = vmatprep.subr.bf16.mxu1 %v1843_v24  ;;  %v1719_v20 = vpack.c.bf16 %v307_v33, %v303_v32  ;;  %v311_v43 = vld [vmem:[%s4434_s1 + $0x8c8] sm:$0xff]  ;;  %v1721_v46 = vpack.c.bf16 %v306_v40, %v302_v37  ;;  %v310_v48 = vld [vmem:[%s4434_s1 + $0x8c0] sm:$0xff]  ;;  %v1853_v56 = vpack.c.bf16 %v60_v49, %v56_v19  ;;  %v81_v12 = vld [vmem:[%s4434_s1 + $0x198] sm:$0xff] }
  0x49   :  { %1714 = vmatpush1.bf16.msra.mxu0 %v1713_v23  ;;  %v315_v44 = vld [vmem:[%s4434_s1 + $0x8e8] sm:$0xff]  ;;  %v314_v51 = vld [vmem:[%s4434_s1 + $0x8e0] sm:$0xff]  ;;  %v85_v13 = vld [vmem:[%s4434_s1 + $0x1b8] sm:$0xff] }
  0x4a   :  { %1716 = vmatprep.subr.bf16.mxu0 %v1715_v28  ;;  %v1723_v50 = vpack.c.bf16 %v315_v44, %v311_v43  ;;  %v319_v54 = vld [vmem:[%s4434_s1 + $0x908] sm:$0xff]  ;;  %v1725_v57 = vpack.c.bf16 %v314_v51, %v310_v48  ;;  %v318_v59 = vld [vmem:[%s4434_s1 + $0x900] sm:$0xff]  ;;  %v1863_v23 = vpack.c.bf16 %v85_v13, %v81_v12  ;;  %v80_v25 = vld [vmem:[%s4434_s1 + $0x190] sm:$0xff] }
  0x4b   :  { %1846 = vmatpush1.bf16.msra.mxu1 %v1845_v34  ;;  %v323_v55 = vld [vmem:[%s4434_s1 + $0x928] sm:$0xff]  ;;  %v322_v63 = vld [vmem:[%s4434_s1 + $0x920] sm:$0xff]  ;;  %v89_v28 = vld [vmem:[%s4434_s1 + $0x1d8] sm:$0xff]  ;;  %v1865_v34 = vpack.c.bf16 %v84_v26, %v80_v25 }
  0x4c   :  { %1848 = vmatprep.subr.bf16.mxu1 %v1847_v36  ;;  %v1727_v62 = vpack.c.bf16 %v323_v55, %v319_v54  ;;  %v327_v2 = vld [vmem:[%s4434_s1 + $0x948] sm:$0xff]  ;;  %v1729_v5 = vpack.c.bf16 %v322_v63, %v318_v59  ;;  %v326_v7 = vld [vmem:[%s4434_s1 + $0x940] sm:$0xff]  ;;  %v93_v29 = vld [vmem:[%s4434_s1 + $0x1f8] sm:$0xff] }
  0x4d   :  { %1718 = vmatpush1.bf16.msra.mxu0 %v1717_v35  ;;  %v331_v3 = vld [vmem:[%s4434_s1 + $0x968] sm:$0xff]  ;;  %v330_v11 = vld [vmem:[%s4434_s1 + $0x960] sm:$0xff]  ;;  %v2906_v30 = vld [vmem:[%s4435_s0 + $0x10] sm:$0xff]  ;;  %v1867_v36 = vpack.c.bf16 %v93_v29, %v89_v28 }
  0x4e   :  { %1720 = vmatprep.subr.bf16.mxu0 %v1719_v20  ;;  %v1731_v10 = vpack.c.bf16 %v331_v3, %v327_v2  ;;  %v335_v14 = vld [vmem:[%s4434_s1 + $0x988] sm:$0xff]  ;;  %v334_v18 = vld [vmem:[%s4434_s1 + $0x980] sm:$0xff]  ;;  %v1733_v21 = vpack.c.bf16 %v330_v11, %v326_v7  ;;  %v2916_v33 = vcombine.high %v2906_v30, %v2906_v30  ;;  %v88_v38 = vld [vmem:[%s4434_s1 + $0x1d0] sm:$0xff] }
  0x4f   :  { %1850 = vmatpush1.bf16.msra.mxu1 %v1849_v45  ;;  %v339_v15 = vld [vmem:[%s4434_s1 + $0x9a8] sm:$0xff]  ;;  %v338_v24 = vld [vmem:[%s4434_s1 + $0x9a0] sm:$0xff]  ;;  %v92_v39 = vld [vmem:[%s4434_s1 + $0x1f0] sm:$0xff] }
  0x50   :  { %1852 = vmatprep.subr.bf16.mxu1 %v1851_v47  ;;  %v1735_v27 = vpack.c.bf16 %v339_v15, %v335_v14  ;;  %v343_v31 = vld [vmem:[%s4434_s1 + $0x9c8] sm:$0xff]  ;;  %v1737_v35 = vpack.c.bf16 %v338_v24, %v334_v18  ;;  %v342_v37 = vld [vmem:[%s4434_s1 + $0x9c0] sm:$0xff]  ;;  %v97_v41 = vld [vmem:[%s4434_s1 + $0x218] sm:$0xff]  ;;  %782 = vmatprep.mubr.f32.mxu0 %v2916_v33  ;;  %v1869_v45 = vpack.c.bf16 %v92_v39, %v88_v38 }
  0x51   :  { %1722 = vmatpush1.bf16.msra.mxu0 %v1721_v46  ;;  %v347_v32 = vld [vmem:[%s4434_s1 + $0x9e8] sm:$0xff]  ;;  %v346_v40 = vld [vmem:[%s4434_s1 + $0x9e0] sm:$0xff]  ;;  %v101_v42 = vld [vmem:[%s4434_s1 + $0x238] sm:$0xff] }
  0x52   :  { %1724 = vmatprep.subr.bf16.mxu0 %v1723_v50  ;;  %v1739_v20 = vpack.c.bf16 %v347_v32, %v343_v31  ;;  %v351_v43 = vld [vmem:[%s4434_s1 + $0xa08] sm:$0xff]  ;;  %v1741_v46 = vpack.c.bf16 %v346_v40, %v342_v37  ;;  %v1871_v47 = vpack.c.bf16 %v101_v42, %v97_v41  ;;  %v350_v48 = vld [vmem:[%s4434_s1 + $0xa00] sm:$0xff]  ;;  %v96_v19 = vld [vmem:[%s4434_s1 + $0x210] sm:$0xff] }
  0x53   :  { %1854 = vmatpush1.bf16.msra.mxu1 %v1853_v56  ;;  %v355_v44 = vld [vmem:[%s4434_s1 + $0xa28] sm:$0xff]  ;;  %v100_v49 = vld [vmem:[%s4434_s1 + $0x230] sm:$0xff]  ;;  %v354_v51 = vld [vmem:[%s4434_s1 + $0xa20] sm:$0xff] }
  0x54   :  { %1856 = vmatprep.subr.bf16.mxu1 %v1855_v58  ;;  %v1743_v50 = vpack.c.bf16 %v355_v44, %v351_v43  ;;  %v105_v52 = vld [vmem:[%s4434_s1 + $0x258] sm:$0xff]  ;;  %v359_v54 = vld [vmem:[%s4434_s1 + $0xa48] sm:$0xff]  ;;  %v1873_v56 = vpack.c.bf16 %v100_v49, %v96_v19  ;;  %v358_v59 = vld [vmem:[%s4434_s1 + $0xa40] sm:$0xff] }
  0x55   :  { %1726 = vmatpush1.bf16.msra.mxu0 %v1725_v57  ;;  %v109_v53 = vld [vmem:[%s4434_s1 + $0x278] sm:$0xff]  ;;  %v363_v55 = vld [vmem:[%s4434_s1 + $0xa68] sm:$0xff]  ;;  %v1745_v57 = vpack.c.bf16 %v354_v51, %v350_v48  ;;  %v104_v60 = vld [vmem:[%s4434_s1 + $0x250] sm:$0xff] }
  0x56   :  { %1728 = vmatprep.subr.bf16.mxu0 %v1727_v62  ;;  %v1875_v58 = vpack.c.bf16 %v109_v53, %v105_v52  ;;  %v108_v61 = vld [vmem:[%s4434_s1 + $0x270] sm:$0xff]  ;;  %v1747_v62 = vpack.c.bf16 %v363_v55, %v359_v54  ;;  %v362_v63 = vld [vmem:[%s4434_s1 + $0xa60] sm:$0xff]  ;;  %v113_v0 = vld [vmem:[%s4434_s1 + $0x298] sm:$0xff] }
  0x57   :  { %1858 = vmatpush1.bf16.msra.mxu1 %v1857_v4  ;;  %v117_v1 = vld [vmem:[%s4434_s1 + $0x2b8] sm:$0xff]  ;;  %v367_v2 = vld [vmem:[%s4434_s1 + $0xa88] sm:$0xff]  ;;  %v1877_v4 = vpack.c.bf16 %v108_v61, %v104_v60  ;;  %v366_v7 = vld [vmem:[%s4434_s1 + $0xa80] sm:$0xff] }
  0x58   :  { %1860 = vmatprep.subr.bf16.mxu1 %v1859_v6  ;;  %v371_v3 = vld [vmem:[%s4434_s1 + $0xaa8] sm:$0xff]  ;;  %v1879_v6 = vpack.c.bf16 %v117_v1, %v113_v0  ;;  %v112_v8 = vld [vmem:[%s4434_s1 + $0x290] sm:$0xff]  ;;  %v370_v11 = vld [vmem:[%s4434_s1 + $0xaa0] sm:$0xff] }
  0x59   :  { %1730 = vmatpush1.bf16.msra.mxu0 %v1729_v5  ;;  %v1749_v5 = vpack.c.bf16 %v362_v63, %v358_v59  ;;  %v116_v9 = vld [vmem:[%s4434_s1 + $0x2b0] sm:$0xff]  ;;  %v121_v12 = vld [vmem:[%s4434_s1 + $0x2d8] sm:$0xff]  ;;  %v375_v14 = vld [vmem:[%s4434_s1 + $0xac8] sm:$0xff]  ;;  %v1753_v18 = vpack.c.bf16 %v370_v11, %v366_v7 }
  0x5a   :  { %1732 = vmatprep.subr.bf16.mxu0 %v1731_v10  ;;  %v1751_v10 = vpack.c.bf16 %v371_v3, %v367_v2  ;;  %v125_v13 = vld [vmem:[%s4434_s1 + $0x2f8] sm:$0xff]  ;;  %v379_v15 = vld [vmem:[%s4434_s1 + $0xae8] sm:$0xff]  ;;  %v120_v24 = vld [vmem:[%s4434_s1 + $0x2d0] sm:$0xff] }
  0x5b   :  { %1862 = vmatpush1.bf16.msra.mxu1 %v1861_v17  ;;  %v1881_v17 = vpack.c.bf16 %v116_v9, %v112_v8  ;;  %v124_v25 = vld [vmem:[%s4434_s1 + $0x2f0] sm:$0xff]  ;;  %v1755_v26 = vpack.c.bf16 %v379_v15, %v375_v14  ;;  %v129_v28 = vld [vmem:[%s4434_s1 + $0x318] sm:$0xff]  ;;  %v383_v31 = vld [vmem:[%s4434_s1 + $0xb08] sm:$0xff] }
  0x5c   :  { %1864 = vmatprep.subr.bf16.mxu1 %v1863_v23  ;;  %v374_v23 = vld [vmem:[%s4434_s1 + $0xac0] sm:$0xff]  ;;  %v133_v29 = vld [vmem:[%s4434_s1 + $0x338] sm:$0xff]  ;;  %v387_v32 = vld [vmem:[%s4434_s1 + $0xb28] sm:$0xff] }
  0x5d   :  { %1734 = vmatpush1.bf16.msra.mxu0 %v1733_v21  ;;  %v1883_v21 = vpack.c.bf16 %v125_v13, %v121_v12  ;;  %v382_v37 = vld [vmem:[%s4434_s1 + $0xb00] sm:$0xff]  ;;  %v128_v38 = vld [vmem:[%s4434_s1 + $0x310] sm:$0xff]  ;;  %v137_v41 = vld [vmem:[%s4434_s1 + $0x358] sm:$0xff] }
  0x5e   :  { %1736 = vmatprep.subr.bf16.mxu0 %v1735_v27  ;;  %v378_v27 = vld [vmem:[%s4434_s1 + $0xae0] sm:$0xff]  ;;  %v132_v39 = vld [vmem:[%s4434_s1 + $0x330] sm:$0xff]  ;;  %v141_v42 = vld [vmem:[%s4434_s1 + $0x378] sm:$0xff] }
  0x5f   :  { %1866 = vmatpush1.bf16.msra.mxu1 %v1865_v34  ;;  %v1885_v34 = vpack.c.bf16 %v124_v25, %v120_v24  ;;  %v386_v40 = vld [vmem:[%s4434_s1 + $0xb20] sm:$0xff]  ;;  %v391_v43 = vld [vmem:[%s4434_s1 + $0xb48] sm:$0xff]  ;;  %v136_v19 = vld [vmem:[%s4434_s1 + $0x350] sm:$0xff] }
  0x60   :  { %1868 = vmatprep.subr.bf16.mxu1 %v1867_v36  ;;  %v1887_v36 = vpack.c.bf16 %v133_v29, %v129_v28  ;;  %v395_v44 = vld [vmem:[%s4434_s1 + $0xb68] sm:$0xff]  ;;  %v390_v48 = vld [vmem:[%s4434_s1 + $0xb40] sm:$0xff]  ;;  %v140_v49 = vld [vmem:[%s4434_s1 + $0x370] sm:$0xff] }
  0x61   :  { %1738 = vmatpush1.bf16.msra.mxu0 %v1737_v35  ;;  %v1757_v35 = vpack.c.bf16 %v378_v27, %v374_v23  ;;  %v394_v51 = vld [vmem:[%s4434_s1 + $0xb60] sm:$0xff]  ;;  %v145_v52 = vld [vmem:[%s4434_s1 + $0x398] sm:$0xff]  ;;  %v399_v54 = vld [vmem:[%s4434_s1 + $0xb88] sm:$0xff] }
  0x62   :  { %1740 = vmatprep.subr.bf16.mxu0 %v1739_v20  ;;  %v1759_v20 = vpack.c.bf16 %v387_v32, %v383_v31  ;;  %v149_v53 = vld [vmem:[%s4434_s1 + $0x3b8] sm:$0xff]  ;;  %v403_v55 = vld [vmem:[%s4434_s1 + $0xba8] sm:$0xff]  ;;  %v398_v59 = vld [vmem:[%s4434_s1 + $0xb80] sm:$0xff] }
  0x63   :  { %1870 = vmatpush1.bf16.msra.mxu1 %v1869_v45  ;;  %v1889_v45 = vpack.c.bf16 %v132_v39, %v128_v38  ;;  %v144_v60 = vld [vmem:[%s4434_s1 + $0x390] sm:$0xff]  ;;  %v402_v63 = vld [vmem:[%s4434_s1 + $0xba0] sm:$0xff]  ;;  %v153_v0 = vld [vmem:[%s4434_s1 + $0x3d8] sm:$0xff] }
  0x64   :  { %1872 = vmatprep.subr.bf16.mxu1 %v1871_v47  ;;  %v1891_v47 = vpack.c.bf16 %v141_v42, %v137_v41  ;;  %v148_v61 = vld [vmem:[%s4434_s1 + $0x3b0] sm:$0xff]  ;;  %v157_v1 = vld [vmem:[%s4434_s1 + $0x3f8] sm:$0xff]  ;;  %v407_v2 = vld [vmem:[%s4434_s1 + $0xbc8] sm:$0xff] }
  0x65   :  { %1742 = vmatpush1.bf16.msra.mxu0 %v1741_v46  ;;  %v1761_v46 = vpack.c.bf16 %v386_v40, %v382_v37  ;;  %v411_v3 = vld [vmem:[%s4434_s1 + $0xbe8] sm:$0xff]  ;;  %v406_v7 = vld [vmem:[%s4434_s1 + $0xbc0] sm:$0xff]  ;;  %v152_v8 = vld [vmem:[%s4434_s1 + $0x3d0] sm:$0xff] }
  0x66   :  { %1744 = vmatprep.subr.bf16.mxu0 %v1743_v50  ;;  %v1763_v50 = vpack.c.bf16 %v395_v44, %v391_v43  ;;  %v156_v9 = vld [vmem:[%s4434_s1 + $0x3f0] sm:$0xff]  ;;  %v410_v11 = vld [vmem:[%s4434_s1 + $0xbe0] sm:$0xff]  ;;  %v161_v12 = vld [vmem:[%s4434_s1 + $0x418] sm:$0xff] }
  0x67   :  { %1874 = vmatpush1.bf16.msra.mxu1 %v1873_v56  ;;  %v1893_v56 = vpack.c.bf16 %v140_v49, %v136_v19  ;;  %v165_v13 = vld [vmem:[%s4434_s1 + $0x438] sm:$0xff]  ;;  %v415_v14 = vld [vmem:[%s4434_s1 + $0xc08] sm:$0xff]  ;;  %v414_v23 = vld [vmem:[%s4434_s1 + $0xc00] sm:$0xff] }
  0x68   :  { %1876 = vmatprep.subr.bf16.mxu1 %v1875_v58  ;;  %v1895_v58 = vpack.c.bf16 %v149_v53, %v145_v52  ;;  %v419_v15 = vld [vmem:[%s4434_s1 + $0xc28] sm:$0xff]  ;;  %v160_v24 = vld [vmem:[%s4434_s1 + $0x410] sm:$0xff]  ;;  %v418_v27 = vld [vmem:[%s4434_s1 + $0xc20] sm:$0xff] }
  0x69   :  { %1746 = vmatpush1.bf16.msra.mxu0 %v1745_v57  ;;  %v1765_v57 = vpack.c.bf16 %v394_v51, %v390_v48  ;;  %v164_v25 = vld [vmem:[%s4434_s1 + $0x430] sm:$0xff]  ;;  %v169_v28 = vld [vmem:[%s4434_s1 + $0x458] sm:$0xff]  ;;  %v423_v31 = vld [vmem:[%s4434_s1 + $0xc48] sm:$0xff] }
  0x6a   :  { %1748 = vmatprep.subr.bf16.mxu0 %v1747_v62  ;;  %v1767_v62 = vpack.c.bf16 %v403_v55, %v399_v54  ;;  %v173_v29 = vld [vmem:[%s4434_s1 + $0x478] sm:$0xff]  ;;  %v427_v32 = vld [vmem:[%s4434_s1 + $0xc68] sm:$0xff]  ;;  %v168_v38 = vld [vmem:[%s4434_s1 + $0x450] sm:$0xff] }
  0x6b   :  { %1878 = vmatpush1.bf16.msra.mxu1 %v1877_v4  ;;  %v1897_v4 = vpack.c.bf16 %v148_v61, %v144_v60  ;;  %v1907_v37 = vpack.c.bf16 %v173_v29, %v169_v28  ;;  %v172_v39 = vld [vmem:[%s4434_s1 + $0x470] sm:$0xff]  ;;  %v1779_v40 = vpack.c.bf16 %v427_v32, %v423_v31  ;;  %v426_v41 = vld [vmem:[%s4434_s1 + $0xc60] sm:$0xff]  ;;  %v177_v42 = vld [vmem:[%s4434_s1 + $0x498] sm:$0xff] }
  0x6c   :  { %1880 = vmatprep.subr.bf16.mxu1 %v1879_v6  ;;  %v1899_v6 = vpack.c.bf16 %v157_v1, %v153_v0  ;;  %v181_v43 = vld [vmem:[%s4434_s1 + $0x4b8] sm:$0xff]  ;;  %v176_v49 = vld [vmem:[%s4434_s1 + $0x490] sm:$0xff]  ;;  %v434_v51 = vld [vmem:[%s4434_s1 + $0xca0] sm:$0xff] }
  0x6d   :  { %1750 = vmatpush1.bf16.msra.mxu0 %v1749_v5  ;;  %v1769_v5 = vpack.c.bf16 %v402_v63, %v398_v59  ;;  %v1911_v19 = vpack.c.bf16 %v181_v43, %v177_v42  ;;  %v185_v52 = vld [vmem:[%s4434_s1 + $0x4d8] sm:$0xff]  ;;  %v439_v54 = vld [vmem:[%s4434_s1 + $0xcc8] sm:$0xff]  ;;  %v438_v59 = vld [vmem:[%s4434_s1 + $0xcc0] sm:$0xff] }
  0x6e   :  { %1752 = vmatprep.subr.bf16.mxu0 %v1751_v10  ;;  %v1771_v10 = vpack.c.bf16 %v411_v3, %v407_v2  ;;  %v189_v53 = vld [vmem:[%s4434_s1 + $0x4f8] sm:$0xff]  ;;  %v443_v55 = vld [vmem:[%s4434_s1 + $0xce8] sm:$0xff]  ;;  %v184_v60 = vld [vmem:[%s4434_s1 + $0x4d0] sm:$0xff] }
  0x6f   :  { %1882 = vmatpush1.bf16.msra.mxu1 %v1881_v17  ;;  %v1901_v17 = vpack.c.bf16 %v156_v9, %v152_v8  ;;  %v188_v61 = vld [vmem:[%s4434_s1 + $0x4f0] sm:$0xff]  ;;  %v193_v63 = vld [vmem:[%s4434_s1 + $0x518] sm:$0xff]  ;;  %v447_v1 = vld [vmem:[%s4434_s1 + $0xd08] sm:$0xff] }
  0x70   :  { %1884 = vmatprep.subr.bf16.mxu1 %v1883_v21  ;;  %v1903_v21 = vpack.c.bf16 %v165_v13, %v161_v12  ;;  %v197_v0 = vld [vmem:[%s4434_s1 + $0x538] sm:$0xff]  ;;  %v451_v2 = vld [vmem:[%s4434_s1 + $0xd28] sm:$0xff]  ;;  %v1917_v3 = vpack.c.bf16 %v188_v61, %v184_v60  ;;  %v196_v8 = vld [vmem:[%s4434_s1 + $0x530] sm:$0xff] }
  0x71   :  { %1754 = vmatpush1.bf16.msra.mxu0 %v1753_v18  ;;  %v1773_v18 = vpack.c.bf16 %v410_v11, %v406_v7  ;;  %v192_v7 = vld [vmem:[%s4434_s1 + $0x510] sm:$0xff]  ;;  %v1791_v9 = vpack.c.bf16 %v451_v2, %v447_v1  ;;  %v201_v11 = vld [vmem:[%s4434_s1 + $0x558] sm:$0xff]  ;;  %v455_v13 = vld [vmem:[%s4434_s1 + $0xd48] sm:$0xff] }
  0x72   :  { %1756 = vmatprep.subr.bf16.mxu0 %v1755_v26  ;;  %v1775_v26 = vpack.c.bf16 %v419_v15, %v415_v14  ;;  %v205_v12 = vld [vmem:[%s4434_s1 + $0x578] sm:$0xff]  ;;  %v459_v14 = vld [vmem:[%s4434_s1 + $0xd68] sm:$0xff]  ;;  %v1921_v15 = vpack.c.bf16 %v196_v8, %v192_v7  ;;  %v228_v60 = vld [vmem:[%s4434_s1 + $0x630] sm:$0xff] }
  0x73   :  { %1886 = vmatpush1.bf16.msra.mxu1 %v1885_v34  ;;  %v1905_v34 = vpack.c.bf16 %v164_v25, %v160_v24  ;;  %v204_v24 = vld [vmem:[%s4434_s1 + $0x570] sm:$0xff]  ;;  %v1795_v25 = vpack.c.bf16 %v459_v14, %v455_v13  ;;  %v213_v28 = vld [vmem:[%s4434_s1 + $0x5b8] sm:$0xff]  ;;  %v463_v29 = vld [vmem:[%s4434_s1 + $0xd88] sm:$0xff] }
  0x74   :  { %1888 = vmatprep.subr.bf16.mxu1 %v1887_v36  ;;  %v1777_v36 = vpack.c.bf16 %v418_v27, %v414_v23  ;;  %v200_v23 = vld [vmem:[%s4434_s1 + $0x550] sm:$0xff]  ;;  %v209_v27 = vld [vmem:[%s4434_s1 + $0x598] sm:$0xff]  ;;  %v467_v31 = vld [vmem:[%s4434_s1 + $0xda8] sm:$0xff] }
  0x75   :  { %1758 = vmatpush1.bf16.msra.mxu0 %v1757_v35  ;;  %v422_v35 = vld [vmem:[%s4434_s1 + $0xc40] sm:$0xff]  ;;  %v1925_v32 = vpack.c.bf16 %v204_v24, %v200_v23  ;;  %v221_v42 = vld [vmem:[%s4434_s1 + $0x5f8] sm:$0xff]  ;;  %v471_v43 = vld [vmem:[%s4434_s1 + $0xdc8] sm:$0xff] }
  0x76   :  { %1760 = vmatprep.subr.bf16.mxu0 %v1759_v20  ;;  %v3171_v20 = vld [vmem:[%s4435_s0 + $0x18] sm:$0xff]  ;;  %v1781_v48 = vpack.c.bf16 %v426_v41, %v422_v35  ;;  %v1927_v35 = vpack.c.bf16 %v213_v28, %v209_v27  ;;  %v491_v1 = vld [vmem:[%s4434_s1 + $0xe68] sm:$0xff]  ;;  %v236_v7 = vld [vmem:[%s4434_s1 + $0x670] sm:$0xff] }
  0x77   :  { %1890 = vmatpush1.bf16.msra.mxu1 %v1889_v45  ;;  %v3184_v44 = vcombine.high %v3171_v20, %v3171_v20  ;;  %v431_v45 = vld [vmem:[%s4434_s1 + $0xc88] sm:$0xff]  ;;  %v217_v41 = vld [vmem:[%s4434_s1 + $0x5d8] sm:$0xff]  ;;  %v244_v23 = vld [vmem:[%s4434_s1 + $0x6b0] sm:$0xff] }
  0x78   :  { %1892 = vmatprep.subr.bf16.mxu1 %v1891_v47  ;;  %v1909_v47 = vpack.c.bf16 %v172_v39, %v168_v38  ;;  %v212_v38 = vld [vmem:[%s4434_s1 + $0x5b0] sm:$0xff]  ;;  %v1799_v39 = vpack.c.bf16 %v467_v31, %v463_v29  ;;  %v499_v13 = vld [vmem:[%s4434_s1 + $0xea8] sm:$0xff]  ;;  %v253_v27 = vld [vmem:[%s4434_s1 + $0x6f8] sm:$0xff] }
  0x79   :  { %1762 = vmatpush1.bf16.msra.mxu0 %v1761_v46  ;;  %v435_v46 = vld [vmem:[%s4434_s1 + $0xca8] sm:$0xff] }
  0x7a   :  { %1764 = vmatprep.subr.bf16.mxu0 %v1763_v50  ;;  %v180_v50 = vld [vmem:[%s4434_s1 + $0x4b0] sm:$0xff]  ;;  %v503_v28 = vld [vmem:[%s4434_s1 + $0xec8] sm:$0xff] }
  0x7b   :  { %1894 = vmatpush1.bf16.msra.mxu1 %v1893_v56  ;;  %v1913_v56 = vpack.c.bf16 %v180_v50, %v176_v49  ;;  %v220_v49 = vld [vmem:[%s4434_s1 + $0x5f0] sm:$0xff]  ;;  %v507_v29 = vld [vmem:[%s4434_s1 + $0xee8] sm:$0xff] }
  0x7c   :  { %1896 = vmatprep.subr.bf16.mxu1 %v1895_v58  ;;  %v1915_v58 = vpack.c.bf16 %v189_v53, %v185_v52  ;;  %v229_v52 = vld [vmem:[%s4434_s1 + $0x638] sm:$0xff]  ;;  %v479_v53 = vld [vmem:[%s4434_s1 + $0xe08] sm:$0xff] }
  0x7d   :  { %1766 = vmatpush1.bf16.msra.mxu0 %v1765_v57 }
  0x7e   :  { %1768 = vmatprep.subr.bf16.mxu0 %v1767_v62  ;;  %v442_v62 = vld [vmem:[%s4434_s1 + $0xce0] sm:$0xff] }
  0x7f   :  { %1898 = vmatpush1.bf16.msra.mxu1 %v1897_v4  ;;  %v1789_v4 = vpack.c.bf16 %v442_v62, %v438_v59  ;;  %v224_v59 = vld [vmem:[%s4434_s1 + $0x610] sm:$0xff]  ;;  %v233_v62 = vld [vmem:[%s4434_s1 + $0x658] sm:$0xff] }
  0x80   :  { %1900 = vmatprep.subr.bf16.mxu1 %v1899_v6  ;;  %v446_v6 = vld [vmem:[%s4434_s1 + $0xd00] sm:$0xff]  ;;  %v1937_v2 = vpack.c.bf16 %v228_v60, %v224_v59  ;;  %v268_v59 = vld [vmem:[%s4434_s1 + $0x770] sm:$0xff] }
  0x81   :  { %1770 = vmatpush1.bf16.msra.mxu0 %v1769_v5  ;;  %v1919_v5 = vpack.c.bf16 %v197_v0, %v193_v63  ;;  %v237_v63 = vld [vmem:[%s4434_s1 + $0x678] sm:$0xff]  ;;  %v487_v0 = vld [vmem:[%s4434_s1 + $0xe48] sm:$0xff] }
  0x82   :  { %1772 = vmatprep.subr.bf16.mxu0 %v1771_v10  ;;  %v450_v10 = vld [vmem:[%s4434_s1 + $0xd20] sm:$0xff]  ;;  %v1811_v8 = vpack.c.bf16 %v491_v1, %v487_v0  ;;  %v531_v0 = vld [vmem:[%s4434_s1 + $0xfa8] sm:$0xff] }
  0x83   :  { %1902 = vmatpush1.bf16.msra.mxu1 %v1901_v17  ;;  %v1793_v17 = vpack.c.bf16 %v450_v10, %v446_v6  ;;  %v232_v6 = vld [vmem:[%s4434_s1 + $0x650] sm:$0xff]  ;;  %v241_v10 = vld [vmem:[%s4434_s1 + $0x698] sm:$0xff] }
  0x84   :  { %1904 = vmatprep.subr.bf16.mxu1 %v1903_v21  ;;  %v454_v21 = vld [vmem:[%s4434_s1 + $0xd40] sm:$0xff]  ;;  %v1941_v14 = vpack.c.bf16 %v236_v7, %v232_v6  ;;  %v276_v6 = vld [vmem:[%s4434_s1 + $0x7b0] sm:$0xff] }
  0x85   :  { %1774 = vmatpush1.bf16.msra.mxu0 %v1773_v18  ;;  %v1923_v18 = vpack.c.bf16 %v205_v12, %v201_v11  ;;  %v245_v11 = vld [vmem:[%s4434_s1 + $0x6b8] sm:$0xff]  ;;  %v495_v12 = vld [vmem:[%s4434_s1 + $0xe88] sm:$0xff] }
  0x86   :  { %1776 = vmatprep.subr.bf16.mxu0 %v1775_v26  ;;  %925 = vmatmul.mubr.f32.vlgmr.msra.gmra.mrb[2].mxu1 %v2619_v16  ;;  %v430_v16 = vld [vmem:[%s4434_s1 + $0xc80] sm:$0xff]  ;;  %v1815_v24 = vpack.c.bf16 %v499_v13, %v495_v12  ;;  %v539_v12 = vld [vmem:[%s4434_s1 + $0xfe8] sm:$0xff] }
  0x87   :  { %1906 = vmatpush1.bf16.msra.mxu1 %v1905_v34  ;;  %995 = vmatprep.mubr.f32.mxu1 %v2638_v22  ;;  %v1785_v57 = vpack.c.bf16 %v434_v51, %v430_v16  ;;  %v1787_v22 = vpack.c.bf16 %v443_v55, %v439_v54  ;;  %v458_v26 = vld [vmem:[%s4434_s1 + $0xd60] sm:$0xff]  ;;  %v216_v16 = vld [vmem:[%s4434_s1 + $0x5d0] sm:$0xff]  ;;  %v225_v51 = vld [vmem:[%s4434_s1 + $0x618] sm:$0xff] }
  0x88   :  { %783 = vmatmul.mubr.f32.vlgmr.msra.gmra.mrb[0].mxu0 %v2906_v30  ;;  %1908 = vmatprep.subr.bf16.mxu1 %v1907_v37  ;;  %v1783_v30 = vpack.c.bf16 %v435_v46, %v431_v45  ;;  %v1797_v34 = vpack.c.bf16 %v458_v26, %v454_v21  ;;  %v208_v37 = vld [vmem:[%s4434_s1 + $0x590] sm:$0xff]  ;;  %v475_v45 = vld [vmem:[%s4434_s1 + $0xde8] sm:$0xff]  ;;  %v1933_v55 = vpack.c.bf16 %v220_v49, %v216_v16  ;;  %v249_v26 = vld [vmem:[%s4434_s1 + $0x6d8] sm:$0xff] }
  0x89   :  { %1778 = vmatpush1.bf16.msra.mxu0 %v1777_v36  ;;  %853 = vmatprep.mubr.f32.mxu0 %v3184_v44  ;;  %v462_v36 = vld [vmem:[%s4434_s1 + $0xd80] sm:$0xff]  ;;  %v1929_v46 = vpack.c.bf16 %v212_v38, %v208_v37  ;;  %v1803_v50 = vpack.c.bf16 %v475_v45, %v471_v43  ;;  %v483_v54 = vld [vmem:[%s4434_s1 + $0xe28] sm:$0xff]  ;;  %v240_v21 = vld [vmem:[%s4434_s1 + $0x690] sm:$0xff]  ;;  %v1819_v38 = vpack.c.bf16 %v507_v29, %v503_v28 }
  0x8a   :  { %1780 = vmatprep.subr.bf16.mxu0 %v1779_v40  ;;  %v466_v40 = vld [vmem:[%s4434_s1 + $0xda0] sm:$0xff]  ;;  %v1807_v61 = vpack.c.bf16 %v483_v54, %v479_v53  ;;  %v1945_v31 = vpack.c.bf16 %v244_v23, %v240_v21  ;;  %v252_v37 = vld [vmem:[%s4434_s1 + $0x6f0] sm:$0xff]  ;;  %v515_v43 = vld [vmem:[%s4434_s1 + $0xf28] sm:$0xff] }
  0x8b   :  { %1910 = vmatpush1.bf16.msra.mxu1 %v1909_v47  ;;  %v1801_v47 = vpack.c.bf16 %v466_v40, %v462_v36  ;;  %v248_v36 = vld [vmem:[%s4434_s1 + $0x6d0] sm:$0xff]  ;;  %v257_v40 = vld [vmem:[%s4434_s1 + $0x718] sm:$0xff]  ;;  %v523_v53 = vld [vmem:[%s4434_s1 + $0xf68] sm:$0xff] }
  0x8c   :  { %1912 = vmatprep.subr.bf16.mxu1 %v1911_v19  ;;  %v470_v19 = vld [vmem:[%s4434_s1 + $0xdc0] sm:$0xff]  ;;  %v1949_v45 = vpack.c.bf16 %v252_v37, %v248_v36  ;;  %v260_v16 = vld [vmem:[%s4434_s1 + $0x730] sm:$0xff] }
  0x8d   :  { %1782 = vmatpush1.bf16.msra.mxu0 %v1781_v48  ;;  %v1931_v48 = vpack.c.bf16 %v221_v42, %v217_v41  ;;  %v261_v41 = vld [vmem:[%s4434_s1 + $0x738] sm:$0xff]  ;;  %v511_v42 = vld [vmem:[%s4434_s1 + $0xf08] sm:$0xff]  ;;  %v284_v21 = vld [vmem:[%s4434_s1 + $0x7f0] sm:$0xff] }
  0x8e   :  { %1784 = vmatprep.subr.bf16.mxu0 %v1783_v30  ;;  %v474_v30 = vld [vmem:[%s4434_s1 + $0xde0] sm:$0xff]  ;;  %v1823_v49 = vpack.c.bf16 %v515_v43, %v511_v42  ;;  %v2279_v42 = vld [vmem:[%s4435_s0 + $0x8] sm:$0xff]  ;;  %v304_v43 = vld [vmem:[%s4434_s1 + $0x890] sm:$0xff] }
  0x8f   :  { %1914 = vmatpush1.bf16.msra.mxu1 %v1913_v56  ;;  %v1805_v56 = vpack.c.bf16 %v474_v30, %v470_v19  ;;  %v256_v19 = vld [vmem:[%s4434_s1 + $0x710] sm:$0xff]  ;;  %v265_v30 = vld [vmem:[%s4434_s1 + $0x758] sm:$0xff] }
  0x90   :  { %1916 = vmatprep.subr.bf16.mxu1 %v1915_v58  ;;  %v478_v58 = vld [vmem:[%s4434_s1 + $0xe00] sm:$0xff]  ;;  %v1953_v54 = vpack.c.bf16 %v260_v16, %v256_v19  ;;  %v1149_v19 = vld [vmem:[%s4436_s3 + $0x8] sm:$0xff]  ;;  %v1151_v16 = vld [vmem:[%s4436_s3 + $0x18] sm:$0xff] }
  0x91   :  { %1786 = vmatpush1.bf16.msra.mxu0 %v1785_v57  ;;  %v1935_v57 = vpack.c.bf16 %v229_v52, %v225_v51  ;;  %v269_v51 = vld [vmem:[%s4434_s1 + $0x778] sm:$0xff]  ;;  %v519_v52 = vld [vmem:[%s4434_s1 + $0xf48] sm:$0xff] }
  0x92   :  { %1788 = vmatprep.subr.bf16.mxu0 %v1787_v22  ;;  %v482_v22 = vld [vmem:[%s4434_s1 + $0xe20] sm:$0xff]  ;;  %v1827_v60 = vpack.c.bf16 %v523_v53, %v519_v52  ;;  %v1155_v52 = vld [vmem:[%s4436_s3 + $0x38] sm:$0xff] }
  0x93   :  { %1918 = vmatpush1.bf16.msra.mxu1 %v1917_v3  ;;  %v1809_v3 = vpack.c.bf16 %v482_v22, %v478_v58  ;;  %v264_v58 = vld [vmem:[%s4434_s1 + $0x750] sm:$0xff]  ;;  %v273_v22 = vld [vmem:[%s4434_s1 + $0x798] sm:$0xff] }
  0x94   :  { %1920 = vmatprep.subr.bf16.mxu1 %v1919_v5  ;;  %v486_v5 = vld [vmem:[%s4434_s1 + $0xe40] sm:$0xff]  ;;  %v1957_v1 = vpack.c.bf16 %v268_v59, %v264_v58  ;;  %v312_v59 = vld [vmem:[%s4434_s1 + $0x8d0] sm:$0xff] }
  0x95   :  { %1790 = vmatpush1.bf16.msra.mxu0 %v1789_v4  ;;  %v1939_v4 = vpack.c.bf16 %v237_v63, %v233_v62  ;;  %v277_v62 = vld [vmem:[%s4434_s1 + $0x7b8] sm:$0xff]  ;;  %v527_v63 = vld [vmem:[%s4434_s1 + $0xf88] sm:$0xff] }
  0x96   :  { %1792 = vmatprep.subr.bf16.mxu0 %v1791_v9  ;;  %v490_v9 = vld [vmem:[%s4434_s1 + $0xe60] sm:$0xff]  ;;  %v1831_v7 = vpack.c.bf16 %v531_v0, %v527_v63 }
  0x97   :  { %1922 = vmatpush1.bf16.msra.mxu1 %v1921_v15  ;;  %v1813_v15 = vpack.c.bf16 %v490_v9, %v486_v5  ;;  %v272_v5 = vld [vmem:[%s4434_s1 + $0x790] sm:$0xff]  ;;  %v281_v9 = vld [vmem:[%s4434_s1 + $0x7d8] sm:$0xff]  ;;  %v1156_v0 = vld [vmem:[%s4436_s3 + $0x40] sm:$0xff] }
  0x98   :  { %1924 = vmatprep.subr.bf16.mxu1 %v1923_v18  ;;  %v494_v18 = vld [vmem:[%s4434_s1 + $0xe80] sm:$0xff]  ;;  %v1961_v13 = vpack.c.bf16 %v276_v6, %v272_v5  ;;  %v320_v6 = vld [vmem:[%s4434_s1 + $0x910] sm:$0xff] }
  0x99   :  { %1794 = vmatpush1.bf16.msra.mxu0 %v1793_v17  ;;  %v1943_v17 = vpack.c.bf16 %v245_v11, %v241_v10  ;;  %v285_v10 = vld [vmem:[%s4434_s1 + $0x7f8] sm:$0xff]  ;;  %v535_v11 = vld [vmem:[%s4434_s1 + $0xfc8] sm:$0xff] }
  0x9a   :  { %1796 = vmatprep.subr.bf16.mxu0 %v1795_v25  ;;  %v498_v25 = vld [vmem:[%s4434_s1 + $0xea0] sm:$0xff]  ;;  %v1835_v23 = vpack.c.bf16 %v539_v12, %v535_v11 }
  0x9b   :  { %1926 = vmatpush1.bf16.msra.mxu1 %v1925_v32  ;;  %v1817_v32 = vpack.c.bf16 %v498_v25, %v494_v18  ;;  %v280_v18 = vld [vmem:[%s4434_s1 + $0x7d0] sm:$0xff]  ;;  %v289_v25 = vld [vmem:[%s4434_s1 + $0x818] sm:$0xff]  ;;  %v1160_v12 = vld [vmem:[%s4436_s3 + $0x60] sm:$0xff] }
  0x9c   :  { %1928 = vmatprep.subr.bf16.mxu1 %v1927_v35  ;;  %v502_v35 = vld [vmem:[%s4434_s1 + $0xec0] sm:$0xff] }
  0x9d   :  { %1798 = vmatpush1.bf16.msra.mxu0 %v1797_v34  ;;  %v1947_v34 = vpack.c.bf16 %v253_v27, %v249_v26  ;;  %v293_v26 = vld [vmem:[%s4434_s1 + $0x838] sm:$0xff]  ;;  %v1965_v27 = vpack.c.bf16 %v284_v21, %v280_v18  ;;  %v328_v21 = vld [vmem:[%s4434_s1 + $0x950] sm:$0xff] }
  0x9e   :  { %1800 = vmatprep.subr.bf16.mxu0 %v1799_v39  ;;  %v506_v39 = vld [vmem:[%s4434_s1 + $0xee0] sm:$0xff]  ;;  %v1967_v29 = vpack.c.bf16 %v293_v26, %v289_v25  ;;  %v337_v26 = vld [vmem:[%s4434_s1 + $0x998] sm:$0xff] }
  0x9f   :  { %1930 = vmatpush1.bf16.msra.mxu1 %v1929_v46  ;;  %v1821_v46 = vpack.c.bf16 %v506_v39, %v502_v35  ;;  %v301_v35 = vld [vmem:[%s4434_s1 + $0x878] sm:$0xff]  ;;  %v300_v39 = vld [vmem:[%s4434_s1 + $0x870] sm:$0xff] }
  0xa0   :  { %1932 = vmatprep.subr.bf16.mxu1 %v1931_v48  ;;  %v510_v48 = vld [vmem:[%s4434_s1 + $0xf00] sm:$0xff] }
  0xa1   :  { %1802 = vmatpush1.bf16.msra.mxu0 %v1801_v47  ;;  %v1951_v47 = vpack.c.bf16 %v261_v41, %v257_v40  ;;  %v305_v40 = vld [vmem:[%s4434_s1 + $0x898] sm:$0xff] }
  0xa2   :  { %1804 = vmatprep.subr.bf16.mxu0 %v1803_v50  ;;  %v514_v50 = vld [vmem:[%s4434_s1 + $0xf20] sm:$0xff]  ;;  %v309_v41 = vld [vmem:[%s4434_s1 + $0x8b8] sm:$0xff] }
  0xa3   :  { %1934 = vmatpush1.bf16.msra.mxu1 %v1933_v55  ;;  %v1825_v55 = vpack.c.bf16 %v514_v50, %v510_v48  ;;  %v317_v48 = vld [vmem:[%s4434_s1 + $0x8f8] sm:$0xff]  ;;  %v2095_v50 = vpack.c.bf16 %v1151_v16, %v1149_v19  ;;  %v344_v19 = vld [vmem:[%s4434_s1 + $0x9d0] sm:$0xff] }
  0xa4   :  { %1936 = vmatprep.subr.bf16.mxu1 %v1935_v57  ;;  %v518_v57 = vld [vmem:[%s4434_s1 + $0xf40] sm:$0xff]  ;;  %v348_v16 = vld [vmem:[%s4434_s1 + $0x9f0] sm:$0xff] }
  0xa5   :  { %1806 = vmatpush1.bf16.msra.mxu0 %v1805_v56  ;;  %v1955_v56 = vpack.c.bf16 %v269_v51, %v265_v30  ;;  %v1150_v30 = vld [vmem:[%s4436_s3 + $0x10] sm:$0xff]  ;;  %v1153_v51 = vld [vmem:[%s4436_s3 + $0x28] sm:$0xff] }
  0xa6   :  { %1808 = vmatprep.subr.bf16.mxu0 %v1807_v61  ;;  %v522_v61 = vld [vmem:[%s4434_s1 + $0xf60] sm:$0xff] }
  0xa7   :  { %1938 = vmatpush1.bf16.msra.mxu1 %v1937_v2  ;;  %v1829_v2 = vpack.c.bf16 %v522_v61, %v518_v57  ;;  %v1159_v57 = vld [vmem:[%s4436_s3 + $0x58] sm:$0xff] }
  0xa8   :  { %1940 = vmatprep.subr.bf16.mxu1 %v1939_v4  ;;  %v526_v4 = vld [vmem:[%s4434_s1 + $0xf80] sm:$0xff] }
  0xa9   :  { %1810 = vmatpush1.bf16.msra.mxu0 %v1809_v3  ;;  %v1959_v3 = vpack.c.bf16 %v277_v62, %v273_v22  ;;  %v321_v62 = vld [vmem:[%s4434_s1 + $0x918] sm:$0xff] }
  0xaa   :  { %1812 = vmatprep.subr.bf16.mxu0 %v1811_v8  ;;  %v530_v8 = vld [vmem:[%s4434_s1 + $0xfa0] sm:$0xff] }
  0xab   :  { %1942 = vmatpush1.bf16.msra.mxu1 %v1941_v14  ;;  %v1833_v14 = vpack.c.bf16 %v530_v8, %v526_v4  ;;  %v1163_v4 = vld [vmem:[%s4436_s3 + $0x78] sm:$0xff] }
  0xac   :  { %1944 = vmatprep.subr.bf16.mxu1 %v1943_v17  ;;  %v534_v17 = vld [vmem:[%s4434_s1 + $0xfc0] sm:$0xff] }
  0xad   :  { %1814 = vmatpush1.bf16.msra.mxu0 %v1813_v15  ;;  %v1963_v15 = vpack.c.bf16 %v285_v10, %v281_v9  ;;  %v329_v10 = vld [vmem:[%s4434_s1 + $0x958] sm:$0xff] }
  0xae   :  { %1816 = vmatprep.subr.bf16.mxu0 %v1815_v24  ;;  %v538_v24 = vld [vmem:[%s4434_s1 + $0xfe0] sm:$0xff] }
  0xaf   :  { %1946 = vmatpush1.bf16.msra.mxu1 %v1945_v31  ;;  %v1837_v28 = vpack.c.bf16 %v538_v24, %v534_v17  ;;  %v288_v31 = vld [vmem:[%s4434_s1 + $0x810] sm:$0xff]  ;;  %v1167_v17 = vld [vmem:[%s4436_s3 + $0x98] sm:$0xff] }
  0xb0   :  { %1948 = vmatprep.subr.bf16.mxu1 %v1947_v34  ;;  %v297_v34 = vld [vmem:[%s4434_s1 + $0x858] sm:$0xff] }
  0xb1   :  { %1818 = vmatpush1.bf16.msra.mxu0 %v1817_v32  ;;  %v292_v32 = vld [vmem:[%s4434_s1 + $0x830] sm:$0xff]  ;;  %v1971_v37 = vpack.c.bf16 %v301_v35, %v297_v34  ;;  %v1171_v34 = vld [vmem:[%s4436_s3 + $0xb8] sm:$0xff] }
  0xb2   :  { %1820 = vmatprep.subr.bf16.mxu0 %v1819_v38  ;;  %v1969_v36 = vpack.c.bf16 %v292_v32, %v288_v31  ;;  %v296_v38 = vld [vmem:[%s4434_s1 + $0x850] sm:$0xff]  ;;  %v341_v31 = vld [vmem:[%s4434_s1 + $0x9b8] sm:$0xff]  ;;  %v1169_v32 = vld [vmem:[%s4436_s3 + $0xa8] sm:$0xff] }
  0xb3   :  { %1950 = vmatpush1.bf16.msra.mxu1 %v1949_v45  ;;  %v308_v45 = vld [vmem:[%s4434_s1 + $0x8b0] sm:$0xff] }
  0xb4   :  { %1952 = vmatprep.subr.bf16.mxu1 %v1951_v47  ;;  %v313_v47 = vld [vmem:[%s4434_s1 + $0x8d8] sm:$0xff]  ;;  %v1977_v58 = vpack.c.bf16 %v308_v45, %v304_v43  ;;  %v1170_v43 = vld [vmem:[%s4436_s3 + $0xb0] sm:$0xff] }
  0xb5   :  { %1822 = vmatpush1.bf16.msra.mxu0 %v1821_v46  ;;  %v1973_v46 = vpack.c.bf16 %v300_v39, %v296_v38  ;;  %v1979_v22 = vpack.c.bf16 %v317_v48, %v313_v47  ;;  %v1991_v39 = vpack.c.bf16 %v341_v31, %v337_v26  ;;  %v349_v45 = vld [vmem:[%s4434_s1 + $0x9f8] sm:$0xff]  ;;  %v1186_v26 = vld [vmem:[%s4436_s3 + $0x130] sm:$0xff] }
  0xb6   :  { %1824 = vmatprep.subr.bf16.mxu0 %v1823_v49  ;;  %v1975_v49 = vpack.c.bf16 %v309_v41, %v305_v40  ;;  %v345_v40 = vld [vmem:[%s4434_s1 + $0x9d8] sm:$0xff]  ;;  %v2115_v41 = vpack.c.bf16 %v1171_v34, %v1169_v32  ;;  %v376_v32 = vld [vmem:[%s4434_s1 + $0xad0] sm:$0xff] }
  0xb7   :  { %1954 = vmatpush1.bf16.msra.mxu1 %v1953_v54  ;;  %v2099_v54 = vpack.c.bf16 %v1155_v52, %v1153_v51  ;;  %v1175_v47 = vld [vmem:[%s4436_s3 + $0xd8] sm:$0xff]  ;;  %v1172_v51 = vld [vmem:[%s4436_s3 + $0xc0] sm:$0xff]  ;;  %v1174_v52 = vld [vmem:[%s4436_s3 + $0xd0] sm:$0xff] }
  0xb8   :  { %1956 = vmatprep.subr.bf16.mxu1 %v1955_v56  ;;  %v1157_v56 = vld [vmem:[%s4436_s3 + $0x48] sm:$0xff]  ;;  %v380_v34 = vld [vmem:[%s4434_s1 + $0xaf0] sm:$0xff] }
  0xb9   :  { %1826 = vmatpush1.bf16.msra.mxu0 %v1825_v55  ;;  %v1152_v55 = vld [vmem:[%s4436_s3 + $0x20] sm:$0xff]  ;;  %v2103_v63 = vpack.c.bf16 %v1159_v57, %v1157_v56  ;;  %v352_v56 = vld [vmem:[%s4434_s1 + $0xa10] sm:$0xff] }
  0xba   :  { %1828 = vmatprep.subr.bf16.mxu0 %v1827_v60  ;;  %v316_v60 = vld [vmem:[%s4434_s1 + $0x8f0] sm:$0xff] }
  0xbb   :  { %1958 = vmatpush1.bf16.msra.mxu1 %v1957_v1  ;;  %v1158_v1 = vld [vmem:[%s4436_s3 + $0x50] sm:$0xff]  ;;  %v1981_v5 = vpack.c.bf16 %v316_v60, %v312_v59  ;;  %v361_v60 = vld [vmem:[%s4434_s1 + $0xa58] sm:$0xff] }
  0xbc   :  { %1960 = vmatprep.subr.bf16.mxu1 %v1959_v3  ;;  %v1161_v3 = vld [vmem:[%s4436_s3 + $0x68] sm:$0xff]  ;;  %v2105_v8 = vpack.c.bf16 %v1158_v1, %v1156_v0  ;;  %v356_v57 = vld [vmem:[%s4434_s1 + $0xa30] sm:$0xff]  ;;  %v1183_v1 = vld [vmem:[%s4436_s3 + $0x118] sm:$0xff] }
  0xbd   :  { %1830 = vmatpush1.bf16.msra.mxu0 %v1829_v2  ;;  %v325_v2 = vld [vmem:[%s4434_s1 + $0x938] sm:$0xff]  ;;  %v2107_v11 = vpack.c.bf16 %v1163_v4, %v1161_v3  ;;  %v1181_v0 = vld [vmem:[%s4436_s3 + $0x108] sm:$0xff]  ;;  %v360_v3 = vld [vmem:[%s4434_s1 + $0xa50] sm:$0xff] }
  0xbe   :  { %1832 = vmatprep.subr.bf16.mxu0 %v1831_v7  ;;  %v324_v7 = vld [vmem:[%s4434_s1 + $0x930] sm:$0xff]  ;;  %v1983_v9 = vpack.c.bf16 %v325_v2, %v321_v62  ;;  %v2001_v2 = vpack.c.bf16 %v356_v57, %v352_v56  ;;  %v401_v57 = vld [vmem:[%s4434_s1 + $0xb98] sm:$0xff] }
  0xbf   :  { %1962 = vmatpush1.bf16.msra.mxu1 %v1961_v13  ;;  %v1162_v13 = vld [vmem:[%s4436_s3 + $0x70] sm:$0xff]  ;;  %v1985_v18 = vpack.c.bf16 %v324_v7, %v320_v6  ;;  %v369_v7 = vld [vmem:[%s4434_s1 + $0xa98] sm:$0xff] }
  0xc0   :  { %1964 = vmatprep.subr.bf16.mxu1 %v1963_v15  ;;  %v1165_v15 = vld [vmem:[%s4436_s3 + $0x88] sm:$0xff]  ;;  %v2109_v24 = vpack.c.bf16 %v1162_v13, %v1160_v12  ;;  %v1178_v62 = vld [vmem:[%s4436_s3 + $0xf0] sm:$0xff]  ;;  %v1187_v13 = vld [vmem:[%s4436_s3 + $0x138] sm:$0xff] }
  0xc1   :  { %1834 = vmatpush1.bf16.msra.mxu0 %v1833_v14  ;;  %v333_v14 = vld [vmem:[%s4434_s1 + $0x978] sm:$0xff]  ;;  %v364_v4 = vld [vmem:[%s4434_s1 + $0xa70] sm:$0xff]  ;;  %v1185_v12 = vld [vmem:[%s4436_s3 + $0x128] sm:$0xff] }
  0xc2   :  { %1836 = vmatprep.subr.bf16.mxu0 %v1835_v23  ;;  %v332_v23 = vld [vmem:[%s4434_s1 + $0x970] sm:$0xff]  ;;  %v1987_v25 = vpack.c.bf16 %v333_v14, %v329_v10  ;;  %v2005_v14 = vpack.c.bf16 %v364_v4, %v360_v3  ;;  %v409_v4 = vld [vmem:[%s4434_s1 + $0xbd8] sm:$0xff] }
  0xc3   :  { %1966 = vmatpush1.bf16.msra.mxu1 %v1965_v27  ;;  %v2111_v27 = vpack.c.bf16 %v1167_v17, %v1165_v15  ;;  %v1989_v35 = vpack.c.bf16 %v332_v23, %v328_v21  ;;  %v1182_v10 = vld [vmem:[%s4436_s3 + $0x110] sm:$0xff]  ;;  %v377_v23 = vld [vmem:[%s4434_s1 + $0xad8] sm:$0xff] }
  0xc4   :  { %1968 = vmatprep.subr.bf16.mxu1 %v1967_v29  ;;  %v1166_v29 = vld [vmem:[%s4436_s3 + $0x90] sm:$0xff] }
  0xc5   :  { %1838 = vmatpush1.bf16.msra.mxu0 %v1837_v28  ;;  %v1164_v28 = vld [vmem:[%s4436_s3 + $0x80] sm:$0xff]  ;;  %v368_v15 = vld [vmem:[%s4434_s1 + $0xa90] sm:$0xff] }
  0xc6   :  { %996 = vmatmul.mubr.f32.vlgmr.msra.gmra.mrb[2].mxu1 %v2279_v42  ;;  %2096 = vmatprep.subr.bf16.mxu0 %v2095_v50  ;;  %v2113_v38 = vpack.c.bf16 %v1166_v29, %v1164_v28  ;;  %v1168_v42 = vld [vmem:[%s4436_s3 + $0xa0] sm:$0xff]  ;;  %v353_v50 = vld [vmem:[%s4434_s1 + $0xa18] sm:$0xff]  ;;  %v372_v17 = vld [vmem:[%s4434_s1 + $0xab0] sm:$0xff] }
  0xc7   :  { %1970 = vmatpush1.bf16.msra.mxu1 %v1969_v36  ;;  %1066 = vmatprep.mubr.f32.mxu1 %v2916_v33  ;;  %v1154_v33 = vld [vmem:[%s4436_s3 + $0x30] sm:$0xff]  ;;  %v1189_v28 = vld [vmem:[%s4436_s3 + $0x148] sm:$0xff]  ;;  %v1191_v29 = vld [vmem:[%s4436_s3 + $0x158] sm:$0xff]  ;;  %v2009_v31 = vpack.c.bf16 %v372_v17, %v368_v15 }
  0xc8   :  { %854 = vmatmul.mubr.f32.vlgmr.msra.gmra.mrb[0].mxu0 %v3171_v20  ;;  %v1148_v20 = vld [vmem:[%s4436_s3] sm:$0xff]  ;;  %1972 = vmatprep.subr.bf16.mxu1 %v1971_v37  ;;  %v2101_v61 = vpack.c.bf16 %v1154_v33, %v1152_v55  ;;  %v336_v36 = vld [vmem:[%s4434_s1 + $0x990] sm:$0xff]  ;;  %v1179_v55 = vld [vmem:[%s4436_s3 + $0xf8] sm:$0xff]  ;;  %v1997_v33 = vpack.c.bf16 %v348_v16, %v344_v19 }
  0xc9   :  { %v2097_v53 = vpack.c.bf16 %v1150_v30, %v1148_v20  ;;  %v340_v37 = vld [vmem:[%s4434_s1 + $0x9b0] sm:$0xff]  ;;  %v2117_v20 = vpack.c.bf16 %v1170_v43, %v1168_v42  ;;  %v1193_v42 = vld [vmem:[%s4436_s3 + $0x168] sm:$0xff]  ;;  %v1195_v43 = vld [vmem:[%s4436_s3 + $0x178] sm:$0xff] }
  0xca   :  { %v1993_v48 = vpack.c.bf16 %v340_v37, %v336_v36  ;;  %v385_v37 = vld [vmem:[%s4434_s1 + $0xb18] sm:$0xff]  ;;  %v412_v15 = vld [vmem:[%s4434_s1 + $0xbf0] sm:$0xff] }
  0xcb   :  { %1974 = vmatpush1.bf16.msra.mxu1 %v1973_v46  ;;  %2098 = vmatpush1.bf16.msra.mxu0 %v2097_v53  ;;  %v1173_v46 = vld [vmem:[%s4436_s3 + $0xc8] sm:$0xff]  ;;  %v357_v53 = vld [vmem:[%s4434_s1 + $0xa38] sm:$0xff] }
  0xcc   :  { %1976 = vmatprep.subr.bf16.mxu1 %v1975_v49  ;;  %2100 = vmatprep.subr.bf16.mxu0 %v2099_v54  ;;  %v1995_v49 = vpack.c.bf16 %v349_v45, %v345_v40  ;;  %v2119_v30 = vpack.c.bf16 %v1175_v47, %v1173_v46  ;;  %v1177_v54 = vld [vmem:[%s4436_s3 + $0xe8] sm:$0xff]  ;;  %v1999_v59 = vpack.c.bf16 %v357_v53, %v353_v50  ;;  %v1190_v40 = vld [vmem:[%s4436_s3 + $0x150] sm:$0xff]  ;;  %v393_v16 = vld [vmem:[%s4434_s1 + $0xb58] sm:$0xff] }
  0xcd   :  { %v2013_v45 = vpack.c.bf16 %v380_v34, %v376_v32  ;;  %v384_v46 = vld [vmem:[%s4434_s1 + $0xb10] sm:$0xff] }
  0xce   :  { %v388_v47 = vld [vmem:[%s4434_s1 + $0xb30] sm:$0xff] }
  0xcf   :  { %1978 = vmatpush1.bf16.msra.mxu1 %v1977_v58  ;;  %2102 = vmatpush1.bf16.msra.mxu0 %v2101_v61  ;;  %v2121_v58 = vpack.c.bf16 %v1174_v52, %v1172_v51  ;;  %v2123_v61 = vpack.c.bf16 %v1179_v55, %v1177_v54  ;;  %v1194_v50 = vld [vmem:[%s4436_s3 + $0x170] sm:$0xff]  ;;  %v1197_v51 = vld [vmem:[%s4436_s3 + $0x188] sm:$0xff]  ;;  %v1199_v52 = vld [vmem:[%s4436_s3 + $0x198] sm:$0xff]  ;;  %v2017_v53 = vpack.c.bf16 %v388_v47, %v384_v46 }
  0xd0   :  { %1980 = vmatprep.subr.bf16.mxu1 %v1979_v22  ;;  %2104 = vmatprep.subr.bf16.mxu0 %v2103_v63  ;;  %v1176_v22 = vld [vmem:[%s4436_s3 + $0xe0] sm:$0xff]  ;;  %v365_v63 = vld [vmem:[%s4434_s1 + $0xa78] sm:$0xff]  ;;  %v392_v54 = vld [vmem:[%s4434_s1 + $0xb50] sm:$0xff] }
  0xd1   :  { %v2003_v6 = vpack.c.bf16 %v365_v63, %v361_v60  ;;  %v396_v55 = vld [vmem:[%s4434_s1 + $0xb70] sm:$0xff] }
  0xd2   :  { %v1198_v60 = vld [vmem:[%s4436_s3 + $0x190] sm:$0xff]  ;;  %v2021_v63 = vpack.c.bf16 %v396_v55, %v392_v54 }
  0xd3   :  { %1982 = vmatpush1.bf16.msra.mxu1 %v1981_v5  ;;  %2106 = vmatpush1.bf16.msra.mxu0 %v2105_v8  ;;  %v2125_v5 = vpack.c.bf16 %v1178_v62, %v1176_v22  ;;  %v2127_v8 = vpack.c.bf16 %v1183_v1, %v1181_v0  ;;  %v1201_v22 = vld [vmem:[%s4436_s3 + $0x1a8] sm:$0xff]  ;;  %v1203_v62 = vld [vmem:[%s4436_s3 + $0x1b8] sm:$0xff]  ;;  %v400_v0 = vld [vmem:[%s4434_s1 + $0xb90] sm:$0xff] }
  0xd4   :  { %1984 = vmatprep.subr.bf16.mxu1 %v1983_v9  ;;  %2108 = vmatprep.subr.bf16.mxu0 %v2107_v11  ;;  %v1180_v9 = vld [vmem:[%s4436_s3 + $0x100] sm:$0xff]  ;;  %v373_v11 = vld [vmem:[%s4434_s1 + $0xab8] sm:$0xff]  ;;  %v404_v1 = vld [vmem:[%s4434_s1 + $0xbb0] sm:$0xff] }
  0xd5   :  { %v2007_v21 = vpack.c.bf16 %v373_v11, %v369_v7  ;;  %v1202_v7 = vld [vmem:[%s4436_s3 + $0x1b0] sm:$0xff]  ;;  %v2025_v11 = vpack.c.bf16 %v404_v1, %v400_v0  ;;  %v473_v0 = vld [vmem:[%s4434_s1 + $0xdd8] sm:$0xff] }
  0xd6   :  { %v424_v32 = vld [vmem:[%s4434_s1 + $0xc50] sm:$0xff]  ;;  %v477_v1 = vld [vmem:[%s4434_s1 + $0xdf8] sm:$0xff] }
  0xd7   :  { %1986 = vmatpush1.bf16.msra.mxu1 %v1985_v18  ;;  %2110 = vmatpush1.bf16.msra.mxu0 %v2109_v24  ;;  %v2129_v18 = vpack.c.bf16 %v1182_v10, %v1180_v9  ;;  %v2131_v24 = vpack.c.bf16 %v1187_v13, %v1185_v12  ;;  %v1205_v9 = vld [vmem:[%s4436_s3 + $0x1c8] sm:$0xff]  ;;  %v1207_v10 = vld [vmem:[%s4436_s3 + $0x1d8] sm:$0xff]  ;;  %v428_v34 = vld [vmem:[%s4434_s1 + $0xc70] sm:$0xff] }
  0xd8   :  { %1988 = vmatprep.subr.bf16.mxu1 %v1987_v25  ;;  %2112 = vmatprep.subr.bf16.mxu0 %v2111_v27  ;;  %v1184_v25 = vld [vmem:[%s4436_s3 + $0x120] sm:$0xff]  ;;  %v381_v27 = vld [vmem:[%s4434_s1 + $0xaf8] sm:$0xff]  ;;  %v2151_v17 = vpack.c.bf16 %v1207_v10, %v1205_v9  ;;  %v440_v46 = vld [vmem:[%s4434_s1 + $0xcd0] sm:$0xff]  ;;  %v2059_v9 = vpack.c.bf16 %v477_v1, %v473_v0 }
  0xd9   :  { %v2011_v36 = vpack.c.bf16 %v381_v27, %v377_v23  ;;  %v425_v27 = vld [vmem:[%s4434_s1 + $0xc58] sm:$0xff]  ;;  %v444_v47 = vld [vmem:[%s4434_s1 + $0xcf0] sm:$0xff] }
  0xda   :  { %v456_v54 = vld [vmem:[%s4434_s1 + $0xd50] sm:$0xff] }
  0xdb   :  { %1990 = vmatpush1.bf16.msra.mxu1 %v1989_v35  ;;  %2114 = vmatpush1.bf16.msra.mxu0 %v2113_v38  ;;  %v2133_v35 = vpack.c.bf16 %v1186_v26, %v1184_v25  ;;  %v2135_v38 = vpack.c.bf16 %v1191_v29, %v1189_v28  ;;  %v416_v25 = vld [vmem:[%s4434_s1 + $0xc10] sm:$0xff]  ;;  %v429_v28 = vld [vmem:[%s4434_s1 + $0xc78] sm:$0xff] }
  0xdc   :  { %1992 = vmatprep.subr.bf16.mxu1 %v1991_v39  ;;  %2116 = vmatprep.subr.bf16.mxu0 %v2115_v41  ;;  %v1188_v39 = vld [vmem:[%s4436_s3 + $0x140] sm:$0xff]  ;;  %v389_v41 = vld [vmem:[%s4434_s1 + $0xb38] sm:$0xff]  ;;  %v420_v26 = vld [vmem:[%s4434_s1 + $0xc30] sm:$0xff] }
  0xdd   :  { %v2015_v19 = vpack.c.bf16 %v389_v41, %v385_v37  ;;  %v2033_v29 = vpack.c.bf16 %v420_v26, %v416_v25  ;;  %v2280_v37 = vld [vmem:[%s4435_s0 + $0x10] sm:$0xff]  ;;  %v1213_v25 = vld [vmem:[%s4436_s3 + $0x208] sm:$0xff]  ;;  %v1215_v26 = vld [vmem:[%s4436_s3 + $0x218] sm:$0xff] }
  0xde   :  { %v436_v41 = vld [vmem:[%s4434_s1 + $0xcb0] sm:$0xff] }
  0xdf   :  { %1994 = vmatpush1.bf16.msra.mxu1 %v1993_v48  ;;  %2118 = vmatpush1.bf16.msra.mxu0 %v2117_v20  ;;  %v2137_v48 = vpack.c.bf16 %v1190_v40, %v1188_v39  ;;  %v2139_v20 = vpack.c.bf16 %v1195_v43, %v1193_v42  ;;  %v432_v40 = vld [vmem:[%s4434_s1 + $0xc90] sm:$0xff]  ;;  %v441_v42 = vld [vmem:[%s4434_s1 + $0xcd8] sm:$0xff] }
  0xe0   :  { %1996 = vmatprep.subr.bf16.mxu1 %v1995_v49  ;;  %2120 = vmatprep.subr.bf16.mxu0 %v2119_v30  ;;  %v1192_v49 = vld [vmem:[%s4436_s3 + $0x160] sm:$0xff]  ;;  %v397_v30 = vld [vmem:[%s4434_s1 + $0xb78] sm:$0xff]  ;;  %v460_v55 = vld [vmem:[%s4434_s1 + $0xd70] sm:$0xff] }
  0xe1   :  { %v2019_v56 = vpack.c.bf16 %v397_v30, %v393_v16  ;;  %v445_v43 = vld [vmem:[%s4434_s1 + $0xcf8] sm:$0xff]  ;;  %v2045_v16 = vpack.c.bf16 %v444_v47, %v440_v46  ;;  %v472_v10 = vld [vmem:[%s4434_s1 + $0xdd0] sm:$0xff] }
  0xe2   :  { %v457_v30 = vld [vmem:[%s4434_s1 + $0xd58] sm:$0xff]  ;;  %v540_v0 = vld [vmem:[%s4434_s1 + $0xff0] sm:$0xff] }
  0xe3   :  { %1998 = vmatpush1.bf16.msra.mxu1 %v1997_v33  ;;  %2122 = vmatpush1.bf16.msra.mxu0 %v2121_v58  ;;  %v2141_v33 = vpack.c.bf16 %v1194_v50, %v1192_v49  ;;  %v2143_v58 = vpack.c.bf16 %v1199_v52, %v1197_v51  ;;  %v448_v49 = vld [vmem:[%s4434_s1 + $0xd10] sm:$0xff]  ;;  %v461_v51 = vld [vmem:[%s4434_s1 + $0xd78] sm:$0xff] }
  0xe4   :  { %2000 = vmatprep.subr.bf16.mxu1 %v1999_v59  ;;  %2124 = vmatprep.subr.bf16.mxu0 %v2123_v61  ;;  %v1196_v59 = vld [vmem:[%s4436_s3 + $0x180] sm:$0xff]  ;;  %v405_v61 = vld [vmem:[%s4434_s1 + $0xbb8] sm:$0xff]  ;;  %v452_v50 = vld [vmem:[%s4434_s1 + $0xd30] sm:$0xff] }
  0xe5   :  { %v2023_v3 = vpack.c.bf16 %v405_v61, %v401_v57  ;;  %v2049_v52 = vpack.c.bf16 %v452_v50, %v448_v49  ;;  %v2053_v57 = vpack.c.bf16 %v460_v55, %v456_v54  ;;  %v464_v61 = vld [vmem:[%s4434_s1 + $0xd90] sm:$0xff]  ;;  %v513_v46 = vld [vmem:[%s4434_s1 + $0xf18] sm:$0xff] }
  0xe6   :  { %v517_v47 = vld [vmem:[%s4434_s1 + $0xf38] sm:$0xff] }
  0xe7   :  { %2002 = vmatpush1.bf16.msra.mxu1 %v2001_v2  ;;  %2126 = vmatpush1.bf16.msra.mxu0 %v2125_v5  ;;  %v2145_v2 = vpack.c.bf16 %v1198_v60, %v1196_v59  ;;  %v2147_v5 = vpack.c.bf16 %v1203_v62, %v1201_v22  ;;  %v1206_v59 = vld [vmem:[%s4436_s3 + $0x1d0] sm:$0xff]  ;;  %v521_v49 = vld [vmem:[%s4434_s1 + $0xf58] sm:$0xff] }
  0xe8   :  { %2004 = vmatprep.subr.bf16.mxu1 %v2003_v6  ;;  %2128 = vmatprep.subr.bf16.mxu0 %v2127_v8  ;;  %v1200_v6 = vld [vmem:[%s4436_s3 + $0x1a0] sm:$0xff]  ;;  %v413_v8 = vld [vmem:[%s4434_s1 + $0xbf8] sm:$0xff]  ;;  %v468_v22 = vld [vmem:[%s4434_s1 + $0xdb0] sm:$0xff] }
  0xe9   :  { %v2149_v12 = vpack.c.bf16 %v1202_v7, %v1200_v6  ;;  %v2027_v13 = vpack.c.bf16 %v413_v8, %v409_v4  ;;  %v1211_v4 = vld [vmem:[%s4436_s3 + $0x1f8] sm:$0xff]  ;;  %v1208_v7 = vld [vmem:[%s4436_s3 + $0x1e0] sm:$0xff]  ;;  %v1210_v8 = vld [vmem:[%s4436_s3 + $0x1f0] sm:$0xff] }
  0xea   :  { %v525_v50 = vld [vmem:[%s4434_s1 + $0xf78] sm:$0xff] }
  0xeb   :  { %2006 = vmatpush1.bf16.msra.mxu1 %v2005_v14  ;;  %2130 = vmatpush1.bf16.msra.mxu0 %v2129_v18  ;;  %v408_v14 = vld [vmem:[%s4434_s1 + $0xbd0] sm:$0xff]  ;;  %v417_v18 = vld [vmem:[%s4434_s1 + $0xc18] sm:$0xff] }
  0xec   :  { %2008 = vmatprep.subr.bf16.mxu1 %v2007_v21  ;;  %2132 = vmatprep.subr.bf16.mxu0 %v2131_v24  ;;  %v421_v21 = vld [vmem:[%s4434_s1 + $0xc38] sm:$0xff]  ;;  %v2029_v23 = vpack.c.bf16 %v412_v15, %v408_v14 }
  0xed   :  { %v2031_v24 = vpack.c.bf16 %v421_v21, %v417_v18  ;;  %v485_v14 = vld [vmem:[%s4434_s1 + $0xe38] sm:$0xff]  ;;  %v480_v18 = vld [vmem:[%s4434_s1 + $0xe10] sm:$0xff] }
  0xee   :  { %v484_v21 = vld [vmem:[%s4434_s1 + $0xe30] sm:$0xff]  ;;  %v529_v54 = vld [vmem:[%s4434_s1 + $0xf98] sm:$0xff] }
  0xef   :  { %2010 = vmatpush1.bf16.msra.mxu1 %v2009_v31  ;;  %2134 = vmatpush1.bf16.msra.mxu0 %v2133_v35  ;;  %v2035_v31 = vpack.c.bf16 %v429_v28, %v425_v27  ;;  %v433_v35 = vld [vmem:[%s4434_s1 + $0xc98] sm:$0xff]  ;;  %v2159_v27 = vpack.c.bf16 %v1215_v26, %v1213_v25  ;;  %v2065_v28 = vpack.c.bf16 %v484_v21, %v480_v18  ;;  %v1214_v18 = vld [vmem:[%s4436_s3 + $0x210] sm:$0xff] }
  0xf0   :  { %2012 = vmatprep.subr.bf16.mxu1 %v2011_v36  ;;  %2136 = vmatprep.subr.bf16.mxu0 %v2135_v38  ;;  %v437_v36 = vld [vmem:[%s4434_s1 + $0xcb8] sm:$0xff]  ;;  %v2037_v38 = vpack.c.bf16 %v428_v34, %v424_v32  ;;  %v492_v32 = vld [vmem:[%s4434_s1 + $0xe70] sm:$0xff] }
  0xf1   :  { %v2039_v39 = vpack.c.bf16 %v437_v36, %v433_v35  ;;  %v497_v34 = vld [vmem:[%s4434_s1 + $0xe98] sm:$0xff] }
  0xf2   :  { %v501_v35 = vld [vmem:[%s4434_s1 + $0xeb8] sm:$0xff] }
  0xf3   :  { %2014 = vmatpush1.bf16.msra.mxu1 %v2013_v45  ;;  %2138 = vmatpush1.bf16.msra.mxu0 %v2137_v48  ;;  %v2043_v45 = vpack.c.bf16 %v445_v43, %v441_v42  ;;  %v449_v48 = vld [vmem:[%s4434_s1 + $0xd18] sm:$0xff] }
  0xf4   :  { %2016 = vmatprep.subr.bf16.mxu1 %v2015_v19  ;;  %2140 = vmatprep.subr.bf16.mxu0 %v2139_v20  ;;  %v453_v19 = vld [vmem:[%s4434_s1 + $0xd38] sm:$0xff] }
  0xf5   :  { %v2047_v20 = vpack.c.bf16 %v453_v19, %v449_v48  ;;  %v2079_v19 = vpack.c.bf16 %v517_v47, %v513_v46  ;;  %v533_v55 = vld [vmem:[%s4434_s1 + $0xfb8] sm:$0xff]  ;;  %v1434_v46 = vld [vmem:[%s4438_s5 + $0x10] sm:$0xff] }
  0xf6   :  { %v1435_v47 = vld [vmem:[%s4438_s5 + $0x18] sm:$0xff] }
  0xf7   :  { %2018 = vmatpush1.bf16.msra.mxu1 %v2017_v53  ;;  %2142 = vmatpush1.bf16.msra.mxu0 %v2141_v33  ;;  %v2051_v53 = vpack.c.bf16 %v461_v51, %v457_v30  ;;  %v465_v33 = vld [vmem:[%s4434_s1 + $0xd98] sm:$0xff]  ;;  %v2083_v51 = vpack.c.bf16 %v525_v50, %v521_v49  ;;  %v2229_v49 = vpack.c.bf16 %v1435_v47, %v1434_v46  ;;  %v1245_v46 = vld [vmem:[%s4436_s3 + $0x308] sm:$0xff] }
  0xf8   :  { %2020 = vmatprep.subr.bf16.mxu1 %v2019_v56  ;;  %2144 = vmatprep.subr.bf16.mxu0 %v2143_v58  ;;  %v469_v56 = vld [vmem:[%s4434_s1 + $0xdb8] sm:$0xff]  ;;  %v1204_v58 = vld [vmem:[%s4436_s3 + $0x1c0] sm:$0xff] }
  0xf9   :  { %v2055_v60 = vpack.c.bf16 %v469_v56, %v465_v33  ;;  %v2153_v62 = vpack.c.bf16 %v1206_v59, %v1204_v58  ;;  %v2087_v56 = vpack.c.bf16 %v533_v55, %v529_v54  ;;  %v532_v58 = vld [vmem:[%s4434_s1 + $0xfb0] sm:$0xff]  ;;  %v537_v59 = vld [vmem:[%s4434_s1 + $0xfd8] sm:$0xff] }
  0xfa   :  { %v1226_v55 = vld [vmem:[%s4436_s3 + $0x270] sm:$0xff]  ;;  %v1247_v47 = vld [vmem:[%s4436_s3 + $0x318] sm:$0xff] }
  0xfb   :  { %2022 = vmatpush1.bf16.msra.mxu1 %v2021_v63  ;;  %2146 = vmatpush1.bf16.msra.mxu0 %v2145_v2 }
  0xfc   :  { %2024 = vmatprep.subr.bf16.mxu1 %v2023_v3  ;;  %2148 = vmatprep.subr.bf16.mxu0 %v2147_v5  ;;  %v1209_v3 = vld [vmem:[%s4436_s3 + $0x1e8] sm:$0xff]  ;;  %v2057_v5 = vpack.c.bf16 %v468_v22, %v464_v61 }
  0xfd   :  { %v2155_v6 = vpack.c.bf16 %v1211_v4, %v1209_v3  ;;  %v2281_v3 = vld [vmem:[%s4435_s0 + $0x18] sm:$0xff]  ;;  %v544_v4 = vlaneseq }
  0xff   :  { %2026 = vmatpush1.bf16.msra.mxu1 %v2025_v11  ;;  %2150 = vmatpush1.bf16.msra.mxu0 %v2149_v12  ;;  %v476_v11 = vld [vmem:[%s4434_s1 + $0xdf0] sm:$0xff]  ;;  %v2157_v12 = vpack.c.bf16 %v1210_v8, %v1208_v7  ;;  %v4124_v7 = vld [vmem:[%s4437_s2] sm:$0xf] }
 0x100   :  { %2028 = vmatprep.subr.bf16.mxu1 %v2027_v13  ;;  %2152 = vmatprep.subr.bf16.mxu0 %v2151_v17  ;;  %v481_v13 = vld [vmem:[%s4434_s1 + $0xe18] sm:$0xff]  ;;  %v2061_v15 = vpack.c.bf16 %v476_v11, %v472_v10 }
 0x101   :  { %v2063_v17 = vpack.c.bf16 %v485_v14, %v481_v13 }
 0x103   :  { %2030 = vmatpush1.bf16.msra.mxu1 %v2029_v23  ;;  %2154 = vmatpush1.bf16.msra.mxu0 %v2153_v62  ;;  %v489_v23 = vld [vmem:[%s4434_s1 + $0xe58] sm:$0xff]  ;;  %v536_v62 = vld [vmem:[%s4434_s1 + $0xfd0] sm:$0xff] }
 0x104   :  { %2032 = vmatprep.subr.bf16.mxu1 %v2031_v24  ;;  %2156 = vmatprep.subr.bf16.mxu0 %v2155_v6  ;;  %v493_v24 = vld [vmem:[%s4434_s1 + $0xe78] sm:$0xff]  ;;  %v2093_v1 = vpack.c.bf16 %v540_v0, %v536_v62  ;;  %v1438_v62 = vld [vmem:[%s4438_s5 + $0x30] sm:$0xff] }
 0x105   :  { %v1439_v0 = vld [vmem:[%s4438_s5 + $0x38] sm:$0xff] }
 0x106   :  { %1067 = vmatmul.mubr.f32.vlgmr.msra.gmra.mrb[2].mxu1 %v2280_v37  ;;  %v2071_v37 = vpack.c.bf16 %v501_v35, %v497_v34  ;;  %v1222_v34 = vld [vmem:[%s4436_s3 + $0x250] sm:$0xff]  ;;  %v1448_v35 = vld [vmem:[%s4438_s5 + $0x80] sm:$0xff] }
 0x107   :  { %2034 = vmatpush1.bf16.msra.mxu1 %v2033_v29  ;;  %1137 = vmatprep.mubr.f32.mxu1 %v3184_v44  ;;  %v2041_v44 = vpack.c.bf16 %v436_v41, %v432_v40  ;;  %v2067_v29 = vpack.c.bf16 %v493_v24, %v489_v23  ;;  %v505_v40 = vld [vmem:[%s4434_s1 + $0xed8] sm:$0xff]  ;;  %v1217_v23 = vld [vmem:[%s4436_s3 + $0x228] sm:$0xff] }
 0x108   :  { %2036 = vmatprep.subr.bf16.mxu1 %v2035_v31  ;;  %2158 = vmatpush1.bf16.msra.mxu0 %v2157_v12  ;;  %v488_v31 = vld [vmem:[%s4434_s1 + $0xe50] sm:$0xff]  ;;  %v509_v41 = vld [vmem:[%s4434_s1 + $0xef8] sm:$0xff] }
 0x109   :  { %2160 = vmatprep.subr.bf16.mxu0 %v2159_v27  ;;  %v2069_v36 = vpack.c.bf16 %v492_v32, %v488_v31  ;;  %v2075_v43 = vpack.c.bf16 %v509_v41, %v505_v40  ;;  %v1216_v27 = vld [vmem:[%s4436_s3 + $0x220] sm:$0xff]  ;;  %v1223_v31 = vld [vmem:[%s4436_s3 + $0x258] sm:$0xff]  ;;  %v1433_v40 = vld [vmem:[%s4438_s5 + $0x8] sm:$0xff] }
 0x10a   :  { %v1220_v32 = vld [vmem:[%s4436_s3 + $0x240] sm:$0xff]  ;;  %v1450_v41 = vld [vmem:[%s4438_s5 + $0x90] sm:$0xff] }
 0x10b   :  { %2038 = vmatpush1.bf16.msra.mxu1 %v2037_v38  ;;  %v496_v38 = vld [vmem:[%s4434_s1 + $0xe90] sm:$0xff]  ;;  %v2169_v50 = vpack.c.bf16 %v1222_v34, %v1220_v32  ;;  %v1443_v32 = vld [vmem:[%s4438_s5 + $0x58] sm:$0xff] }
 0x10c   :  { %2040 = vmatprep.subr.bf16.mxu1 %v2039_v39  ;;  %v500_v39 = vld [vmem:[%s4434_s1 + $0xeb0] sm:$0xff] }
 0x10d   :  { %v2073_v42 = vpack.c.bf16 %v500_v39, %v496_v38 }
 0x10f   :  { %2042 = vmatpush1.bf16.msra.mxu1 %v2041_v44  ;;  %v504_v44 = vld [vmem:[%s4434_s1 + $0xed0] sm:$0xff] }
 0x110   :  { %2044 = vmatprep.subr.bf16.mxu1 %v2043_v45  ;;  %v508_v45 = vld [vmem:[%s4434_s1 + $0xef0] sm:$0xff] }
 0x111   :  { %v2077_v48 = vpack.c.bf16 %v508_v45, %v504_v44 }
 0x113   :  { %2046 = vmatpush1.bf16.msra.mxu1 %v2045_v16  ;;  %v512_v16 = vld [vmem:[%s4434_s1 + $0xf10] sm:$0xff] }
 0x114   :  { %2048 = vmatprep.subr.bf16.mxu1 %v2047_v20  ;;  %v516_v20 = vld [vmem:[%s4434_s1 + $0xf30] sm:$0xff] }
 0x115   :  { %v2081_v30 = vpack.c.bf16 %v516_v20, %v512_v16  ;;  %v1227_v16 = vld [vmem:[%s4436_s3 + $0x278] sm:$0xff]  ;;  %v1453_v20 = vld [vmem:[%s4438_s5 + $0xa8] sm:$0xff] }
 0x117   :  { %2050 = vmatpush1.bf16.msra.mxu1 %v2049_v52  ;;  %v520_v52 = vld [vmem:[%s4434_s1 + $0xf50] sm:$0xff] }
 0x118   :  { %2052 = vmatprep.subr.bf16.mxu1 %v2051_v53  ;;  %v524_v53 = vld [vmem:[%s4434_s1 + $0xf70] sm:$0xff] }
 0x119   :  { %v3985_v63 = vpop.f32.mrb[0].mxu1  ;;  %v2085_v33 = vpack.c.bf16 %v524_v53, %v520_v52  ;;  %v1436_v52 = vld [vmem:[%s4438_s5 + $0x20] sm:$0xff]  ;;  %v1437_v53 = vld [vmem:[%s4438_s5 + $0x28] sm:$0xff] }
 0x11a   :  { %v3993_v2 = vpop.f32.mrb[1].mxu1 }
 0x11b   :  { %2054 = vmatpush1.bf16.msra.mxu1 %v2053_v57  ;;  %v528_v57 = vld [vmem:[%s4434_s1 + $0xf90] sm:$0xff] }
 0x11c   :  { %2056 = vmatprep.subr.bf16.mxu1 %v2055_v60  ;;  %v541_v60 = vld [vmem:[%s4434_s1 + $0xff8] sm:$0xff]  ;;  %v2089_v61 = vpack.c.bf16 %v532_v58, %v528_v57  ;;  %v1229_v57 = vld [vmem:[%s4436_s3 + $0x288] sm:$0xff] }
 0x11d   :  { %v2091_v22 = vpack.c.bf16 %v541_v60, %v537_v59  ;;  %v1231_v58 = vld [vmem:[%s4436_s3 + $0x298] sm:$0xff]  ;;  %v2233_v59 = vpack.c.bf16 %v1437_v53, %v1436_v52  ;;  %v1248_v52 = vld [vmem:[%s4436_s3 + $0x320] sm:$0xff]  ;;  %v1250_v53 = vld [vmem:[%s4436_s3 + $0x330] sm:$0xff] }
 0x11f   :  { %2058 = vmatpush1.bf16.msra.mxu1 %v2057_v5  ;;  %v4118_v5 = vshrl.u32 %v544_v4, 7  ;;  %v1456_v4 = vld [vmem:[%s4438_s5 + $0xc0] sm:$0xff] }
 0x120   :  { %2060 = vmatprep.subr.bf16.mxu1 %v2059_v9 }
 0x121   :  { %v546_v6 = vsub.s32 0, %v4118_v5  ;;  %v550_v8 = vsub.s32 1, %v4118_v5 }
 0x123   :  { %2062 = vmatpush1.bf16.msra.mxu1 %v2061_v15  ;;  %v547_v9 = vrot.slane %v4124_v7, %v546_v6  ;;  %v551_v10 = vrot.slane %v4124_v7, %v550_v8 }
 0x124   :  { %2064 = vmatprep.subr.bf16.mxu1 %v2063_v17  ;;  %v1212_v17 = vld [vmem:[%s4436_s3 + $0x200] sm:$0xff] }
 0x125   :  { %v643_v11 = vadd.f32 %v3985_v63, %v547_v9  ;;  %v645_v12 = vadd.f32 %v3993_v2, %v551_v10  ;;  %v1219_v63 = vld [vmem:[%s4436_s3 + $0x238] sm:$0xff]  ;;  %v2161_v24 = vpack.c.bf16 %v1214_v18, %v1212_v17  ;;  %v1457_v9 = vld [vmem:[%s4438_s5 + $0xc8] sm:$0xff]  ;;  %v1440_v17 = vld [vmem:[%s4438_s5 + $0x40] sm:$0xff] }
 0x126   :  { %v2163_v26 = vpack.c.bf16 %v1219_v63, %v1217_v23  ;;  %v1233_v10 = vld [vmem:[%s4436_s3 + $0x2a8] sm:$0xff]  ;;  %v1234_v23 = vld [vmem:[%s4436_s3 + $0x2b0] sm:$0xff] }
 0x127   :  { %2066 = vmatpush1.bf16.msra.mxu1 %v2065_v28  ;;  %v1218_v28 = vld [vmem:[%s4436_s3 + $0x230] sm:$0xff]  ;;  %v1441_v18 = vld [vmem:[%s4438_s5 + $0x48] sm:$0xff] }
 0x128   :  { %2068 = vmatprep.subr.bf16.mxu1 %v2067_v29  ;;  %v1221_v29 = vld [vmem:[%s4436_s3 + $0x248] sm:$0xff]  ;;  %v2165_v38 = vpack.c.bf16 %v1218_v28, %v1216_v27  ;;  %v1458_v63 = vld [vmem:[%s4438_s5 + $0xd0] sm:$0xff]  ;;  %v1236_v28 = vld [vmem:[%s4436_s3 + $0x2c0] sm:$0xff] }
 0x12b   :  { %2070 = vmatpush1.bf16.msra.mxu1 %v2069_v36  ;;  %v1449_v36 = vld [vmem:[%s4438_s5 + $0x88] sm:$0xff] }
 0x12c   :  { %2072 = vmatprep.subr.bf16.mxu1 %v2071_v37  ;;  %v1432_v37 = vld [vmem:[%s4438_s5] sm:$0xff]  ;;  %v2223_v39 = vpack.c.bf16 %v1449_v36, %v1448_v35  ;;  %v1238_v35 = vld [vmem:[%s4436_s3 + $0x2d0] sm:$0xff] }
 0x12d   :  { %v2225_v44 = vpack.c.bf16 %v1433_v40, %v1432_v37  ;;  %v1460_v36 = vld [vmem:[%s4438_s5 + $0xe0] sm:$0xff]  ;;  %v1461_v37 = vld [vmem:[%s4438_s5 + $0xe8] sm:$0xff] }
 0x12f   :  { %2074 = vmatpush1.bf16.msra.mxu1 %v2073_v42  ;;  %v1451_v42 = vld [vmem:[%s4438_s5 + $0x98] sm:$0xff] }
 0x130   :  { %2076 = vmatprep.subr.bf16.mxu1 %v2075_v43  ;;  %v2167_v43 = vpack.c.bf16 %v1223_v31, %v1221_v29  ;;  %v2227_v45 = vpack.c.bf16 %v1451_v42, %v1450_v41  ;;  %v1442_v31 = vld [vmem:[%s4438_s5 + $0x50] sm:$0xff]  ;;  %v2185_v41 = vpack.c.bf16 %v1238_v35, %v1236_v28  ;;  %v2247_v42 = vpack.c.bf16 %v1461_v37, %v1460_v36 }
 0x131   :  { %v2245_v40 = vpack.c.bf16 %v1443_v32, %v1442_v31  ;;  %v1272_v31 = vld [vmem:[%s4436_s3 + $0x3e0] sm:$0xff]  ;;  %v1274_v32 = vld [vmem:[%s4436_s3 + $0x3f0] sm:$0xff]  ;;  %v554_v35 = vsub.s32 2, %v4118_v5  ;;  %v558_v36 = vsub.s32 3, %v4118_v5 }
 0x133   :  { %2078 = vmatpush1.bf16.msra.mxu1 %v2077_v48  ;;  %v1452_v48 = vld [vmem:[%s4438_s5 + $0xa0] sm:$0xff]  ;;  %v555_v37 = vrot.slane %v4124_v7, %v554_v35 }
 0x134   :  { %2080 = vmatprep.subr.bf16.mxu1 %v2079_v19  ;;  %v1225_v19 = vld [vmem:[%s4436_s3 + $0x268] sm:$0xff] }
 0x135   :  { %v2171_v54 = vpack.c.bf16 %v1227_v16, %v1225_v19  ;;  %v2191_v19 = vpack.c.bf16 %v1247_v47, %v1245_v46  ;;  %v1244_v16 = vld [vmem:[%s4436_s3 + $0x300] sm:$0xff]  ;;  %v1445_v46 = vld [vmem:[%s4438_s5 + $0x68] sm:$0xff] }
 0x137   :  { %2082 = vmatpush1.bf16.msra.mxu1 %v2081_v30  ;;  %v1224_v30 = vld [vmem:[%s4436_s3 + $0x260] sm:$0xff] }
 0x138   :  { %2084 = vmatprep.subr.bf16.mxu1 %v2083_v51  ;;  %v2231_v51 = vpack.c.bf16 %v1453_v20, %v1452_v48  ;;  %v2173_v60 = vpack.c.bf16 %v1226_v55, %v1224_v30  ;;  %v1246_v20 = vld [vmem:[%s4436_s3 + $0x310] sm:$0xff]  ;;  %v1255_v55 = vld [vmem:[%s4436_s3 + $0x358] sm:$0xff] }
 0x139   :  { %v2193_v30 = vpack.c.bf16 %v1246_v20, %v1244_v16  ;;  %v1446_v16 = vld [vmem:[%s4438_s5 + $0x70] sm:$0xff]  ;;  %v1447_v20 = vld [vmem:[%s4438_s5 + $0x78] sm:$0xff] }
 0x13b   :  { %2086 = vmatpush1.bf16.msra.mxu1 %v2085_v33  ;;  %v1454_v33 = vld [vmem:[%s4438_s5 + $0xb0] sm:$0xff] }
 0x13c   :  { %2088 = vmatprep.subr.bf16.mxu1 %v2087_v56  ;;  %v1455_v56 = vld [vmem:[%s4438_s5 + $0xb8] sm:$0xff] }
 0x13f   :  { %2090 = vmatpush1.bf16.msra.mxu1 %v2089_v61  ;;  %v1228_v61 = vld [vmem:[%s4436_s3 + $0x280] sm:$0xff] }
 0x140   :  { %2092 = vmatprep.subr.bf16.mxu1 %v2091_v22  ;;  %v2235_v22 = vpack.c.bf16 %v1455_v56, %v1454_v33  ;;  %v2197_v33 = vpack.c.bf16 %v1250_v53, %v1248_v52 }
 0x143   :  { %2094 = vmatpush1.bf16.msra.mxu1 %v2093_v1  ;;  %v2175_v1 = vpack.c.bf16 %v1231_v58, %v1229_v57  ;;  %v1252_v57 = vld [vmem:[%s4436_s3 + $0x340] sm:$0xff]  ;;  %v1254_v58 = vld [vmem:[%s4436_s3 + $0x350] sm:$0xff] }
 0x144   :  { %2224 = vmatprep.subr.bf16.mxu1 %v2223_v39  ;;  %v1243_v39 = vld [vmem:[%s4436_s3 + $0x2f8] sm:$0xff] }
 0x146   :  { %1138 = vmatmul.mubr.f32.vlgmr.msra.gmra.mrb[2].mxu1 %v2281_v3  ;;  %v1230_v3 = vld [vmem:[%s4436_s3 + $0x290] sm:$0xff] }
 0x147   :  { %2226 = vmatpush3.bf16.msra.mxu1 %v2225_v44  ;;  %v1240_v44 = vld [vmem:[%s4436_s3 + $0x2e0] sm:$0xff] }
 0x148   :  { %2228 = vmatprep.subr.bf16.mxu1 %v2227_v45  ;;  %v1242_v45 = vld [vmem:[%s4436_s3 + $0x2f0] sm:$0xff] }
 0x149   :  { %v2189_v48 = vpack.c.bf16 %v1242_v45, %v1240_v44  ;;  %v1444_v45 = vld [vmem:[%s4438_s5 + $0x60] sm:$0xff] }
 0x14a   :  { %v2249_v47 = vpack.c.bf16 %v1445_v46, %v1444_v45 }
 0x14b   :  { %2230 = vmatpush3.bf16.msra.mxu1 %v2229_v49  ;;  %v1249_v49 = vld [vmem:[%s4436_s3 + $0x328] sm:$0xff] }
 0x14c   :  { %2232 = vmatprep.subr.bf16.mxu1 %v2231_v51 }
 0x14f   :  { %2234 = vmatpush3.bf16.msra.mxu1 %v2233_v59  ;;  %v1257_v59 = vld [vmem:[%s4436_s3 + $0x368] sm:$0xff] }
 0x150   :  { %2236 = vmatprep.subr.bf16.mxu1 %v2235_v22 }
 0x19b   :  { %v855_v13 = vpop.f32.mrb[0].mxu0 }
 0x19c   :  { %v2256_v14 = vadd.f32 %v855_v13, %v643_v11  ;;  %v857_v15 = vpop.f32.mrb[1].mxu0  ;;  %v1235_v11 = vld [vmem:[%s4436_s3 + $0x2b8] sm:$0xff]  ;;  %v2177_v13 = vpack.c.bf16 %v1230_v3, %v1228_v61  ;;  %v2201_v61 = vpack.c.bf16 %v1254_v58, %v1252_v57  ;;  %v1547_v58 = vld [vmem:[%s4440_s6] ss:$0 sm:$0xff] }
 0x19d   :  { %v2258_v21 = vadd.f32 %v857_v15, %v645_v12  ;;  %v2237_v12 = vpack.c.bf16 %v1439_v0, %v1438_v62  ;;  %v2239_v15 = vpack.c.bf16 %v1457_v9, %v1456_v4  ;;  %v1256_v62 = vld [vmem:[%s4436_s3 + $0x360] sm:$0xff]  ;;  %v1258_v0 = vld [vmem:[%s4436_s3 + $0x370] sm:$0xff]  ;;  %v1263_v3 = vld [vmem:[%s4436_s3 + $0x398] sm:$0xff] }
 0x19e   :  { %v1144_v25 = vmax.f32 %v2256_v14, 0.0  ;;  %v1232_v14 = vld [vmem:[%s4436_s3 + $0x2a0] sm:$0xff]  ;;  %v2205_v4 = vpack.c.bf16 %v1258_v0, %v1256_v62 }
 0x19f   :  { %v1145_v2 = vmax.f32 %v2258_v21, 0.0  ;;  %v2179_v21 = vpack.c.bf16 %v1235_v11, %v1233_v10  ;;  %2238 = vmatpush3.bf16.msra.mxu1 %v2237_v12  ;;  %v2181_v27 = vpack.c.bf16 %v1234_v23, %v1232_v14  ;;  %v1260_v10 = vld [vmem:[%s4436_s3 + $0x380] sm:$0xff]  ;;  %v1262_v11 = vld [vmem:[%s4436_s3 + $0x390] sm:$0xff]  ;;  %v1265_v12 = vld [vmem:[%s4436_s3 + $0x3a8] sm:$0xff] }
 0x1a0   :  { %2240 = vmatprep.subr.bf16.mxu1 %v2239_v15  ;;  %v2209_v14 = vpack.c.bf16 %v1262_v11, %v1260_v10  ;;  %v1271_v23 = vld [vmem:[%s4436_s3 + $0x3d8] sm:$0xff] }
 0x1a1   :  { %1352 = vmatprep.mubr.f32.mxu0 %v1145_v2  ;;  %v1459_v2 = vld [vmem:[%s4438_s5 + $0xd8] sm:$0xff] }
 0x1a2   :  { %1353 = vmatmul.mubr.f32.vlgmr.msra.gmra.mrb[2].mxu0 %v1144_v25  ;;  %v1239_v25 = vld [vmem:[%s4436_s3 + $0x2d8] sm:$0xff]  ;;  %v2243_v29 = vpack.c.bf16 %v1459_v2, %v1458_v63 }
 0x1a3   :  { %2162 = vmatpush1.bf16.msra.mxu0 %v2161_v24  ;;  %v1237_v24 = vld [vmem:[%s4436_s3 + $0x2c8] sm:$0xff] }
 0x1a4   :  { %2164 = vmatprep.subr.bf16.mxu0 %v2163_v26  ;;  %v2241_v26 = vpack.c.bf16 %v1441_v18, %v1440_v17  ;;  %v2183_v34 = vpack.c.bf16 %v1239_v25, %v1237_v24  ;;  %v1264_v17 = vld [vmem:[%s4436_s3 + $0x3a0] sm:$0xff]  ;;  %v1266_v18 = vld [vmem:[%s4436_s3 + $0x3b0] sm:$0xff] }
 0x1a5   :  { %v2213_v63 = vpack.c.bf16 %v1266_v18, %v1264_v17  ;;  %v1268_v24 = vld [vmem:[%s4436_s3 + $0x3c0] sm:$0xff]  ;;  %v1270_v25 = vld [vmem:[%s4436_s3 + $0x3d0] sm:$0xff] }
 0x1a6   :  { %2242 = vmatpush3.bf16.msra.mxu1 %v2241_v26  ;;  %v1273_v26 = vld [vmem:[%s4436_s3 + $0x3e8] sm:$0xff]  ;;  %v2217_v28 = vpack.c.bf16 %v1270_v25, %v1268_v24 }
 0x1a7   :  { %2166 = vmatpush1.bf16.msra.mxu0 %v2165_v38  ;;  %v1241_v38 = vld [vmem:[%s4436_s3 + $0x2e8] sm:$0xff]  ;;  %2244 = vmatprep.subr.bf16.mxu1 %v2243_v29 }
 0x1a8   :  { %2168 = vmatprep.subr.bf16.mxu0 %v2167_v43  ;;  %v2187_v43 = vpack.c.bf16 %v1243_v39, %v1241_v38  ;;  %v559_v38 = vrot.slane %v4124_v7, %v558_v36  ;;  %v1462_v7 = vld [vmem:[%s4438_s5 + $0xf0] sm:$0xff] }
 0x1aa   :  { %2246 = vmatpush3.bf16.msra.mxu1 %v2245_v40 }
 0x1ab   :  { %2170 = vmatpush1.bf16.msra.mxu0 %v2169_v50  ;;  %2248 = vmatprep.subr.bf16.mxu1 %v2247_v42  ;;  %v1251_v50 = vld [vmem:[%s4436_s3 + $0x338] sm:$0xff] }
 0x1ac   :  { %2172 = vmatprep.subr.bf16.mxu0 %v2171_v54  ;;  %v2195_v51 = vpack.c.bf16 %v1251_v50, %v1249_v49  ;;  %v1253_v54 = vld [vmem:[%s4436_s3 + $0x348] sm:$0xff]  ;;  %v2253_v49 = vpack.c.bf16 %v1447_v20, %v1446_v16  ;;  %v1276_v50 = vld [vmem:[%s4439_s4] sm:$0x3] }
 0x1ad   :  { %v2199_v56 = vpack.c.bf16 %v1255_v55, %v1253_v54 }
 0x1ae   :  { %2250 = vmatpush3.bf16.msra.mxu1 %v2249_v47 }
 0x1af   :  { %2174 = vmatpush1.bf16.msra.mxu0 %v2173_v60  ;;  %v1259_v60 = vld [vmem:[%s4436_s3 + $0x378] sm:$0xff] }
 0x1b0   :  { %2176 = vmatprep.subr.bf16.mxu0 %v2175_v1  ;;  %v2203_v22 = vpack.c.bf16 %v1259_v60, %v1257_v59  ;;  %v1261_v1 = vld [vmem:[%s4436_s3 + $0x388] sm:$0xff] }
 0x1b1   :  { %v2207_v9 = vpack.c.bf16 %v1263_v3, %v1261_v1 }
 0x1b3   :  { %2178 = vmatpush1.bf16.msra.mxu0 %v2177_v13  ;;  %v1267_v13 = vld [vmem:[%s4436_s3 + $0x3b8] sm:$0xff] }
 0x1b4   :  { %2180 = vmatprep.subr.bf16.mxu0 %v2179_v21  ;;  %v2211_v15 = vpack.c.bf16 %v1267_v13, %v1265_v12  ;;  %v1269_v21 = vld [vmem:[%s4436_s3 + $0x3c8] sm:$0xff] }
 0x1b5   :  { %v2215_v2 = vpack.c.bf16 %v1271_v23, %v1269_v21 }
 0x1b7   :  { %2182 = vmatpush1.bf16.msra.mxu0 %v2181_v27  ;;  %v1275_v27 = vld [vmem:[%s4436_s3 + $0x3f8] sm:$0xff] }
 0x1b8   :  { %2184 = vmatprep.subr.bf16.mxu0 %v2183_v34  ;;  %v2219_v29 = vpack.c.bf16 %v1275_v27, %v1273_v26  ;;  %v2221_v34 = vpack.c.bf16 %v1274_v32, %v1272_v31 }
 0x1bb   :  { %2186 = vmatpush1.bf16.msra.mxu0 %v2185_v41 }
 0x1bc   :  { %2188 = vmatprep.subr.bf16.mxu0 %v2187_v43 }
 0x1bf   :  { %2190 = vmatpush1.bf16.msra.mxu0 %v2189_v48  ;;  %v1463_v48 = vld [vmem:[%s4438_s5 + $0xf8] sm:$0xff] }
 0x1c0   :  { %2192 = vmatprep.subr.bf16.mxu0 %v2191_v19  ;;  %v2251_v19 = vpack.c.bf16 %v1463_v48, %v1462_v7 }
 0x1c2   :  { %2252 = vmatprep.subr.bf16.mxu1 %v2251_v19 }
 0x1c3   :  { %2194 = vmatpush1.bf16.msra.mxu0 %v2193_v30  ;;  %2254 = vmatpush3.bf16.msra.mxu1 %v2253_v49  ;;  %v1281_v30 = vrot.slane %v1276_v50, %v546_v6 }
 0x1c4   :  { %2196 = vmatprep.subr.bf16.mxu0 %v2195_v51  ;;  %v1285_v51 = vrot.slane %v1276_v50, %v550_v8 }
 0x1c7   :  { %2198 = vmatpush1.bf16.msra.mxu0 %v2197_v33 }
 0x1c8   :  { %2200 = vmatprep.subr.bf16.mxu0 %v2199_v56 }
 0x1cb   :  { %2202 = vmatpush1.bf16.msra.mxu0 %v2201_v61 }
 0x1cc   :  { %2204 = vmatprep.subr.bf16.mxu0 %v2203_v22 }
 0x1cf   :  { %2206 = vmatpush1.bf16.msra.mxu0 %v2205_v4 }
 0x1d0   :  { %2208 = vmatprep.subr.bf16.mxu0 %v2207_v9 }
 0x1d3   :  { %2210 = vmatpush1.bf16.msra.mxu0 %v2209_v14 }
 0x1d4   :  { %2212 = vmatprep.subr.bf16.mxu0 %v2211_v15 }
 0x1d7   :  { %2214 = vmatpush1.bf16.msra.mxu0 %v2213_v63 }
 0x1d8   :  { %2216 = vmatprep.subr.bf16.mxu0 %v2215_v2 }
 0x1db   :  { %2218 = vmatpush1.bf16.msra.mxu0 %v2217_v28 }
 0x1dc   :  { %2220 = vmatprep.subr.bf16.mxu0 %v2219_v29 }
 0x1df   :  { %2222 = vmatpush1.bf16.msra.mxu0 %v2221_v34 }
 0x219   :  { %v1139_v39 = vpop.f32.mrb[2].mxu1 }
 0x21a   :  { %v2259_v40 = vadd.f32 %v1139_v39, %v555_v37  ;;  %v1141_v41 = vpop.f32.mrb[3].mxu1 }
 0x21b   :  { %v2260_v42 = vadd.f32 %v1141_v41, %v559_v38 }
 0x21c   :  { %v1146_v44 = vmax.f32 %v2259_v40, 0.0 }
 0x21d   :  { %v1147_v43 = vmax.f32 %v2260_v42, 0.0 }
 0x21f   :  { %1423 = vmatprep.mubr.f32.mxu0 %v1147_v43 }
 0x220   :  { %1424 = vmatmul.mubr.f32.vlgmr.msra.gmra.mrb[2].mxu0 %v1146_v44 }
 0x2f3   :  { %v1425_v52 = vpop.f32.mrb[2].mxu0 }
 0x2f4   :  { %v2261_v53 = vadd.f32 %v1425_v52, %v1281_v30  ;;  %v1427_v54 = vpop.f32.mrb[3].mxu0 }
 0x2f5   :  { %v2262_v55 = vadd.f32 %v1427_v54, %v1285_v51 }
 0x2f6   :  { %v1430_v56 = vmax.f32 %v2261_v53, 0.0 }
 0x2f7   :  { %v1431_v33 = vmax.f32 %v2262_v55, 0.0 }
 0x2f9   :  { %1535 = vmatprep.mubr.f32.mxu1 %v1431_v33 }
 0x2fa   :  { %1536 = vmatmul.mubr.f32.vlgmr.msra.gmra.mrb[4].mxu1 %v1430_v56 }
 0x3cd   :  { %v1580_v57 = vpop.f32.mrb[4].mxu1 }
 0x3ce   :  { %v1581_v59 = vpop.f32.mrb[5].mxu1 }
 0x3cf   :  { %v1582_v60 = vadd.f32 %v1581_v59, %v1580_v57 }
 0x3d1   :  { %v1538_v6 = vadd.f32 %v1582_v60, %v1547_v58 }
 0x3d3   :  { %1542 = vst.msk [vmem:[%s4441_s7] sm:$0xf] %vm1541_vm0, %v1538_v6 }

</bundles_post_ra>
